<compile_context>
chip_gen: v7x
topology: tpu7x:2x2x1
jax: 0.10.0
libtpu: 0.0.40
codegen_flags: <defaults>
</compile_context>

<pallas_src>
import functools

import jax
import jax.numpy as jnp
from jax.experimental import pallas as pl
from jax.experimental.pallas import tpu as pltpu

_VMEM_LIMIT_BYTES = 32 * 1024 * 1024   # tiny working set; safe on v5e/v6e/v7x
_MM_DTYPE = jnp.bfloat16               # MXU input dtype (f32 accumulation)


# ----------------------------------------------------------------- in-kernel helpers

def _edge_masks(H, W):
    """Hoisted per-resolution column-validity masks (built once, reused by every
    conv at that resolution): {-1: x != 0, +1: x != W-1}, shape [1, H*W]."""
    col = jax.lax.broadcasted_iota(jnp.int32, (1, H * W), 1) % W
    return {-1: col > 0, 1: col < W - 1}


def _pad_lanes(v, W):
    """[C, H*W] -> [C, H*W + 2*(W+1)]: zero pad of W+1 on both lane ends so every
    3x3 tap (|shift| <= W+1) is a full-width contiguous static slice."""
    z = jnp.zeros((v.shape[0], W + 1), v.dtype)
    return jnp.concatenate([z, v, z], axis=1)


def _tap(vpad, s, hw, W):
    """tap[i] = v[i + s] (zero where i+s is outside [0, H*W)); full-width slice."""
    start = (W + 1) + s
    return vpad[:, start:start + hw]


def _conv3x3_acc(v, w_ref, dx_masks, *, W):
    """3x3 same-padding conv as 9 accumulated MXU matmuls (bf16 in, f32 acc).

    v: [Cin, H*W] f32 value; w_ref: [9, Cout, Cin] bf16 ref (tap-major blocks).
    Out-of-row reads come back as the padded zeros; out-of-column reads are zeroed
    with the hoisted dx masks.  Returns f32 [Cout, H*W] (no bias / ReLU)."""
    _, hw = v.shape
    vpad = _pad_lanes(v, W)
    acc = None
    t = 0
    for dy in (-1, 0, 1):
        for dx in (-1, 0, 1):
            tap = _tap(vpad, dy * W + dx, hw, W)
            if dx != 0:
                tap = jnp.where(dx_masks[dx], tap, 0.0)
            p = jnp.dot(w_ref[t], tap.astype(_MM_DTYPE),
                        preferred_element_type=jnp.float32)
            acc = p if acc is None else acc + p
            t += 1
    return acc


def _maxpool2x2(v, sel_ref, *, W):
    """2x2 / stride-2 max pool on a lane-dense [C, H*W] value: shift-max over the
    2x2 window, then gather the even-row/even-col positions with a 0/1 selection
    matmul (exact; runs on the idle MXU, avoids strided in-kernel reshapes)."""
    hw = v.shape[1]
    vpad = _pad_lanes(v, W)
    m = jnp.maximum(jnp.maximum(_tap(vpad, 0, hw, W), _tap(vpad, 1, hw, W)),
                    jnp.maximum(_tap(vpad, W, hw, W), _tap(vpad, W + 1, hw, W)))
    return jnp.dot(m.astype(_MM_DTYPE), sel_ref[...],
                   preferred_element_type=jnp.float32)


def _upsample2x(v, sel_ref):
    """Nearest-neighbour 2x upsample via a 0/1 replication matmul (exact)."""
    return jnp.dot(v.astype(_MM_DTYPE), sel_ref[...],
                   preferred_element_type=jnp.float32)


# ------------------------------------------------------------------ the fused kernel

def _unet_kernel(x_ref,
                 e1w1, e1b1, e1w2, e1b2,
                 e2w1, e2b1, e2w2, e2b2,
                 btw1, btb1, btw2, btb2,
                 d1wu, d1ws, d1b1, d1w2, d1b2,
                 d2wu, d2ws, d2b1, d2w2, d2b2,
                 fw, fb,
                 pool1_sel, pool2_sel, up1_sel, up2_sel,
                 o_ref, *, H, W):
    H2, W2 = H // 2, W // 2
    H4, W4 = H // 4, W // 4
    mk_f = _edge_masks(H, W)     # hoisted once per resolution, reused by all convs
    mk_h = _edge_masks(H2, W2)
    mk_q = _edge_masks(H4, W4)

    def conv_relu(v, w, b, masks, W_):
        return jnp.maximum(_conv3x3_acc(v, w, masks, W=W_) + b[...], 0.0)

    x = x_ref[...]                                                   # [Cin, H*W] f32

    # ------------------------------- encoder -------------------------------
    s1 = conv_relu(conv_relu(x, e1w1, e1b1, mk_f, W), e1w2, e1b2, mk_f, W)
    p1 = _maxpool2x2(s1, pool1_sel, W=W)
    s2 = conv_relu(conv_relu(p1, e2w1, e2b1, mk_h, W2), e2w2, e2b2, mk_h, W2)
    p2 = _maxpool2x2(s2, pool2_sel, W=W2)
    bt = conv_relu(conv_relu(p2, btw1, btb1, mk_q, W4), btw2, btb2, mk_q, W4)

    # ------------------------------- decoder -------------------------------
    # The channel-concat is never materialised: split-weight conv accumulation.
    u1 = _upsample2x(bt, up1_sel)
    h1 = jnp.maximum(_conv3x3_acc(u1, d1wu, mk_h, W=W2)
                     + _conv3x3_acc(s2, d1ws, mk_h, W=W2) + d1b1[...], 0.0)
    d1 = conv_relu(h1, d1w2, d1b2, mk_h, W2)

    u2 = _upsample2x(d1, up2_sel)
    h2 = jnp.maximum(_conv3x3_acc(u2, d2wu, mk_f, W=W)
                     + _conv3x3_acc(s1, d2ws, mk_f, W=W) + d2b1[...], 0.0)
    d2 = conv_relu(h2, d2w2, d2b2, mk_f, W)

    # final 1x1 projection fused as a matmul epilogue (lane-dense store)
    logits = jnp.dot(fw[...], d2.astype(_MM_DTYPE),
                     preferred_element_type=jnp.float32) + fb[...]
    o_ref[...] = logits.astype(o_ref.dtype)


# --------------------------------------------------------------------- host helpers

def _repack_w3x3(w_flat):
    """[Cout, 9*Cin] f32 -> [9, Cout, Cin] bf16 (tap-major, MXU-friendly blocks)."""
    cout, kcin = w_flat.shape
    cin = kcin // 9
    return jnp.transpose(w_flat.reshape(cout, 9, cin), (1, 0, 2)).astype(_MM_DTYPE)


def _pool_sel(H, W, dtype=_MM_DTYPE):
    """[H*W, (H//2)*(W//2)] 0/1 matrix: column j selects the top-left pixel of
    2x2 block j (applied after the in-kernel shift-max)."""
    Ho, Wo = H // 2, W // 2
    j = jnp.arange(Ho * Wo)
    src = 2 * (j // Wo) * W + 2 * (j % Wo)
    k = jnp.arange(H * W)
    return (k[:, None] == src[None, :]).astype(dtype)


def _up_sel(H, W, dtype=_MM_DTYPE):
    """[H*W, 4*H*W] 0/1 matrix implementing nearest-neighbour 2x upsampling."""
    Wo = 2 * W
    i = jnp.arange(4 * H * W)
    src = (i // Wo) // 2 * W + (i % Wo) // 2
    j = jnp.arange(H * W)
    return (j[:, None] == src[None, :]).astype(dtype)


def _param_spec(arr):
    zeros = (0,) * arr.ndim
    return pl.BlockSpec(arr.shape, lambda b, _z=zeros: _z)


# -------------------------------------------------------------------------- forward

def prompt_segmentation_forward(x_nchw, params):
    """[B, in_ch, H, W] (NCHW) -> [B, num_classes, H, W]. H, W must be multiples of 4."""
    B, cin, H, W = x_nchw.shape
    assert H % 4 == 0 and W % 4 == 0, "2-level UNet requires H, W divisible by 4"
    hw = H * W
    # Flattened NCHW is exactly the lane-dense [C, H*W] layout the kernel uses.
    x = x_nchw.reshape(B, cin, hw)

    pe1, pe2, pbt = params["enc1"], params["enc2"], params["bott"]
    pd1, pd2, pfi = params["dec1"], params["dec2"], params["final"]
    nclass = pfi["w"].shape[0]

    consts = [
        _repack_w3x3(pe1["w1"]), pe1["b1"], _repack_w3x3(pe1["w2"]), pe1["b2"],
        _repack_w3x3(pe2["w1"]), pe2["b1"], _repack_w3x3(pe2["w2"]), pe2["b2"],
        _repack_w3x3(pbt["w1"]), pbt["b1"], _repack_w3x3(pbt["w2"]), pbt["b2"],
        _repack_w3x3(pd1["w1u"]), _repack_w3x3(pd1["w1s"]), pd1["b1"],
        _repack_w3x3(pd1["w2"]), pd1["b2"],
        _repack_w3x3(pd2["w1u"]), _repack_w3x3(pd2["w1s"]), pd2["b1"],
        _repack_w3x3(pd2["w2"]), pd2["b2"],
        pfi["w"].astype(_MM_DTYPE), pfi["b"],
        _pool_sel(H, W), _pool_sel(H // 2, W // 2),
        _up_sel(H // 4, W // 4), _up_sel(H // 2, W // 2),
    ]

    out = pl.pallas_call(
        functools.partial(_unet_kernel, H=H, W=W),
        out_shape=jax.ShapeDtypeStruct((B, nclass, hw), x_nchw.dtype),
        grid=(B,),
        in_specs=[pl.BlockSpec((None, cin, hw), lambda b: (b, 0, 0))]
                 + [_param_spec(a) for a in consts],
        out_specs=pl.BlockSpec((None, nclass, hw), lambda b: (b, 0, 0)),
        compiler_params=pltpu.CompilerParams(
            dimension_semantics=("parallel",),
            vmem_limit_bytes=_VMEM_LIMIT_BYTES),
    )(x, *consts)

    # Spatial size is preserved exactly (H, W divisible by 4), so the reference
    # module's final resize to (original_h, original_w) is the identity here.
    return out.reshape(B, nclass, H, W)


# --------------------------------------------------------------------------- params

def _bias(cout):
    return jnp.linspace(-0.05, 0.05, cout, dtype=jnp.float32).reshape(cout, 1)


def _w3x3(key, cin, cout, fan_in=None):
    fan_in = cin if fan_in is None else fan_in
    scale = jnp.sqrt(2.0 / (9.0 * fan_in)).astype(jnp.float32)
    return jax.random.normal(key, (cout, 9 * cin), jnp.float32) * scale


def init_params(key, in_channels=4, out_channels=3, base=8):
    ks = jax.random.split(key, 13)
    c1, c2, c4 = base, base * 2, base * 4
    return {
        "enc1": {"w1": _w3x3(ks[0], in_channels, c1), "b1": _bias(c1),
                 "w2": _w3x3(ks[1], c1, c1), "b2": _bias(c1)},
        "enc2": {"w1": _w3x3(ks[2], c1, c2), "b1": _bias(c2),
                 "w2": _w3x3(ks[3], c2, c2), "b2": _bias(c2)},
        "bott": {"w1": _w3x3(ks[4], c2, c4), "b1": _bias(c4),
                 "w2": _w3x3(ks[5], c4, c4), "b2": _bias(c4)},
        "dec1": {"w1u": _w3x3(ks[6], c4, c2, fan_in=c4 + c2),
                 "w1s": _w3x3(ks[7], c2, c2, fan_in=c4 + c2), "b1": _bias(c2),
                 "w2": _w3x3(ks[8], c2, c2), "b2": _bias(c2)},
        "dec2": {"w1u": _w3x3(ks[9], c2, c1, fan_in=c2 + c1),
                 "w1s": _w3x3(ks[10], c1, c1, fan_in=c2 + c1), "b1": _bias(c1),
                 "w2": _w3x3(ks[11], c1, c1), "b2": _bias(c1)},
        "final": {"w": jax.random.normal(ks[12], (out_channels, c1), jnp.float32)
                       * jnp.sqrt(2.0 / c1).astype(jnp.float32),
                  "b": _bias(out_channels)},
    }


# ---------------------------------------------------------- plain-XLA reference (check)

def _ref_conv3x3(x, w_flat, b=None):
    cout, kcin = w_flat.shape
    cin = kcin // 9
    w_oihw = jnp.transpose(w_flat.reshape(cout, 3, 3, cin), (0, 3, 1, 2))
    y = jax.lax.conv_general_dilated(
        x.astype(_MM_DTYPE), w_oihw.astype(_MM_DTYPE), (1, 1), ((1, 1), (1, 1)),
        dimension_numbers=("NCHW", "OIHW", "NCHW"),
        preferred_element_type=jnp.float32)
    if b is not None:
        y = y + b.reshape(1, cout, 1, 1)
    return y


def _ref_forward(x, params):
    relu = lambda t: jnp.maximum(t, 0.0)

    def dconv(t, p):
        t = relu(_ref_conv3x3(t, p["w1"], p["b1"]))
        return relu(_ref_conv3x3(t, p["w2"], p["b2"]))

    def pool(t):
        B, C, H, W = t.shape
        return t.reshape(B, C, H // 2, 2, W // 2, 2).max(axis=(3, 5))

    def up2(t):
        return jnp.repeat(jnp.repeat(t, 2, axis=2), 2, axis=3)

    def dec(t_up, skip, p):
        h = relu(_ref_conv3x3(t_up, p["w1u"]) + _ref_conv3x3(skip, p["w1s"])
                 + p["b1"].reshape(1, -1, 1, 1))
        return relu(_ref_conv3x3(h, p["w2"], p["b2"]))

    s1 = dconv(x, params["enc1"])
    s2 = dconv(pool(s1), params["enc2"])
    bt = dconv(pool(s2), params["bott"])
    d1 = dec(up2(bt), s2, params["dec1"])
    d2 = dec(up2(d1), s1, params["dec2"])
    wf, bf = params["final"]["w"], params["final"]["b"]
    logits = jnp.einsum("oc,bchw->bohw", wf.astype(_MM_DTYPE), d2.astype(_MM_DTYPE),
                        preferred_element_type=jnp.float32)
    return logits + bf.reshape(1, -1, 1, 1)


# ----------------------------------------------------------------------------- main

if __name__ == "__main__":
    key = jax.random.PRNGKey(0)
    k_img, k_msk, k_par = jax.random.split(key, 3)

    B, H, W = 2, 16, 16
    in_channels, out_channels, base_channels = 4, 3, 8

    image = jax.random.normal(k_img, (B, 3, H, W), jnp.float32)
    prompt = (jax.random.uniform(k_msk, (B, 1, H, W)) > 0.5).astype(jnp.float32)
    x = jnp.concatenate([image, prompt], axis=1)      # [B, 4, H, W] NCHW, like PyTorch

    params = init_params(k_par, in_channels, out_channels, base_channels)

    fwd = jax.jit(prompt_segmentation_forward)
    out = jax.block_until_ready(fwd(x, params))

    assert out.shape == (B, out_channels, H, W), out.shape
    assert bool(jnp.all(jnp.isfinite(out)))

    # numerical self-check against a plain-XLA reference (same bf16-in / f32-acc
    # matmul precision as the kernel); much tighter than before.
    ref = jax.block_until_ready(jax.jit(_ref_forward)(x, params))
    err = float(jnp.max(jnp.abs(out - ref)))
    tol = 1e-2 * max(1.0, float(jnp.max(jnp.abs(ref))))
    assert err <= tol, f"kernel/reference mismatch: max|diff|={err:.4e} tol={tol:.4e}"

    print("KERNEL_OK")
</pallas_src>

<mosaic_0001>
module attributes {stable_mosaic.version = 11 : i64} {
  func.func @_unet_kernel(%arg0: i32, %arg1: memref<1x4x256xf32, #tpu.memory_space<vmem>>, %arg2: memref<9x8x4xbf16, #tpu.memory_space<vmem>>, %arg3: memref<8x1xf32, #tpu.memory_space<vmem>>, %arg4: memref<9x8x8xbf16, #tpu.memory_space<vmem>>, %arg5: memref<8x1xf32, #tpu.memory_space<vmem>>, %arg6: memref<9x16x8xbf16, #tpu.memory_space<vmem>>, %arg7: memref<16x1xf32, #tpu.memory_space<vmem>>, %arg8: memref<9x16x16xbf16, #tpu.memory_space<vmem>>, %arg9: memref<16x1xf32, #tpu.memory_space<vmem>>, %arg10: memref<9x32x16xbf16, #tpu.memory_space<vmem>>, %arg11: memref<32x1xf32, #tpu.memory_space<vmem>>, %arg12: memref<9x32x32xbf16, #tpu.memory_space<vmem>>, %arg13: memref<32x1xf32, #tpu.memory_space<vmem>>, %arg14: memref<9x16x32xbf16, #tpu.memory_space<vmem>>, %arg15: memref<9x16x16xbf16, #tpu.memory_space<vmem>>, %arg16: memref<16x1xf32, #tpu.memory_space<vmem>>, %arg17: memref<9x16x16xbf16, #tpu.memory_space<vmem>>, %arg18: memref<16x1xf32, #tpu.memory_space<vmem>>, %arg19: memref<9x8x16xbf16, #tpu.memory_space<vmem>>, %arg20: memref<9x8x8xbf16, #tpu.memory_space<vmem>>, %arg21: memref<8x1xf32, #tpu.memory_space<vmem>>, %arg22: memref<9x8x8xbf16, #tpu.memory_space<vmem>>, %arg23: memref<8x1xf32, #tpu.memory_space<vmem>>, %arg24: memref<3x8xbf16, #tpu.memory_space<vmem>>, %arg25: memref<3x1xf32, #tpu.memory_space<vmem>>, %arg26: memref<256x64xbf16, #tpu.memory_space<vmem>>, %arg27: memref<64x16xbf16, #tpu.memory_space<vmem>>, %arg28: memref<16x64xbf16, #tpu.memory_space<vmem>>, %arg29: memref<64x256xbf16, #tpu.memory_space<vmem>>, %arg30: memref<1x3x256xf32, #tpu.memory_space<vmem>>) attributes {dimension_semantics = [#tpu.dimension_semantics<parallel>], iteration_bounds = array<i64: 2>, scalar_prefetch = 0 : i64, scratch_operands = 0 : i64, tpu.core_type = #tpu.core_type<tc>, window_params = [{transform_indices = @transform_0, window_bounds = array<i64: 1, 4, 256>}, {pipeline_mode = #tpu.pipeline_mode<synchronous>, transform_indices = @transform_1, window_bounds = array<i64: 9, 8, 4>}, {pipeline_mode = #tpu.pipeline_mode<synchronous>, transform_indices = @transform_2, window_bounds = array<i64: 8, 1>}, {pipeline_mode = #tpu.pipeline_mode<synchronous>, transform_indices = @transform_3, window_bounds = array<i64: 9, 8, 8>}, {pipeline_mode = #tpu.pipeline_mode<synchronous>, transform_indices = @transform_4, window_bounds = array<i64: 8, 1>}, {pipeline_mode = #tpu.pipeline_mode<synchronous>, transform_indices = @transform_5, window_bounds = array<i64: 9, 16, 8>}, {pipeline_mode = #tpu.pipeline_mode<synchronous>, transform_indices = @transform_6, window_bounds = array<i64: 16, 1>}, {pipeline_mode = #tpu.pipeline_mode<synchronous>, transform_indices = @transform_7, window_bounds = array<i64: 9, 16, 16>}, {pipeline_mode = #tpu.pipeline_mode<synchronous>, transform_indices = @transform_8, window_bounds = array<i64: 16, 1>}, {pipeline_mode = #tpu.pipeline_mode<synchronous>, transform_indices = @transform_9, window_bounds = array<i64: 9, 32, 16>}, {pipeline_mode = #tpu.pipeline_mode<synchronous>, transform_indices = @transform_10, window_bounds = array<i64: 32, 1>}, {pipeline_mode = #tpu.pipeline_mode<synchronous>, transform_indices = @transform_11, window_bounds = array<i64: 9, 32, 32>}, {pipeline_mode = #tpu.pipeline_mode<synchronous>, transform_indices = @transform_12, window_bounds = array<i64: 32, 1>}, {pipeline_mode = #tpu.pipeline_mode<synchronous>, transform_indices = @transform_13, window_bounds = array<i64: 9, 16, 32>}, {pipeline_mode = #tpu.pipeline_mode<synchronous>, transform_indices = @transform_14, window_bounds = array<i64: 9, 16, 16>}, {pipeline_mode = #tpu.pipeline_mode<synchronous>, transform_indices = @transform_15, window_bounds = array<i64: 16, 1>}, {pipeline_mode = #tpu.pipeline_mode<synchronous>, transform_indices = @transform_16, window_bounds = array<i64: 9, 16, 16>}, {pipeline_mode = #tpu.pipeline_mode<synchronous>, transform_indices = @transform_17, window_bounds = array<i64: 16, 1>}, {pipeline_mode = #tpu.pipeline_mode<synchronous>, transform_indices = @transform_18, window_bounds = array<i64: 9, 8, 16>}, {pipeline_mode = #tpu.pipeline_mode<synchronous>, transform_indices = @transform_19, window_bounds = array<i64: 9, 8, 8>}, {pipeline_mode = #tpu.pipeline_mode<synchronous>, transform_indices = @transform_20, window_bounds = array<i64: 8, 1>}, {pipeline_mode = #tpu.pipeline_mode<synchronous>, transform_indices = @transform_21, window_bounds = array<i64: 9, 8, 8>}, {pipeline_mode = #tpu.pipeline_mode<synchronous>, transform_indices = @transform_22, window_bounds = array<i64: 8, 1>}, {pipeline_mode = #tpu.pipeline_mode<synchronous>, transform_indices = @transform_23, window_bounds = array<i64: 3, 8>}, {pipeline_mode = #tpu.pipeline_mode<synchronous>, transform_indices = @transform_24, window_bounds = array<i64: 3, 1>}, {pipeline_mode = #tpu.pipeline_mode<synchronous>, transform_indices = @transform_25, window_bounds = array<i64: 256, 64>}, {pipeline_mode = #tpu.pipeline_mode<synchronous>, transform_indices = @transform_26, window_bounds = array<i64: 64, 16>}, {pipeline_mode = #tpu.pipeline_mode<synchronous>, transform_indices = @transform_27, window_bounds = array<i64: 16, 64>}, {pipeline_mode = #tpu.pipeline_mode<synchronous>, transform_indices = @transform_28, window_bounds = array<i64: 64, 256>}, {transform_indices = @transform_29, window_bounds = array<i64: 1, 3, 256>}]} {
    %0 = tpu.iota {dimensions = array<i32: 1>} : vector<1x256xi32>
    %c16_i32 = arith.constant 16 : i32
    %c0_i32 = arith.constant 0 : i32
    %1 = arith.cmpi eq, %c16_i32, %c0_i32 : i32
    %c1_i32 = arith.constant 1 : i32
    %2 = arith.select %1, %c1_i32, %c16_i32 : i32
    %3 = vector.broadcast %2 : i32 to vector<1x256xi32>
    %4 = arith.remsi %0, %3 : vector<1x256xi32>
    %c0_i32_0 = arith.constant 0 : i32
    %5 = vector.broadcast %c0_i32_0 : i32 to vector<1x256xi32>
    %6 = arith.cmpi ne, %4, %5 : vector<1x256xi32>
    %c0_i32_1 = arith.constant 0 : i32
    %7 = vector.broadcast %c0_i32_1 : i32 to vector<1x256xi32>
    %8 = arith.cmpi slt, %4, %7 : vector<1x256xi32>
    %c0_i32_2 = arith.constant 0 : i32
    %9 = arith.cmpi slt, %2, %c0_i32_2 : i32
    %10 = vector.broadcast %9 : i1 to vector<1x256xi1>
    %11 = vector.broadcast %10 : vector<1x256xi1> to vector<1x256xi1>
    %12 = arith.xori %8, %11 : vector<1x256xi1>
    %13 = arith.andi %12, %6 : vector<1x256xi1>
    %14 = vector.broadcast %2 : i32 to vector<1x256xi32>
    %15 = arith.addi %4, %14 : vector<1x256xi32>
    %16 = arith.select %13, %15, %4 : vector<1x256xi1>, vector<1x256xi32>
    %c0_i32_3 = arith.constant 0 : i32
    %17 = vector.broadcast %c0_i32_3 : i32 to vector<1x256xi32>
    %18 = arith.cmpi sgt, %16, %17 : vector<1x256xi32>
    %c15_i32 = arith.constant 15 : i32
    %19 = vector.broadcast %c15_i32 : i32 to vector<1x256xi32>
    %20 = arith.cmpi slt, %16, %19 : vector<1x256xi32>
    %21 = tpu.iota {dimensions = array<i32: 1>} : vector<1x64xi32>
    %c8_i32 = arith.constant 8 : i32
    %c0_i32_4 = arith.constant 0 : i32
    %22 = arith.cmpi eq, %c8_i32, %c0_i32_4 : i32
    %c1_i32_5 = arith.constant 1 : i32
    %23 = arith.select %22, %c1_i32_5, %c8_i32 : i32
    %24 = vector.broadcast %23 : i32 to vector<1x64xi32>
    %25 = arith.remsi %21, %24 : vector<1x64xi32>
    %c0_i32_6 = arith.constant 0 : i32
    %26 = vector.broadcast %c0_i32_6 : i32 to vector<1x64xi32>
    %27 = arith.cmpi ne, %25, %26 : vector<1x64xi32>
    %c0_i32_7 = arith.constant 0 : i32
    %28 = vector.broadcast %c0_i32_7 : i32 to vector<1x64xi32>
    %29 = arith.cmpi slt, %25, %28 : vector<1x64xi32>
    %c0_i32_8 = arith.constant 0 : i32
    %30 = arith.cmpi slt, %23, %c0_i32_8 : i32
    %31 = vector.broadcast %30 : i1 to vector<1x64xi1>
    %32 = vector.broadcast %31 : vector<1x64xi1> to vector<1x64xi1>
    %33 = arith.xori %29, %32 : vector<1x64xi1>
    %34 = arith.andi %33, %27 : vector<1x64xi1>
    %35 = vector.broadcast %23 : i32 to vector<1x64xi32>
    %36 = arith.addi %25, %35 : vector<1x64xi32>
    %37 = arith.select %34, %36, %25 : vector<1x64xi1>, vector<1x64xi32>
    %c0_i32_9 = arith.constant 0 : i32
    %38 = vector.broadcast %c0_i32_9 : i32 to vector<1x64xi32>
    %39 = arith.cmpi sgt, %37, %38 : vector<1x64xi32>
    %c7_i32 = arith.constant 7 : i32
    %40 = vector.broadcast %c7_i32 : i32 to vector<1x64xi32>
    %41 = arith.cmpi slt, %37, %40 : vector<1x64xi32>
    %42 = tpu.iota {dimensions = array<i32: 1>} : vector<1x16xi32>
    %c4_i32 = arith.constant 4 : i32
    %c0_i32_10 = arith.constant 0 : i32
    %43 = arith.cmpi eq, %c4_i32, %c0_i32_10 : i32
    %c1_i32_11 = arith.constant 1 : i32
    %44 = arith.select %43, %c1_i32_11, %c4_i32 : i32
    %45 = vector.broadcast %44 : i32 to vector<1x16xi32>
    %46 = arith.remsi %42, %45 : vector<1x16xi32>
    %c0_i32_12 = arith.constant 0 : i32
    %47 = vector.broadcast %c0_i32_12 : i32 to vector<1x16xi32>
    %48 = arith.cmpi ne, %46, %47 : vector<1x16xi32>
    %c0_i32_13 = arith.constant 0 : i32
    %49 = vector.broadcast %c0_i32_13 : i32 to vector<1x16xi32>
    %50 = arith.cmpi slt, %46, %49 : vector<1x16xi32>
    %c0_i32_14 = arith.constant 0 : i32
    %51 = arith.cmpi slt, %44, %c0_i32_14 : i32
    %52 = vector.broadcast %51 : i1 to vector<1x16xi1>
    %53 = vector.broadcast %52 : vector<1x16xi1> to vector<1x16xi1>
    %54 = arith.xori %50, %53 : vector<1x16xi1>
    %55 = arith.andi %54, %48 : vector<1x16xi1>
    %56 = vector.broadcast %44 : i32 to vector<1x16xi32>
    %57 = arith.addi %46, %56 : vector<1x16xi32>
    %58 = arith.select %55, %57, %46 : vector<1x16xi1>, vector<1x16xi32>
    %c0_i32_15 = arith.constant 0 : i32
    %59 = vector.broadcast %c0_i32_15 : i32 to vector<1x16xi32>
    %60 = arith.cmpi sgt, %58, %59 : vector<1x16xi32>
    %c3_i32 = arith.constant 3 : i32
    %61 = vector.broadcast %c3_i32 : i32 to vector<1x16xi32>
    %62 = arith.cmpi slt, %58, %61 : vector<1x16xi32>
    %c0 = arith.constant 0 : index
    %c0_16 = arith.constant 0 : index
    %c0_17 = arith.constant 0 : index
    %63 = vector.load %arg1[%c0, %c0_16, %c0_17] : memref<1x4x256xf32, #tpu.memory_space<vmem>>, vector<1x4x256xf32>
    %64 = vector.shape_cast %63 : vector<1x4x256xf32> to vector<4x256xf32>
    %cst = arith.constant 0.000000e+00 : f32
    %65 = vector.broadcast %cst : f32 to vector<4x17xf32>
    %66 = tpu.concatenate %65, %64, %65 in 1 : vector<4x17xf32>, vector<4x256xf32>, vector<4x17xf32> -> vector<4x290xf32>
    %67 = vector.extract_strided_slice %66 {offsets = [0, 0], sizes = [4, 256], strides = [1, 1]} : vector<4x290xf32> to vector<4x256xf32>
    %cst_18 = arith.constant 0.000000e+00 : f32
    %68 = vector.shape_cast %18 : vector<1x256xi1> to vector<1x256xi1>
    %69 = vector.broadcast %68 : vector<1x256xi1> to vector<4x256xi1>
    %70 = vector.broadcast %cst_18 : f32 to vector<4x256xf32>
    %71 = arith.select %69, %67, %70 : vector<4x256xi1>, vector<4x256xf32>
    %c0_19 = arith.constant 0 : index
    %c0_20 = arith.constant 0 : index
    %c0_21 = arith.constant 0 : index
    %72 = vector.load %arg2[%c0_19, %c0_20, %c0_21] : memref<9x8x4xbf16, #tpu.memory_space<vmem>>, vector<1x8x4xbf16>
    %73 = vector.shape_cast %72 : vector<1x8x4xbf16> to vector<8x4xbf16>
    %74 = arith.truncf %71 : vector<4x256xf32> to vector<4x256xbf16>
    %cst_22 = arith.constant dense<0.000000e+00> : vector<8x256xf32>
    %75 = tpu.matmul %73, %74, %cst_22 {dimension_numbers = #tpu.dot_dimension_numbers<[1], [0], [0], [1], [0, 0, 1, 1], [], []>} : vector<8x4xbf16>, vector<4x256xbf16>, vector<8x256xf32> -> vector<8x256xf32>
    %76 = vector.extract_strided_slice %66 {offsets = [0, 1], sizes = [4, 256], strides = [1, 1]} : vector<4x290xf32> to vector<4x256xf32>
    %c1 = arith.constant 1 : index
    %c0_23 = arith.constant 0 : index
    %c0_24 = arith.constant 0 : index
    %77 = vector.load %arg2[%c1, %c0_23, %c0_24] : memref<9x8x4xbf16, #tpu.memory_space<vmem>>, vector<1x8x4xbf16>
    %78 = vector.shape_cast %77 : vector<1x8x4xbf16> to vector<8x4xbf16>
    %79 = arith.truncf %76 : vector<4x256xf32> to vector<4x256xbf16>
    %cst_25 = arith.constant dense<0.000000e+00> : vector<8x256xf32>
    %80 = tpu.matmul %78, %79, %cst_25 {dimension_numbers = #tpu.dot_dimension_numbers<[1], [0], [0], [1], [0, 0, 1, 1], [], []>} : vector<8x4xbf16>, vector<4x256xbf16>, vector<8x256xf32> -> vector<8x256xf32>
    %81 = arith.addf %75, %80 : vector<8x256xf32>
    %82 = vector.extract_strided_slice %66 {offsets = [0, 2], sizes = [4, 256], strides = [1, 1]} : vector<4x290xf32> to vector<4x256xf32>
    %cst_26 = arith.constant 0.000000e+00 : f32
    %83 = vector.shape_cast %20 : vector<1x256xi1> to vector<1x256xi1>
    %84 = vector.broadcast %83 : vector<1x256xi1> to vector<4x256xi1>
    %85 = vector.broadcast %cst_26 : f32 to vector<4x256xf32>
    %86 = arith.select %84, %82, %85 : vector<4x256xi1>, vector<4x256xf32>
    %c2 = arith.constant 2 : index
    %c0_27 = arith.constant 0 : index
    %c0_28 = arith.constant 0 : index
    %87 = vector.load %arg2[%c2, %c0_27, %c0_28] : memref<9x8x4xbf16, #tpu.memory_space<vmem>>, vector<1x8x4xbf16>
    %88 = vector.shape_cast %87 : vector<1x8x4xbf16> to vector<8x4xbf16>
    %89 = arith.truncf %86 : vector<4x256xf32> to vector<4x256xbf16>
    %cst_29 = arith.constant dense<0.000000e+00> : vector<8x256xf32>
    %90 = tpu.matmul %88, %89, %cst_29 {dimension_numbers = #tpu.dot_dimension_numbers<[1], [0], [0], [1], [0, 0, 1, 1], [], []>} : vector<8x4xbf16>, vector<4x256xbf16>, vector<8x256xf32> -> vector<8x256xf32>
    %91 = arith.addf %81, %90 : vector<8x256xf32>
    %92 = vector.extract_strided_slice %66 {offsets = [0, 16], sizes = [4, 256], strides = [1, 1]} : vector<4x290xf32> to vector<4x256xf32>
    %cst_30 = arith.constant 0.000000e+00 : f32
    %93 = vector.shape_cast %18 : vector<1x256xi1> to vector<1x256xi1>
    %94 = vector.broadcast %93 : vector<1x256xi1> to vector<4x256xi1>
    %95 = vector.broadcast %cst_30 : f32 to vector<4x256xf32>
    %96 = arith.select %94, %92, %95 : vector<4x256xi1>, vector<4x256xf32>
    %c3 = arith.constant 3 : index
    %c0_31 = arith.constant 0 : index
    %c0_32 = arith.constant 0 : index
    %97 = vector.load %arg2[%c3, %c0_31, %c0_32] : memref<9x8x4xbf16, #tpu.memory_space<vmem>>, vector<1x8x4xbf16>
    %98 = vector.shape_cast %97 : vector<1x8x4xbf16> to vector<8x4xbf16>
    %99 = arith.truncf %96 : vector<4x256xf32> to vector<4x256xbf16>
    %cst_33 = arith.constant dense<0.000000e+00> : vector<8x256xf32>
    %100 = tpu.matmul %98, %99, %cst_33 {dimension_numbers = #tpu.dot_dimension_numbers<[1], [0], [0], [1], [0, 0, 1, 1], [], []>} : vector<8x4xbf16>, vector<4x256xbf16>, vector<8x256xf32> -> vector<8x256xf32>
    %101 = arith.addf %91, %100 : vector<8x256xf32>
    %102 = vector.extract_strided_slice %66 {offsets = [0, 17], sizes = [4, 256], strides = [1, 1]} : vector<4x290xf32> to vector<4x256xf32>
    %c4 = arith.constant 4 : index
    %c0_34 = arith.constant 0 : index
    %c0_35 = arith.constant 0 : index
    %103 = vector.load %arg2[%c4, %c0_34, %c0_35] : memref<9x8x4xbf16, #tpu.memory_space<vmem>>, vector<1x8x4xbf16>
    %104 = vector.shape_cast %103 : vector<1x8x4xbf16> to vector<8x4xbf16>
    %105 = arith.truncf %102 : vector<4x256xf32> to vector<4x256xbf16>
    %cst_36 = arith.constant dense<0.000000e+00> : vector<8x256xf32>
    %106 = tpu.matmul %104, %105, %cst_36 {dimension_numbers = #tpu.dot_dimension_numbers<[1], [0], [0], [1], [0, 0, 1, 1], [], []>} : vector<8x4xbf16>, vector<4x256xbf16>, vector<8x256xf32> -> vector<8x256xf32>
    %107 = arith.addf %101, %106 : vector<8x256xf32>
    %108 = vector.extract_strided_slice %66 {offsets = [0, 18], sizes = [4, 256], strides = [1, 1]} : vector<4x290xf32> to vector<4x256xf32>
    %cst_37 = arith.constant 0.000000e+00 : f32
    %109 = vector.shape_cast %20 : vector<1x256xi1> to vector<1x256xi1>
    %110 = vector.broadcast %109 : vector<1x256xi1> to vector<4x256xi1>
    %111 = vector.broadcast %cst_37 : f32 to vector<4x256xf32>
    %112 = arith.select %110, %108, %111 : vector<4x256xi1>, vector<4x256xf32>
    %c5 = arith.constant 5 : index
    %c0_38 = arith.constant 0 : index
    %c0_39 = arith.constant 0 : index
    %113 = vector.load %arg2[%c5, %c0_38, %c0_39] : memref<9x8x4xbf16, #tpu.memory_space<vmem>>, vector<1x8x4xbf16>
    %114 = vector.shape_cast %113 : vector<1x8x4xbf16> to vector<8x4xbf16>
    %115 = arith.truncf %112 : vector<4x256xf32> to vector<4x256xbf16>
    %cst_40 = arith.constant dense<0.000000e+00> : vector<8x256xf32>
    %116 = tpu.matmul %114, %115, %cst_40 {dimension_numbers = #tpu.dot_dimension_numbers<[1], [0], [0], [1], [0, 0, 1, 1], [], []>} : vector<8x4xbf16>, vector<4x256xbf16>, vector<8x256xf32> -> vector<8x256xf32>
    %117 = arith.addf %107, %116 : vector<8x256xf32>
    %118 = vector.extract_strided_slice %66 {offsets = [0, 32], sizes = [4, 256], strides = [1, 1]} : vector<4x290xf32> to vector<4x256xf32>
    %cst_41 = arith.constant 0.000000e+00 : f32
    %119 = vector.shape_cast %18 : vector<1x256xi1> to vector<1x256xi1>
    %120 = vector.broadcast %119 : vector<1x256xi1> to vector<4x256xi1>
    %121 = vector.broadcast %cst_41 : f32 to vector<4x256xf32>
    %122 = arith.select %120, %118, %121 : vector<4x256xi1>, vector<4x256xf32>
    %c6 = arith.constant 6 : index
    %c0_42 = arith.constant 0 : index
    %c0_43 = arith.constant 0 : index
    %123 = vector.load %arg2[%c6, %c0_42, %c0_43] : memref<9x8x4xbf16, #tpu.memory_space<vmem>>, vector<1x8x4xbf16>
    %124 = vector.shape_cast %123 : vector<1x8x4xbf16> to vector<8x4xbf16>
    %125 = arith.truncf %122 : vector<4x256xf32> to vector<4x256xbf16>
    %cst_44 = arith.constant dense<0.000000e+00> : vector<8x256xf32>
    %126 = tpu.matmul %124, %125, %cst_44 {dimension_numbers = #tpu.dot_dimension_numbers<[1], [0], [0], [1], [0, 0, 1, 1], [], []>} : vector<8x4xbf16>, vector<4x256xbf16>, vector<8x256xf32> -> vector<8x256xf32>
    %127 = arith.addf %117, %126 : vector<8x256xf32>
    %128 = vector.extract_strided_slice %66 {offsets = [0, 33], sizes = [4, 256], strides = [1, 1]} : vector<4x290xf32> to vector<4x256xf32>
    %c7 = arith.constant 7 : index
    %c0_45 = arith.constant 0 : index
    %c0_46 = arith.constant 0 : index
    %129 = vector.load %arg2[%c7, %c0_45, %c0_46] : memref<9x8x4xbf16, #tpu.memory_space<vmem>>, vector<1x8x4xbf16>
    %130 = vector.shape_cast %129 : vector<1x8x4xbf16> to vector<8x4xbf16>
    %131 = arith.truncf %128 : vector<4x256xf32> to vector<4x256xbf16>
    %cst_47 = arith.constant dense<0.000000e+00> : vector<8x256xf32>
    %132 = tpu.matmul %130, %131, %cst_47 {dimension_numbers = #tpu.dot_dimension_numbers<[1], [0], [0], [1], [0, 0, 1, 1], [], []>} : vector<8x4xbf16>, vector<4x256xbf16>, vector<8x256xf32> -> vector<8x256xf32>
    %133 = arith.addf %127, %132 : vector<8x256xf32>
    %134 = vector.extract_strided_slice %66 {offsets = [0, 34], sizes = [4, 256], strides = [1, 1]} : vector<4x290xf32> to vector<4x256xf32>
    %cst_48 = arith.constant 0.000000e+00 : f32
    %135 = vector.shape_cast %20 : vector<1x256xi1> to vector<1x256xi1>
    %136 = vector.broadcast %135 : vector<1x256xi1> to vector<4x256xi1>
    %137 = vector.broadcast %cst_48 : f32 to vector<4x256xf32>
    %138 = arith.select %136, %134, %137 : vector<4x256xi1>, vector<4x256xf32>
    %c8 = arith.constant 8 : index
    %c0_49 = arith.constant 0 : index
    %c0_50 = arith.constant 0 : index
    %139 = vector.load %arg2[%c8, %c0_49, %c0_50] : memref<9x8x4xbf16, #tpu.memory_space<vmem>>, vector<1x8x4xbf16>
    %140 = vector.shape_cast %139 : vector<1x8x4xbf16> to vector<8x4xbf16>
    %141 = arith.truncf %138 : vector<4x256xf32> to vector<4x256xbf16>
    %cst_51 = arith.constant dense<0.000000e+00> : vector<8x256xf32>
    %142 = tpu.matmul %140, %141, %cst_51 {dimension_numbers = #tpu.dot_dimension_numbers<[1], [0], [0], [1], [0, 0, 1, 1], [], []>} : vector<8x4xbf16>, vector<4x256xbf16>, vector<8x256xf32> -> vector<8x256xf32>
    %143 = arith.addf %133, %142 : vector<8x256xf32>
    %c0_52 = arith.constant 0 : index
    %c0_53 = arith.constant 0 : index
    %144 = vector.load %arg3[%c0_52, %c0_53] : memref<8x1xf32, #tpu.memory_space<vmem>>, vector<8x1xf32>
    %145 = vector.broadcast %144 : vector<8x1xf32> to vector<8x256xf32>
    %146 = arith.addf %143, %145 : vector<8x256xf32>
    %cst_54 = arith.constant 0.000000e+00 : f32
    %147 = vector.broadcast %cst_54 : f32 to vector<8x256xf32>
    %148 = arith.maximumf %146, %147 : vector<8x256xf32>
    %cst_55 = arith.constant 0.000000e+00 : f32
    %149 = vector.broadcast %cst_55 : f32 to vector<8x17xf32>
    %150 = tpu.concatenate %149, %148, %149 in 1 : vector<8x17xf32>, vector<8x256xf32>, vector<8x17xf32> -> vector<8x290xf32>
    %151 = vector.extract_strided_slice %150 {offsets = [0, 0], sizes = [8, 256], strides = [1, 1]} : vector<8x290xf32> to vector<8x256xf32>
    %cst_56 = arith.constant 0.000000e+00 : f32
    %152 = vector.shape_cast %18 : vector<1x256xi1> to vector<1x256xi1>
    %153 = vector.broadcast %152 : vector<1x256xi1> to vector<8x256xi1>
    %154 = vector.broadcast %cst_56 : f32 to vector<8x256xf32>
    %155 = arith.select %153, %151, %154 : vector<8x256xi1>, vector<8x256xf32>
    %c0_57 = arith.constant 0 : index
    %c0_58 = arith.constant 0 : index
    %c0_59 = arith.constant 0 : index
    %156 = vector.load %arg4[%c0_57, %c0_58, %c0_59] : memref<9x8x8xbf16, #tpu.memory_space<vmem>>, vector<1x8x8xbf16>
    %157 = vector.shape_cast %156 : vector<1x8x8xbf16> to vector<8x8xbf16>
    %158 = arith.truncf %155 : vector<8x256xf32> to vector<8x256xbf16>
    %cst_60 = arith.constant dense<0.000000e+00> : vector<8x256xf32>
    %159 = tpu.matmul %157, %158, %cst_60 {dimension_numbers = #tpu.dot_dimension_numbers<[1], [0], [0], [1], [0, 0, 1, 1], [], []>} : vector<8x8xbf16>, vector<8x256xbf16>, vector<8x256xf32> -> vector<8x256xf32>
    %160 = vector.extract_strided_slice %150 {offsets = [0, 1], sizes = [8, 256], strides = [1, 1]} : vector<8x290xf32> to vector<8x256xf32>
    %c1_61 = arith.constant 1 : index
    %c0_62 = arith.constant 0 : index
    %c0_63 = arith.constant 0 : index
    %161 = vector.load %arg4[%c1_61, %c0_62, %c0_63] : memref<9x8x8xbf16, #tpu.memory_space<vmem>>, vector<1x8x8xbf16>
    %162 = vector.shape_cast %161 : vector<1x8x8xbf16> to vector<8x8xbf16>
    %163 = arith.truncf %160 : vector<8x256xf32> to vector<8x256xbf16>
    %cst_64 = arith.constant dense<0.000000e+00> : vector<8x256xf32>
    %164 = tpu.matmul %162, %163, %cst_64 {dimension_numbers = #tpu.dot_dimension_numbers<[1], [0], [0], [1], [0, 0, 1, 1], [], []>} : vector<8x8xbf16>, vector<8x256xbf16>, vector<8x256xf32> -> vector<8x256xf32>
    %165 = arith.addf %159, %164 : vector<8x256xf32>
    %166 = vector.extract_strided_slice %150 {offsets = [0, 2], sizes = [8, 256], strides = [1, 1]} : vector<8x290xf32> to vector<8x256xf32>
    %cst_65 = arith.constant 0.000000e+00 : f32
    %167 = vector.shape_cast %20 : vector<1x256xi1> to vector<1x256xi1>
    %168 = vector.broadcast %167 : vector<1x256xi1> to vector<8x256xi1>
    %169 = vector.broadcast %cst_65 : f32 to vector<8x256xf32>
    %170 = arith.select %168, %166, %169 : vector<8x256xi1>, vector<8x256xf32>
    %c2_66 = arith.constant 2 : index
    %c0_67 = arith.constant 0 : index
    %c0_68 = arith.constant 0 : index
    %171 = vector.load %arg4[%c2_66, %c0_67, %c0_68] : memref<9x8x8xbf16, #tpu.memory_space<vmem>>, vector<1x8x8xbf16>
    %172 = vector.shape_cast %171 : vector<1x8x8xbf16> to vector<8x8xbf16>
    %173 = arith.truncf %170 : vector<8x256xf32> to vector<8x256xbf16>
    %cst_69 = arith.constant dense<0.000000e+00> : vector<8x256xf32>
    %174 = tpu.matmul %172, %173, %cst_69 {dimension_numbers = #tpu.dot_dimension_numbers<[1], [0], [0], [1], [0, 0, 1, 1], [], []>} : vector<8x8xbf16>, vector<8x256xbf16>, vector<8x256xf32> -> vector<8x256xf32>
    %175 = arith.addf %165, %174 : vector<8x256xf32>
    %176 = vector.extract_strided_slice %150 {offsets = [0, 16], sizes = [8, 256], strides = [1, 1]} : vector<8x290xf32> to vector<8x256xf32>
    %cst_70 = arith.constant 0.000000e+00 : f32
    %177 = vector.shape_cast %18 : vector<1x256xi1> to vector<1x256xi1>
    %178 = vector.broadcast %177 : vector<1x256xi1> to vector<8x256xi1>
    %179 = vector.broadcast %cst_70 : f32 to vector<8x256xf32>
    %180 = arith.select %178, %176, %179 : vector<8x256xi1>, vector<8x256xf32>
    %c3_71 = arith.constant 3 : index
    %c0_72 = arith.constant 0 : index
    %c0_73 = arith.constant 0 : index
    %181 = vector.load %arg4[%c3_71, %c0_72, %c0_73] : memref<9x8x8xbf16, #tpu.memory_space<vmem>>, vector<1x8x8xbf16>
    %182 = vector.shape_cast %181 : vector<1x8x8xbf16> to vector<8x8xbf16>
    %183 = arith.truncf %180 : vector<8x256xf32> to vector<8x256xbf16>
    %cst_74 = arith.constant dense<0.000000e+00> : vector<8x256xf32>
    %184 = tpu.matmul %182, %183, %cst_74 {dimension_numbers = #tpu.dot_dimension_numbers<[1], [0], [0], [1], [0, 0, 1, 1], [], []>} : vector<8x8xbf16>, vector<8x256xbf16>, vector<8x256xf32> -> vector<8x256xf32>
    %185 = arith.addf %175, %184 : vector<8x256xf32>
    %186 = vector.extract_strided_slice %150 {offsets = [0, 17], sizes = [8, 256], strides = [1, 1]} : vector<8x290xf32> to vector<8x256xf32>
    %c4_75 = arith.constant 4 : index
    %c0_76 = arith.constant 0 : index
    %c0_77 = arith.constant 0 : index
    %187 = vector.load %arg4[%c4_75, %c0_76, %c0_77] : memref<9x8x8xbf16, #tpu.memory_space<vmem>>, vector<1x8x8xbf16>
    %188 = vector.shape_cast %187 : vector<1x8x8xbf16> to vector<8x8xbf16>
    %189 = arith.truncf %186 : vector<8x256xf32> to vector<8x256xbf16>
    %cst_78 = arith.constant dense<0.000000e+00> : vector<8x256xf32>
    %190 = tpu.matmul %188, %189, %cst_78 {dimension_numbers = #tpu.dot_dimension_numbers<[1], [0], [0], [1], [0, 0, 1, 1], [], []>} : vector<8x8xbf16>, vector<8x256xbf16>, vector<8x256xf32> -> vector<8x256xf32>
    %191 = arith.addf %185, %190 : vector<8x256xf32>
    %192 = vector.extract_strided_slice %150 {offsets = [0, 18], sizes = [8, 256], strides = [1, 1]} : vector<8x290xf32> to vector<8x256xf32>
    %cst_79 = arith.constant 0.000000e+00 : f32
    %193 = vector.shape_cast %20 : vector<1x256xi1> to vector<1x256xi1>
    %194 = vector.broadcast %193 : vector<1x256xi1> to vector<8x256xi1>
    %195 = vector.broadcast %cst_79 : f32 to vector<8x256xf32>
    %196 = arith.select %194, %192, %195 : vector<8x256xi1>, vector<8x256xf32>
    %c5_80 = arith.constant 5 : index
    %c0_81 = arith.constant 0 : index
    %c0_82 = arith.constant 0 : index
    %197 = vector.load %arg4[%c5_80, %c0_81, %c0_82] : memref<9x8x8xbf16, #tpu.memory_space<vmem>>, vector<1x8x8xbf16>
    %198 = vector.shape_cast %197 : vector<1x8x8xbf16> to vector<8x8xbf16>
    %199 = arith.truncf %196 : vector<8x256xf32> to vector<8x256xbf16>
    %cst_83 = arith.constant dense<0.000000e+00> : vector<8x256xf32>
    %200 = tpu.matmul %198, %199, %cst_83 {dimension_numbers = #tpu.dot_dimension_numbers<[1], [0], [0], [1], [0, 0, 1, 1], [], []>} : vector<8x8xbf16>, vector<8x256xbf16>, vector<8x256xf32> -> vector<8x256xf32>
    %201 = arith.addf %191, %200 : vector<8x256xf32>
    %202 = vector.extract_strided_slice %150 {offsets = [0, 32], sizes = [8, 256], strides = [1, 1]} : vector<8x290xf32> to vector<8x256xf32>
    %cst_84 = arith.constant 0.000000e+00 : f32
    %203 = vector.shape_cast %18 : vector<1x256xi1> to vector<1x256xi1>
    %204 = vector.broadcast %203 : vector<1x256xi1> to vector<8x256xi1>
    %205 = vector.broadcast %cst_84 : f32 to vector<8x256xf32>
    %206 = arith.select %204, %202, %205 : vector<8x256xi1>, vector<8x256xf32>
    %c6_85 = arith.constant 6 : index
    %c0_86 = arith.constant 0 : index
    %c0_87 = arith.constant 0 : index
    %207 = vector.load %arg4[%c6_85, %c0_86, %c0_87] : memref<9x8x8xbf16, #tpu.memory_space<vmem>>, vector<1x8x8xbf16>
    %208 = vector.shape_cast %207 : vector<1x8x8xbf16> to vector<8x8xbf16>
    %209 = arith.truncf %206 : vector<8x256xf32> to vector<8x256xbf16>
    %cst_88 = arith.constant dense<0.000000e+00> : vector<8x256xf32>
    %210 = tpu.matmul %208, %209, %cst_88 {dimension_numbers = #tpu.dot_dimension_numbers<[1], [0], [0], [1], [0, 0, 1, 1], [], []>} : vector<8x8xbf16>, vector<8x256xbf16>, vector<8x256xf32> -> vector<8x256xf32>
    %211 = arith.addf %201, %210 : vector<8x256xf32>
    %212 = vector.extract_strided_slice %150 {offsets = [0, 33], sizes = [8, 256], strides = [1, 1]} : vector<8x290xf32> to vector<8x256xf32>
    %c7_89 = arith.constant 7 : index
    %c0_90 = arith.constant 0 : index
    %c0_91 = arith.constant 0 : index
    %213 = vector.load %arg4[%c7_89, %c0_90, %c0_91] : memref<9x8x8xbf16, #tpu.memory_space<vmem>>, vector<1x8x8xbf16>
    %214 = vector.shape_cast %213 : vector<1x8x8xbf16> to vector<8x8xbf16>
    %215 = arith.truncf %212 : vector<8x256xf32> to vector<8x256xbf16>
    %cst_92 = arith.constant dense<0.000000e+00> : vector<8x256xf32>
    %216 = tpu.matmul %214, %215, %cst_92 {dimension_numbers = #tpu.dot_dimension_numbers<[1], [0], [0], [1], [0, 0, 1, 1], [], []>} : vector<8x8xbf16>, vector<8x256xbf16>, vector<8x256xf32> -> vector<8x256xf32>
    %217 = arith.addf %211, %216 : vector<8x256xf32>
    %218 = vector.extract_strided_slice %150 {offsets = [0, 34], sizes = [8, 256], strides = [1, 1]} : vector<8x290xf32> to vector<8x256xf32>
    %cst_93 = arith.constant 0.000000e+00 : f32
    %219 = vector.shape_cast %20 : vector<1x256xi1> to vector<1x256xi1>
    %220 = vector.broadcast %219 : vector<1x256xi1> to vector<8x256xi1>
    %221 = vector.broadcast %cst_93 : f32 to vector<8x256xf32>
    %222 = arith.select %220, %218, %221 : vector<8x256xi1>, vector<8x256xf32>
    %c8_94 = arith.constant 8 : index
    %c0_95 = arith.constant 0 : index
    %c0_96 = arith.constant 0 : index
    %223 = vector.load %arg4[%c8_94, %c0_95, %c0_96] : memref<9x8x8xbf16, #tpu.memory_space<vmem>>, vector<1x8x8xbf16>
    %224 = vector.shape_cast %223 : vector<1x8x8xbf16> to vector<8x8xbf16>
    %225 = arith.truncf %222 : vector<8x256xf32> to vector<8x256xbf16>
    %cst_97 = arith.constant dense<0.000000e+00> : vector<8x256xf32>
    %226 = tpu.matmul %224, %225, %cst_97 {dimension_numbers = #tpu.dot_dimension_numbers<[1], [0], [0], [1], [0, 0, 1, 1], [], []>} : vector<8x8xbf16>, vector<8x256xbf16>, vector<8x256xf32> -> vector<8x256xf32>
    %227 = arith.addf %217, %226 : vector<8x256xf32>
    %c0_98 = arith.constant 0 : index
    %c0_99 = arith.constant 0 : index
    %228 = vector.load %arg5[%c0_98, %c0_99] : memref<8x1xf32, #tpu.memory_space<vmem>>, vector<8x1xf32>
    %229 = vector.broadcast %228 : vector<8x1xf32> to vector<8x256xf32>
    %230 = arith.addf %227, %229 : vector<8x256xf32>
    %cst_100 = arith.constant 0.000000e+00 : f32
    %231 = vector.broadcast %cst_100 : f32 to vector<8x256xf32>
    %232 = arith.maximumf %230, %231 : vector<8x256xf32>
    %cst_101 = arith.constant 0.000000e+00 : f32
    %233 = vector.broadcast %cst_101 : f32 to vector<8x17xf32>
    %234 = tpu.concatenate %233, %232, %233 in 1 : vector<8x17xf32>, vector<8x256xf32>, vector<8x17xf32> -> vector<8x290xf32>
    %235 = vector.extract_strided_slice %234 {offsets = [0, 17], sizes = [8, 256], strides = [1, 1]} : vector<8x290xf32> to vector<8x256xf32>
    %236 = vector.extract_strided_slice %234 {offsets = [0, 18], sizes = [8, 256], strides = [1, 1]} : vector<8x290xf32> to vector<8x256xf32>
    %237 = arith.maximumf %235, %236 : vector<8x256xf32>
    %238 = vector.extract_strided_slice %234 {offsets = [0, 33], sizes = [8, 256], strides = [1, 1]} : vector<8x290xf32> to vector<8x256xf32>
    %239 = vector.extract_strided_slice %234 {offsets = [0, 34], sizes = [8, 256], strides = [1, 1]} : vector<8x290xf32> to vector<8x256xf32>
    %240 = arith.maximumf %238, %239 : vector<8x256xf32>
    %241 = arith.maximumf %237, %240 : vector<8x256xf32>
    %242 = arith.truncf %241 : vector<8x256xf32> to vector<8x256xbf16>
    %c0_102 = arith.constant 0 : index
    %c0_103 = arith.constant 0 : index
    %243 = vector.load %arg26[%c0_102, %c0_103] : memref<256x64xbf16, #tpu.memory_space<vmem>>, vector<256x64xbf16>
    %cst_104 = arith.constant dense<0.000000e+00> : vector<8x64xf32>
    %244 = tpu.matmul %242, %243, %cst_104 {dimension_numbers = #tpu.dot_dimension_numbers<[1], [0], [0], [1], [0, 0, 1, 1], [], []>} : vector<8x256xbf16>, vector<256x64xbf16>, vector<8x64xf32> -> vector<8x64xf32>
    %cst_105 = arith.constant 0.000000e+00 : f32
    %245 = vector.broadcast %cst_105 : f32 to vector<8x9xf32>
    %246 = tpu.concatenate %245, %244, %245 in 1 : vector<8x9xf32>, vector<8x64xf32>, vector<8x9xf32> -> vector<8x82xf32>
    %247 = vector.extract_strided_slice %246 {offsets = [0, 0], sizes = [8, 64], strides = [1, 1]} : vector<8x82xf32> to vector<8x64xf32>
    %cst_106 = arith.constant 0.000000e+00 : f32
    %248 = vector.shape_cast %39 : vector<1x64xi1> to vector<1x64xi1>
    %249 = vector.broadcast %248 : vector<1x64xi1> to vector<8x64xi1>
    %250 = vector.broadcast %cst_106 : f32 to vector<8x64xf32>
    %251 = arith.select %249, %247, %250 : vector<8x64xi1>, vector<8x64xf32>
    %c0_107 = arith.constant 0 : index
    %c0_108 = arith.constant 0 : index
    %c0_109 = arith.constant 0 : index
    %252 = vector.load %arg6[%c0_107, %c0_108, %c0_109] : memref<9x16x8xbf16, #tpu.memory_space<vmem>>, vector<1x16x8xbf16>
    %253 = vector.shape_cast %252 : vector<1x16x8xbf16> to vector<16x8xbf16>
    %254 = arith.truncf %251 : vector<8x64xf32> to vector<8x64xbf16>
    %cst_110 = arith.constant dense<0.000000e+00> : vector<16x64xf32>
    %255 = tpu.matmul %253, %254, %cst_110 {dimension_numbers = #tpu.dot_dimension_numbers<[1], [0], [0], [1], [0, 0, 1, 1], [], []>} : vector<16x8xbf16>, vector<8x64xbf16>, vector<16x64xf32> -> vector<16x64xf32>
    %256 = vector.extract_strided_slice %246 {offsets = [0, 1], sizes = [8, 64], strides = [1, 1]} : vector<8x82xf32> to vector<8x64xf32>
    %c1_111 = arith.constant 1 : index
    %c0_112 = arith.constant 0 : index
    %c0_113 = arith.constant 0 : index
    %257 = vector.load %arg6[%c1_111, %c0_112, %c0_113] : memref<9x16x8xbf16, #tpu.memory_space<vmem>>, vector<1x16x8xbf16>
    %258 = vector.shape_cast %257 : vector<1x16x8xbf16> to vector<16x8xbf16>
    %259 = arith.truncf %256 : vector<8x64xf32> to vector<8x64xbf16>
    %cst_114 = arith.constant dense<0.000000e+00> : vector<16x64xf32>
    %260 = tpu.matmul %258, %259, %cst_114 {dimension_numbers = #tpu.dot_dimension_numbers<[1], [0], [0], [1], [0, 0, 1, 1], [], []>} : vector<16x8xbf16>, vector<8x64xbf16>, vector<16x64xf32> -> vector<16x64xf32>
    %261 = arith.addf %255, %260 : vector<16x64xf32>
    %262 = vector.extract_strided_slice %246 {offsets = [0, 2], sizes = [8, 64], strides = [1, 1]} : vector<8x82xf32> to vector<8x64xf32>
    %cst_115 = arith.constant 0.000000e+00 : f32
    %263 = vector.shape_cast %41 : vector<1x64xi1> to vector<1x64xi1>
    %264 = vector.broadcast %263 : vector<1x64xi1> to vector<8x64xi1>
    %265 = vector.broadcast %cst_115 : f32 to vector<8x64xf32>
    %266 = arith.select %264, %262, %265 : vector<8x64xi1>, vector<8x64xf32>
    %c2_116 = arith.constant 2 : index
    %c0_117 = arith.constant 0 : index
    %c0_118 = arith.constant 0 : index
    %267 = vector.load %arg6[%c2_116, %c0_117, %c0_118] : memref<9x16x8xbf16, #tpu.memory_space<vmem>>, vector<1x16x8xbf16>
    %268 = vector.shape_cast %267 : vector<1x16x8xbf16> to vector<16x8xbf16>
    %269 = arith.truncf %266 : vector<8x64xf32> to vector<8x64xbf16>
    %cst_119 = arith.constant dense<0.000000e+00> : vector<16x64xf32>
    %270 = tpu.matmul %268, %269, %cst_119 {dimension_numbers = #tpu.dot_dimension_numbers<[1], [0], [0], [1], [0, 0, 1, 1], [], []>} : vector<16x8xbf16>, vector<8x64xbf16>, vector<16x64xf32> -> vector<16x64xf32>
    %271 = arith.addf %261, %270 : vector<16x64xf32>
    %272 = vector.extract_strided_slice %246 {offsets = [0, 8], sizes = [8, 64], strides = [1, 1]} : vector<8x82xf32> to vector<8x64xf32>
    %cst_120 = arith.constant 0.000000e+00 : f32
    %273 = vector.shape_cast %39 : vector<1x64xi1> to vector<1x64xi1>
    %274 = vector.broadcast %273 : vector<1x64xi1> to vector<8x64xi1>
    %275 = vector.broadcast %cst_120 : f32 to vector<8x64xf32>
    %276 = arith.select %274, %272, %275 : vector<8x64xi1>, vector<8x64xf32>
    %c3_121 = arith.constant 3 : index
    %c0_122 = arith.constant 0 : index
    %c0_123 = arith.constant 0 : index
    %277 = vector.load %arg6[%c3_121, %c0_122, %c0_123] : memref<9x16x8xbf16, #tpu.memory_space<vmem>>, vector<1x16x8xbf16>
    %278 = vector.shape_cast %277 : vector<1x16x8xbf16> to vector<16x8xbf16>
    %279 = arith.truncf %276 : vector<8x64xf32> to vector<8x64xbf16>
    %cst_124 = arith.constant dense<0.000000e+00> : vector<16x64xf32>
    %280 = tpu.matmul %278, %279, %cst_124 {dimension_numbers = #tpu.dot_dimension_numbers<[1], [0], [0], [1], [0, 0, 1, 1], [], []>} : vector<16x8xbf16>, vector<8x64xbf16>, vector<16x64xf32> -> vector<16x64xf32>
    %281 = arith.addf %271, %280 : vector<16x64xf32>
    %282 = vector.extract_strided_slice %246 {offsets = [0, 9], sizes = [8, 64], strides = [1, 1]} : vector<8x82xf32> to vector<8x64xf32>
    %c4_125 = arith.constant 4 : index
    %c0_126 = arith.constant 0 : index
    %c0_127 = arith.constant 0 : index
    %283 = vector.load %arg6[%c4_125, %c0_126, %c0_127] : memref<9x16x8xbf16, #tpu.memory_space<vmem>>, vector<1x16x8xbf16>
    %284 = vector.shape_cast %283 : vector<1x16x8xbf16> to vector<16x8xbf16>
    %285 = arith.truncf %282 : vector<8x64xf32> to vector<8x64xbf16>
    %cst_128 = arith.constant dense<0.000000e+00> : vector<16x64xf32>
    %286 = tpu.matmul %284, %285, %cst_128 {dimension_numbers = #tpu.dot_dimension_numbers<[1], [0], [0], [1], [0, 0, 1, 1], [], []>} : vector<16x8xbf16>, vector<8x64xbf16>, vector<16x64xf32> -> vector<16x64xf32>
    %287 = arith.addf %281, %286 : vector<16x64xf32>
    %288 = vector.extract_strided_slice %246 {offsets = [0, 10], sizes = [8, 64], strides = [1, 1]} : vector<8x82xf32> to vector<8x64xf32>
    %cst_129 = arith.constant 0.000000e+00 : f32
    %289 = vector.shape_cast %41 : vector<1x64xi1> to vector<1x64xi1>
    %290 = vector.broadcast %289 : vector<1x64xi1> to vector<8x64xi1>
    %291 = vector.broadcast %cst_129 : f32 to vector<8x64xf32>
    %292 = arith.select %290, %288, %291 : vector<8x64xi1>, vector<8x64xf32>
    %c5_130 = arith.constant 5 : index
    %c0_131 = arith.constant 0 : index
    %c0_132 = arith.constant 0 : index
    %293 = vector.load %arg6[%c5_130, %c0_131, %c0_132] : memref<9x16x8xbf16, #tpu.memory_space<vmem>>, vector<1x16x8xbf16>
    %294 = vector.shape_cast %293 : vector<1x16x8xbf16> to vector<16x8xbf16>
    %295 = arith.truncf %292 : vector<8x64xf32> to vector<8x64xbf16>
    %cst_133 = arith.constant dense<0.000000e+00> : vector<16x64xf32>
    %296 = tpu.matmul %294, %295, %cst_133 {dimension_numbers = #tpu.dot_dimension_numbers<[1], [0], [0], [1], [0, 0, 1, 1], [], []>} : vector<16x8xbf16>, vector<8x64xbf16>, vector<16x64xf32> -> vector<16x64xf32>
    %297 = arith.addf %287, %296 : vector<16x64xf32>
    %298 = vector.extract_strided_slice %246 {offsets = [0, 16], sizes = [8, 64], strides = [1, 1]} : vector<8x82xf32> to vector<8x64xf32>
    %cst_134 = arith.constant 0.000000e+00 : f32
    %299 = vector.shape_cast %39 : vector<1x64xi1> to vector<1x64xi1>
    %300 = vector.broadcast %299 : vector<1x64xi1> to vector<8x64xi1>
    %301 = vector.broadcast %cst_134 : f32 to vector<8x64xf32>
    %302 = arith.select %300, %298, %301 : vector<8x64xi1>, vector<8x64xf32>
    %c6_135 = arith.constant 6 : index
    %c0_136 = arith.constant 0 : index
    %c0_137 = arith.constant 0 : index
    %303 = vector.load %arg6[%c6_135, %c0_136, %c0_137] : memref<9x16x8xbf16, #tpu.memory_space<vmem>>, vector<1x16x8xbf16>
    %304 = vector.shape_cast %303 : vector<1x16x8xbf16> to vector<16x8xbf16>
    %305 = arith.truncf %302 : vector<8x64xf32> to vector<8x64xbf16>
    %cst_138 = arith.constant dense<0.000000e+00> : vector<16x64xf32>
    %306 = tpu.matmul %304, %305, %cst_138 {dimension_numbers = #tpu.dot_dimension_numbers<[1], [0], [0], [1], [0, 0, 1, 1], [], []>} : vector<16x8xbf16>, vector<8x64xbf16>, vector<16x64xf32> -> vector<16x64xf32>
    %307 = arith.addf %297, %306 : vector<16x64xf32>
    %308 = vector.extract_strided_slice %246 {offsets = [0, 17], sizes = [8, 64], strides = [1, 1]} : vector<8x82xf32> to vector<8x64xf32>
    %c7_139 = arith.constant 7 : index
    %c0_140 = arith.constant 0 : index
    %c0_141 = arith.constant 0 : index
    %309 = vector.load %arg6[%c7_139, %c0_140, %c0_141] : memref<9x16x8xbf16, #tpu.memory_space<vmem>>, vector<1x16x8xbf16>
    %310 = vector.shape_cast %309 : vector<1x16x8xbf16> to vector<16x8xbf16>
    %311 = arith.truncf %308 : vector<8x64xf32> to vector<8x64xbf16>
    %cst_142 = arith.constant dense<0.000000e+00> : vector<16x64xf32>
    %312 = tpu.matmul %310, %311, %cst_142 {dimension_numbers = #tpu.dot_dimension_numbers<[1], [0], [0], [1], [0, 0, 1, 1], [], []>} : vector<16x8xbf16>, vector<8x64xbf16>, vector<16x64xf32> -> vector<16x64xf32>
    %313 = arith.addf %307, %312 : vector<16x64xf32>
    %314 = vector.extract_strided_slice %246 {offsets = [0, 18], sizes = [8, 64], strides = [1, 1]} : vector<8x82xf32> to vector<8x64xf32>
    %cst_143 = arith.constant 0.000000e+00 : f32
    %315 = vector.shape_cast %41 : vector<1x64xi1> to vector<1x64xi1>
    %316 = vector.broadcast %315 : vector<1x64xi1> to vector<8x64xi1>
    %317 = vector.broadcast %cst_143 : f32 to vector<8x64xf32>
    %318 = arith.select %316, %314, %317 : vector<8x64xi1>, vector<8x64xf32>
    %c8_144 = arith.constant 8 : index
    %c0_145 = arith.constant 0 : index
    %c0_146 = arith.constant 0 : index
    %319 = vector.load %arg6[%c8_144, %c0_145, %c0_146] : memref<9x16x8xbf16, #tpu.memory_space<vmem>>, vector<1x16x8xbf16>
    %320 = vector.shape_cast %319 : vector<1x16x8xbf16> to vector<16x8xbf16>
    %321 = arith.truncf %318 : vector<8x64xf32> to vector<8x64xbf16>
    %cst_147 = arith.constant dense<0.000000e+00> : vector<16x64xf32>
    %322 = tpu.matmul %320, %321, %cst_147 {dimension_numbers = #tpu.dot_dimension_numbers<[1], [0], [0], [1], [0, 0, 1, 1], [], []>} : vector<16x8xbf16>, vector<8x64xbf16>, vector<16x64xf32> -> vector<16x64xf32>
    %323 = arith.addf %313, %322 : vector<16x64xf32>
    %c0_148 = arith.constant 0 : index
    %c0_149 = arith.constant 0 : index
    %324 = vector.load %arg7[%c0_148, %c0_149] : memref<16x1xf32, #tpu.memory_space<vmem>>, vector<16x1xf32>
    %325 = vector.broadcast %324 : vector<16x1xf32> to vector<16x64xf32>
    %326 = arith.addf %323, %325 : vector<16x64xf32>
    %cst_150 = arith.constant 0.000000e+00 : f32
    %327 = vector.broadcast %cst_150 : f32 to vector<16x64xf32>
    %328 = arith.maximumf %326, %327 : vector<16x64xf32>
    %cst_151 = arith.constant 0.000000e+00 : f32
    %329 = vector.broadcast %cst_151 : f32 to vector<16x9xf32>
    %330 = tpu.concatenate %329, %328, %329 in 1 : vector<16x9xf32>, vector<16x64xf32>, vector<16x9xf32> -> vector<16x82xf32>
    %331 = vector.extract_strided_slice %330 {offsets = [0, 0], sizes = [16, 64], strides = [1, 1]} : vector<16x82xf32> to vector<16x64xf32>
    %cst_152 = arith.constant 0.000000e+00 : f32
    %332 = vector.shape_cast %39 : vector<1x64xi1> to vector<1x64xi1>
    %333 = vector.broadcast %332 : vector<1x64xi1> to vector<16x64xi1>
    %334 = vector.broadcast %cst_152 : f32 to vector<16x64xf32>
    %335 = arith.select %333, %331, %334 : vector<16x64xi1>, vector<16x64xf32>
    %c0_153 = arith.constant 0 : index
    %c0_154 = arith.constant 0 : index
    %c0_155 = arith.constant 0 : index
    %336 = vector.load %arg8[%c0_153, %c0_154, %c0_155] : memref<9x16x16xbf16, #tpu.memory_space<vmem>>, vector<1x16x16xbf16>
    %337 = vector.shape_cast %336 : vector<1x16x16xbf16> to vector<16x16xbf16>
    %338 = arith.truncf %335 : vector<16x64xf32> to vector<16x64xbf16>
    %cst_156 = arith.constant dense<0.000000e+00> : vector<16x64xf32>
    %339 = tpu.matmul %337, %338, %cst_156 {dimension_numbers = #tpu.dot_dimension_numbers<[1], [0], [0], [1], [0, 0, 1, 1], [], []>} : vector<16x16xbf16>, vector<16x64xbf16>, vector<16x64xf32> -> vector<16x64xf32>
    %340 = vector.extract_strided_slice %330 {offsets = [0, 1], sizes = [16, 64], strides = [1, 1]} : vector<16x82xf32> to vector<16x64xf32>
    %c1_157 = arith.constant 1 : index
    %c0_158 = arith.constant 0 : index
    %c0_159 = arith.constant 0 : index
    %341 = vector.load %arg8[%c1_157, %c0_158, %c0_159] : memref<9x16x16xbf16, #tpu.memory_space<vmem>>, vector<1x16x16xbf16>
    %342 = vector.shape_cast %341 : vector<1x16x16xbf16> to vector<16x16xbf16>
    %343 = arith.truncf %340 : vector<16x64xf32> to vector<16x64xbf16>
    %cst_160 = arith.constant dense<0.000000e+00> : vector<16x64xf32>
    %344 = tpu.matmul %342, %343, %cst_160 {dimension_numbers = #tpu.dot_dimension_numbers<[1], [0], [0], [1], [0, 0, 1, 1], [], []>} : vector<16x16xbf16>, vector<16x64xbf16>, vector<16x64xf32> -> vector<16x64xf32>
    %345 = arith.addf %339, %344 : vector<16x64xf32>
    %346 = vector.extract_strided_slice %330 {offsets = [0, 2], sizes = [16, 64], strides = [1, 1]} : vector<16x82xf32> to vector<16x64xf32>
    %cst_161 = arith.constant 0.000000e+00 : f32
    %347 = vector.shape_cast %41 : vector<1x64xi1> to vector<1x64xi1>
    %348 = vector.broadcast %347 : vector<1x64xi1> to vector<16x64xi1>
    %349 = vector.broadcast %cst_161 : f32 to vector<16x64xf32>
    %350 = arith.select %348, %346, %349 : vector<16x64xi1>, vector<16x64xf32>
    %c2_162 = arith.constant 2 : index
    %c0_163 = arith.constant 0 : index
    %c0_164 = arith.constant 0 : index
    %351 = vector.load %arg8[%c2_162, %c0_163, %c0_164] : memref<9x16x16xbf16, #tpu.memory_space<vmem>>, vector<1x16x16xbf16>
    %352 = vector.shape_cast %351 : vector<1x16x16xbf16> to vector<16x16xbf16>
    %353 = arith.truncf %350 : vector<16x64xf32> to vector<16x64xbf16>
    %cst_165 = arith.constant dense<0.000000e+00> : vector<16x64xf32>
    %354 = tpu.matmul %352, %353, %cst_165 {dimension_numbers = #tpu.dot_dimension_numbers<[1], [0], [0], [1], [0, 0, 1, 1], [], []>} : vector<16x16xbf16>, vector<16x64xbf16>, vector<16x64xf32> -> vector<16x64xf32>
    %355 = arith.addf %345, %354 : vector<16x64xf32>
    %356 = vector.extract_strided_slice %330 {offsets = [0, 8], sizes = [16, 64], strides = [1, 1]} : vector<16x82xf32> to vector<16x64xf32>
    %cst_166 = arith.constant 0.000000e+00 : f32
    %357 = vector.shape_cast %39 : vector<1x64xi1> to vector<1x64xi1>
    %358 = vector.broadcast %357 : vector<1x64xi1> to vector<16x64xi1>
    %359 = vector.broadcast %cst_166 : f32 to vector<16x64xf32>
    %360 = arith.select %358, %356, %359 : vector<16x64xi1>, vector<16x64xf32>
    %c3_167 = arith.constant 3 : index
    %c0_168 = arith.constant 0 : index
    %c0_169 = arith.constant 0 : index
    %361 = vector.load %arg8[%c3_167, %c0_168, %c0_169] : memref<9x16x16xbf16, #tpu.memory_space<vmem>>, vector<1x16x16xbf16>
    %362 = vector.shape_cast %361 : vector<1x16x16xbf16> to vector<16x16xbf16>
    %363 = arith.truncf %360 : vector<16x64xf32> to vector<16x64xbf16>
    %cst_170 = arith.constant dense<0.000000e+00> : vector<16x64xf32>
    %364 = tpu.matmul %362, %363, %cst_170 {dimension_numbers = #tpu.dot_dimension_numbers<[1], [0], [0], [1], [0, 0, 1, 1], [], []>} : vector<16x16xbf16>, vector<16x64xbf16>, vector<16x64xf32> -> vector<16x64xf32>
    %365 = arith.addf %355, %364 : vector<16x64xf32>
    %366 = vector.extract_strided_slice %330 {offsets = [0, 9], sizes = [16, 64], strides = [1, 1]} : vector<16x82xf32> to vector<16x64xf32>
    %c4_171 = arith.constant 4 : index
    %c0_172 = arith.constant 0 : index
    %c0_173 = arith.constant 0 : index
    %367 = vector.load %arg8[%c4_171, %c0_172, %c0_173] : memref<9x16x16xbf16, #tpu.memory_space<vmem>>, vector<1x16x16xbf16>
    %368 = vector.shape_cast %367 : vector<1x16x16xbf16> to vector<16x16xbf16>
    %369 = arith.truncf %366 : vector<16x64xf32> to vector<16x64xbf16>
    %cst_174 = arith.constant dense<0.000000e+00> : vector<16x64xf32>
    %370 = tpu.matmul %368, %369, %cst_174 {dimension_numbers = #tpu.dot_dimension_numbers<[1], [0], [0], [1], [0, 0, 1, 1], [], []>} : vector<16x16xbf16>, vector<16x64xbf16>, vector<16x64xf32> -> vector<16x64xf32>
    %371 = arith.addf %365, %370 : vector<16x64xf32>
    %372 = vector.extract_strided_slice %330 {offsets = [0, 10], sizes = [16, 64], strides = [1, 1]} : vector<16x82xf32> to vector<16x64xf32>
    %cst_175 = arith.constant 0.000000e+00 : f32
    %373 = vector.shape_cast %41 : vector<1x64xi1> to vector<1x64xi1>
    %374 = vector.broadcast %373 : vector<1x64xi1> to vector<16x64xi1>
    %375 = vector.broadcast %cst_175 : f32 to vector<16x64xf32>
    %376 = arith.select %374, %372, %375 : vector<16x64xi1>, vector<16x64xf32>
    %c5_176 = arith.constant 5 : index
    %c0_177 = arith.constant 0 : index
    %c0_178 = arith.constant 0 : index
    %377 = vector.load %arg8[%c5_176, %c0_177, %c0_178] : memref<9x16x16xbf16, #tpu.memory_space<vmem>>, vector<1x16x16xbf16>
    %378 = vector.shape_cast %377 : vector<1x16x16xbf16> to vector<16x16xbf16>
    %379 = arith.truncf %376 : vector<16x64xf32> to vector<16x64xbf16>
    %cst_179 = arith.constant dense<0.000000e+00> : vector<16x64xf32>
    %380 = tpu.matmul %378, %379, %cst_179 {dimension_numbers = #tpu.dot_dimension_numbers<[1], [0], [0], [1], [0, 0, 1, 1], [], []>} : vector<16x16xbf16>, vector<16x64xbf16>, vector<16x64xf32> -> vector<16x64xf32>
    %381 = arith.addf %371, %380 : vector<16x64xf32>
    %382 = vector.extract_strided_slice %330 {offsets = [0, 16], sizes = [16, 64], strides = [1, 1]} : vector<16x82xf32> to vector<16x64xf32>
    %cst_180 = arith.constant 0.000000e+00 : f32
    %383 = vector.shape_cast %39 : vector<1x64xi1> to vector<1x64xi1>
    %384 = vector.broadcast %383 : vector<1x64xi1> to vector<16x64xi1>
    %385 = vector.broadcast %cst_180 : f32 to vector<16x64xf32>
    %386 = arith.select %384, %382, %385 : vector<16x64xi1>, vector<16x64xf32>
    %c6_181 = arith.constant 6 : index
    %c0_182 = arith.constant 0 : index
    %c0_183 = arith.constant 0 : index
    %387 = vector.load %arg8[%c6_181, %c0_182, %c0_183] : memref<9x16x16xbf16, #tpu.memory_space<vmem>>, vector<1x16x16xbf16>
    %388 = vector.shape_cast %387 : vector<1x16x16xbf16> to vector<16x16xbf16>
    %389 = arith.truncf %386 : vector<16x64xf32> to vector<16x64xbf16>
    %cst_184 = arith.constant dense<0.000000e+00> : vector<16x64xf32>
    %390 = tpu.matmul %388, %389, %cst_184 {dimension_numbers = #tpu.dot_dimension_numbers<[1], [0], [0], [1], [0, 0, 1, 1], [], []>} : vector<16x16xbf16>, vector<16x64xbf16>, vector<16x64xf32> -> vector<16x64xf32>
    %391 = arith.addf %381, %390 : vector<16x64xf32>
    %392 = vector.extract_strided_slice %330 {offsets = [0, 17], sizes = [16, 64], strides = [1, 1]} : vector<16x82xf32> to vector<16x64xf32>
    %c7_185 = arith.constant 7 : index
    %c0_186 = arith.constant 0 : index
    %c0_187 = arith.constant 0 : index
    %393 = vector.load %arg8[%c7_185, %c0_186, %c0_187] : memref<9x16x16xbf16, #tpu.memory_space<vmem>>, vector<1x16x16xbf16>
    %394 = vector.shape_cast %393 : vector<1x16x16xbf16> to vector<16x16xbf16>
    %395 = arith.truncf %392 : vector<16x64xf32> to vector<16x64xbf16>
    %cst_188 = arith.constant dense<0.000000e+00> : vector<16x64xf32>
    %396 = tpu.matmul %394, %395, %cst_188 {dimension_numbers = #tpu.dot_dimension_numbers<[1], [0], [0], [1], [0, 0, 1, 1], [], []>} : vector<16x16xbf16>, vector<16x64xbf16>, vector<16x64xf32> -> vector<16x64xf32>
    %397 = arith.addf %391, %396 : vector<16x64xf32>
    %398 = vector.extract_strided_slice %330 {offsets = [0, 18], sizes = [16, 64], strides = [1, 1]} : vector<16x82xf32> to vector<16x64xf32>
    %cst_189 = arith.constant 0.000000e+00 : f32
    %399 = vector.shape_cast %41 : vector<1x64xi1> to vector<1x64xi1>
    %400 = vector.broadcast %399 : vector<1x64xi1> to vector<16x64xi1>
    %401 = vector.broadcast %cst_189 : f32 to vector<16x64xf32>
    %402 = arith.select %400, %398, %401 : vector<16x64xi1>, vector<16x64xf32>
    %c8_190 = arith.constant 8 : index
    %c0_191 = arith.constant 0 : index
    %c0_192 = arith.constant 0 : index
    %403 = vector.load %arg8[%c8_190, %c0_191, %c0_192] : memref<9x16x16xbf16, #tpu.memory_space<vmem>>, vector<1x16x16xbf16>
    %404 = vector.shape_cast %403 : vector<1x16x16xbf16> to vector<16x16xbf16>
    %405 = arith.truncf %402 : vector<16x64xf32> to vector<16x64xbf16>
    %cst_193 = arith.constant dense<0.000000e+00> : vector<16x64xf32>
    %406 = tpu.matmul %404, %405, %cst_193 {dimension_numbers = #tpu.dot_dimension_numbers<[1], [0], [0], [1], [0, 0, 1, 1], [], []>} : vector<16x16xbf16>, vector<16x64xbf16>, vector<16x64xf32> -> vector<16x64xf32>
    %407 = arith.addf %397, %406 : vector<16x64xf32>
    %c0_194 = arith.constant 0 : index
    %c0_195 = arith.constant 0 : index
    %408 = vector.load %arg9[%c0_194, %c0_195] : memref<16x1xf32, #tpu.memory_space<vmem>>, vector<16x1xf32>
    %409 = vector.broadcast %408 : vector<16x1xf32> to vector<16x64xf32>
    %410 = arith.addf %407, %409 : vector<16x64xf32>
    %cst_196 = arith.constant 0.000000e+00 : f32
    %411 = vector.broadcast %cst_196 : f32 to vector<16x64xf32>
    %412 = arith.maximumf %410, %411 : vector<16x64xf32>
    %cst_197 = arith.constant 0.000000e+00 : f32
    %413 = vector.broadcast %cst_197 : f32 to vector<16x9xf32>
    %414 = tpu.concatenate %413, %412, %413 in 1 : vector<16x9xf32>, vector<16x64xf32>, vector<16x9xf32> -> vector<16x82xf32>
    %415 = vector.extract_strided_slice %414 {offsets = [0, 9], sizes = [16, 64], strides = [1, 1]} : vector<16x82xf32> to vector<16x64xf32>
    %416 = vector.extract_strided_slice %414 {offsets = [0, 10], sizes = [16, 64], strides = [1, 1]} : vector<16x82xf32> to vector<16x64xf32>
    %417 = arith.maximumf %415, %416 : vector<16x64xf32>
    %418 = vector.extract_strided_slice %414 {offsets = [0, 17], sizes = [16, 64], strides = [1, 1]} : vector<16x82xf32> to vector<16x64xf32>
    %419 = vector.extract_strided_slice %414 {offsets = [0, 18], sizes = [16, 64], strides = [1, 1]} : vector<16x82xf32> to vector<16x64xf32>
    %420 = arith.maximumf %418, %419 : vector<16x64xf32>
    %421 = arith.maximumf %417, %420 : vector<16x64xf32>
    %422 = arith.truncf %421 : vector<16x64xf32> to vector<16x64xbf16>
    %c0_198 = arith.constant 0 : index
    %c0_199 = arith.constant 0 : index
    %423 = vector.load %arg27[%c0_198, %c0_199] : memref<64x16xbf16, #tpu.memory_space<vmem>>, vector<64x16xbf16>
    %cst_200 = arith.constant dense<0.000000e+00> : vector<16x16xf32>
    %424 = tpu.matmul %422, %423, %cst_200 {dimension_numbers = #tpu.dot_dimension_numbers<[1], [0], [0], [1], [0, 0, 1, 1], [], []>} : vector<16x64xbf16>, vector<64x16xbf16>, vector<16x16xf32> -> vector<16x16xf32>
    %cst_201 = arith.constant 0.000000e+00 : f32
    %425 = vector.broadcast %cst_201 : f32 to vector<16x5xf32>
    %426 = tpu.concatenate %425, %424, %425 in 1 : vector<16x5xf32>, vector<16x16xf32>, vector<16x5xf32> -> vector<16x26xf32>
    %427 = vector.extract_strided_slice %426 {offsets = [0, 0], sizes = [16, 16], strides = [1, 1]} : vector<16x26xf32> to vector<16x16xf32>
    %cst_202 = arith.constant 0.000000e+00 : f32
    %428 = vector.shape_cast %60 : vector<1x16xi1> to vector<1x16xi1>
    %429 = vector.broadcast %428 : vector<1x16xi1> to vector<16x16xi1>
    %430 = vector.broadcast %cst_202 : f32 to vector<16x16xf32>
    %431 = arith.select %429, %427, %430 : vector<16x16xi1>, vector<16x16xf32>
    %c0_203 = arith.constant 0 : index
    %c0_204 = arith.constant 0 : index
    %c0_205 = arith.constant 0 : index
    %432 = vector.load %arg10[%c0_203, %c0_204, %c0_205] : memref<9x32x16xbf16, #tpu.memory_space<vmem>>, vector<1x32x16xbf16>
    %433 = vector.shape_cast %432 : vector<1x32x16xbf16> to vector<32x16xbf16>
    %434 = arith.truncf %431 : vector<16x16xf32> to vector<16x16xbf16>
    %cst_206 = arith.constant dense<0.000000e+00> : vector<32x16xf32>
    %435 = tpu.matmul %433, %434, %cst_206 {dimension_numbers = #tpu.dot_dimension_numbers<[1], [0], [0], [1], [0, 0, 1, 1], [], []>} : vector<32x16xbf16>, vector<16x16xbf16>, vector<32x16xf32> -> vector<32x16xf32>
    %436 = vector.extract_strided_slice %426 {offsets = [0, 1], sizes = [16, 16], strides = [1, 1]} : vector<16x26xf32> to vector<16x16xf32>
    %c1_207 = arith.constant 1 : index
    %c0_208 = arith.constant 0 : index
    %c0_209 = arith.constant 0 : index
    %437 = vector.load %arg10[%c1_207, %c0_208, %c0_209] : memref<9x32x16xbf16, #tpu.memory_space<vmem>>, vector<1x32x16xbf16>
    %438 = vector.shape_cast %437 : vector<1x32x16xbf16> to vector<32x16xbf16>
    %439 = arith.truncf %436 : vector<16x16xf32> to vector<16x16xbf16>
    %cst_210 = arith.constant dense<0.000000e+00> : vector<32x16xf32>
    %440 = tpu.matmul %438, %439, %cst_210 {dimension_numbers = #tpu.dot_dimension_numbers<[1], [0], [0], [1], [0, 0, 1, 1], [], []>} : vector<32x16xbf16>, vector<16x16xbf16>, vector<32x16xf32> -> vector<32x16xf32>
    %441 = arith.addf %435, %440 : vector<32x16xf32>
    %442 = vector.extract_strided_slice %426 {offsets = [0, 2], sizes = [16, 16], strides = [1, 1]} : vector<16x26xf32> to vector<16x16xf32>
    %cst_211 = arith.constant 0.000000e+00 : f32
    %443 = vector.shape_cast %62 : vector<1x16xi1> to vector<1x16xi1>
    %444 = vector.broadcast %443 : vector<1x16xi1> to vector<16x16xi1>
    %445 = vector.broadcast %cst_211 : f32 to vector<16x16xf32>
    %446 = arith.select %444, %442, %445 : vector<16x16xi1>, vector<16x16xf32>
    %c2_212 = arith.constant 2 : index
    %c0_213 = arith.constant 0 : index
    %c0_214 = arith.constant 0 : index
    %447 = vector.load %arg10[%c2_212, %c0_213, %c0_214] : memref<9x32x16xbf16, #tpu.memory_space<vmem>>, vector<1x32x16xbf16>
    %448 = vector.shape_cast %447 : vector<1x32x16xbf16> to vector<32x16xbf16>
    %449 = arith.truncf %446 : vector<16x16xf32> to vector<16x16xbf16>
    %cst_215 = arith.constant dense<0.000000e+00> : vector<32x16xf32>
    %450 = tpu.matmul %448, %449, %cst_215 {dimension_numbers = #tpu.dot_dimension_numbers<[1], [0], [0], [1], [0, 0, 1, 1], [], []>} : vector<32x16xbf16>, vector<16x16xbf16>, vector<32x16xf32> -> vector<32x16xf32>
    %451 = arith.addf %441, %450 : vector<32x16xf32>
    %452 = vector.extract_strided_slice %426 {offsets = [0, 4], sizes = [16, 16], strides = [1, 1]} : vector<16x26xf32> to vector<16x16xf32>
    %cst_216 = arith.constant 0.000000e+00 : f32
    %453 = vector.shape_cast %60 : vector<1x16xi1> to vector<1x16xi1>
    %454 = vector.broadcast %453 : vector<1x16xi1> to vector<16x16xi1>
    %455 = vector.broadcast %cst_216 : f32 to vector<16x16xf32>
    %456 = arith.select %454, %452, %455 : vector<16x16xi1>, vector<16x16xf32>
    %c3_217 = arith.constant 3 : index
    %c0_218 = arith.constant 0 : index
    %c0_219 = arith.constant 0 : index
    %457 = vector.load %arg10[%c3_217, %c0_218, %c0_219] : memref<9x32x16xbf16, #tpu.memory_space<vmem>>, vector<1x32x16xbf16>
    %458 = vector.shape_cast %457 : vector<1x32x16xbf16> to vector<32x16xbf16>
    %459 = arith.truncf %456 : vector<16x16xf32> to vector<16x16xbf16>
    %cst_220 = arith.constant dense<0.000000e+00> : vector<32x16xf32>
    %460 = tpu.matmul %458, %459, %cst_220 {dimension_numbers = #tpu.dot_dimension_numbers<[1], [0], [0], [1], [0, 0, 1, 1], [], []>} : vector<32x16xbf16>, vector<16x16xbf16>, vector<32x16xf32> -> vector<32x16xf32>
    %461 = arith.addf %451, %460 : vector<32x16xf32>
    %462 = vector.extract_strided_slice %426 {offsets = [0, 5], sizes = [16, 16], strides = [1, 1]} : vector<16x26xf32> to vector<16x16xf32>
    %c4_221 = arith.constant 4 : index
    %c0_222 = arith.constant 0 : index
    %c0_223 = arith.constant 0 : index
    %463 = vector.load %arg10[%c4_221, %c0_222, %c0_223] : memref<9x32x16xbf16, #tpu.memory_space<vmem>>, vector<1x32x16xbf16>
    %464 = vector.shape_cast %463 : vector<1x32x16xbf16> to vector<32x16xbf16>
    %465 = arith.truncf %462 : vector<16x16xf32> to vector<16x16xbf16>
    %cst_224 = arith.constant dense<0.000000e+00> : vector<32x16xf32>
    %466 = tpu.matmul %464, %465, %cst_224 {dimension_numbers = #tpu.dot_dimension_numbers<[1], [0], [0], [1], [0, 0, 1, 1], [], []>} : vector<32x16xbf16>, vector<16x16xbf16>, vector<32x16xf32> -> vector<32x16xf32>
    %467 = arith.addf %461, %466 : vector<32x16xf32>
    %468 = vector.extract_strided_slice %426 {offsets = [0, 6], sizes = [16, 16], strides = [1, 1]} : vector<16x26xf32> to vector<16x16xf32>
    %cst_225 = arith.constant 0.000000e+00 : f32
    %469 = vector.shape_cast %62 : vector<1x16xi1> to vector<1x16xi1>
    %470 = vector.broadcast %469 : vector<1x16xi1> to vector<16x16xi1>
    %471 = vector.broadcast %cst_225 : f32 to vector<16x16xf32>
    %472 = arith.select %470, %468, %471 : vector<16x16xi1>, vector<16x16xf32>
    %c5_226 = arith.constant 5 : index
    %c0_227 = arith.constant 0 : index
    %c0_228 = arith.constant 0 : index
    %473 = vector.load %arg10[%c5_226, %c0_227, %c0_228] : memref<9x32x16xbf16, #tpu.memory_space<vmem>>, vector<1x32x16xbf16>
    %474 = vector.shape_cast %473 : vector<1x32x16xbf16> to vector<32x16xbf16>
    %475 = arith.truncf %472 : vector<16x16xf32> to vector<16x16xbf16>
    %cst_229 = arith.constant dense<0.000000e+00> : vector<32x16xf32>
    %476 = tpu.matmul %474, %475, %cst_229 {dimension_numbers = #tpu.dot_dimension_numbers<[1], [0], [0], [1], [0, 0, 1, 1], [], []>} : vector<32x16xbf16>, vector<16x16xbf16>, vector<32x16xf32> -> vector<32x16xf32>
    %477 = arith.addf %467, %476 : vector<32x16xf32>
    %478 = vector.extract_strided_slice %426 {offsets = [0, 8], sizes = [16, 16], strides = [1, 1]} : vector<16x26xf32> to vector<16x16xf32>
    %cst_230 = arith.constant 0.000000e+00 : f32
    %479 = vector.shape_cast %60 : vector<1x16xi1> to vector<1x16xi1>
    %480 = vector.broadcast %479 : vector<1x16xi1> to vector<16x16xi1>
    %481 = vector.broadcast %cst_230 : f32 to vector<16x16xf32>
    %482 = arith.select %480, %478, %481 : vector<16x16xi1>, vector<16x16xf32>
    %c6_231 = arith.constant 6 : index
    %c0_232 = arith.constant 0 : index
    %c0_233 = arith.constant 0 : index
    %483 = vector.load %arg10[%c6_231, %c0_232, %c0_233] : memref<9x32x16xbf16, #tpu.memory_space<vmem>>, vector<1x32x16xbf16>
    %484 = vector.shape_cast %483 : vector<1x32x16xbf16> to vector<32x16xbf16>
    %485 = arith.truncf %482 : vector<16x16xf32> to vector<16x16xbf16>
    %cst_234 = arith.constant dense<0.000000e+00> : vector<32x16xf32>
    %486 = tpu.matmul %484, %485, %cst_234 {dimension_numbers = #tpu.dot_dimension_numbers<[1], [0], [0], [1], [0, 0, 1, 1], [], []>} : vector<32x16xbf16>, vector<16x16xbf16>, vector<32x16xf32> -> vector<32x16xf32>
    %487 = arith.addf %477, %486 : vector<32x16xf32>
    %488 = vector.extract_strided_slice %426 {offsets = [0, 9], sizes = [16, 16], strides = [1, 1]} : vector<16x26xf32> to vector<16x16xf32>
    %c7_235 = arith.constant 7 : index
    %c0_236 = arith.constant 0 : index
    %c0_237 = arith.constant 0 : index
    %489 = vector.load %arg10[%c7_235, %c0_236, %c0_237] : memref<9x32x16xbf16, #tpu.memory_space<vmem>>, vector<1x32x16xbf16>
    %490 = vector.shape_cast %489 : vector<1x32x16xbf16> to vector<32x16xbf16>
    %491 = arith.truncf %488 : vector<16x16xf32> to vector<16x16xbf16>
    %cst_238 = arith.constant dense<0.000000e+00> : vector<32x16xf32>
    %492 = tpu.matmul %490, %491, %cst_238 {dimension_numbers = #tpu.dot_dimension_numbers<[1], [0], [0], [1], [0, 0, 1, 1], [], []>} : vector<32x16xbf16>, vector<16x16xbf16>, vector<32x16xf32> -> vector<32x16xf32>
    %493 = arith.addf %487, %492 : vector<32x16xf32>
    %494 = vector.extract_strided_slice %426 {offsets = [0, 10], sizes = [16, 16], strides = [1, 1]} : vector<16x26xf32> to vector<16x16xf32>
    %cst_239 = arith.constant 0.000000e+00 : f32
    %495 = vector.shape_cast %62 : vector<1x16xi1> to vector<1x16xi1>
    %496 = vector.broadcast %495 : vector<1x16xi1> to vector<16x16xi1>
    %497 = vector.broadcast %cst_239 : f32 to vector<16x16xf32>
    %498 = arith.select %496, %494, %497 : vector<16x16xi1>, vector<16x16xf32>
    %c8_240 = arith.constant 8 : index
    %c0_241 = arith.constant 0 : index
    %c0_242 = arith.constant 0 : index
    %499 = vector.load %arg10[%c8_240, %c0_241, %c0_242] : memref<9x32x16xbf16, #tpu.memory_space<vmem>>, vector<1x32x16xbf16>
    %500 = vector.shape_cast %499 : vector<1x32x16xbf16> to vector<32x16xbf16>
    %501 = arith.truncf %498 : vector<16x16xf32> to vector<16x16xbf16>
    %cst_243 = arith.constant dense<0.000000e+00> : vector<32x16xf32>
    %502 = tpu.matmul %500, %501, %cst_243 {dimension_numbers = #tpu.dot_dimension_numbers<[1], [0], [0], [1], [0, 0, 1, 1], [], []>} : vector<32x16xbf16>, vector<16x16xbf16>, vector<32x16xf32> -> vector<32x16xf32>
    %503 = arith.addf %493, %502 : vector<32x16xf32>
    %c0_244 = arith.constant 0 : index
    %c0_245 = arith.constant 0 : index
    %504 = vector.load %arg11[%c0_244, %c0_245] : memref<32x1xf32, #tpu.memory_space<vmem>>, vector<32x1xf32>
    %505 = vector.broadcast %504 : vector<32x1xf32> to vector<32x16xf32>
    %506 = arith.addf %503, %505 : vector<32x16xf32>
    %cst_246 = arith.constant 0.000000e+00 : f32
    %507 = vector.broadcast %cst_246 : f32 to vector<32x16xf32>
    %508 = arith.maximumf %506, %507 : vector<32x16xf32>
    %cst_247 = arith.constant 0.000000e+00 : f32
    %509 = vector.broadcast %cst_247 : f32 to vector<32x5xf32>
    %510 = tpu.concatenate %509, %508, %509 in 1 : vector<32x5xf32>, vector<32x16xf32>, vector<32x5xf32> -> vector<32x26xf32>
    %511 = vector.extract_strided_slice %510 {offsets = [0, 0], sizes = [32, 16], strides = [1, 1]} : vector<32x26xf32> to vector<32x16xf32>
    %cst_248 = arith.constant 0.000000e+00 : f32
    %512 = vector.shape_cast %60 : vector<1x16xi1> to vector<1x16xi1>
    %513 = vector.broadcast %512 : vector<1x16xi1> to vector<32x16xi1>
    %514 = vector.broadcast %cst_248 : f32 to vector<32x16xf32>
    %515 = arith.select %513, %511, %514 : vector<32x16xi1>, vector<32x16xf32>
    %c0_249 = arith.constant 0 : index
    %c0_250 = arith.constant 0 : index
    %c0_251 = arith.constant 0 : index
    %516 = vector.load %arg12[%c0_249, %c0_250, %c0_251] : memref<9x32x32xbf16, #tpu.memory_space<vmem>>, vector<1x32x32xbf16>
    %517 = vector.shape_cast %516 : vector<1x32x32xbf16> to vector<32x32xbf16>
    %518 = arith.truncf %515 : vector<32x16xf32> to vector<32x16xbf16>
    %cst_252 = arith.constant dense<0.000000e+00> : vector<32x16xf32>
    %519 = tpu.matmul %517, %518, %cst_252 {dimension_numbers = #tpu.dot_dimension_numbers<[1], [0], [0], [1], [0, 0, 1, 1], [], []>} : vector<32x32xbf16>, vector<32x16xbf16>, vector<32x16xf32> -> vector<32x16xf32>
    %520 = vector.extract_strided_slice %510 {offsets = [0, 1], sizes = [32, 16], strides = [1, 1]} : vector<32x26xf32> to vector<32x16xf32>
    %c1_253 = arith.constant 1 : index
    %c0_254 = arith.constant 0 : index
    %c0_255 = arith.constant 0 : index
    %521 = vector.load %arg12[%c1_253, %c0_254, %c0_255] : memref<9x32x32xbf16, #tpu.memory_space<vmem>>, vector<1x32x32xbf16>
    %522 = vector.shape_cast %521 : vector<1x32x32xbf16> to vector<32x32xbf16>
    %523 = arith.truncf %520 : vector<32x16xf32> to vector<32x16xbf16>
    %cst_256 = arith.constant dense<0.000000e+00> : vector<32x16xf32>
    %524 = tpu.matmul %522, %523, %cst_256 {dimension_numbers = #tpu.dot_dimension_numbers<[1], [0], [0], [1], [0, 0, 1, 1], [], []>} : vector<32x32xbf16>, vector<32x16xbf16>, vector<32x16xf32> -> vector<32x16xf32>
    %525 = arith.addf %519, %524 : vector<32x16xf32>
    %526 = vector.extract_strided_slice %510 {offsets = [0, 2], sizes = [32, 16], strides = [1, 1]} : vector<32x26xf32> to vector<32x16xf32>
    %cst_257 = arith.constant 0.000000e+00 : f32
    %527 = vector.shape_cast %62 : vector<1x16xi1> to vector<1x16xi1>
    %528 = vector.broadcast %527 : vector<1x16xi1> to vector<32x16xi1>
    %529 = vector.broadcast %cst_257 : f32 to vector<32x16xf32>
    %530 = arith.select %528, %526, %529 : vector<32x16xi1>, vector<32x16xf32>
    %c2_258 = arith.constant 2 : index
    %c0_259 = arith.constant 0 : index
    %c0_260 = arith.constant 0 : index
    %531 = vector.load %arg12[%c2_258, %c0_259, %c0_260] : memref<9x32x32xbf16, #tpu.memory_space<vmem>>, vector<1x32x32xbf16>
    %532 = vector.shape_cast %531 : vector<1x32x32xbf16> to vector<32x32xbf16>
    %533 = arith.truncf %530 : vector<32x16xf32> to vector<32x16xbf16>
    %cst_261 = arith.constant dense<0.000000e+00> : vector<32x16xf32>
    %534 = tpu.matmul %532, %533, %cst_261 {dimension_numbers = #tpu.dot_dimension_numbers<[1], [0], [0], [1], [0, 0, 1, 1], [], []>} : vector<32x32xbf16>, vector<32x16xbf16>, vector<32x16xf32> -> vector<32x16xf32>
    %535 = arith.addf %525, %534 : vector<32x16xf32>
    %536 = vector.extract_strided_slice %510 {offsets = [0, 4], sizes = [32, 16], strides = [1, 1]} : vector<32x26xf32> to vector<32x16xf32>
    %cst_262 = arith.constant 0.000000e+00 : f32
    %537 = vector.shape_cast %60 : vector<1x16xi1> to vector<1x16xi1>
    %538 = vector.broadcast %537 : vector<1x16xi1> to vector<32x16xi1>
    %539 = vector.broadcast %cst_262 : f32 to vector<32x16xf32>
    %540 = arith.select %538, %536, %539 : vector<32x16xi1>, vector<32x16xf32>
    %c3_263 = arith.constant 3 : index
    %c0_264 = arith.constant 0 : index
    %c0_265 = arith.constant 0 : index
    %541 = vector.load %arg12[%c3_263, %c0_264, %c0_265] : memref<9x32x32xbf16, #tpu.memory_space<vmem>>, vector<1x32x32xbf16>
    %542 = vector.shape_cast %541 : vector<1x32x32xbf16> to vector<32x32xbf16>
    %543 = arith.truncf %540 : vector<32x16xf32> to vector<32x16xbf16>
    %cst_266 = arith.constant dense<0.000000e+00> : vector<32x16xf32>
    %544 = tpu.matmul %542, %543, %cst_266 {dimension_numbers = #tpu.dot_dimension_numbers<[1], [0], [0], [1], [0, 0, 1, 1], [], []>} : vector<32x32xbf16>, vector<32x16xbf16>, vector<32x16xf32> -> vector<32x16xf32>
    %545 = arith.addf %535, %544 : vector<32x16xf32>
    %546 = vector.extract_strided_slice %510 {offsets = [0, 5], sizes = [32, 16], strides = [1, 1]} : vector<32x26xf32> to vector<32x16xf32>
    %c4_267 = arith.constant 4 : index
    %c0_268 = arith.constant 0 : index
    %c0_269 = arith.constant 0 : index
    %547 = vector.load %arg12[%c4_267, %c0_268, %c0_269] : memref<9x32x32xbf16, #tpu.memory_space<vmem>>, vector<1x32x32xbf16>
    %548 = vector.shape_cast %547 : vector<1x32x32xbf16> to vector<32x32xbf16>
    %549 = arith.truncf %546 : vector<32x16xf32> to vector<32x16xbf16>
    %cst_270 = arith.constant dense<0.000000e+00> : vector<32x16xf32>
    %550 = tpu.matmul %548, %549, %cst_270 {dimension_numbers = #tpu.dot_dimension_numbers<[1], [0], [0], [1], [0, 0, 1, 1], [], []>} : vector<32x32xbf16>, vector<32x16xbf16>, vector<32x16xf32> -> vector<32x16xf32>
    %551 = arith.addf %545, %550 : vector<32x16xf32>
    %552 = vector.extract_strided_slice %510 {offsets = [0, 6], sizes = [32, 16], strides = [1, 1]} : vector<32x26xf32> to vector<32x16xf32>
    %cst_271 = arith.constant 0.000000e+00 : f32
    %553 = vector.shape_cast %62 : vector<1x16xi1> to vector<1x16xi1>
    %554 = vector.broadcast %553 : vector<1x16xi1> to vector<32x16xi1>
    %555 = vector.broadcast %cst_271 : f32 to vector<32x16xf32>
    %556 = arith.select %554, %552, %555 : vector<32x16xi1>, vector<32x16xf32>
    %c5_272 = arith.constant 5 : index
    %c0_273 = arith.constant 0 : index
    %c0_274 = arith.constant 0 : index
    %557 = vector.load %arg12[%c5_272, %c0_273, %c0_274] : memref<9x32x32xbf16, #tpu.memory_space<vmem>>, vector<1x32x32xbf16>
    %558 = vector.shape_cast %557 : vector<1x32x32xbf16> to vector<32x32xbf16>
    %559 = arith.truncf %556 : vector<32x16xf32> to vector<32x16xbf16>
    %cst_275 = arith.constant dense<0.000000e+00> : vector<32x16xf32>
    %560 = tpu.matmul %558, %559, %cst_275 {dimension_numbers = #tpu.dot_dimension_numbers<[1], [0], [0], [1], [0, 0, 1, 1], [], []>} : vector<32x32xbf16>, vector<32x16xbf16>, vector<32x16xf32> -> vector<32x16xf32>
    %561 = arith.addf %551, %560 : vector<32x16xf32>
    %562 = vector.extract_strided_slice %510 {offsets = [0, 8], sizes = [32, 16], strides = [1, 1]} : vector<32x26xf32> to vector<32x16xf32>
    %cst_276 = arith.constant 0.000000e+00 : f32
    %563 = vector.shape_cast %60 : vector<1x16xi1> to vector<1x16xi1>
    %564 = vector.broadcast %563 : vector<1x16xi1> to vector<32x16xi1>
    %565 = vector.broadcast %cst_276 : f32 to vector<32x16xf32>
    %566 = arith.select %564, %562, %565 : vector<32x16xi1>, vector<32x16xf32>
    %c6_277 = arith.constant 6 : index
    %c0_278 = arith.constant 0 : index
    %c0_279 = arith.constant 0 : index
    %567 = vector.load %arg12[%c6_277, %c0_278, %c0_279] : memref<9x32x32xbf16, #tpu.memory_space<vmem>>, vector<1x32x32xbf16>
    %568 = vector.shape_cast %567 : vector<1x32x32xbf16> to vector<32x32xbf16>
    %569 = arith.truncf %566 : vector<32x16xf32> to vector<32x16xbf16>
    %cst_280 = arith.constant dense<0.000000e+00> : vector<32x16xf32>
    %570 = tpu.matmul %568, %569, %cst_280 {dimension_numbers = #tpu.dot_dimension_numbers<[1], [0], [0], [1], [0, 0, 1, 1], [], []>} : vector<32x32xbf16>, vector<32x16xbf16>, vector<32x16xf32> -> vector<32x16xf32>
    %571 = arith.addf %561, %570 : vector<32x16xf32>
    %572 = vector.extract_strided_slice %510 {offsets = [0, 9], sizes = [32, 16], strides = [1, 1]} : vector<32x26xf32> to vector<32x16xf32>
    %c7_281 = arith.constant 7 : index
    %c0_282 = arith.constant 0 : index
    %c0_283 = arith.constant 0 : index
    %573 = vector.load %arg12[%c7_281, %c0_282, %c0_283] : memref<9x32x32xbf16, #tpu.memory_space<vmem>>, vector<1x32x32xbf16>
    %574 = vector.shape_cast %573 : vector<1x32x32xbf16> to vector<32x32xbf16>
    %575 = arith.truncf %572 : vector<32x16xf32> to vector<32x16xbf16>
    %cst_284 = arith.constant dense<0.000000e+00> : vector<32x16xf32>
    %576 = tpu.matmul %574, %575, %cst_284 {dimension_numbers = #tpu.dot_dimension_numbers<[1], [0], [0], [1], [0, 0, 1, 1], [], []>} : vector<32x32xbf16>, vector<32x16xbf16>, vector<32x16xf32> -> vector<32x16xf32>
    %577 = arith.addf %571, %576 : vector<32x16xf32>
    %578 = vector.extract_strided_slice %510 {offsets = [0, 10], sizes = [32, 16], strides = [1, 1]} : vector<32x26xf32> to vector<32x16xf32>
    %cst_285 = arith.constant 0.000000e+00 : f32
    %579 = vector.shape_cast %62 : vector<1x16xi1> to vector<1x16xi1>
    %580 = vector.broadcast %579 : vector<1x16xi1> to vector<32x16xi1>
    %581 = vector.broadcast %cst_285 : f32 to vector<32x16xf32>
    %582 = arith.select %580, %578, %581 : vector<32x16xi1>, vector<32x16xf32>
    %c8_286 = arith.constant 8 : index
    %c0_287 = arith.constant 0 : index
    %c0_288 = arith.constant 0 : index
    %583 = vector.load %arg12[%c8_286, %c0_287, %c0_288] : memref<9x32x32xbf16, #tpu.memory_space<vmem>>, vector<1x32x32xbf16>
    %584 = vector.shape_cast %583 : vector<1x32x32xbf16> to vector<32x32xbf16>
    %585 = arith.truncf %582 : vector<32x16xf32> to vector<32x16xbf16>
    %cst_289 = arith.constant dense<0.000000e+00> : vector<32x16xf32>
    %586 = tpu.matmul %584, %585, %cst_289 {dimension_numbers = #tpu.dot_dimension_numbers<[1], [0], [0], [1], [0, 0, 1, 1], [], []>} : vector<32x32xbf16>, vector<32x16xbf16>, vector<32x16xf32> -> vector<32x16xf32>
    %587 = arith.addf %577, %586 : vector<32x16xf32>
    %c0_290 = arith.constant 0 : index
    %c0_291 = arith.constant 0 : index
    %588 = vector.load %arg13[%c0_290, %c0_291] : memref<32x1xf32, #tpu.memory_space<vmem>>, vector<32x1xf32>
    %589 = vector.broadcast %588 : vector<32x1xf32> to vector<32x16xf32>
    %590 = arith.addf %587, %589 : vector<32x16xf32>
    %cst_292 = arith.constant 0.000000e+00 : f32
    %591 = vector.broadcast %cst_292 : f32 to vector<32x16xf32>
    %592 = arith.maximumf %590, %591 : vector<32x16xf32>
    %593 = arith.truncf %592 : vector<32x16xf32> to vector<32x16xbf16>
    %c0_293 = arith.constant 0 : index
    %c0_294 = arith.constant 0 : index
    %594 = vector.load %arg28[%c0_293, %c0_294] : memref<16x64xbf16, #tpu.memory_space<vmem>>, vector<16x64xbf16>
    %cst_295 = arith.constant dense<0.000000e+00> : vector<32x64xf32>
    %595 = tpu.matmul %593, %594, %cst_295 {dimension_numbers = #tpu.dot_dimension_numbers<[1], [0], [0], [1], [0, 0, 1, 1], [], []>} : vector<32x16xbf16>, vector<16x64xbf16>, vector<32x64xf32> -> vector<32x64xf32>
    %cst_296 = arith.constant 0.000000e+00 : f32
    %596 = vector.broadcast %cst_296 : f32 to vector<32x9xf32>
    %597 = tpu.concatenate %596, %595, %596 in 1 : vector<32x9xf32>, vector<32x64xf32>, vector<32x9xf32> -> vector<32x82xf32>
    %598 = vector.extract_strided_slice %597 {offsets = [0, 0], sizes = [32, 64], strides = [1, 1]} : vector<32x82xf32> to vector<32x64xf32>
    %cst_297 = arith.constant 0.000000e+00 : f32
    %599 = vector.shape_cast %39 : vector<1x64xi1> to vector<1x64xi1>
    %600 = vector.broadcast %599 : vector<1x64xi1> to vector<32x64xi1>
    %601 = vector.broadcast %cst_297 : f32 to vector<32x64xf32>
    %602 = arith.select %600, %598, %601 : vector<32x64xi1>, vector<32x64xf32>
    %c0_298 = arith.constant 0 : index
    %c0_299 = arith.constant 0 : index
    %c0_300 = arith.constant 0 : index
    %603 = vector.load %arg14[%c0_298, %c0_299, %c0_300] : memref<9x16x32xbf16, #tpu.memory_space<vmem>>, vector<1x16x32xbf16>
    %604 = vector.shape_cast %603 : vector<1x16x32xbf16> to vector<16x32xbf16>
    %605 = arith.truncf %602 : vector<32x64xf32> to vector<32x64xbf16>
    %cst_301 = arith.constant dense<0.000000e+00> : vector<16x64xf32>
    %606 = tpu.matmul %604, %605, %cst_301 {dimension_numbers = #tpu.dot_dimension_numbers<[1], [0], [0], [1], [0, 0, 1, 1], [], []>} : vector<16x32xbf16>, vector<32x64xbf16>, vector<16x64xf32> -> vector<16x64xf32>
    %607 = vector.extract_strided_slice %597 {offsets = [0, 1], sizes = [32, 64], strides = [1, 1]} : vector<32x82xf32> to vector<32x64xf32>
    %c1_302 = arith.constant 1 : index
    %c0_303 = arith.constant 0 : index
    %c0_304 = arith.constant 0 : index
    %608 = vector.load %arg14[%c1_302, %c0_303, %c0_304] : memref<9x16x32xbf16, #tpu.memory_space<vmem>>, vector<1x16x32xbf16>
    %609 = vector.shape_cast %608 : vector<1x16x32xbf16> to vector<16x32xbf16>
    %610 = arith.truncf %607 : vector<32x64xf32> to vector<32x64xbf16>
    %cst_305 = arith.constant dense<0.000000e+00> : vector<16x64xf32>
    %611 = tpu.matmul %609, %610, %cst_305 {dimension_numbers = #tpu.dot_dimension_numbers<[1], [0], [0], [1], [0, 0, 1, 1], [], []>} : vector<16x32xbf16>, vector<32x64xbf16>, vector<16x64xf32> -> vector<16x64xf32>
    %612 = arith.addf %606, %611 : vector<16x64xf32>
    %613 = vector.extract_strided_slice %597 {offsets = [0, 2], sizes = [32, 64], strides = [1, 1]} : vector<32x82xf32> to vector<32x64xf32>
    %cst_306 = arith.constant 0.000000e+00 : f32
    %614 = vector.shape_cast %41 : vector<1x64xi1> to vector<1x64xi1>
    %615 = vector.broadcast %614 : vector<1x64xi1> to vector<32x64xi1>
    %616 = vector.broadcast %cst_306 : f32 to vector<32x64xf32>
    %617 = arith.select %615, %613, %616 : vector<32x64xi1>, vector<32x64xf32>
    %c2_307 = arith.constant 2 : index
    %c0_308 = arith.constant 0 : index
    %c0_309 = arith.constant 0 : index
    %618 = vector.load %arg14[%c2_307, %c0_308, %c0_309] : memref<9x16x32xbf16, #tpu.memory_space<vmem>>, vector<1x16x32xbf16>
    %619 = vector.shape_cast %618 : vector<1x16x32xbf16> to vector<16x32xbf16>
    %620 = arith.truncf %617 : vector<32x64xf32> to vector<32x64xbf16>
    %cst_310 = arith.constant dense<0.000000e+00> : vector<16x64xf32>
    %621 = tpu.matmul %619, %620, %cst_310 {dimension_numbers = #tpu.dot_dimension_numbers<[1], [0], [0], [1], [0, 0, 1, 1], [], []>} : vector<16x32xbf16>, vector<32x64xbf16>, vector<16x64xf32> -> vector<16x64xf32>
    %622 = arith.addf %612, %621 : vector<16x64xf32>
    %623 = vector.extract_strided_slice %597 {offsets = [0, 8], sizes = [32, 64], strides = [1, 1]} : vector<32x82xf32> to vector<32x64xf32>
    %cst_311 = arith.constant 0.000000e+00 : f32
    %624 = vector.shape_cast %39 : vector<1x64xi1> to vector<1x64xi1>
    %625 = vector.broadcast %624 : vector<1x64xi1> to vector<32x64xi1>
    %626 = vector.broadcast %cst_311 : f32 to vector<32x64xf32>
    %627 = arith.select %625, %623, %626 : vector<32x64xi1>, vector<32x64xf32>
    %c3_312 = arith.constant 3 : index
    %c0_313 = arith.constant 0 : index
    %c0_314 = arith.constant 0 : index
    %628 = vector.load %arg14[%c3_312, %c0_313, %c0_314] : memref<9x16x32xbf16, #tpu.memory_space<vmem>>, vector<1x16x32xbf16>
    %629 = vector.shape_cast %628 : vector<1x16x32xbf16> to vector<16x32xbf16>
    %630 = arith.truncf %627 : vector<32x64xf32> to vector<32x64xbf16>
    %cst_315 = arith.constant dense<0.000000e+00> : vector<16x64xf32>
    %631 = tpu.matmul %629, %630, %cst_315 {dimension_numbers = #tpu.dot_dimension_numbers<[1], [0], [0], [1], [0, 0, 1, 1], [], []>} : vector<16x32xbf16>, vector<32x64xbf16>, vector<16x64xf32> -> vector<16x64xf32>
    %632 = arith.addf %622, %631 : vector<16x64xf32>
    %633 = vector.extract_strided_slice %597 {offsets = [0, 9], sizes = [32, 64], strides = [1, 1]} : vector<32x82xf32> to vector<32x64xf32>
    %c4_316 = arith.constant 4 : index
    %c0_317 = arith.constant 0 : index
    %c0_318 = arith.constant 0 : index
    %634 = vector.load %arg14[%c4_316, %c0_317, %c0_318] : memref<9x16x32xbf16, #tpu.memory_space<vmem>>, vector<1x16x32xbf16>
    %635 = vector.shape_cast %634 : vector<1x16x32xbf16> to vector<16x32xbf16>
    %636 = arith.truncf %633 : vector<32x64xf32> to vector<32x64xbf16>
    %cst_319 = arith.constant dense<0.000000e+00> : vector<16x64xf32>
    %637 = tpu.matmul %635, %636, %cst_319 {dimension_numbers = #tpu.dot_dimension_numbers<[1], [0], [0], [1], [0, 0, 1, 1], [], []>} : vector<16x32xbf16>, vector<32x64xbf16>, vector<16x64xf32> -> vector<16x64xf32>
    %638 = arith.addf %632, %637 : vector<16x64xf32>
    %639 = vector.extract_strided_slice %597 {offsets = [0, 10], sizes = [32, 64], strides = [1, 1]} : vector<32x82xf32> to vector<32x64xf32>
    %cst_320 = arith.constant 0.000000e+00 : f32
    %640 = vector.shape_cast %41 : vector<1x64xi1> to vector<1x64xi1>
    %641 = vector.broadcast %640 : vector<1x64xi1> to vector<32x64xi1>
    %642 = vector.broadcast %cst_320 : f32 to vector<32x64xf32>
    %643 = arith.select %641, %639, %642 : vector<32x64xi1>, vector<32x64xf32>
    %c5_321 = arith.constant 5 : index
    %c0_322 = arith.constant 0 : index
    %c0_323 = arith.constant 0 : index
    %644 = vector.load %arg14[%c5_321, %c0_322, %c0_323] : memref<9x16x32xbf16, #tpu.memory_space<vmem>>, vector<1x16x32xbf16>
    %645 = vector.shape_cast %644 : vector<1x16x32xbf16> to vector<16x32xbf16>
    %646 = arith.truncf %643 : vector<32x64xf32> to vector<32x64xbf16>
    %cst_324 = arith.constant dense<0.000000e+00> : vector<16x64xf32>
    %647 = tpu.matmul %645, %646, %cst_324 {dimension_numbers = #tpu.dot_dimension_numbers<[1], [0], [0], [1], [0, 0, 1, 1], [], []>} : vector<16x32xbf16>, vector<32x64xbf16>, vector<16x64xf32> -> vector<16x64xf32>
    %648 = arith.addf %638, %647 : vector<16x64xf32>
    %649 = vector.extract_strided_slice %597 {offsets = [0, 16], sizes = [32, 64], strides = [1, 1]} : vector<32x82xf32> to vector<32x64xf32>
    %cst_325 = arith.constant 0.000000e+00 : f32
    %650 = vector.shape_cast %39 : vector<1x64xi1> to vector<1x64xi1>
    %651 = vector.broadcast %650 : vector<1x64xi1> to vector<32x64xi1>
    %652 = vector.broadcast %cst_325 : f32 to vector<32x64xf32>
    %653 = arith.select %651, %649, %652 : vector<32x64xi1>, vector<32x64xf32>
    %c6_326 = arith.constant 6 : index
    %c0_327 = arith.constant 0 : index
    %c0_328 = arith.constant 0 : index
    %654 = vector.load %arg14[%c6_326, %c0_327, %c0_328] : memref<9x16x32xbf16, #tpu.memory_space<vmem>>, vector<1x16x32xbf16>
    %655 = vector.shape_cast %654 : vector<1x16x32xbf16> to vector<16x32xbf16>
    %656 = arith.truncf %653 : vector<32x64xf32> to vector<32x64xbf16>
    %cst_329 = arith.constant dense<0.000000e+00> : vector<16x64xf32>
    %657 = tpu.matmul %655, %656, %cst_329 {dimension_numbers = #tpu.dot_dimension_numbers<[1], [0], [0], [1], [0, 0, 1, 1], [], []>} : vector<16x32xbf16>, vector<32x64xbf16>, vector<16x64xf32> -> vector<16x64xf32>
    %658 = arith.addf %648, %657 : vector<16x64xf32>
    %659 = vector.extract_strided_slice %597 {offsets = [0, 17], sizes = [32, 64], strides = [1, 1]} : vector<32x82xf32> to vector<32x64xf32>
    %c7_330 = arith.constant 7 : index
    %c0_331 = arith.constant 0 : index
    %c0_332 = arith.constant 0 : index
    %660 = vector.load %arg14[%c7_330, %c0_331, %c0_332] : memref<9x16x32xbf16, #tpu.memory_space<vmem>>, vector<1x16x32xbf16>
    %661 = vector.shape_cast %660 : vector<1x16x32xbf16> to vector<16x32xbf16>
    %662 = arith.truncf %659 : vector<32x64xf32> to vector<32x64xbf16>
    %cst_333 = arith.constant dense<0.000000e+00> : vector<16x64xf32>
    %663 = tpu.matmul %661, %662, %cst_333 {dimension_numbers = #tpu.dot_dimension_numbers<[1], [0], [0], [1], [0, 0, 1, 1], [], []>} : vector<16x32xbf16>, vector<32x64xbf16>, vector<16x64xf32> -> vector<16x64xf32>
    %664 = arith.addf %658, %663 : vector<16x64xf32>
    %665 = vector.extract_strided_slice %597 {offsets = [0, 18], sizes = [32, 64], strides = [1, 1]} : vector<32x82xf32> to vector<32x64xf32>
    %cst_334 = arith.constant 0.000000e+00 : f32
    %666 = vector.shape_cast %41 : vector<1x64xi1> to vector<1x64xi1>
    %667 = vector.broadcast %666 : vector<1x64xi1> to vector<32x64xi1>
    %668 = vector.broadcast %cst_334 : f32 to vector<32x64xf32>
    %669 = arith.select %667, %665, %668 : vector<32x64xi1>, vector<32x64xf32>
    %c8_335 = arith.constant 8 : index
    %c0_336 = arith.constant 0 : index
    %c0_337 = arith.constant 0 : index
    %670 = vector.load %arg14[%c8_335, %c0_336, %c0_337] : memref<9x16x32xbf16, #tpu.memory_space<vmem>>, vector<1x16x32xbf16>
    %671 = vector.shape_cast %670 : vector<1x16x32xbf16> to vector<16x32xbf16>
    %672 = arith.truncf %669 : vector<32x64xf32> to vector<32x64xbf16>
    %cst_338 = arith.constant dense<0.000000e+00> : vector<16x64xf32>
    %673 = tpu.matmul %671, %672, %cst_338 {dimension_numbers = #tpu.dot_dimension_numbers<[1], [0], [0], [1], [0, 0, 1, 1], [], []>} : vector<16x32xbf16>, vector<32x64xbf16>, vector<16x64xf32> -> vector<16x64xf32>
    %674 = arith.addf %664, %673 : vector<16x64xf32>
    %cst_339 = arith.constant 0.000000e+00 : f32
    %675 = vector.broadcast %cst_339 : f32 to vector<16x9xf32>
    %676 = tpu.concatenate %675, %412, %675 in 1 : vector<16x9xf32>, vector<16x64xf32>, vector<16x9xf32> -> vector<16x82xf32>
    %677 = vector.extract_strided_slice %676 {offsets = [0, 0], sizes = [16, 64], strides = [1, 1]} : vector<16x82xf32> to vector<16x64xf32>
    %cst_340 = arith.constant 0.000000e+00 : f32
    %678 = vector.shape_cast %39 : vector<1x64xi1> to vector<1x64xi1>
    %679 = vector.broadcast %678 : vector<1x64xi1> to vector<16x64xi1>
    %680 = vector.broadcast %cst_340 : f32 to vector<16x64xf32>
    %681 = arith.select %679, %677, %680 : vector<16x64xi1>, vector<16x64xf32>
    %c0_341 = arith.constant 0 : index
    %c0_342 = arith.constant 0 : index
    %c0_343 = arith.constant 0 : index
    %682 = vector.load %arg15[%c0_341, %c0_342, %c0_343] : memref<9x16x16xbf16, #tpu.memory_space<vmem>>, vector<1x16x16xbf16>
    %683 = vector.shape_cast %682 : vector<1x16x16xbf16> to vector<16x16xbf16>
    %684 = arith.truncf %681 : vector<16x64xf32> to vector<16x64xbf16>
    %cst_344 = arith.constant dense<0.000000e+00> : vector<16x64xf32>
    %685 = tpu.matmul %683, %684, %cst_344 {dimension_numbers = #tpu.dot_dimension_numbers<[1], [0], [0], [1], [0, 0, 1, 1], [], []>} : vector<16x16xbf16>, vector<16x64xbf16>, vector<16x64xf32> -> vector<16x64xf32>
    %686 = vector.extract_strided_slice %676 {offsets = [0, 1], sizes = [16, 64], strides = [1, 1]} : vector<16x82xf32> to vector<16x64xf32>
    %c1_345 = arith.constant 1 : index
    %c0_346 = arith.constant 0 : index
    %c0_347 = arith.constant 0 : index
    %687 = vector.load %arg15[%c1_345, %c0_346, %c0_347] : memref<9x16x16xbf16, #tpu.memory_space<vmem>>, vector<1x16x16xbf16>
    %688 = vector.shape_cast %687 : vector<1x16x16xbf16> to vector<16x16xbf16>
    %689 = arith.truncf %686 : vector<16x64xf32> to vector<16x64xbf16>
    %cst_348 = arith.constant dense<0.000000e+00> : vector<16x64xf32>
    %690 = tpu.matmul %688, %689, %cst_348 {dimension_numbers = #tpu.dot_dimension_numbers<[1], [0], [0], [1], [0, 0, 1, 1], [], []>} : vector<16x16xbf16>, vector<16x64xbf16>, vector<16x64xf32> -> vector<16x64xf32>
    %691 = arith.addf %685, %690 : vector<16x64xf32>
    %692 = vector.extract_strided_slice %676 {offsets = [0, 2], sizes = [16, 64], strides = [1, 1]} : vector<16x82xf32> to vector<16x64xf32>
    %cst_349 = arith.constant 0.000000e+00 : f32
    %693 = vector.shape_cast %41 : vector<1x64xi1> to vector<1x64xi1>
    %694 = vector.broadcast %693 : vector<1x64xi1> to vector<16x64xi1>
    %695 = vector.broadcast %cst_349 : f32 to vector<16x64xf32>
    %696 = arith.select %694, %692, %695 : vector<16x64xi1>, vector<16x64xf32>
    %c2_350 = arith.constant 2 : index
    %c0_351 = arith.constant 0 : index
    %c0_352 = arith.constant 0 : index
    %697 = vector.load %arg15[%c2_350, %c0_351, %c0_352] : memref<9x16x16xbf16, #tpu.memory_space<vmem>>, vector<1x16x16xbf16>
    %698 = vector.shape_cast %697 : vector<1x16x16xbf16> to vector<16x16xbf16>
    %699 = arith.truncf %696 : vector<16x64xf32> to vector<16x64xbf16>
    %cst_353 = arith.constant dense<0.000000e+00> : vector<16x64xf32>
    %700 = tpu.matmul %698, %699, %cst_353 {dimension_numbers = #tpu.dot_dimension_numbers<[1], [0], [0], [1], [0, 0, 1, 1], [], []>} : vector<16x16xbf16>, vector<16x64xbf16>, vector<16x64xf32> -> vector<16x64xf32>
    %701 = arith.addf %691, %700 : vector<16x64xf32>
    %702 = vector.extract_strided_slice %676 {offsets = [0, 8], sizes = [16, 64], strides = [1, 1]} : vector<16x82xf32> to vector<16x64xf32>
    %cst_354 = arith.constant 0.000000e+00 : f32
    %703 = vector.shape_cast %39 : vector<1x64xi1> to vector<1x64xi1>
    %704 = vector.broadcast %703 : vector<1x64xi1> to vector<16x64xi1>
    %705 = vector.broadcast %cst_354 : f32 to vector<16x64xf32>
    %706 = arith.select %704, %702, %705 : vector<16x64xi1>, vector<16x64xf32>
    %c3_355 = arith.constant 3 : index
    %c0_356 = arith.constant 0 : index
    %c0_357 = arith.constant 0 : index
    %707 = vector.load %arg15[%c3_355, %c0_356, %c0_357] : memref<9x16x16xbf16, #tpu.memory_space<vmem>>, vector<1x16x16xbf16>
    %708 = vector.shape_cast %707 : vector<1x16x16xbf16> to vector<16x16xbf16>
    %709 = arith.truncf %706 : vector<16x64xf32> to vector<16x64xbf16>
    %cst_358 = arith.constant dense<0.000000e+00> : vector<16x64xf32>
    %710 = tpu.matmul %708, %709, %cst_358 {dimension_numbers = #tpu.dot_dimension_numbers<[1], [0], [0], [1], [0, 0, 1, 1], [], []>} : vector<16x16xbf16>, vector<16x64xbf16>, vector<16x64xf32> -> vector<16x64xf32>
    %711 = arith.addf %701, %710 : vector<16x64xf32>
    %712 = vector.extract_strided_slice %676 {offsets = [0, 9], sizes = [16, 64], strides = [1, 1]} : vector<16x82xf32> to vector<16x64xf32>
    %c4_359 = arith.constant 4 : index
    %c0_360 = arith.constant 0 : index
    %c0_361 = arith.constant 0 : index
    %713 = vector.load %arg15[%c4_359, %c0_360, %c0_361] : memref<9x16x16xbf16, #tpu.memory_space<vmem>>, vector<1x16x16xbf16>
    %714 = vector.shape_cast %713 : vector<1x16x16xbf16> to vector<16x16xbf16>
    %715 = arith.truncf %712 : vector<16x64xf32> to vector<16x64xbf16>
    %cst_362 = arith.constant dense<0.000000e+00> : vector<16x64xf32>
    %716 = tpu.matmul %714, %715, %cst_362 {dimension_numbers = #tpu.dot_dimension_numbers<[1], [0], [0], [1], [0, 0, 1, 1], [], []>} : vector<16x16xbf16>, vector<16x64xbf16>, vector<16x64xf32> -> vector<16x64xf32>
    %717 = arith.addf %711, %716 : vector<16x64xf32>
    %718 = vector.extract_strided_slice %676 {offsets = [0, 10], sizes = [16, 64], strides = [1, 1]} : vector<16x82xf32> to vector<16x64xf32>
    %cst_363 = arith.constant 0.000000e+00 : f32
    %719 = vector.shape_cast %41 : vector<1x64xi1> to vector<1x64xi1>
    %720 = vector.broadcast %719 : vector<1x64xi1> to vector<16x64xi1>
    %721 = vector.broadcast %cst_363 : f32 to vector<16x64xf32>
    %722 = arith.select %720, %718, %721 : vector<16x64xi1>, vector<16x64xf32>
    %c5_364 = arith.constant 5 : index
    %c0_365 = arith.constant 0 : index
    %c0_366 = arith.constant 0 : index
    %723 = vector.load %arg15[%c5_364, %c0_365, %c0_366] : memref<9x16x16xbf16, #tpu.memory_space<vmem>>, vector<1x16x16xbf16>
    %724 = vector.shape_cast %723 : vector<1x16x16xbf16> to vector<16x16xbf16>
    %725 = arith.truncf %722 : vector<16x64xf32> to vector<16x64xbf16>
    %cst_367 = arith.constant dense<0.000000e+00> : vector<16x64xf32>
    %726 = tpu.matmul %724, %725, %cst_367 {dimension_numbers = #tpu.dot_dimension_numbers<[1], [0], [0], [1], [0, 0, 1, 1], [], []>} : vector<16x16xbf16>, vector<16x64xbf16>, vector<16x64xf32> -> vector<16x64xf32>
    %727 = arith.addf %717, %726 : vector<16x64xf32>
    %728 = vector.extract_strided_slice %676 {offsets = [0, 16], sizes = [16, 64], strides = [1, 1]} : vector<16x82xf32> to vector<16x64xf32>
    %cst_368 = arith.constant 0.000000e+00 : f32
    %729 = vector.shape_cast %39 : vector<1x64xi1> to vector<1x64xi1>
    %730 = vector.broadcast %729 : vector<1x64xi1> to vector<16x64xi1>
    %731 = vector.broadcast %cst_368 : f32 to vector<16x64xf32>
    %732 = arith.select %730, %728, %731 : vector<16x64xi1>, vector<16x64xf32>
    %c6_369 = arith.constant 6 : index
    %c0_370 = arith.constant 0 : index
    %c0_371 = arith.constant 0 : index
    %733 = vector.load %arg15[%c6_369, %c0_370, %c0_371] : memref<9x16x16xbf16, #tpu.memory_space<vmem>>, vector<1x16x16xbf16>
    %734 = vector.shape_cast %733 : vector<1x16x16xbf16> to vector<16x16xbf16>
    %735 = arith.truncf %732 : vector<16x64xf32> to vector<16x64xbf16>
    %cst_372 = arith.constant dense<0.000000e+00> : vector<16x64xf32>
    %736 = tpu.matmul %734, %735, %cst_372 {dimension_numbers = #tpu.dot_dimension_numbers<[1], [0], [0], [1], [0, 0, 1, 1], [], []>} : vector<16x16xbf16>, vector<16x64xbf16>, vector<16x64xf32> -> vector<16x64xf32>
    %737 = arith.addf %727, %736 : vector<16x64xf32>
    %738 = vector.extract_strided_slice %676 {offsets = [0, 17], sizes = [16, 64], strides = [1, 1]} : vector<16x82xf32> to vector<16x64xf32>
    %c7_373 = arith.constant 7 : index
    %c0_374 = arith.constant 0 : index
    %c0_375 = arith.constant 0 : index
    %739 = vector.load %arg15[%c7_373, %c0_374, %c0_375] : memref<9x16x16xbf16, #tpu.memory_space<vmem>>, vector<1x16x16xbf16>
    %740 = vector.shape_cast %739 : vector<1x16x16xbf16> to vector<16x16xbf16>
    %741 = arith.truncf %738 : vector<16x64xf32> to vector<16x64xbf16>
    %cst_376 = arith.constant dense<0.000000e+00> : vector<16x64xf32>
    %742 = tpu.matmul %740, %741, %cst_376 {dimension_numbers = #tpu.dot_dimension_numbers<[1], [0], [0], [1], [0, 0, 1, 1], [], []>} : vector<16x16xbf16>, vector<16x64xbf16>, vector<16x64xf32> -> vector<16x64xf32>
    %743 = arith.addf %737, %742 : vector<16x64xf32>
    %744 = vector.extract_strided_slice %676 {offsets = [0, 18], sizes = [16, 64], strides = [1, 1]} : vector<16x82xf32> to vector<16x64xf32>
    %cst_377 = arith.constant 0.000000e+00 : f32
    %745 = vector.shape_cast %41 : vector<1x64xi1> to vector<1x64xi1>
    %746 = vector.broadcast %745 : vector<1x64xi1> to vector<16x64xi1>
    %747 = vector.broadcast %cst_377 : f32 to vector<16x64xf32>
    %748 = arith.select %746, %744, %747 : vector<16x64xi1>, vector<16x64xf32>
    %c8_378 = arith.constant 8 : index
    %c0_379 = arith.constant 0 : index
    %c0_380 = arith.constant 0 : index
    %749 = vector.load %arg15[%c8_378, %c0_379, %c0_380] : memref<9x16x16xbf16, #tpu.memory_space<vmem>>, vector<1x16x16xbf16>
    %750 = vector.shape_cast %749 : vector<1x16x16xbf16> to vector<16x16xbf16>
    %751 = arith.truncf %748 : vector<16x64xf32> to vector<16x64xbf16>
    %cst_381 = arith.constant dense<0.000000e+00> : vector<16x64xf32>
    %752 = tpu.matmul %750, %751, %cst_381 {dimension_numbers = #tpu.dot_dimension_numbers<[1], [0], [0], [1], [0, 0, 1, 1], [], []>} : vector<16x16xbf16>, vector<16x64xbf16>, vector<16x64xf32> -> vector<16x64xf32>
    %753 = arith.addf %743, %752 : vector<16x64xf32>
    %754 = arith.addf %674, %753 : vector<16x64xf32>
    %c0_382 = arith.constant 0 : index
    %c0_383 = arith.constant 0 : index
    %755 = vector.load %arg16[%c0_382, %c0_383] : memref<16x1xf32, #tpu.memory_space<vmem>>, vector<16x1xf32>
    %756 = vector.broadcast %755 : vector<16x1xf32> to vector<16x64xf32>
    %757 = arith.addf %754, %756 : vector<16x64xf32>
    %cst_384 = arith.constant 0.000000e+00 : f32
    %758 = vector.broadcast %cst_384 : f32 to vector<16x64xf32>
    %759 = arith.maximumf %757, %758 : vector<16x64xf32>
    %cst_385 = arith.constant 0.000000e+00 : f32
    %760 = vector.broadcast %cst_385 : f32 to vector<16x9xf32>
    %761 = tpu.concatenate %760, %759, %760 in 1 : vector<16x9xf32>, vector<16x64xf32>, vector<16x9xf32> -> vector<16x82xf32>
    %762 = vector.extract_strided_slice %761 {offsets = [0, 0], sizes = [16, 64], strides = [1, 1]} : vector<16x82xf32> to vector<16x64xf32>
    %cst_386 = arith.constant 0.000000e+00 : f32
    %763 = vector.shape_cast %39 : vector<1x64xi1> to vector<1x64xi1>
    %764 = vector.broadcast %763 : vector<1x64xi1> to vector<16x64xi1>
    %765 = vector.broadcast %cst_386 : f32 to vector<16x64xf32>
    %766 = arith.select %764, %762, %765 : vector<16x64xi1>, vector<16x64xf32>
    %c0_387 = arith.constant 0 : index
    %c0_388 = arith.constant 0 : index
    %c0_389 = arith.constant 0 : index
    %767 = vector.load %arg17[%c0_387, %c0_388, %c0_389] : memref<9x16x16xbf16, #tpu.memory_space<vmem>>, vector<1x16x16xbf16>
    %768 = vector.shape_cast %767 : vector<1x16x16xbf16> to vector<16x16xbf16>
    %769 = arith.truncf %766 : vector<16x64xf32> to vector<16x64xbf16>
    %cst_390 = arith.constant dense<0.000000e+00> : vector<16x64xf32>
    %770 = tpu.matmul %768, %769, %cst_390 {dimension_numbers = #tpu.dot_dimension_numbers<[1], [0], [0], [1], [0, 0, 1, 1], [], []>} : vector<16x16xbf16>, vector<16x64xbf16>, vector<16x64xf32> -> vector<16x64xf32>
    %771 = vector.extract_strided_slice %761 {offsets = [0, 1], sizes = [16, 64], strides = [1, 1]} : vector<16x82xf32> to vector<16x64xf32>
    %c1_391 = arith.constant 1 : index
    %c0_392 = arith.constant 0 : index
    %c0_393 = arith.constant 0 : index
    %772 = vector.load %arg17[%c1_391, %c0_392, %c0_393] : memref<9x16x16xbf16, #tpu.memory_space<vmem>>, vector<1x16x16xbf16>
    %773 = vector.shape_cast %772 : vector<1x16x16xbf16> to vector<16x16xbf16>
    %774 = arith.truncf %771 : vector<16x64xf32> to vector<16x64xbf16>
    %cst_394 = arith.constant dense<0.000000e+00> : vector<16x64xf32>
    %775 = tpu.matmul %773, %774, %cst_394 {dimension_numbers = #tpu.dot_dimension_numbers<[1], [0], [0], [1], [0, 0, 1, 1], [], []>} : vector<16x16xbf16>, vector<16x64xbf16>, vector<16x64xf32> -> vector<16x64xf32>
    %776 = arith.addf %770, %775 : vector<16x64xf32>
    %777 = vector.extract_strided_slice %761 {offsets = [0, 2], sizes = [16, 64], strides = [1, 1]} : vector<16x82xf32> to vector<16x64xf32>
    %cst_395 = arith.constant 0.000000e+00 : f32
    %778 = vector.shape_cast %41 : vector<1x64xi1> to vector<1x64xi1>
    %779 = vector.broadcast %778 : vector<1x64xi1> to vector<16x64xi1>
    %780 = vector.broadcast %cst_395 : f32 to vector<16x64xf32>
    %781 = arith.select %779, %777, %780 : vector<16x64xi1>, vector<16x64xf32>
    %c2_396 = arith.constant 2 : index
    %c0_397 = arith.constant 0 : index
    %c0_398 = arith.constant 0 : index
    %782 = vector.load %arg17[%c2_396, %c0_397, %c0_398] : memref<9x16x16xbf16, #tpu.memory_space<vmem>>, vector<1x16x16xbf16>
    %783 = vector.shape_cast %782 : vector<1x16x16xbf16> to vector<16x16xbf16>
    %784 = arith.truncf %781 : vector<16x64xf32> to vector<16x64xbf16>
    %cst_399 = arith.constant dense<0.000000e+00> : vector<16x64xf32>
    %785 = tpu.matmul %783, %784, %cst_399 {dimension_numbers = #tpu.dot_dimension_numbers<[1], [0], [0], [1], [0, 0, 1, 1], [], []>} : vector<16x16xbf16>, vector<16x64xbf16>, vector<16x64xf32> -> vector<16x64xf32>
    %786 = arith.addf %776, %785 : vector<16x64xf32>
    %787 = vector.extract_strided_slice %761 {offsets = [0, 8], sizes = [16, 64], strides = [1, 1]} : vector<16x82xf32> to vector<16x64xf32>
    %cst_400 = arith.constant 0.000000e+00 : f32
    %788 = vector.shape_cast %39 : vector<1x64xi1> to vector<1x64xi1>
    %789 = vector.broadcast %788 : vector<1x64xi1> to vector<16x64xi1>
    %790 = vector.broadcast %cst_400 : f32 to vector<16x64xf32>
    %791 = arith.select %789, %787, %790 : vector<16x64xi1>, vector<16x64xf32>
    %c3_401 = arith.constant 3 : index
    %c0_402 = arith.constant 0 : index
    %c0_403 = arith.constant 0 : index
    %792 = vector.load %arg17[%c3_401, %c0_402, %c0_403] : memref<9x16x16xbf16, #tpu.memory_space<vmem>>, vector<1x16x16xbf16>
    %793 = vector.shape_cast %792 : vector<1x16x16xbf16> to vector<16x16xbf16>
    %794 = arith.truncf %791 : vector<16x64xf32> to vector<16x64xbf16>
    %cst_404 = arith.constant dense<0.000000e+00> : vector<16x64xf32>
    %795 = tpu.matmul %793, %794, %cst_404 {dimension_numbers = #tpu.dot_dimension_numbers<[1], [0], [0], [1], [0, 0, 1, 1], [], []>} : vector<16x16xbf16>, vector<16x64xbf16>, vector<16x64xf32> -> vector<16x64xf32>
    %796 = arith.addf %786, %795 : vector<16x64xf32>
    %797 = vector.extract_strided_slice %761 {offsets = [0, 9], sizes = [16, 64], strides = [1, 1]} : vector<16x82xf32> to vector<16x64xf32>
    %c4_405 = arith.constant 4 : index
    %c0_406 = arith.constant 0 : index
    %c0_407 = arith.constant 0 : index
    %798 = vector.load %arg17[%c4_405, %c0_406, %c0_407] : memref<9x16x16xbf16, #tpu.memory_space<vmem>>, vector<1x16x16xbf16>
    %799 = vector.shape_cast %798 : vector<1x16x16xbf16> to vector<16x16xbf16>
    %800 = arith.truncf %797 : vector<16x64xf32> to vector<16x64xbf16>
    %cst_408 = arith.constant dense<0.000000e+00> : vector<16x64xf32>
    %801 = tpu.matmul %799, %800, %cst_408 {dimension_numbers = #tpu.dot_dimension_numbers<[1], [0], [0], [1], [0, 0, 1, 1], [], []>} : vector<16x16xbf16>, vector<16x64xbf16>, vector<16x64xf32> -> vector<16x64xf32>
    %802 = arith.addf %796, %801 : vector<16x64xf32>
    %803 = vector.extract_strided_slice %761 {offsets = [0, 10], sizes = [16, 64], strides = [1, 1]} : vector<16x82xf32> to vector<16x64xf32>
    %cst_409 = arith.constant 0.000000e+00 : f32
    %804 = vector.shape_cast %41 : vector<1x64xi1> to vector<1x64xi1>
    %805 = vector.broadcast %804 : vector<1x64xi1> to vector<16x64xi1>
    %806 = vector.broadcast %cst_409 : f32 to vector<16x64xf32>
    %807 = arith.select %805, %803, %806 : vector<16x64xi1>, vector<16x64xf32>
    %c5_410 = arith.constant 5 : index
    %c0_411 = arith.constant 0 : index
    %c0_412 = arith.constant 0 : index
    %808 = vector.load %arg17[%c5_410, %c0_411, %c0_412] : memref<9x16x16xbf16, #tpu.memory_space<vmem>>, vector<1x16x16xbf16>
    %809 = vector.shape_cast %808 : vector<1x16x16xbf16> to vector<16x16xbf16>
    %810 = arith.truncf %807 : vector<16x64xf32> to vector<16x64xbf16>
    %cst_413 = arith.constant dense<0.000000e+00> : vector<16x64xf32>
    %811 = tpu.matmul %809, %810, %cst_413 {dimension_numbers = #tpu.dot_dimension_numbers<[1], [0], [0], [1], [0, 0, 1, 1], [], []>} : vector<16x16xbf16>, vector<16x64xbf16>, vector<16x64xf32> -> vector<16x64xf32>
    %812 = arith.addf %802, %811 : vector<16x64xf32>
    %813 = vector.extract_strided_slice %761 {offsets = [0, 16], sizes = [16, 64], strides = [1, 1]} : vector<16x82xf32> to vector<16x64xf32>
    %cst_414 = arith.constant 0.000000e+00 : f32
    %814 = vector.shape_cast %39 : vector<1x64xi1> to vector<1x64xi1>
    %815 = vector.broadcast %814 : vector<1x64xi1> to vector<16x64xi1>
    %816 = vector.broadcast %cst_414 : f32 to vector<16x64xf32>
    %817 = arith.select %815, %813, %816 : vector<16x64xi1>, vector<16x64xf32>
    %c6_415 = arith.constant 6 : index
    %c0_416 = arith.constant 0 : index
    %c0_417 = arith.constant 0 : index
    %818 = vector.load %arg17[%c6_415, %c0_416, %c0_417] : memref<9x16x16xbf16, #tpu.memory_space<vmem>>, vector<1x16x16xbf16>
    %819 = vector.shape_cast %818 : vector<1x16x16xbf16> to vector<16x16xbf16>
    %820 = arith.truncf %817 : vector<16x64xf32> to vector<16x64xbf16>
    %cst_418 = arith.constant dense<0.000000e+00> : vector<16x64xf32>
    %821 = tpu.matmul %819, %820, %cst_418 {dimension_numbers = #tpu.dot_dimension_numbers<[1], [0], [0], [1], [0, 0, 1, 1], [], []>} : vector<16x16xbf16>, vector<16x64xbf16>, vector<16x64xf32> -> vector<16x64xf32>
    %822 = arith.addf %812, %821 : vector<16x64xf32>
    %823 = vector.extract_strided_slice %761 {offsets = [0, 17], sizes = [16, 64], strides = [1, 1]} : vector<16x82xf32> to vector<16x64xf32>
    %c7_419 = arith.constant 7 : index
    %c0_420 = arith.constant 0 : index
    %c0_421 = arith.constant 0 : index
    %824 = vector.load %arg17[%c7_419, %c0_420, %c0_421] : memref<9x16x16xbf16, #tpu.memory_space<vmem>>, vector<1x16x16xbf16>
    %825 = vector.shape_cast %824 : vector<1x16x16xbf16> to vector<16x16xbf16>
    %826 = arith.truncf %823 : vector<16x64xf32> to vector<16x64xbf16>
    %cst_422 = arith.constant dense<0.000000e+00> : vector<16x64xf32>
    %827 = tpu.matmul %825, %826, %cst_422 {dimension_numbers = #tpu.dot_dimension_numbers<[1], [0], [0], [1], [0, 0, 1, 1], [], []>} : vector<16x16xbf16>, vector<16x64xbf16>, vector<16x64xf32> -> vector<16x64xf32>
    %828 = arith.addf %822, %827 : vector<16x64xf32>
    %829 = vector.extract_strided_slice %761 {offsets = [0, 18], sizes = [16, 64], strides = [1, 1]} : vector<16x82xf32> to vector<16x64xf32>
    %cst_423 = arith.constant 0.000000e+00 : f32
    %830 = vector.shape_cast %41 : vector<1x64xi1> to vector<1x64xi1>
    %831 = vector.broadcast %830 : vector<1x64xi1> to vector<16x64xi1>
    %832 = vector.broadcast %cst_423 : f32 to vector<16x64xf32>
    %833 = arith.select %831, %829, %832 : vector<16x64xi1>, vector<16x64xf32>
    %c8_424 = arith.constant 8 : index
    %c0_425 = arith.constant 0 : index
    %c0_426 = arith.constant 0 : index
    %834 = vector.load %arg17[%c8_424, %c0_425, %c0_426] : memref<9x16x16xbf16, #tpu.memory_space<vmem>>, vector<1x16x16xbf16>
    %835 = vector.shape_cast %834 : vector<1x16x16xbf16> to vector<16x16xbf16>
    %836 = arith.truncf %833 : vector<16x64xf32> to vector<16x64xbf16>
    %cst_427 = arith.constant dense<0.000000e+00> : vector<16x64xf32>
    %837 = tpu.matmul %835, %836, %cst_427 {dimension_numbers = #tpu.dot_dimension_numbers<[1], [0], [0], [1], [0, 0, 1, 1], [], []>} : vector<16x16xbf16>, vector<16x64xbf16>, vector<16x64xf32> -> vector<16x64xf32>
    %838 = arith.addf %828, %837 : vector<16x64xf32>
    %c0_428 = arith.constant 0 : index
    %c0_429 = arith.constant 0 : index
    %839 = vector.load %arg18[%c0_428, %c0_429] : memref<16x1xf32, #tpu.memory_space<vmem>>, vector<16x1xf32>
    %840 = vector.broadcast %839 : vector<16x1xf32> to vector<16x64xf32>
    %841 = arith.addf %838, %840 : vector<16x64xf32>
    %cst_430 = arith.constant 0.000000e+00 : f32
    %842 = vector.broadcast %cst_430 : f32 to vector<16x64xf32>
    %843 = arith.maximumf %841, %842 : vector<16x64xf32>
    %844 = arith.truncf %843 : vector<16x64xf32> to vector<16x64xbf16>
    %c0_431 = arith.constant 0 : index
    %c0_432 = arith.constant 0 : index
    %845 = vector.load %arg29[%c0_431, %c0_432] : memref<64x256xbf16, #tpu.memory_space<vmem>>, vector<64x256xbf16>
    %cst_433 = arith.constant dense<0.000000e+00> : vector<16x256xf32>
    %846 = tpu.matmul %844, %845, %cst_433 {dimension_numbers = #tpu.dot_dimension_numbers<[1], [0], [0], [1], [0, 0, 1, 1], [], []>} : vector<16x64xbf16>, vector<64x256xbf16>, vector<16x256xf32> -> vector<16x256xf32>
    %cst_434 = arith.constant 0.000000e+00 : f32
    %847 = vector.broadcast %cst_434 : f32 to vector<16x17xf32>
    %848 = tpu.concatenate %847, %846, %847 in 1 : vector<16x17xf32>, vector<16x256xf32>, vector<16x17xf32> -> vector<16x290xf32>
    %849 = vector.extract_strided_slice %848 {offsets = [0, 0], sizes = [16, 256], strides = [1, 1]} : vector<16x290xf32> to vector<16x256xf32>
    %cst_435 = arith.constant 0.000000e+00 : f32
    %850 = vector.shape_cast %18 : vector<1x256xi1> to vector<1x256xi1>
    %851 = vector.broadcast %850 : vector<1x256xi1> to vector<16x256xi1>
    %852 = vector.broadcast %cst_435 : f32 to vector<16x256xf32>
    %853 = arith.select %851, %849, %852 : vector<16x256xi1>, vector<16x256xf32>
    %c0_436 = arith.constant 0 : index
    %c0_437 = arith.constant 0 : index
    %c0_438 = arith.constant 0 : index
    %854 = vector.load %arg19[%c0_436, %c0_437, %c0_438] : memref<9x8x16xbf16, #tpu.memory_space<vmem>>, vector<1x8x16xbf16>
    %855 = vector.shape_cast %854 : vector<1x8x16xbf16> to vector<8x16xbf16>
    %856 = arith.truncf %853 : vector<16x256xf32> to vector<16x256xbf16>
    %cst_439 = arith.constant dense<0.000000e+00> : vector<8x256xf32>
    %857 = tpu.matmul %855, %856, %cst_439 {dimension_numbers = #tpu.dot_dimension_numbers<[1], [0], [0], [1], [0, 0, 1, 1], [], []>} : vector<8x16xbf16>, vector<16x256xbf16>, vector<8x256xf32> -> vector<8x256xf32>
    %858 = vector.extract_strided_slice %848 {offsets = [0, 1], sizes = [16, 256], strides = [1, 1]} : vector<16x290xf32> to vector<16x256xf32>
    %c1_440 = arith.constant 1 : index
    %c0_441 = arith.constant 0 : index
    %c0_442 = arith.constant 0 : index
    %859 = vector.load %arg19[%c1_440, %c0_441, %c0_442] : memref<9x8x16xbf16, #tpu.memory_space<vmem>>, vector<1x8x16xbf16>
    %860 = vector.shape_cast %859 : vector<1x8x16xbf16> to vector<8x16xbf16>
    %861 = arith.truncf %858 : vector<16x256xf32> to vector<16x256xbf16>
    %cst_443 = arith.constant dense<0.000000e+00> : vector<8x256xf32>
    %862 = tpu.matmul %860, %861, %cst_443 {dimension_numbers = #tpu.dot_dimension_numbers<[1], [0], [0], [1], [0, 0, 1, 1], [], []>} : vector<8x16xbf16>, vector<16x256xbf16>, vector<8x256xf32> -> vector<8x256xf32>
    %863 = arith.addf %857, %862 : vector<8x256xf32>
    %864 = vector.extract_strided_slice %848 {offsets = [0, 2], sizes = [16, 256], strides = [1, 1]} : vector<16x290xf32> to vector<16x256xf32>
    %cst_444 = arith.constant 0.000000e+00 : f32
    %865 = vector.shape_cast %20 : vector<1x256xi1> to vector<1x256xi1>
    %866 = vector.broadcast %865 : vector<1x256xi1> to vector<16x256xi1>
    %867 = vector.broadcast %cst_444 : f32 to vector<16x256xf32>
    %868 = arith.select %866, %864, %867 : vector<16x256xi1>, vector<16x256xf32>
    %c2_445 = arith.constant 2 : index
    %c0_446 = arith.constant 0 : index
    %c0_447 = arith.constant 0 : index
    %869 = vector.load %arg19[%c2_445, %c0_446, %c0_447] : memref<9x8x16xbf16, #tpu.memory_space<vmem>>, vector<1x8x16xbf16>
    %870 = vector.shape_cast %869 : vector<1x8x16xbf16> to vector<8x16xbf16>
    %871 = arith.truncf %868 : vector<16x256xf32> to vector<16x256xbf16>
    %cst_448 = arith.constant dense<0.000000e+00> : vector<8x256xf32>
    %872 = tpu.matmul %870, %871, %cst_448 {dimension_numbers = #tpu.dot_dimension_numbers<[1], [0], [0], [1], [0, 0, 1, 1], [], []>} : vector<8x16xbf16>, vector<16x256xbf16>, vector<8x256xf32> -> vector<8x256xf32>
    %873 = arith.addf %863, %872 : vector<8x256xf32>
    %874 = vector.extract_strided_slice %848 {offsets = [0, 16], sizes = [16, 256], strides = [1, 1]} : vector<16x290xf32> to vector<16x256xf32>
    %cst_449 = arith.constant 0.000000e+00 : f32
    %875 = vector.shape_cast %18 : vector<1x256xi1> to vector<1x256xi1>
    %876 = vector.broadcast %875 : vector<1x256xi1> to vector<16x256xi1>
    %877 = vector.broadcast %cst_449 : f32 to vector<16x256xf32>
    %878 = arith.select %876, %874, %877 : vector<16x256xi1>, vector<16x256xf32>
    %c3_450 = arith.constant 3 : index
    %c0_451 = arith.constant 0 : index
    %c0_452 = arith.constant 0 : index
    %879 = vector.load %arg19[%c3_450, %c0_451, %c0_452] : memref<9x8x16xbf16, #tpu.memory_space<vmem>>, vector<1x8x16xbf16>
    %880 = vector.shape_cast %879 : vector<1x8x16xbf16> to vector<8x16xbf16>
    %881 = arith.truncf %878 : vector<16x256xf32> to vector<16x256xbf16>
    %cst_453 = arith.constant dense<0.000000e+00> : vector<8x256xf32>
    %882 = tpu.matmul %880, %881, %cst_453 {dimension_numbers = #tpu.dot_dimension_numbers<[1], [0], [0], [1], [0, 0, 1, 1], [], []>} : vector<8x16xbf16>, vector<16x256xbf16>, vector<8x256xf32> -> vector<8x256xf32>
    %883 = arith.addf %873, %882 : vector<8x256xf32>
    %884 = vector.extract_strided_slice %848 {offsets = [0, 17], sizes = [16, 256], strides = [1, 1]} : vector<16x290xf32> to vector<16x256xf32>
    %c4_454 = arith.constant 4 : index
    %c0_455 = arith.constant 0 : index
    %c0_456 = arith.constant 0 : index
    %885 = vector.load %arg19[%c4_454, %c0_455, %c0_456] : memref<9x8x16xbf16, #tpu.memory_space<vmem>>, vector<1x8x16xbf16>
    %886 = vector.shape_cast %885 : vector<1x8x16xbf16> to vector<8x16xbf16>
    %887 = arith.truncf %884 : vector<16x256xf32> to vector<16x256xbf16>
    %cst_457 = arith.constant dense<0.000000e+00> : vector<8x256xf32>
    %888 = tpu.matmul %886, %887, %cst_457 {dimension_numbers = #tpu.dot_dimension_numbers<[1], [0], [0], [1], [0, 0, 1, 1], [], []>} : vector<8x16xbf16>, vector<16x256xbf16>, vector<8x256xf32> -> vector<8x256xf32>
    %889 = arith.addf %883, %888 : vector<8x256xf32>
    %890 = vector.extract_strided_slice %848 {offsets = [0, 18], sizes = [16, 256], strides = [1, 1]} : vector<16x290xf32> to vector<16x256xf32>
    %cst_458 = arith.constant 0.000000e+00 : f32
    %891 = vector.shape_cast %20 : vector<1x256xi1> to vector<1x256xi1>
    %892 = vector.broadcast %891 : vector<1x256xi1> to vector<16x256xi1>
    %893 = vector.broadcast %cst_458 : f32 to vector<16x256xf32>
    %894 = arith.select %892, %890, %893 : vector<16x256xi1>, vector<16x256xf32>
    %c5_459 = arith.constant 5 : index
    %c0_460 = arith.constant 0 : index
    %c0_461 = arith.constant 0 : index
    %895 = vector.load %arg19[%c5_459, %c0_460, %c0_461] : memref<9x8x16xbf16, #tpu.memory_space<vmem>>, vector<1x8x16xbf16>
    %896 = vector.shape_cast %895 : vector<1x8x16xbf16> to vector<8x16xbf16>
    %897 = arith.truncf %894 : vector<16x256xf32> to vector<16x256xbf16>
    %cst_462 = arith.constant dense<0.000000e+00> : vector<8x256xf32>
    %898 = tpu.matmul %896, %897, %cst_462 {dimension_numbers = #tpu.dot_dimension_numbers<[1], [0], [0], [1], [0, 0, 1, 1], [], []>} : vector<8x16xbf16>, vector<16x256xbf16>, vector<8x256xf32> -> vector<8x256xf32>
    %899 = arith.addf %889, %898 : vector<8x256xf32>
    %900 = vector.extract_strided_slice %848 {offsets = [0, 32], sizes = [16, 256], strides = [1, 1]} : vector<16x290xf32> to vector<16x256xf32>
    %cst_463 = arith.constant 0.000000e+00 : f32
    %901 = vector.shape_cast %18 : vector<1x256xi1> to vector<1x256xi1>
    %902 = vector.broadcast %901 : vector<1x256xi1> to vector<16x256xi1>
    %903 = vector.broadcast %cst_463 : f32 to vector<16x256xf32>
    %904 = arith.select %902, %900, %903 : vector<16x256xi1>, vector<16x256xf32>
    %c6_464 = arith.constant 6 : index
    %c0_465 = arith.constant 0 : index
    %c0_466 = arith.constant 0 : index
    %905 = vector.load %arg19[%c6_464, %c0_465, %c0_466] : memref<9x8x16xbf16, #tpu.memory_space<vmem>>, vector<1x8x16xbf16>
    %906 = vector.shape_cast %905 : vector<1x8x16xbf16> to vector<8x16xbf16>
    %907 = arith.truncf %904 : vector<16x256xf32> to vector<16x256xbf16>
    %cst_467 = arith.constant dense<0.000000e+00> : vector<8x256xf32>
    %908 = tpu.matmul %906, %907, %cst_467 {dimension_numbers = #tpu.dot_dimension_numbers<[1], [0], [0], [1], [0, 0, 1, 1], [], []>} : vector<8x16xbf16>, vector<16x256xbf16>, vector<8x256xf32> -> vector<8x256xf32>
    %909 = arith.addf %899, %908 : vector<8x256xf32>
    %910 = vector.extract_strided_slice %848 {offsets = [0, 33], sizes = [16, 256], strides = [1, 1]} : vector<16x290xf32> to vector<16x256xf32>
    %c7_468 = arith.constant 7 : index
    %c0_469 = arith.constant 0 : index
    %c0_470 = arith.constant 0 : index
    %911 = vector.load %arg19[%c7_468, %c0_469, %c0_470] : memref<9x8x16xbf16, #tpu.memory_space<vmem>>, vector<1x8x16xbf16>
    %912 = vector.shape_cast %911 : vector<1x8x16xbf16> to vector<8x16xbf16>
    %913 = arith.truncf %910 : vector<16x256xf32> to vector<16x256xbf16>
    %cst_471 = arith.constant dense<0.000000e+00> : vector<8x256xf32>
    %914 = tpu.matmul %912, %913, %cst_471 {dimension_numbers = #tpu.dot_dimension_numbers<[1], [0], [0], [1], [0, 0, 1, 1], [], []>} : vector<8x16xbf16>, vector<16x256xbf16>, vector<8x256xf32> -> vector<8x256xf32>
    %915 = arith.addf %909, %914 : vector<8x256xf32>
    %916 = vector.extract_strided_slice %848 {offsets = [0, 34], sizes = [16, 256], strides = [1, 1]} : vector<16x290xf32> to vector<16x256xf32>
    %cst_472 = arith.constant 0.000000e+00 : f32
    %917 = vector.shape_cast %20 : vector<1x256xi1> to vector<1x256xi1>
    %918 = vector.broadcast %917 : vector<1x256xi1> to vector<16x256xi1>
    %919 = vector.broadcast %cst_472 : f32 to vector<16x256xf32>
    %920 = arith.select %918, %916, %919 : vector<16x256xi1>, vector<16x256xf32>
    %c8_473 = arith.constant 8 : index
    %c0_474 = arith.constant 0 : index
    %c0_475 = arith.constant 0 : index
    %921 = vector.load %arg19[%c8_473, %c0_474, %c0_475] : memref<9x8x16xbf16, #tpu.memory_space<vmem>>, vector<1x8x16xbf16>
    %922 = vector.shape_cast %921 : vector<1x8x16xbf16> to vector<8x16xbf16>
    %923 = arith.truncf %920 : vector<16x256xf32> to vector<16x256xbf16>
    %cst_476 = arith.constant dense<0.000000e+00> : vector<8x256xf32>
    %924 = tpu.matmul %922, %923, %cst_476 {dimension_numbers = #tpu.dot_dimension_numbers<[1], [0], [0], [1], [0, 0, 1, 1], [], []>} : vector<8x16xbf16>, vector<16x256xbf16>, vector<8x256xf32> -> vector<8x256xf32>
    %925 = arith.addf %915, %924 : vector<8x256xf32>
    %cst_477 = arith.constant 0.000000e+00 : f32
    %926 = vector.broadcast %cst_477 : f32 to vector<8x17xf32>
    %927 = tpu.concatenate %926, %232, %926 in 1 : vector<8x17xf32>, vector<8x256xf32>, vector<8x17xf32> -> vector<8x290xf32>
    %928 = vector.extract_strided_slice %927 {offsets = [0, 0], sizes = [8, 256], strides = [1, 1]} : vector<8x290xf32> to vector<8x256xf32>
    %cst_478 = arith.constant 0.000000e+00 : f32
    %929 = vector.shape_cast %18 : vector<1x256xi1> to vector<1x256xi1>
    %930 = vector.broadcast %929 : vector<1x256xi1> to vector<8x256xi1>
    %931 = vector.broadcast %cst_478 : f32 to vector<8x256xf32>
    %932 = arith.select %930, %928, %931 : vector<8x256xi1>, vector<8x256xf32>
    %c0_479 = arith.constant 0 : index
    %c0_480 = arith.constant 0 : index
    %c0_481 = arith.constant 0 : index
    %933 = vector.load %arg20[%c0_479, %c0_480, %c0_481] : memref<9x8x8xbf16, #tpu.memory_space<vmem>>, vector<1x8x8xbf16>
    %934 = vector.shape_cast %933 : vector<1x8x8xbf16> to vector<8x8xbf16>
    %935 = arith.truncf %932 : vector<8x256xf32> to vector<8x256xbf16>
    %cst_482 = arith.constant dense<0.000000e+00> : vector<8x256xf32>
    %936 = tpu.matmul %934, %935, %cst_482 {dimension_numbers = #tpu.dot_dimension_numbers<[1], [0], [0], [1], [0, 0, 1, 1], [], []>} : vector<8x8xbf16>, vector<8x256xbf16>, vector<8x256xf32> -> vector<8x256xf32>
    %937 = vector.extract_strided_slice %927 {offsets = [0, 1], sizes = [8, 256], strides = [1, 1]} : vector<8x290xf32> to vector<8x256xf32>
    %c1_483 = arith.constant 1 : index
    %c0_484 = arith.constant 0 : index
    %c0_485 = arith.constant 0 : index
    %938 = vector.load %arg20[%c1_483, %c0_484, %c0_485] : memref<9x8x8xbf16, #tpu.memory_space<vmem>>, vector<1x8x8xbf16>
    %939 = vector.shape_cast %938 : vector<1x8x8xbf16> to vector<8x8xbf16>
    %940 = arith.truncf %937 : vector<8x256xf32> to vector<8x256xbf16>
    %cst_486 = arith.constant dense<0.000000e+00> : vector<8x256xf32>
    %941 = tpu.matmul %939, %940, %cst_486 {dimension_numbers = #tpu.dot_dimension_numbers<[1], [0], [0], [1], [0, 0, 1, 1], [], []>} : vector<8x8xbf16>, vector<8x256xbf16>, vector<8x256xf32> -> vector<8x256xf32>
    %942 = arith.addf %936, %941 : vector<8x256xf32>
    %943 = vector.extract_strided_slice %927 {offsets = [0, 2], sizes = [8, 256], strides = [1, 1]} : vector<8x290xf32> to vector<8x256xf32>
    %cst_487 = arith.constant 0.000000e+00 : f32
    %944 = vector.shape_cast %20 : vector<1x256xi1> to vector<1x256xi1>
    %945 = vector.broadcast %944 : vector<1x256xi1> to vector<8x256xi1>
    %946 = vector.broadcast %cst_487 : f32 to vector<8x256xf32>
    %947 = arith.select %945, %943, %946 : vector<8x256xi1>, vector<8x256xf32>
    %c2_488 = arith.constant 2 : index
    %c0_489 = arith.constant 0 : index
    %c0_490 = arith.constant 0 : index
    %948 = vector.load %arg20[%c2_488, %c0_489, %c0_490] : memref<9x8x8xbf16, #tpu.memory_space<vmem>>, vector<1x8x8xbf16>
    %949 = vector.shape_cast %948 : vector<1x8x8xbf16> to vector<8x8xbf16>
    %950 = arith.truncf %947 : vector<8x256xf32> to vector<8x256xbf16>
    %cst_491 = arith.constant dense<0.000000e+00> : vector<8x256xf32>
    %951 = tpu.matmul %949, %950, %cst_491 {dimension_numbers = #tpu.dot_dimension_numbers<[1], [0], [0], [1], [0, 0, 1, 1], [], []>} : vector<8x8xbf16>, vector<8x256xbf16>, vector<8x256xf32> -> vector<8x256xf32>
    %952 = arith.addf %942, %951 : vector<8x256xf32>
    %953 = vector.extract_strided_slice %927 {offsets = [0, 16], sizes = [8, 256], strides = [1, 1]} : vector<8x290xf32> to vector<8x256xf32>
    %cst_492 = arith.constant 0.000000e+00 : f32
    %954 = vector.shape_cast %18 : vector<1x256xi1> to vector<1x256xi1>
    %955 = vector.broadcast %954 : vector<1x256xi1> to vector<8x256xi1>
    %956 = vector.broadcast %cst_492 : f32 to vector<8x256xf32>
    %957 = arith.select %955, %953, %956 : vector<8x256xi1>, vector<8x256xf32>
    %c3_493 = arith.constant 3 : index
    %c0_494 = arith.constant 0 : index
    %c0_495 = arith.constant 0 : index
    %958 = vector.load %arg20[%c3_493, %c0_494, %c0_495] : memref<9x8x8xbf16, #tpu.memory_space<vmem>>, vector<1x8x8xbf16>
    %959 = vector.shape_cast %958 : vector<1x8x8xbf16> to vector<8x8xbf16>
    %960 = arith.truncf %957 : vector<8x256xf32> to vector<8x256xbf16>
    %cst_496 = arith.constant dense<0.000000e+00> : vector<8x256xf32>
    %961 = tpu.matmul %959, %960, %cst_496 {dimension_numbers = #tpu.dot_dimension_numbers<[1], [0], [0], [1], [0, 0, 1, 1], [], []>} : vector<8x8xbf16>, vector<8x256xbf16>, vector<8x256xf32> -> vector<8x256xf32>
    %962 = arith.addf %952, %961 : vector<8x256xf32>
    %963 = vector.extract_strided_slice %927 {offsets = [0, 17], sizes = [8, 256], strides = [1, 1]} : vector<8x290xf32> to vector<8x256xf32>
    %c4_497 = arith.constant 4 : index
    %c0_498 = arith.constant 0 : index
    %c0_499 = arith.constant 0 : index
    %964 = vector.load %arg20[%c4_497, %c0_498, %c0_499] : memref<9x8x8xbf16, #tpu.memory_space<vmem>>, vector<1x8x8xbf16>
    %965 = vector.shape_cast %964 : vector<1x8x8xbf16> to vector<8x8xbf16>
    %966 = arith.truncf %963 : vector<8x256xf32> to vector<8x256xbf16>
    %cst_500 = arith.constant dense<0.000000e+00> : vector<8x256xf32>
    %967 = tpu.matmul %965, %966, %cst_500 {dimension_numbers = #tpu.dot_dimension_numbers<[1], [0], [0], [1], [0, 0, 1, 1], [], []>} : vector<8x8xbf16>, vector<8x256xbf16>, vector<8x256xf32> -> vector<8x256xf32>
    %968 = arith.addf %962, %967 : vector<8x256xf32>
    %969 = vector.extract_strided_slice %927 {offsets = [0, 18], sizes = [8, 256], strides = [1, 1]} : vector<8x290xf32> to vector<8x256xf32>
    %cst_501 = arith.constant 0.000000e+00 : f32
    %970 = vector.shape_cast %20 : vector<1x256xi1> to vector<1x256xi1>
    %971 = vector.broadcast %970 : vector<1x256xi1> to vector<8x256xi1>
    %972 = vector.broadcast %cst_501 : f32 to vector<8x256xf32>
    %973 = arith.select %971, %969, %972 : vector<8x256xi1>, vector<8x256xf32>
    %c5_502 = arith.constant 5 : index
    %c0_503 = arith.constant 0 : index
    %c0_504 = arith.constant 0 : index
    %974 = vector.load %arg20[%c5_502, %c0_503, %c0_504] : memref<9x8x8xbf16, #tpu.memory_space<vmem>>, vector<1x8x8xbf16>
    %975 = vector.shape_cast %974 : vector<1x8x8xbf16> to vector<8x8xbf16>
    %976 = arith.truncf %973 : vector<8x256xf32> to vector<8x256xbf16>
    %cst_505 = arith.constant dense<0.000000e+00> : vector<8x256xf32>
    %977 = tpu.matmul %975, %976, %cst_505 {dimension_numbers = #tpu.dot_dimension_numbers<[1], [0], [0], [1], [0, 0, 1, 1], [], []>} : vector<8x8xbf16>, vector<8x256xbf16>, vector<8x256xf32> -> vector<8x256xf32>
    %978 = arith.addf %968, %977 : vector<8x256xf32>
    %979 = vector.extract_strided_slice %927 {offsets = [0, 32], sizes = [8, 256], strides = [1, 1]} : vector<8x290xf32> to vector<8x256xf32>
    %cst_506 = arith.constant 0.000000e+00 : f32
    %980 = vector.shape_cast %18 : vector<1x256xi1> to vector<1x256xi1>
    %981 = vector.broadcast %980 : vector<1x256xi1> to vector<8x256xi1>
    %982 = vector.broadcast %cst_506 : f32 to vector<8x256xf32>
    %983 = arith.select %981, %979, %982 : vector<8x256xi1>, vector<8x256xf32>
    %c6_507 = arith.constant 6 : index
    %c0_508 = arith.constant 0 : index
    %c0_509 = arith.constant 0 : index
    %984 = vector.load %arg20[%c6_507, %c0_508, %c0_509] : memref<9x8x8xbf16, #tpu.memory_space<vmem>>, vector<1x8x8xbf16>
    %985 = vector.shape_cast %984 : vector<1x8x8xbf16> to vector<8x8xbf16>
    %986 = arith.truncf %983 : vector<8x256xf32> to vector<8x256xbf16>
    %cst_510 = arith.constant dense<0.000000e+00> : vector<8x256xf32>
    %987 = tpu.matmul %985, %986, %cst_510 {dimension_numbers = #tpu.dot_dimension_numbers<[1], [0], [0], [1], [0, 0, 1, 1], [], []>} : vector<8x8xbf16>, vector<8x256xbf16>, vector<8x256xf32> -> vector<8x256xf32>
    %988 = arith.addf %978, %987 : vector<8x256xf32>
    %989 = vector.extract_strided_slice %927 {offsets = [0, 33], sizes = [8, 256], strides = [1, 1]} : vector<8x290xf32> to vector<8x256xf32>
    %c7_511 = arith.constant 7 : index
    %c0_512 = arith.constant 0 : index
    %c0_513 = arith.constant 0 : index
    %990 = vector.load %arg20[%c7_511, %c0_512, %c0_513] : memref<9x8x8xbf16, #tpu.memory_space<vmem>>, vector<1x8x8xbf16>
    %991 = vector.shape_cast %990 : vector<1x8x8xbf16> to vector<8x8xbf16>
    %992 = arith.truncf %989 : vector<8x256xf32> to vector<8x256xbf16>
    %cst_514 = arith.constant dense<0.000000e+00> : vector<8x256xf32>
    %993 = tpu.matmul %991, %992, %cst_514 {dimension_numbers = #tpu.dot_dimension_numbers<[1], [0], [0], [1], [0, 0, 1, 1], [], []>} : vector<8x8xbf16>, vector<8x256xbf16>, vector<8x256xf32> -> vector<8x256xf32>
    %994 = arith.addf %988, %993 : vector<8x256xf32>
    %995 = vector.extract_strided_slice %927 {offsets = [0, 34], sizes = [8, 256], strides = [1, 1]} : vector<8x290xf32> to vector<8x256xf32>
    %cst_515 = arith.constant 0.000000e+00 : f32
    %996 = vector.shape_cast %20 : vector<1x256xi1> to vector<1x256xi1>
    %997 = vector.broadcast %996 : vector<1x256xi1> to vector<8x256xi1>
    %998 = vector.broadcast %cst_515 : f32 to vector<8x256xf32>
    %999 = arith.select %997, %995, %998 : vector<8x256xi1>, vector<8x256xf32>
    %c8_516 = arith.constant 8 : index
    %c0_517 = arith.constant 0 : index
    %c0_518 = arith.constant 0 : index
    %1000 = vector.load %arg20[%c8_516, %c0_517, %c0_518] : memref<9x8x8xbf16, #tpu.memory_space<vmem>>, vector<1x8x8xbf16>
    %1001 = vector.shape_cast %1000 : vector<1x8x8xbf16> to vector<8x8xbf16>
    %1002 = arith.truncf %999 : vector<8x256xf32> to vector<8x256xbf16>
    %cst_519 = arith.constant dense<0.000000e+00> : vector<8x256xf32>
    %1003 = tpu.matmul %1001, %1002, %cst_519 {dimension_numbers = #tpu.dot_dimension_numbers<[1], [0], [0], [1], [0, 0, 1, 1], [], []>} : vector<8x8xbf16>, vector<8x256xbf16>, vector<8x256xf32> -> vector<8x256xf32>
    %1004 = arith.addf %994, %1003 : vector<8x256xf32>
    %1005 = arith.addf %925, %1004 : vector<8x256xf32>
    %c0_520 = arith.constant 0 : index
    %c0_521 = arith.constant 0 : index
    %1006 = vector.load %arg21[%c0_520, %c0_521] : memref<8x1xf32, #tpu.memory_space<vmem>>, vector<8x1xf32>
    %1007 = vector.broadcast %1006 : vector<8x1xf32> to vector<8x256xf32>
    %1008 = arith.addf %1005, %1007 : vector<8x256xf32>
    %cst_522 = arith.constant 0.000000e+00 : f32
    %1009 = vector.broadcast %cst_522 : f32 to vector<8x256xf32>
    %1010 = arith.maximumf %1008, %1009 : vector<8x256xf32>
    %cst_523 = arith.constant 0.000000e+00 : f32
    %1011 = vector.broadcast %cst_523 : f32 to vector<8x17xf32>
    %1012 = tpu.concatenate %1011, %1010, %1011 in 1 : vector<8x17xf32>, vector<8x256xf32>, vector<8x17xf32> -> vector<8x290xf32>
    %1013 = vector.extract_strided_slice %1012 {offsets = [0, 0], sizes = [8, 256], strides = [1, 1]} : vector<8x290xf32> to vector<8x256xf32>
    %cst_524 = arith.constant 0.000000e+00 : f32
    %1014 = vector.shape_cast %18 : vector<1x256xi1> to vector<1x256xi1>
    %1015 = vector.broadcast %1014 : vector<1x256xi1> to vector<8x256xi1>
    %1016 = vector.broadcast %cst_524 : f32 to vector<8x256xf32>
    %1017 = arith.select %1015, %1013, %1016 : vector<8x256xi1>, vector<8x256xf32>
    %c0_525 = arith.constant 0 : index
    %c0_526 = arith.constant 0 : index
    %c0_527 = arith.constant 0 : index
    %1018 = vector.load %arg22[%c0_525, %c0_526, %c0_527] : memref<9x8x8xbf16, #tpu.memory_space<vmem>>, vector<1x8x8xbf16>
    %1019 = vector.shape_cast %1018 : vector<1x8x8xbf16> to vector<8x8xbf16>
    %1020 = arith.truncf %1017 : vector<8x256xf32> to vector<8x256xbf16>
    %cst_528 = arith.constant dense<0.000000e+00> : vector<8x256xf32>
    %1021 = tpu.matmul %1019, %1020, %cst_528 {dimension_numbers = #tpu.dot_dimension_numbers<[1], [0], [0], [1], [0, 0, 1, 1], [], []>} : vector<8x8xbf16>, vector<8x256xbf16>, vector<8x256xf32> -> vector<8x256xf32>
    %1022 = vector.extract_strided_slice %1012 {offsets = [0, 1], sizes = [8, 256], strides = [1, 1]} : vector<8x290xf32> to vector<8x256xf32>
    %c1_529 = arith.constant 1 : index
    %c0_530 = arith.constant 0 : index
    %c0_531 = arith.constant 0 : index
    %1023 = vector.load %arg22[%c1_529, %c0_530, %c0_531] : memref<9x8x8xbf16, #tpu.memory_space<vmem>>, vector<1x8x8xbf16>
    %1024 = vector.shape_cast %1023 : vector<1x8x8xbf16> to vector<8x8xbf16>
    %1025 = arith.truncf %1022 : vector<8x256xf32> to vector<8x256xbf16>
    %cst_532 = arith.constant dense<0.000000e+00> : vector<8x256xf32>
    %1026 = tpu.matmul %1024, %1025, %cst_532 {dimension_numbers = #tpu.dot_dimension_numbers<[1], [0], [0], [1], [0, 0, 1, 1], [], []>} : vector<8x8xbf16>, vector<8x256xbf16>, vector<8x256xf32> -> vector<8x256xf32>
    %1027 = arith.addf %1021, %1026 : vector<8x256xf32>
    %1028 = vector.extract_strided_slice %1012 {offsets = [0, 2], sizes = [8, 256], strides = [1, 1]} : vector<8x290xf32> to vector<8x256xf32>
    %cst_533 = arith.constant 0.000000e+00 : f32
    %1029 = vector.shape_cast %20 : vector<1x256xi1> to vector<1x256xi1>
    %1030 = vector.broadcast %1029 : vector<1x256xi1> to vector<8x256xi1>
    %1031 = vector.broadcast %cst_533 : f32 to vector<8x256xf32>
    %1032 = arith.select %1030, %1028, %1031 : vector<8x256xi1>, vector<8x256xf32>
    %c2_534 = arith.constant 2 : index
    %c0_535 = arith.constant 0 : index
    %c0_536 = arith.constant 0 : index
    %1033 = vector.load %arg22[%c2_534, %c0_535, %c0_536] : memref<9x8x8xbf16, #tpu.memory_space<vmem>>, vector<1x8x8xbf16>
    %1034 = vector.shape_cast %1033 : vector<1x8x8xbf16> to vector<8x8xbf16>
    %1035 = arith.truncf %1032 : vector<8x256xf32> to vector<8x256xbf16>
    %cst_537 = arith.constant dense<0.000000e+00> : vector<8x256xf32>
    %1036 = tpu.matmul %1034, %1035, %cst_537 {dimension_numbers = #tpu.dot_dimension_numbers<[1], [0], [0], [1], [0, 0, 1, 1], [], []>} : vector<8x8xbf16>, vector<8x256xbf16>, vector<8x256xf32> -> vector<8x256xf32>
    %1037 = arith.addf %1027, %1036 : vector<8x256xf32>
    %1038 = vector.extract_strided_slice %1012 {offsets = [0, 16], sizes = [8, 256], strides = [1, 1]} : vector<8x290xf32> to vector<8x256xf32>
    %cst_538 = arith.constant 0.000000e+00 : f32
    %1039 = vector.shape_cast %18 : vector<1x256xi1> to vector<1x256xi1>
    %1040 = vector.broadcast %1039 : vector<1x256xi1> to vector<8x256xi1>
    %1041 = vector.broadcast %cst_538 : f32 to vector<8x256xf32>
    %1042 = arith.select %1040, %1038, %1041 : vector<8x256xi1>, vector<8x256xf32>
    %c3_539 = arith.constant 3 : index
    %c0_540 = arith.constant 0 : index
    %c0_541 = arith.constant 0 : index
    %1043 = vector.load %arg22[%c3_539, %c0_540, %c0_541] : memref<9x8x8xbf16, #tpu.memory_space<vmem>>, vector<1x8x8xbf16>
    %1044 = vector.shape_cast %1043 : vector<1x8x8xbf16> to vector<8x8xbf16>
    %1045 = arith.truncf %1042 : vector<8x256xf32> to vector<8x256xbf16>
    %cst_542 = arith.constant dense<0.000000e+00> : vector<8x256xf32>
    %1046 = tpu.matmul %1044, %1045, %cst_542 {dimension_numbers = #tpu.dot_dimension_numbers<[1], [0], [0], [1], [0, 0, 1, 1], [], []>} : vector<8x8xbf16>, vector<8x256xbf16>, vector<8x256xf32> -> vector<8x256xf32>
    %1047 = arith.addf %1037, %1046 : vector<8x256xf32>
    %1048 = vector.extract_strided_slice %1012 {offsets = [0, 17], sizes = [8, 256], strides = [1, 1]} : vector<8x290xf32> to vector<8x256xf32>
    %c4_543 = arith.constant 4 : index
    %c0_544 = arith.constant 0 : index
    %c0_545 = arith.constant 0 : index
    %1049 = vector.load %arg22[%c4_543, %c0_544, %c0_545] : memref<9x8x8xbf16, #tpu.memory_space<vmem>>, vector<1x8x8xbf16>
    %1050 = vector.shape_cast %1049 : vector<1x8x8xbf16> to vector<8x8xbf16>
    %1051 = arith.truncf %1048 : vector<8x256xf32> to vector<8x256xbf16>
    %cst_546 = arith.constant dense<0.000000e+00> : vector<8x256xf32>
    %1052 = tpu.matmul %1050, %1051, %cst_546 {dimension_numbers = #tpu.dot_dimension_numbers<[1], [0], [0], [1], [0, 0, 1, 1], [], []>} : vector<8x8xbf16>, vector<8x256xbf16>, vector<8x256xf32> -> vector<8x256xf32>
    %1053 = arith.addf %1047, %1052 : vector<8x256xf32>
    %1054 = vector.extract_strided_slice %1012 {offsets = [0, 18], sizes = [8, 256], strides = [1, 1]} : vector<8x290xf32> to vector<8x256xf32>
    %cst_547 = arith.constant 0.000000e+00 : f32
    %1055 = vector.shape_cast %20 : vector<1x256xi1> to vector<1x256xi1>
    %1056 = vector.broadcast %1055 : vector<1x256xi1> to vector<8x256xi1>
    %1057 = vector.broadcast %cst_547 : f32 to vector<8x256xf32>
    %1058 = arith.select %1056, %1054, %1057 : vector<8x256xi1>, vector<8x256xf32>
    %c5_548 = arith.constant 5 : index
    %c0_549 = arith.constant 0 : index
    %c0_550 = arith.constant 0 : index
    %1059 = vector.load %arg22[%c5_548, %c0_549, %c0_550] : memref<9x8x8xbf16, #tpu.memory_space<vmem>>, vector<1x8x8xbf16>
    %1060 = vector.shape_cast %1059 : vector<1x8x8xbf16> to vector<8x8xbf16>
    %1061 = arith.truncf %1058 : vector<8x256xf32> to vector<8x256xbf16>
    %cst_551 = arith.constant dense<0.000000e+00> : vector<8x256xf32>
    %1062 = tpu.matmul %1060, %1061, %cst_551 {dimension_numbers = #tpu.dot_dimension_numbers<[1], [0], [0], [1], [0, 0, 1, 1], [], []>} : vector<8x8xbf16>, vector<8x256xbf16>, vector<8x256xf32> -> vector<8x256xf32>
    %1063 = arith.addf %1053, %1062 : vector<8x256xf32>
    %1064 = vector.extract_strided_slice %1012 {offsets = [0, 32], sizes = [8, 256], strides = [1, 1]} : vector<8x290xf32> to vector<8x256xf32>
    %cst_552 = arith.constant 0.000000e+00 : f32
    %1065 = vector.shape_cast %18 : vector<1x256xi1> to vector<1x256xi1>
    %1066 = vector.broadcast %1065 : vector<1x256xi1> to vector<8x256xi1>
    %1067 = vector.broadcast %cst_552 : f32 to vector<8x256xf32>
    %1068 = arith.select %1066, %1064, %1067 : vector<8x256xi1>, vector<8x256xf32>
    %c6_553 = arith.constant 6 : index
    %c0_554 = arith.constant 0 : index
    %c0_555 = arith.constant 0 : index
    %1069 = vector.load %arg22[%c6_553, %c0_554, %c0_555] : memref<9x8x8xbf16, #tpu.memory_space<vmem>>, vector<1x8x8xbf16>
    %1070 = vector.shape_cast %1069 : vector<1x8x8xbf16> to vector<8x8xbf16>
    %1071 = arith.truncf %1068 : vector<8x256xf32> to vector<8x256xbf16>
    %cst_556 = arith.constant dense<0.000000e+00> : vector<8x256xf32>
    %1072 = tpu.matmul %1070, %1071, %cst_556 {dimension_numbers = #tpu.dot_dimension_numbers<[1], [0], [0], [1], [0, 0, 1, 1], [], []>} : vector<8x8xbf16>, vector<8x256xbf16>, vector<8x256xf32> -> vector<8x256xf32>
    %1073 = arith.addf %1063, %1072 : vector<8x256xf32>
    %1074 = vector.extract_strided_slice %1012 {offsets = [0, 33], sizes = [8, 256], strides = [1, 1]} : vector<8x290xf32> to vector<8x256xf32>
    %c7_557 = arith.constant 7 : index
    %c0_558 = arith.constant 0 : index
    %c0_559 = arith.constant 0 : index
    %1075 = vector.load %arg22[%c7_557, %c0_558, %c0_559] : memref<9x8x8xbf16, #tpu.memory_space<vmem>>, vector<1x8x8xbf16>
    %1076 = vector.shape_cast %1075 : vector<1x8x8xbf16> to vector<8x8xbf16>
    %1077 = arith.truncf %1074 : vector<8x256xf32> to vector<8x256xbf16>
    %cst_560 = arith.constant dense<0.000000e+00> : vector<8x256xf32>
    %1078 = tpu.matmul %1076, %1077, %cst_560 {dimension_numbers = #tpu.dot_dimension_numbers<[1], [0], [0], [1], [0, 0, 1, 1], [], []>} : vector<8x8xbf16>, vector<8x256xbf16>, vector<8x256xf32> -> vector<8x256xf32>
    %1079 = arith.addf %1073, %1078 : vector<8x256xf32>
    %1080 = vector.extract_strided_slice %1012 {offsets = [0, 34], sizes = [8, 256], strides = [1, 1]} : vector<8x290xf32> to vector<8x256xf32>
    %cst_561 = arith.constant 0.000000e+00 : f32
    %1081 = vector.shape_cast %20 : vector<1x256xi1> to vector<1x256xi1>
    %1082 = vector.broadcast %1081 : vector<1x256xi1> to vector<8x256xi1>
    %1083 = vector.broadcast %cst_561 : f32 to vector<8x256xf32>
    %1084 = arith.select %1082, %1080, %1083 : vector<8x256xi1>, vector<8x256xf32>
    %c8_562 = arith.constant 8 : index
    %c0_563 = arith.constant 0 : index
    %c0_564 = arith.constant 0 : index
    %1085 = vector.load %arg22[%c8_562, %c0_563, %c0_564] : memref<9x8x8xbf16, #tpu.memory_space<vmem>>, vector<1x8x8xbf16>
    %1086 = vector.shape_cast %1085 : vector<1x8x8xbf16> to vector<8x8xbf16>
    %1087 = arith.truncf %1084 : vector<8x256xf32> to vector<8x256xbf16>
    %cst_565 = arith.constant dense<0.000000e+00> : vector<8x256xf32>
    %1088 = tpu.matmul %1086, %1087, %cst_565 {dimension_numbers = #tpu.dot_dimension_numbers<[1], [0], [0], [1], [0, 0, 1, 1], [], []>} : vector<8x8xbf16>, vector<8x256xbf16>, vector<8x256xf32> -> vector<8x256xf32>
    %1089 = arith.addf %1079, %1088 : vector<8x256xf32>
    %c0_566 = arith.constant 0 : index
    %c0_567 = arith.constant 0 : index
    %1090 = vector.load %arg23[%c0_566, %c0_567] : memref<8x1xf32, #tpu.memory_space<vmem>>, vector<8x1xf32>
    %1091 = vector.broadcast %1090 : vector<8x1xf32> to vector<8x256xf32>
    %1092 = arith.addf %1089, %1091 : vector<8x256xf32>
    %cst_568 = arith.constant 0.000000e+00 : f32
    %1093 = vector.broadcast %cst_568 : f32 to vector<8x256xf32>
    %1094 = arith.maximumf %1092, %1093 : vector<8x256xf32>
    %c0_569 = arith.constant 0 : index
    %c0_570 = arith.constant 0 : index
    %1095 = vector.load %arg24[%c0_569, %c0_570] : memref<3x8xbf16, #tpu.memory_space<vmem>>, vector<3x8xbf16>
    %1096 = arith.truncf %1094 : vector<8x256xf32> to vector<8x256xbf16>
    %cst_571 = arith.constant dense<0.000000e+00> : vector<3x256xf32>
    %1097 = tpu.matmul %1095, %1096, %cst_571 {dimension_numbers = #tpu.dot_dimension_numbers<[1], [0], [0], [1], [0, 0, 1, 1], [], []>} : vector<3x8xbf16>, vector<8x256xbf16>, vector<3x256xf32> -> vector<3x256xf32>
    %c0_572 = arith.constant 0 : index
    %c0_573 = arith.constant 0 : index
    %1098 = vector.load %arg25[%c0_572, %c0_573] : memref<3x1xf32, #tpu.memory_space<vmem>>, vector<3x1xf32>
    %1099 = vector.broadcast %1098 : vector<3x1xf32> to vector<3x256xf32>
    %1100 = arith.addf %1097, %1099 : vector<3x256xf32>
    %c0_574 = arith.constant 0 : index
    %c0_575 = arith.constant 0 : index
    %c0_576 = arith.constant 0 : index
    %1101 = vector.load %arg30[%c0_574, %c0_575, %c0_576] : memref<1x3x256xf32, #tpu.memory_space<vmem>>, vector<1x3x256xf32>
    %1102 = vector.shape_cast %1101 : vector<1x3x256xf32> to vector<3x256xf32>
    %1103 = vector.shape_cast %1100 : vector<3x256xf32> to vector<1x3x256xf32>
    tpu.vector_store %arg30[%c0_574, %c0_575, %c0_576], %1103 {strides = array<i32>} : memref<1x3x256xf32, #tpu.memory_space<vmem>>, vector<1x3x256xf32>,
    return
  }
  func.func @transform_0(%arg0: i32) -> (i32, i32, i32) {
    %c0_i32 = arith.constant 0 : i32
    %c0_i32_0 = arith.constant 0 : i32
    %c0_i32_1 = arith.constant 0 : i32
    return %arg0, %c0_i32, %c0_i32_0 : i32, i32, i32
  }
  func.func @transform_1(%arg0: i32) -> (i32, i32, i32) {
    %c0_i32 = arith.constant 0 : i32
    %c0_i32_0 = arith.constant 0 : i32
    %c0_i32_1 = arith.constant 0 : i32
    %c0_i32_2 = arith.constant 0 : i32
    return %c0_i32, %c0_i32_0, %c0_i32_1 : i32, i32, i32
  }
  func.func @transform_2(%arg0: i32) -> (i32, i32) {
    %c0_i32 = arith.constant 0 : i32
    %c0_i32_0 = arith.constant 0 : i32
    %c0_i32_1 = arith.constant 0 : i32
    return %c0_i32, %c0_i32_0 : i32, i32
  }
  func.func @transform_3(%arg0: i32) -> (i32, i32, i32) {
    %c0_i32 = arith.constant 0 : i32
    %c0_i32_0 = arith.constant 0 : i32
    %c0_i32_1 = arith.constant 0 : i32
    %c0_i32_2 = arith.constant 0 : i32
    return %c0_i32, %c0_i32_0, %c0_i32_1 : i32, i32, i32
  }
  func.func @transform_4(%arg0: i32) -> (i32, i32) {
    %c0_i32 = arith.constant 0 : i32
    %c0_i32_0 = arith.constant 0 : i32
    %c0_i32_1 = arith.constant 0 : i32
    return %c0_i32, %c0_i32_0 : i32, i32
  }
  func.func @transform_5(%arg0: i32) -> (i32, i32, i32) {
    %c0_i32 = arith.constant 0 : i32
    %c0_i32_0 = arith.constant 0 : i32
    %c0_i32_1 = arith.constant 0 : i32
    %c0_i32_2 = arith.constant 0 : i32
    return %c0_i32, %c0_i32_0, %c0_i32_1 : i32, i32, i32
  }
  func.func @transform_6(%arg0: i32) -> (i32, i32) {
    %c0_i32 = arith.constant 0 : i32
    %c0_i32_0 = arith.constant 0 : i32
    %c0_i32_1 = arith.constant 0 : i32
    return %c0_i32, %c0_i32_0 : i32, i32
  }
  func.func @transform_7(%arg0: i32) -> (i32, i32, i32) {
    %c0_i32 = arith.constant 0 : i32
    %c0_i32_0 = arith.constant 0 : i32
    %c0_i32_1 = arith.constant 0 : i32
    %c0_i32_2 = arith.constant 0 : i32
    return %c0_i32, %c0_i32_0, %c0_i32_1 : i32, i32, i32
  }
  func.func @transform_8(%arg0: i32) -> (i32, i32) {
    %c0_i32 = arith.constant 0 : i32
    %c0_i32_0 = arith.constant 0 : i32
    %c0_i32_1 = arith.constant 0 : i32
    return %c0_i32, %c0_i32_0 : i32, i32
  }
  func.func @transform_9(%arg0: i32) -> (i32, i32, i32) {
    %c0_i32 = arith.constant 0 : i32
    %c0_i32_0 = arith.constant 0 : i32
    %c0_i32_1 = arith.constant 0 : i32
    %c0_i32_2 = arith.constant 0 : i32
    return %c0_i32, %c0_i32_0, %c0_i32_1 : i32, i32, i32
  }
  func.func @transform_10(%arg0: i32) -> (i32, i32) {
    %c0_i32 = arith.constant 0 : i32
    %c0_i32_0 = arith.constant 0 : i32
    %c0_i32_1 = arith.constant 0 : i32
    return %c0_i32, %c0_i32_0 : i32, i32
  }
  func.func @transform_11(%arg0: i32) -> (i32, i32, i32) {
    %c0_i32 = arith.constant 0 : i32
    %c0_i32_0 = arith.constant 0 : i32
    %c0_i32_1 = arith.constant 0 : i32
    %c0_i32_2 = arith.constant 0 : i32
    return %c0_i32, %c0_i32_0, %c0_i32_1 : i32, i32, i32
  }
  func.func @transform_12(%arg0: i32) -> (i32, i32) {
    %c0_i32 = arith.constant 0 : i32
    %c0_i32_0 = arith.constant 0 : i32
    %c0_i32_1 = arith.constant 0 : i32
    return %c0_i32, %c0_i32_0 : i32, i32
  }
  func.func @transform_13(%arg0: i32) -> (i32, i32, i32) {
    %c0_i32 = arith.constant 0 : i32
    %c0_i32_0 = arith.constant 0 : i32
    %c0_i32_1 = arith.constant 0 : i32
    %c0_i32_2 = arith.constant 0 : i32
    return %c0_i32, %c0_i32_0, %c0_i32_1 : i32, i32, i32
  }
  func.func @transform_14(%arg0: i32) -> (i32, i32, i32) {
    %c0_i32 = arith.constant 0 : i32
    %c0_i32_0 = arith.constant 0 : i32
    %c0_i32_1 = arith.constant 0 : i32
    %c0_i32_2 = arith.constant 0 : i32
    return %c0_i32, %c0_i32_0, %c0_i32_1 : i32, i32, i32
  }
  func.func @transform_15(%arg0: i32) -> (i32, i32) {
    %c0_i32 = arith.constant 0 : i32
    %c0_i32_0 = arith.constant 0 : i32
    %c0_i32_1 = arith.constant 0 : i32
    return %c0_i32, %c0_i32_0 : i32, i32
  }
  func.func @transform_16(%arg0: i32) -> (i32, i32, i32) {
    %c0_i32 = arith.constant 0 : i32
    %c0_i32_0 = arith.constant 0 : i32
    %c0_i32_1 = arith.constant 0 : i32
    %c0_i32_2 = arith.constant 0 : i32
    return %c0_i32, %c0_i32_0, %c0_i32_1 : i32, i32, i32
  }
  func.func @transform_17(%arg0: i32) -> (i32, i32) {
    %c0_i32 = arith.constant 0 : i32
    %c0_i32_0 = arith.constant 0 : i32
    %c0_i32_1 = arith.constant 0 : i32
    return %c0_i32, %c0_i32_0 : i32, i32
  }
  func.func @transform_18(%arg0: i32) -> (i32, i32, i32) {
    %c0_i32 = arith.constant 0 : i32
    %c0_i32_0 = arith.constant 0 : i32
    %c0_i32_1 = arith.constant 0 : i32
    %c0_i32_2 = arith.constant 0 : i32
    return %c0_i32, %c0_i32_0, %c0_i32_1 : i32, i32, i32
  }
  func.func @transform_19(%arg0: i32) -> (i32, i32, i32) {
    %c0_i32 = arith.constant 0 : i32
    %c0_i32_0 = arith.constant 0 : i32
    %c0_i32_1 = arith.constant 0 : i32
    %c0_i32_2 = arith.constant 0 : i32
    return %c0_i32, %c0_i32_0, %c0_i32_1 : i32, i32, i32
  }
  func.func @transform_20(%arg0: i32) -> (i32, i32) {
    %c0_i32 = arith.constant 0 : i32
    %c0_i32_0 = arith.constant 0 : i32
    %c0_i32_1 = arith.constant 0 : i32
    return %c0_i32, %c0_i32_0 : i32, i32
  }
  func.func @transform_21(%arg0: i32) -> (i32, i32, i32) {
    %c0_i32 = arith.constant 0 : i32
    %c0_i32_0 = arith.constant 0 : i32
    %c0_i32_1 = arith.constant 0 : i32
    %c0_i32_2 = arith.constant 0 : i32
    return %c0_i32, %c0_i32_0, %c0_i32_1 : i32, i32, i32
  }
  func.func @transform_22(%arg0: i32) -> (i32, i32) {
    %c0_i32 = arith.constant 0 : i32
    %c0_i32_0 = arith.constant 0 : i32
    %c0_i32_1 = arith.constant 0 : i32
    return %c0_i32, %c0_i32_0 : i32, i32
  }
  func.func @transform_23(%arg0: i32) -> (i32, i32) {
    %c0_i32 = arith.constant 0 : i32
    %c0_i32_0 = arith.constant 0 : i32
    %c0_i32_1 = arith.constant 0 : i32
    return %c0_i32, %c0_i32_0 : i32, i32
  }
  func.func @transform_24(%arg0: i32) -> (i32, i32) {
    %c0_i32 = arith.constant 0 : i32
    %c0_i32_0 = arith.constant 0 : i32
    %c0_i32_1 = arith.constant 0 : i32
    return %c0_i32, %c0_i32_0 : i32, i32
  }
  func.func @transform_25(%arg0: i32) -> (i32, i32) {
    %c0_i32 = arith.constant 0 : i32
    %c0_i32_0 = arith.constant 0 : i32
    %c0_i32_1 = arith.constant 0 : i32
    return %c0_i32, %c0_i32_0 : i32, i32
  }
  func.func @transform_26(%arg0: i32) -> (i32, i32) {
    %c0_i32 = arith.constant 0 : i32
    %c0_i32_0 = arith.constant 0 : i32
    %c0_i32_1 = arith.constant 0 : i32
    return %c0_i32, %c0_i32_0 : i32, i32
  }
  func.func @transform_27(%arg0: i32) -> (i32, i32) {
    %c0_i32 = arith.constant 0 : i32
    %c0_i32_0 = arith.constant 0 : i32
    %c0_i32_1 = arith.constant 0 : i32
    return %c0_i32, %c0_i32_0 : i32, i32
  }
  func.func @transform_28(%arg0: i32) -> (i32, i32) {
    %c0_i32 = arith.constant 0 : i32
    %c0_i32_0 = arith.constant 0 : i32
    %c0_i32_1 = arith.constant 0 : i32
    return %c0_i32, %c0_i32_0 : i32, i32
  }
  func.func @transform_29(%arg0: i32) -> (i32, i32, i32) {
    %c0_i32 = arith.constant 0 : i32
    %c0_i32_0 = arith.constant 0 : i32
    %c0_i32_1 = arith.constant 0 : i32
    return %arg0, %c0_i32, %c0_i32_0 : i32, i32, i32
  }
}

</mosaic_0001>

<bundles_post_ra>
// kernel: prompt_segmentation_forward.1
= control target key start
LH: loop header
LB: loop body
LE: loop exit
PB: predicated region body
PF: predicated region fallthrough
CT: control target
= control target key end

     0   :  { %s11179_s6 = smov 1   ;;  %s11180_s10 = smov 2   ;;  %s12756_s0 = inlined_call_operand.smem [shape: u32[30], index: -1, kind: input, shape index: {}] }
   0x1   :  { %s11236_s5 = sld [smem:[%s12756_s0]]   ;;  %s11181_s14 = smov 3  }
   0x2   :  { %s11241_s9 = sld [smem:[%s12756_s0 + %s11179_s6]]   ;;  %s11182_s18 = smov 4  }
   0x3   :  { %s11246_s13 = sld [smem:[%s12756_s0 + %s11180_s10]]   ;;  %s11183_s22 = smov 5  }
   0x4   :  { %s11251_s17 = sld [smem:[%s12756_s0 + %s11181_s14]]   ;;  %s11184_s26 = smov 6  }
   0x5   :  { %s11256_s21 = sld [smem:[%s12756_s0 + %s11182_s18]]   ;;  %s11185_s30 = smov 7  }
   0x6   :  { %s11261_s25 = sld [smem:[%s12756_s0 + %s11183_s22]]   ;;  %s11186_s4 = smov 8  }
   0x7   :  { %12804 = sst [smem:[#allocation2_spill]] %s11236_s5  ;;  %s11187_s10 = smov 9  }
   0x8   :  { %s11266_s29 = sld [smem:[%s12756_s0 + %s11184_s26]]   ;;  %s11188_s15 = smov 10  }
   0x9   :  { %s11271_s3 = sld [smem:[%s12756_s0 + %s11185_s30]]   ;;  %s11189_s20 = smov 11  }
   0xa   :  { %s11276_s8 = sld [smem:[%s12756_s0 + %s11186_s4]]   ;;  %s11190_s26 = smov 12  }
   0xb   :  { %s11281_s14 = sld [smem:[%s12756_s0 + %s11187_s10]]   ;;  %s11191_s1 = smov 13  }
   0xc   :  { %s11286_s19 = sld [smem:[%s12756_s0 + %s11188_s15]]   ;;  %s11192_s7 = smov 14  }
   0xd   :  { %s11291_s24 = sld [smem:[%s12756_s0 + %s11189_s20]]   ;;  %s11193_s15 = smov 15  }
   0xe   :  { %s11296_s30 = sld [smem:[%s12756_s0 + %s11190_s26]]   ;;  %s11194_s22 = smov 16  }
   0xf   :  { %12805 = sst [smem:[#allocation3_spill]] %s11271_s3  ;;  %s11195_s28 = smov 17  }
  0x10   :  { %s11301_s6 = sld [smem:[%s12756_s0 + %s11191_s1]]  }
  0x11   :  { %s11306_s12 = sld [smem:[%s12756_s0 + %s11192_s7]]   ;;  %s11196_s7 = smov 18  }
  0x12   :  { %s11311_s20 = sld [smem:[%s12756_s0 + %s11193_s15]]   ;;  %s11197_s15 = smov 19  }
  0x13   :  { %s11316_s27 = sld [smem:[%s12756_s0 + %s11194_s22]]   ;;  %s11198_s22 = smov 20  }
  0x14   :  { %s11321_s4 = sld [smem:[%s12756_s0 + %s11195_s28]]   ;;  %s11199_s28 = smov 21  }
  0x16   :  { %12806 = sst [smem:[#allocation4_spill]] %s11301_s6 }
  0x17   :  { %12807 = sst [smem:[#allocation5_spill]] %s11306_s12 }
  0x18   :  { %12808 = sst [smem:[#allocation6_spill]] %s11311_s20 }
  0x19   :  { %12809 = sst [smem:[#allocation7_spill]] %s11316_s27 }
  0x1a   :  { %12810 = sst [smem:[#allocation8_spill]] %s11321_s4 }
  0x1b   :  { %s11326_s12 = sld [smem:[%s12756_s0 + %s11196_s7]]   ;;  %s11200_s7 = smov 22  }
  0x1c   :  { %s11331_s20 = sld [smem:[%s12756_s0 + %s11197_s15]]   ;;  %s11201_s15 = smov 23  }
  0x1d   :  { %s11336_s27 = sld [smem:[%s12756_s0 + %s11198_s22]]   ;;  %s11202_s22 = smov 24  }
  0x1e   :  { %s11341_s4 = sld [smem:[%s12756_s0 + %s11199_s28]]   ;;  %s11203_s28 = smov 25  }
  0x21   :  { %12811 = sst [smem:[#allocation9_spill]] %s11326_s12 }
  0x22   :  { %12812 = sst [smem:[#allocation10_spill]] %s11331_s20 }
  0x23   :  { %12813 = sst [smem:[#allocation11_spill]] %s11336_s27 }
  0x24   :  { %12814 = sst [smem:[#allocation12_spill]] %s11341_s4 }
  0x25   :  { %s11346_s12 = sld [smem:[%s12756_s0 + %s11200_s7]]   ;;  %s11204_s7 = smov 26  }
  0x26   :  { %s11351_s20 = sld [smem:[%s12756_s0 + %s11201_s15]]   ;;  %s11205_s15 = smov 27  }
  0x27   :  { %s11356_s27 = sld [smem:[%s12756_s0 + %s11202_s22]]   ;;  %s11206_s22 = smov 28  }
  0x28   :  { %s11361_s4 = sld [smem:[%s12756_s0 + %s11203_s28]]   ;;  %s11207_s28 = smov 29  }
  0x29   :  { %s11381_s6 = sld [smem:[%s12756_s0 + %s11207_s28]]  }
  0x2b   :  { %12815 = sst [smem:[#allocation13_spill]] %s11346_s12 }
  0x2c   :  { %12816 = sst [smem:[#allocation14_spill]] %s11351_s20 }
  0x2d   :  { %12817 = sst [smem:[#allocation15_spill]] %s11356_s27 }
  0x2e   :  { %12818 = sst [smem:[#allocation16_spill]] %s11361_s4 }
  0x2f   :  { %s11366_s12 = sld [smem:[%s12756_s0 + %s11204_s7]]   ;;  %s11383_s7 = smov 0  }
  0x30   :  { %s11371_s20 = sld [smem:[%s12756_s0 + %s11205_s15]]  }
  0x31   :  { %s11376_s27 = sld [smem:[%s12756_s0 + %s11206_s22]]  }
  0x32 LB: > { %s12819_s4 = sld [smem:[#allocation16_spill]]  ;;  %s12820_s3 = sld [smem:[#allocation3_spill]]  ;;  %s11177_s7 = sphi %s11383_s7, %s69_s7  }
  0x33   : > { %s9189_s10 = sadd.s32 4294967295, %s11177_s7   ;;  %p9193_p0 = scmp.ge.s32.totalorder %s11177_s7, 1 }
  0x34   : > { %p817_p1 = scmp.lt.s32.totalorder %s11177_s7, 3 }
  0x36   : > { %p818_p2 = pnand %p9193_p0, %p817_p1 }
  0x37   : > { %p893_p3 = scmp.lt.s32.totalorder (!%p818_p2), %s9189_s10, 1  ;;  %s12821_s5 = sld [smem:[#allocation2_spill]] (!%p818_p2)  ;;  %v904_v3 = vlaneseq (!%p818_p2)  ;;  %vm12788_vm0 = vcmask (!%p818_p2), 138240   ;;  %vm1007_vm3 = vcmask (!%p818_p2), 1041408   ;;  %v11209_v19 = vmov (!%p818_p2), 0   ;;  %v1582_v27 = vld [vmem:[%s11246_s13] sm:$0xff] (!%p818_p2) }
  0x38   : > { %821 = sbr.rel (%p818_p2) target bundleno = 7304 (0x1c88), region = 136  ;;  %s12780_s15 = smov (!%p818_p2), 17   ;;  %1046 = vmatprep.mubr.bf16.mxu0 (!%p818_p2), %v11209_v19  ;;  %1096 = vmatprep.mubr.bf16.mxu1 (!%p818_p2), %v11209_v19  ;;  %vm1003_vm4 = vcmask (!%p818_p2), 31744   ;;  %v983_v26 = vld [vmem:[%s11241_s9] sm:$0xf] (!%p818_p2)  ;;  %vm12786_vm5 = vcmask (!%p818_p2), 1039360  }
  0x39   : > { %v11398_v4 = vand.u32 (!%p818_p2), 127, %v904_v3  ;;  %10619 = vset.pattern.permute.xlu0 (!%p818_p2), %v11209_v19  ;;  %s12797_s16 = smov (!%p818_p2), 127   ;;  %10665 = vset.pattern.permute.xlu1 (!%p818_p2), %v11209_v19  ;;  %s12795_s18 = smov (!%p818_p2), 126   ;;  %vm12787_vm6 = vcmask (!%p818_p2), 1031168   ;;  %v9198_v39 = vld [vmem:[%s11241_s9 + $0x4] sm:$0xf] (!%p818_p2) }
  0x3a   : > { %s12791_s22 = smov (!%p818_p2), 112   ;;  %s12784_s23 = smov (!%p818_p2), 111   ;;  %vm12779_vm9 = vcmask (!%p818_p2), 916480   ;;  %v9203_v59 = vld [vmem:[%s11241_s9 + $0x8] sm:$0xf] (!%p818_p2)  ;;  %vm12778_vm10 = vcmask (!%p818_p2), 900096  }
  0x3b   : > { %v11401_v5 = vadd.s32 (!%p818_p2), 128, %v11398_v4  ;;  %v911_v7 = vand.u32 (!%p818_p2), 15, %v11398_v4  ;;  %s12782_s26 = smov (!%p818_p2), 110   ;;  %s12776_s28 = smov (!%p818_p2), 96   ;;  %vm12772_vm11 = vcmask (!%p818_p2), 908288   ;;  %vm12773_vm12 = vcmask (!%p818_p2), 785408  }
  0x3c   : > { %s12768_s1 = smov (!%p818_p2), 94   ;;  %s12770_s2 = smov (!%p818_p2), 95   ;;  %vm12766_vm13 = vcmask (!%p818_p2), 769024   ;;  %vm12765_vm14 = vcmask (!%p818_p2), 777216   ;;  %vm12775_vm15 = vcmask (!%p818_p2), 1043456  }
  0x3d   : > { %v918_v6 = vand.u32 (!%p818_p2), 15, %v11401_v5  ;;  %vm11413_vm2 = vcmp.gt.s32.totalorder (!%p818_p2), %v911_v7, 0  ;;  %vm11457_vm7 = vcmp.lt.s32.totalorder (!%p818_p2), %v911_v7, 15 }
  0x3f   : > { %s12996_s10 = smov (!%p893_p3, %s9189_s10), 1  ;;  %vm11407_vm1 = vcmp.gt.s32.totalorder %v918_v6, 0  ;;  %vm11465_vm8 = vcmp.lt.s32.totalorder %v918_v6, 15 }
  0x40   : > { %s12767_s0 = sshll.u32 %s12996_s10, 3 }
  0x41   : > { %s897_s11 = scalar_lea.vmem %s12821_s5, %s12767_s0  ;;  %s11221_s0 = smov 119  }
  0x42   : > { %v963_v0 = vld [vmem:[%s897_s11] sm:$0xff]  ;;  %s11218_s11 = smov 9   ;;  %s12866_s5 = sld [smem:[#allocation9_spill]] }
  0x43   : > { %v965_v1 = vcombine.high %v963_v0, %v963_v0 }
  0x45   : > { %v10589_v2 = vpack.i.bf16 %v965_v1, %v963_v0  ;;  %v9206_v1 = vld [vmem:[%s11241_s9 + $0xc] sm:$0xf] }
  0x47   : > { %10590 = vrot.lane.b32.xlu0 %v10589_v2, %s12780_s15 }
  0xb9   : > { %v10591_v8 = vpop.permute.xlu0 %10590 }
  0xba   : > { %v10593_v9 = vunpack.i.h.bf16 %v10591_v8  ;;  %v10592_v10 = vunpack.i.l.bf16 %v10591_v8 }
  0xbc   : > { %v971_v13 = vsel %vm12788_vm0, %v10592_v10, %v10593_v9  ;;  %v975_v14 = vsel %vm12788_vm0, 0.0, %v10592_v10  ;;  %v976_v20 = vsel %vm12788_vm0, %v10593_v9, 0.0 }
  0xbd   : > { %v988_v15 = vpack.c.bf16 %v975_v14, %v975_v14  ;;  %v989_v16 = vpack.c.bf16 %v971_v13, %v971_v13  ;;  %v982_v17 = vsel %vm11407_vm1, %v971_v13, 0.0  ;;  %v981_v18 = vsel %vm11413_vm2, %v975_v14, 0.0 }
  0xbe   : > { %v985_v21 = vpack.c.bf16 %v982_v17, %v982_v17  ;;  %v984_v22 = vpack.c.bf16 %v981_v18, %v981_v18  ;;  %v10594_v24 = vpack.i.bf16 %v971_v13, %v975_v14  ;;  %v990_v25 = vpack.c.bf16 %v976_v20, %v976_v20 }
  0xbf   : > { %994 = vrot.lane.b32.xlu0 %v988_v15, %s12797_s16  ;;  %996 = vrot.lane.b32.xlu1 %v989_v16, %s12797_s16 }
  0xc0   : > { %9201 = vmatprep.subr.msk.bf16.mxu1 %vm1007_vm3, %v985_v21  ;;  %v1059_v23 = vsel %vm1007_vm3, %v984_v22, 0 }
  0xc1   : > { %1065 = vmatpush1.bf16.msra.mxu1 %v1059_v23  ;;  %v9212_v23 = vld [vmem:[%s11241_s9 + $0x14] sm:$0xf] }
  0xc3   : > { %10595 = vrot.lane.b32.xlu0 %v10594_v24, %s12795_s18  ;;  %998 = vrot.lane.b32.xlu1 %v990_v25, %s12797_s16 }
  0xc4   : > { %9202 = vmatmul.mubr.msk.bf16.vlgmr.msra.gmra.mrb[0].mxu1 %vm1003_vm4, %v983_v26 }
  0xc5   : > { %1238 = vmatprep.mubr.bf16.mxu1 %v11209_v19 }
  0xc7   : > { %10600 = vrot.lane.b32.xlu0 %v10594_v24, %s12791_s22  ;;  %1115 = vrot.lane.b32.xlu1 %v976_v20, %s12795_s18 }
  0xcb   : > { %1251 = vrot.lane.b32.xlu0 %v988_v15, %s12784_s23  ;;  %1184 = vrot.lane.b32.xlu1 %v976_v20, %s12791_s22 }
  0xcf   : > { %1255 = vrot.lane.b32.xlu0 %v990_v25, %s12784_s23  ;;  %10605 = vrot.lane.b32.xlu1 %v10594_v24, %s12782_s26 }
  0xd3   : > { %1316 = vrot.lane.b32.xlu0 %v976_v20, %s12782_s26  ;;  %1253 = vrot.lane.b32.xlu1 %v989_v16, %s12784_s23 }
  0xd7   : > { %1385 = vrot.lane.b32.xlu0 %v976_v20, %s12776_s28  ;;  %10610 = vrot.lane.b32.xlu1 %v10594_v24, %s12776_s28 }
  0xdb   : > { %1517 = vrot.lane.b32.xlu0 %v976_v20, %s12768_s1  ;;  %10615 = vrot.lane.b32.xlu1 %v10594_v24, %s12768_s1 }
  0xdf   : > { %1454 = vrot.lane.b32.xlu0 %v989_v16, %s12770_s2  ;;  %1452 = vrot.lane.b32.xlu1 %v988_v15, %s12770_s2  ;;  %v9209_v16 = vld [vmem:[%s11241_s9 + $0x10] sm:$0xf] }
  0xe3   : > { %1456 = vrot.lane.b32.xlu1 %v990_v25, %s12770_s2  ;;  %1585 = vperm.xlu0 %10619, %v1582_v27  }
 0x131   : > { %v995_v28 = vpop.permute.xlu0 %994  ;;  %v997_v29 = vpop.permute.xlu1 %996 }
 0x132   : > { %v1001_v30 = vsel %vm12786_vm5, %v995_v28, %v997_v29 }
 0x133   : > { %v1009_v37 = vsel %vm1007_vm3, %v1001_v30, 0 }
 0x135   : > { %v10596_v31 = vpop.permute.xlu0 %10595  ;;  %v999_v32 = vpop.permute.xlu1 %998 }
 0x136   : > { %v10598_v33 = vunpack.i.h.bf16 %v10596_v31  ;;  %v10597_v34 = vunpack.i.l.bf16 %v10596_v31  ;;  %v1002_v35 = vsel %vm12786_vm5, %v997_v29, %v999_v32 }
 0x137   : > { %9199 = vmatprep.subr.msk.bf16.mxu0 %vm1007_vm3, %v1002_v35 }
 0x138   : > { %1015 = vmatpush1.bf16.msra.mxu0 %v1009_v37  ;;  %v1118_v40 = vsel %vm12787_vm6, %v10597_v34, %v10598_v33 }
 0x139   : > { %v10601_v41 = vpop.permute.xlu0 %10600  ;;  %v1116_v42 = vpop.permute.xlu1 %1115  ;;  %v1122_v43 = vsel %vm11457_vm7, %v1118_v40, 0.0 }
 0x13a   : > { %v10603_v44 = vunpack.i.h.bf16 %v10601_v41  ;;  %v10602_v45 = vunpack.i.l.bf16 %v10601_v41  ;;  %v1119_v46 = vsel %vm12787_vm6, %v10598_v33, %v1116_v42  ;;  %v1126_v47 = vpack.c.bf16 %v1122_v43, %v1122_v43  ;;  %v9215_v41 = vld [vmem:[%s11241_s9 + $0x18] sm:$0xf] }
 0x13b   : > { %v1123_v48 = vsel %vm11465_vm8, %v1119_v46, 0.0  ;;  %9200 = vmatmul.mubr.msk.bf16.vlgmr.msra.gmra.mrb[0].mxu0 %vm1003_vm4, %v9198_v39 }
 0x13c   : > { %v1127_v49 = vpack.c.bf16 %v1123_v48, %v1123_v48  ;;  %1169 = vmatprep.mubr.bf16.mxu0 %v11209_v19  ;;  %v1187_v50 = vsel %vm12779_vm9, %v10602_v45, %v10603_v44  ;;  %v1132_v55 = vsel %vm1007_vm3, %v1126_v47, 0 }
 0x13d   : > { %v1252_v51 = vpop.permute.xlu0 %1251  ;;  %v1185_v52 = vpop.permute.xlu1 %1184  ;;  %v1191_v53 = vsel %vm11413_vm2, %v1187_v50, 0.0 }
 0x13e   : > { %v1188_v54 = vsel %vm12779_vm9, %v10603_v44, %v1185_v52  ;;  %9204 = vmatprep.subr.msk.bf16.mxu0 %vm1007_vm3, %v1127_v49  ;;  %v1195_v56 = vpack.c.bf16 %v1191_v53, %v1191_v53  ;;  %v9221_v52 = vld [vmem:[%s11241_s9 + $0x20] sm:$0xf] }
 0x13f   : > { %v1192_v57 = vsel %vm11407_vm1, %v1188_v54, 0.0  ;;  %1138 = vmatpush1.bf16.msra.mxu0 %v1132_v55 }
 0x140   : > { %v1196_v58 = vpack.c.bf16 %v1192_v57, %v1192_v57  ;;  %v1201_v0 = vsel %vm1007_vm3, %v1195_v56, 0 }
 0x141   : > { %v1256_v60 = vpop.permute.xlu0 %1255  ;;  %v10606_v61 = vpop.permute.xlu1 %10605 }
 0x142   : > { %v10608_v62 = vunpack.i.h.bf16 %v10606_v61  ;;  %v10607_v63 = vunpack.i.l.bf16 %v10606_v61  ;;  %9207 = vmatprep.subr.msk.bf16.mxu1 %vm1007_vm3, %v1196_v58 }
 0x143   : > { %9205 = vmatmul.mubr.msk.bf16.vlgmr.msra.gmra.mrb[4].mxu0 %vm1003_vm4, %v9203_v59  ;;  %1207 = vmatpush1.bf16.msra.mxu1 %v1201_v0 }
 0x144   : > { %1301 = vmatprep.mubr.bf16.mxu0 %v11209_v19  ;;  %v1319_v2 = vsel %vm12778_vm10, %v10607_v63, %v10608_v62 }
 0x145   : > { %v1317_v3 = vpop.permute.xlu0 %1316  ;;  %v1254_v5 = vpop.permute.xlu1 %1253  ;;  %v1323_v6 = vsel %vm11457_vm7, %v1319_v2, 0.0 }
 0x146   : > { %v1320_v7 = vsel %vm12778_vm10, %v10608_v62, %v1317_v3  ;;  %v1258_v8 = vsel %vm12772_vm11, %v1252_v51, %v1254_v5  ;;  %9208 = vmatmul.mubr.msk.bf16.vlgmr.msra.gmra.mrb[4].mxu1 %vm1003_vm4, %v9206_v1  ;;  %v1259_v9 = vsel %vm12772_vm11, %v1254_v5, %v1256_v60  ;;  %v1327_v10 = vpack.c.bf16 %v1323_v6, %v1323_v6  ;;  %v9218_v51 = vld [vmem:[%s11241_s9 + $0x1c] sm:$0xf] }
 0x147   : > { %v1324_v13 = vsel %vm11465_vm8, %v1320_v7, 0.0  ;;  %9210 = vmatprep.subr.msk.bf16.mxu0 %vm1007_vm3, %v1259_v9  ;;  %v1264_v14 = vsel %vm1007_vm3, %v1258_v8, 0  ;;  %1370 = vmatprep.mubr.bf16.mxu1 %v11209_v19 }
 0x148   : > { %v1328_v15 = vpack.c.bf16 %v1324_v13, %v1324_v13  ;;  %1270 = vmatpush1.bf16.msra.mxu0 %v1264_v14  ;;  %v1333_v22 = vsel %vm1007_vm3, %v1327_v10, 0 }
 0x149   : > { %v1386_v17 = vpop.permute.xlu0 %1385  ;;  %v10611_v18 = vpop.permute.xlu1 %10610 }
 0x14a   : > { %v10613_v20 = vunpack.i.h.bf16 %v10611_v18  ;;  %v10612_v21 = vunpack.i.l.bf16 %v10611_v18  ;;  %9213 = vmatprep.subr.msk.bf16.mxu1 %vm1007_vm3, %v1328_v15 }
 0x14b   : > { %9211 = vmatmul.mubr.msk.bf16.vlgmr.msra.gmra.mrb[8].mxu0 %vm1003_vm4, %v9209_v16  ;;  %1339 = vmatpush1.bf16.msra.mxu1 %v1333_v22 }
 0x14c   : > { %v1389_v24 = vsel %vm12773_vm12, %v10613_v20, %v1386_v17  ;;  %v1388_v25 = vsel %vm12773_vm12, %v10612_v21, %v10613_v20  ;;  %1439 = vmatprep.mubr.bf16.mxu0 %v11209_v19 }
 0x14d   : > { %v1518_v26 = vpop.permute.xlu0 %1517  ;;  %v10616_v27 = vpop.permute.xlu1 %10615  ;;  %v1393_v28 = vsel %vm11407_vm1, %v1389_v24, 0.0  ;;  %v1392_v29 = vsel %vm11413_vm2, %v1388_v25, 0.0 }
 0x14e   : > { %v10618_v30 = vunpack.i.h.bf16 %v10616_v27  ;;  %v10617_v31 = vunpack.i.l.bf16 %v10616_v27  ;;  %9214 = vmatmul.mubr.msk.bf16.vlgmr.msra.gmra.mrb[8].mxu1 %vm1003_vm4, %v9212_v23  ;;  %v1397_v32 = vpack.c.bf16 %v1393_v28, %v1393_v28  ;;  %v1396_v33 = vpack.c.bf16 %v1392_v29, %v1392_v29 }
 0x14f   : > { %1502 = vmatprep.mubr.bf16.mxu1 %v11209_v19 }
 0x150   : > { %v1521_v34 = vsel %vm12766_vm13, %v10618_v30, %v1518_v26  ;;  %9216 = vmatprep.subr.msk.bf16.mxu0 %vm1007_vm3, %v1397_v32  ;;  %v1402_v35 = vsel %vm1007_vm3, %v1396_v33, 0  ;;  %v1520_v37 = vsel %vm12766_vm13, %v10617_v31, %v10618_v30 }
 0x151   : > { %v1455_v39 = vpop.permute.xlu0 %1454  ;;  %v1453_v40 = vpop.permute.xlu1 %1452  ;;  %1408 = vmatpush1.bf16.msra.mxu0 %v1402_v35  ;;  %v1525_v42 = vsel %vm11465_vm8, %v1521_v34, 0.0  ;;  %v1524_v43 = vsel %vm11457_vm7, %v1520_v37, 0.0 }
 0x152   : > { %v1529_v44 = vpack.c.bf16 %v1525_v42, %v1525_v42  ;;  %v1528_v45 = vpack.c.bf16 %v1524_v43, %v1524_v43  ;;  %v1459_v46 = vsel %vm12765_vm14, %v1453_v40, %v1455_v39 }
 0x153   : > { %v1465_v50 = vsel %vm1007_vm3, %v1459_v46, 0 }
 0x154   : > { %9217 = vmatmul.mubr.msk.bf16.vlgmr.msra.gmra.mrb[12].mxu0 %vm1003_vm4, %v9215_v41  ;;  %9222 = vmatprep.subr.msk.bf16.mxu0 %vm1007_vm3, %v1529_v44  ;;  %v1534_v47 = vsel %vm1007_vm3, %v1528_v45, 0 }
 0x155   : > { %v1457_v48 = vpop.permute.xlu1 %1456  ;;  %1540 = vmatpush1.bf16.msra.mxu0 %v1534_v47  ;;  %1571 = vmatprep.mubr.bf16.mxu0 %v11209_v19 }
 0x156   : > { %v1460_v49 = vsel %vm12765_vm14, %v1455_v39, %v1457_v48 }
 0x157   : > { %9219 = vmatprep.subr.msk.bf16.mxu1 %vm1007_vm3, %v1460_v49  ;;  %vm12774_vm3 = vcmask 64512  }
 0x158   : > { %1471 = vmatpush1.bf16.msra.mxu1 %v1465_v50 }
 0x15b   : > { %9220 = vmatmul.mubr.msk.bf16.vlgmr.msra.gmra.mrb[12].mxu1 %vm1003_vm4, %v9218_v51 }
 0x15c   : > { %9223 = vmatmul.mubr.msk.bf16.vlgmr.msra.gmra.mrb[16].mxu0 %vm1003_vm4, %v9221_v52  ;;  %1668 = vmatprep.mubr.bf16.mxu1 %v11209_v19  ;;  %vm11220_vm4 = vmmov 0  }
 0x15d   : > { %1718 = vmatprep.mubr.bf16.mxu0 %v11209_v19 }
 0x162   : > { %v1586_v34 = vpop.permute.xlu0 %1585 }
 0x197   : > { %v1098_v53 = vpop.f32.mrb[0].mxu1 }
 0x198   : > { %v1100_v54 = vpop.f32.mrb[1].mxu1 }
 0x199   : > { %v1102_v55 = vpop.f32.mrb[2].mxu1 }
 0x19a   : > { %v1103_v56 = vpop.f32.mrb[3].mxu1 }
 0x20e   : > { %v1048_v57 = vpop.f32.mrb[0].mxu0 }
 0x20f   : > { %v1050_v58 = vpop.f32.mrb[1].mxu0  ;;  %v1099_v59 = vadd.f32 %v1098_v53, %v1048_v57 }
 0x210   : > { %v1052_v60 = vpop.f32.mrb[2].mxu0  ;;  %v1101_v61 = vadd.f32 %v1100_v54, %v1050_v58 }
 0x211   : > { %v1053_v62 = vpop.f32.mrb[3].mxu0 }
 0x216   : > { %v1171_v63 = vpop.f32.mrb[4].mxu0 }
 0x217   : > { %v1178_v0 = vadd.f32 %v1171_v63, %v1099_v59  ;;  %v1173_v1 = vpop.f32.mrb[5].mxu0 }
 0x218   : > { %v1179_v2 = vadd.f32 %v1173_v1, %v1101_v61  ;;  %v1175_v3 = vpop.f32.mrb[6].mxu0 }
 0x219   : > { %v1176_v5 = vpop.f32.mrb[7].mxu0  ;;  %v1240_v6 = vpop.f32.mrb[4].mxu1 }
 0x21a   : > { %v1247_v7 = vadd.f32 %v1240_v6, %v1178_v0  ;;  %v1242_v8 = vpop.f32.mrb[5].mxu1  ;;  %v1606_v5 = vld [vmem:[%s11251_s17] sm:$0xf] }
 0x21b   : > { %v1248_v9 = vadd.f32 %v1242_v8, %v1179_v2  ;;  %v1244_v10 = vpop.f32.mrb[6].mxu1  ;;  %v2193_v6 = vld [vmem:[%s11256_s21] sm:$0xff] }
 0x21c   : > { %v1245_v13 = vpop.f32.mrb[7].mxu1 }
 0x21e   : > { %v1303_v14 = vpop.f32.mrb[8].mxu0 }
 0x21f   : > { %v1310_v15 = vadd.f32 %v1303_v14, %v1247_v7  ;;  %v1305_v16 = vpop.f32.mrb[9].mxu0 }
 0x220   : > { %v1311_v17 = vadd.f32 %v1305_v16, %v1248_v9  ;;  %v1307_v18 = vpop.f32.mrb[10].mxu0 }
 0x221   : > { %v1308_v20 = vpop.f32.mrb[11].mxu0  ;;  %v1372_v21 = vpop.f32.mrb[8].mxu1  ;;  %v9224_v18 = vld [vmem:[%s11251_s17 + $0x4] sm:$0xf] }
 0x222   : > { %v1379_v22 = vadd.f32 %v1372_v21, %v1310_v15  ;;  %v1374_v23 = vpop.f32.mrb[9].mxu1 }
 0x223   : > { %v1380_v24 = vadd.f32 %v1374_v23, %v1311_v17  ;;  %v1376_v25 = vpop.f32.mrb[10].mxu1 }
 0x224   : > { %v1377_v26 = vpop.f32.mrb[11].mxu1 }
 0x227   : > { %v1441_v27 = vpop.f32.mrb[12].mxu0 }
 0x228   : > { %v1448_v28 = vadd.f32 %v1441_v27, %v1379_v22  ;;  %v1443_v29 = vpop.f32.mrb[13].mxu0 }
 0x229   : > { %v1449_v30 = vadd.f32 %v1443_v29, %v1380_v24  ;;  %v1445_v31 = vpop.f32.mrb[14].mxu0 }
 0x22a   : > { %v1446_v32 = vpop.f32.mrb[15].mxu0 }
 0x22e   : > { %v1504_v33 = vpop.f32.mrb[12].mxu1 }
 0x22f   : > { %v1511_v35 = vadd.f32 %v1504_v33, %v1448_v28  ;;  %v1506_v37 = vpop.f32.mrb[13].mxu1  ;;  %v1573_v39 = vpop.f32.mrb[16].mxu0 }
 0x230   : > { %v1512_v40 = vadd.f32 %v1506_v37, %v1449_v30  ;;  %v1508_v41 = vpop.f32.mrb[14].mxu1  ;;  %v1575_v42 = vpop.f32.mrb[17].mxu0 }
 0x231   : > { %v1580_v43 = vadd.f32 %v1573_v39, %v1511_v35  ;;  %v1509_v44 = vpop.f32.mrb[15].mxu1  ;;  %v1577_v45 = vpop.f32.mrb[18].mxu0  ;;  %v9229_v41 = vld [vmem:[%s11251_s17 + $0x8] sm:$0xf] }
 0x232   : > { %v1581_v46 = vadd.f32 %v1575_v42, %v1512_v40  ;;  %v1578_v47 = vpop.f32.mrb[19].mxu0 }
 0x233   : > { %v1588_v48 = vadd.f32 %v1586_v34, %v1580_v43  ;;  %v9232_v47 = vld [vmem:[%s11251_s17 + $0xc] sm:$0xf] }
 0x234   : > { %v1589_v49 = vadd.f32 %v1586_v34, %v1581_v46 }
 0x235   : > { %v1590_v50 = vmax.f32 %v1588_v48, 0.0 }
 0x236   : > { %v1591_v51 = vmax.f32 %v1589_v49, 0.0 }
 0x238   : > { %v10620_v52 = vpack.i.bf16 %v1591_v51, %v1590_v50 }
 0x23a   : > { %10621 = vrot.lane.b32.xlu1 %v10620_v52, %s12780_s15 }
 0x2ac   : > { %v10622_v53 = vpop.permute.xlu1 %10621 }
 0x2ad   : > { %v10624_v54 = vunpack.i.h.bf16 %v10622_v53  ;;  %v10623_v55 = vunpack.i.l.bf16 %v10622_v53 }
 0x2af   : > { %v1598_v56 = vsel %vm12788_vm0, %v10623_v55, %v10624_v54  ;;  %v1602_v57 = vsel %vm12788_vm0, 0.0, %v10623_v55  ;;  %v1603_v62 = vsel %vm12788_vm0, %v10624_v54, 0.0 }
 0x2b0   : > { %v1611_v58 = vpack.c.bf16 %v1602_v57, %v1602_v57  ;;  %v1612_v59 = vpack.c.bf16 %v1598_v56, %v1598_v56  ;;  %v1605_v60 = vsel %vm11407_vm1, %v1598_v56, 0.0  ;;  %v1604_v61 = vsel %vm11413_vm2, %v1602_v57, 0.0 }
 0x2b1   : > { %v1608_v63 = vpack.c.bf16 %v1605_v60, %v1605_v60  ;;  %v1607_v0 = vpack.c.bf16 %v1604_v61, %v1604_v61  ;;  %v1613_v2 = vpack.c.bf16 %v1603_v62, %v1603_v62  ;;  %v10625_v3 = vpack.i.bf16 %v1598_v56, %v1602_v57 }
 0x2b2   : > { %1617 = vrot.lane.b32.xlu1 %v1611_v58, %s12797_s16  ;;  %1619 = vrot.lane.b32.xlu0 %v1612_v59, %s12797_s16 }
 0x2b3   : > { %9227 = vmatprep.subr.msk.bf16.mxu0 %vm12775_vm15, %v1608_v63  ;;  %v1681_v1 = vsel %vm12775_vm15, %v1607_v0, 0 }
 0x2b4   : > { %1687 = vmatpush1.bf16.msra.mxu0 %v1681_v1  ;;  %v9238_v1 = vld [vmem:[%s11251_s17 + $0x14] sm:$0xf] }
 0x2b6   : > { %1621 = vrot.lane.b32.xlu1 %v1613_v2, %s12797_s16  ;;  %10626 = vrot.lane.b32.xlu0 %v10625_v3, %s12795_s18 }
 0x2b7   : > { %9228 = vmatmul.mubr.msk.bf16.vlgmr.msra.gmra.mrb[20].mxu0 %vm12774_vm3, %v1606_v5 }
 0x2b8   : > { %1854 = vmatprep.mubr.bf16.mxu0 %v11209_v19 }
 0x2ba   : > { %1733 = vrot.lane.b32.xlu1 %v1603_v62, %s12795_s18  ;;  %10631 = vrot.lane.b32.xlu0 %v10625_v3, %s12791_s22 }
 0x2be   : > { %1801 = vrot.lane.b32.xlu1 %v1603_v62, %s12791_s22  ;;  %1867 = vrot.lane.b32.xlu0 %v1611_v58, %s12784_s23 }
 0x2c2   : > { %10636 = vrot.lane.b32.xlu1 %v10625_v3, %s12782_s26  ;;  %1871 = vrot.lane.b32.xlu0 %v1613_v2, %s12784_s23 }
 0x2c6   : > { %1869 = vrot.lane.b32.xlu1 %v1612_v59, %s12784_s23  ;;  %1931 = vrot.lane.b32.xlu0 %v1603_v62, %s12782_s26 }
 0x2ca   : > { %10641 = vrot.lane.b32.xlu1 %v10625_v3, %s12776_s28  ;;  %1999 = vrot.lane.b32.xlu0 %v1603_v62, %s12776_s28  ;;  %s11224_s28 = smov 5  }
 0x2ce   : > { %10646 = vrot.lane.b32.xlu1 %v10625_v3, %s12768_s1  ;;  %2129 = vrot.lane.b32.xlu0 %v1603_v62, %s12768_s1  ;;  %s12793_s1 = smov 120  }
 0x2d2   : > { %2065 = vrot.lane.b32.xlu1 %v1611_v58, %s12770_s2  ;;  %2067 = vrot.lane.b32.xlu0 %v1612_v59, %s12770_s2  ;;  %v9235_v59 = vld [vmem:[%s11251_s17 + $0x10] sm:$0xf] }
 0x2d6   : > { %2069 = vrot.lane.b32.xlu1 %v1613_v2, %s12770_s2  ;;  %2196 = vperm.xlu0 %10619, %v2193_v6   ;;  %s12790_s2 = smov 118  }
 0x324   : > { %v1618_v7 = vpop.permute.xlu1 %1617  ;;  %v1620_v8 = vpop.permute.xlu0 %1619 }
 0x325   : > { %v1623_v9 = vsel %vm12786_vm5, %v1618_v7, %v1620_v8 }
 0x326   : > { %v1631_v17 = vsel %vm12775_vm15, %v1623_v9, 0 }
 0x328   : > { %v1622_v10 = vpop.permute.xlu1 %1621  ;;  %v10627_v13 = vpop.permute.xlu0 %10626 }
 0x329   : > { %v1624_v14 = vsel %vm12786_vm5, %v1620_v8, %v1622_v10  ;;  %v10629_v15 = vunpack.i.h.bf16 %v10627_v13  ;;  %v10628_v16 = vunpack.i.l.bf16 %v10627_v13 }
 0x32a   : > { %9225 = vmatprep.subr.msk.bf16.mxu1 %vm12775_vm15, %v1624_v14 }
 0x32b   : > { %1637 = vmatpush1.bf16.msra.mxu1 %v1631_v17  ;;  %v1735_v20 = vsel %vm12787_vm6, %v10628_v16, %v10629_v15 }
 0x32c   : > { %v1734_v21 = vpop.permute.xlu1 %1733  ;;  %v10632_v22 = vpop.permute.xlu0 %10631  ;;  %v1739_v23 = vsel %vm11457_vm7, %v1735_v20, 0.0 }
 0x32d   : > { %v1736_v24 = vsel %vm12787_vm6, %v10629_v15, %v1734_v21  ;;  %v10634_v25 = vunpack.i.h.bf16 %v10632_v22  ;;  %v10633_v26 = vunpack.i.l.bf16 %v10632_v22  ;;  %v1743_v27 = vpack.c.bf16 %v1739_v23, %v1739_v23  ;;  %v9241_v22 = vld [vmem:[%s11251_s17 + $0x18] sm:$0xf] }
 0x32e   : > { %v1740_v28 = vsel %vm11465_vm8, %v1736_v24, 0.0  ;;  %9226 = vmatmul.mubr.msk.bf16.vlgmr.msra.gmra.mrb[16].mxu1 %vm12774_vm3, %v9224_v18 }
 0x32f   : > { %v1744_v29 = vpack.c.bf16 %v1740_v28, %v1740_v28  ;;  %1786 = vmatprep.mubr.bf16.mxu1 %v11209_v19  ;;  %v1803_v30 = vsel %vm12779_vm9, %v10633_v26, %v10634_v25  ;;  %v1749_v35 = vsel %vm12775_vm15, %v1743_v27, 0 }
 0x330   : > { %v1802_v31 = vpop.permute.xlu1 %1801  ;;  %v1868_v32 = vpop.permute.xlu0 %1867  ;;  %v1807_v33 = vsel %vm11413_vm2, %v1803_v30, 0.0 }
 0x331   : > { %v1804_v34 = vsel %vm12779_vm9, %v10634_v25, %v1802_v31  ;;  %9230 = vmatprep.subr.msk.bf16.mxu1 %vm12775_vm15, %v1744_v29  ;;  %v1811_v37 = vpack.c.bf16 %v1807_v33, %v1807_v33  ;;  %v9244_v31 = vld [vmem:[%s11251_s17 + $0x1c] sm:$0xf] }
 0x332   : > { %v1808_v39 = vsel %vm11407_vm1, %v1804_v34, 0.0  ;;  %1755 = vmatpush1.bf16.msra.mxu1 %v1749_v35 }
 0x333   : > { %v1812_v40 = vpack.c.bf16 %v1808_v39, %v1808_v39  ;;  %v1817_v46 = vsel %vm12775_vm15, %v1811_v37, 0 }
 0x334   : > { %v10637_v42 = vpop.permute.xlu1 %10636  ;;  %v1872_v43 = vpop.permute.xlu0 %1871 }
 0x335   : > { %v10639_v44 = vunpack.i.h.bf16 %v10637_v42  ;;  %v10638_v45 = vunpack.i.l.bf16 %v10637_v42  ;;  %9233 = vmatprep.subr.msk.bf16.mxu0 %vm12775_vm15, %v1812_v40 }
 0x336   : > { %9231 = vmatmul.mubr.msk.bf16.vlgmr.msra.gmra.mrb[20].mxu1 %vm12774_vm3, %v9229_v41  ;;  %1823 = vmatpush1.bf16.msra.mxu0 %v1817_v46 }
 0x337   : > { %1916 = vmatprep.mubr.bf16.mxu1 %v11209_v19  ;;  %v1933_v48 = vsel %vm12778_vm10, %v10638_v45, %v10639_v44 }
 0x338   : > { %v1870_v49 = vpop.permute.xlu1 %1869  ;;  %v1932_v50 = vpop.permute.xlu0 %1931  ;;  %v1937_v51 = vsel %vm11457_vm7, %v1933_v48, 0.0 }
 0x339   : > { %v1873_v52 = vsel %vm12772_vm11, %v1868_v32, %v1870_v49  ;;  %v1934_v53 = vsel %vm12778_vm10, %v10639_v44, %v1932_v50  ;;  %9234 = vmatmul.mubr.msk.bf16.vlgmr.msra.gmra.mrb[24].mxu0 %vm12774_vm3, %v9232_v47  ;;  %v1874_v54 = vsel %vm12772_vm11, %v1870_v49, %v1872_v43  ;;  %v1941_v55 = vpack.c.bf16 %v1937_v51, %v1937_v51  ;;  %v9247_v32 = vld [vmem:[%s11251_s17 + $0x20] sm:$0xf] }
 0x33a   : > { %v1938_v56 = vsel %vm11465_vm8, %v1934_v53, 0.0  ;;  %9236 = vmatprep.subr.msk.bf16.mxu1 %vm12775_vm15, %v1874_v54  ;;  %v1879_v57 = vsel %vm12775_vm15, %v1873_v52, 0  ;;  %1984 = vmatprep.mubr.bf16.mxu0 %v11209_v19  ;;  %vm3697_vm10 = vcmask 39936  }
 0x33b   : > { %v1942_v58 = vpack.c.bf16 %v1938_v56, %v1938_v56  ;;  %1885 = vmatpush1.bf16.msra.mxu1 %v1879_v57  ;;  %v1947_v0 = vsel %vm12775_vm15, %v1941_v55, 0 }
 0x33c   : > { %v10642_v60 = vpop.permute.xlu1 %10641  ;;  %v2000_v61 = vpop.permute.xlu0 %1999 }
 0x33d   : > { %v10644_v62 = vunpack.i.h.bf16 %v10642_v60  ;;  %v10643_v63 = vunpack.i.l.bf16 %v10642_v60  ;;  %9239 = vmatprep.subr.msk.bf16.mxu0 %vm12775_vm15, %v1942_v58 }
 0x33e   : > { %9237 = vmatmul.mubr.msk.bf16.vlgmr.msra.gmra.mrb[24].mxu1 %vm12774_vm3, %v9235_v59  ;;  %1953 = vmatpush1.bf16.msra.mxu0 %v1947_v0 }
 0x33f   : > { %v2002_v2 = vsel %vm12773_vm12, %v10644_v62, %v2000_v61  ;;  %v2001_v3 = vsel %vm12773_vm12, %v10643_v63, %v10644_v62  ;;  %2052 = vmatprep.mubr.bf16.mxu1 %v11209_v19 }
 0x340   : > { %v2006_v5 = vsel %vm11407_vm1, %v2002_v2, 0.0  ;;  %v10647_v6 = vpop.permute.xlu1 %10646  ;;  %v2130_v7 = vpop.permute.xlu0 %2129  ;;  %v2005_v8 = vsel %vm11413_vm2, %v2001_v3, 0.0 }
 0x341   : > { %v2010_v9 = vpack.c.bf16 %v2006_v5, %v2006_v5  ;;  %v10649_v10 = vunpack.i.h.bf16 %v10647_v6  ;;  %v10648_v13 = vunpack.i.l.bf16 %v10647_v6  ;;  %9240 = vmatmul.mubr.msk.bf16.vlgmr.msra.gmra.mrb[28].mxu0 %vm12774_vm3, %v9238_v1  ;;  %v2009_v14 = vpack.c.bf16 %v2005_v8, %v2005_v8 }
 0x342   : > { %2114 = vmatprep.mubr.bf16.mxu0 %v11209_v19 }
 0x343   : > { %v2132_v15 = vsel %vm12766_vm13, %v10649_v10, %v2130_v7  ;;  %9242 = vmatprep.subr.msk.bf16.mxu1 %vm12775_vm15, %v2010_v9  ;;  %v2015_v16 = vsel %vm12775_vm15, %v2009_v14, 0  ;;  %v2131_v17 = vsel %vm12766_vm13, %v10648_v13, %v10649_v10  ;;  %vm2439_vm13 = vcmask 596992  }
 0x344   : > { %v2136_v18 = vsel %vm11465_vm8, %v2132_v15, 0.0  ;;  %v2066_v20 = vpop.permute.xlu1 %2065  ;;  %v2068_v21 = vpop.permute.xlu0 %2067  ;;  %2021 = vmatpush1.bf16.msra.mxu1 %v2015_v16  ;;  %v2135_v23 = vsel %vm11457_vm7, %v2131_v17, 0.0 }
 0x345   : > { %v2140_v24 = vpack.c.bf16 %v2136_v18, %v2136_v18  ;;  %v2139_v25 = vpack.c.bf16 %v2135_v23, %v2135_v23  ;;  %v2071_v26 = vsel %vm12765_vm14, %v2066_v20, %v2068_v21 }
 0x346   : > { %v2077_v30 = vsel %vm12775_vm15, %v2071_v26, 0 }
 0x347   : > { %9243 = vmatmul.mubr.msk.bf16.vlgmr.msra.gmra.mrb[28].mxu1 %vm12774_vm3, %v9241_v22  ;;  %9248 = vmatprep.subr.msk.bf16.mxu1 %vm12775_vm15, %v2140_v24  ;;  %v2145_v27 = vsel %vm12775_vm15, %v2139_v25, 0 }
 0x348   : > { %v2070_v28 = vpop.permute.xlu1 %2069  ;;  %2151 = vmatpush1.bf16.msra.mxu1 %v2145_v27  ;;  %2182 = vmatprep.mubr.bf16.mxu1 %v11209_v19 }
 0x349   : > { %v2072_v29 = vsel %vm12765_vm14, %v2068_v21, %v2070_v28  ;;  %vm2437_vm14 = vcmask 72704  }
 0x34a   : > { %9245 = vmatprep.subr.msk.bf16.mxu0 %vm12775_vm15, %v2072_v29 }
 0x34b   : > { %2083 = vmatpush1.bf16.msra.mxu0 %v2077_v30 }
 0x34e   : > { %9246 = vmatmul.mubr.msk.bf16.vlgmr.msra.gmra.mrb[32].mxu0 %vm12774_vm3, %v9244_v31 }
 0x34f   : > { %9249 = vmatmul.mubr.msk.bf16.vlgmr.msra.gmra.mrb[32].mxu1 %vm12774_vm3, %v9247_v32 }
 0x355   : > { %v2197_v25 = vpop.permute.xlu0 %2196 }
 0x38a   : > { %v1720_v33 = vpop.f32.mrb[20].mxu0 }
 0x38b   : > { %v1722_v34 = vpop.f32.mrb[21].mxu0 }
 0x38c   : > { %v1724_v35 = vpop.f32.mrb[22].mxu0 }
 0x38d   : > { %v1725_v37 = vpop.f32.mrb[23].mxu0 }
 0x401   : > { %v1670_v39 = vpop.f32.mrb[16].mxu1 }
 0x402   : > { %v1672_v40 = vpop.f32.mrb[17].mxu1  ;;  %v1721_v41 = vadd.f32 %v1720_v33, %v1670_v39 }
 0x403   : > { %v1674_v42 = vpop.f32.mrb[18].mxu1  ;;  %v1723_v43 = vadd.f32 %v1722_v34, %v1672_v40 }
 0x404   : > { %v1675_v44 = vpop.f32.mrb[19].mxu1 }
 0x409   : > { %v1788_v45 = vpop.f32.mrb[20].mxu1 }
 0x40a   : > { %v1795_v46 = vadd.f32 %v1788_v45, %v1721_v41  ;;  %v1790_v47 = vpop.f32.mrb[21].mxu1 }
 0x40b   : > { %v1796_v48 = vadd.f32 %v1790_v47, %v1723_v43  ;;  %v1792_v49 = vpop.f32.mrb[22].mxu1 }
 0x40c   : > { %v1793_v50 = vpop.f32.mrb[23].mxu1  ;;  %v1856_v51 = vpop.f32.mrb[24].mxu0 }
 0x40d   : > { %v1863_v52 = vadd.f32 %v1856_v51, %v1795_v46  ;;  %v1858_v53 = vpop.f32.mrb[25].mxu0 }
 0x40e   : > { %v1864_v54 = vadd.f32 %v1858_v53, %v1796_v48  ;;  %v1860_v55 = vpop.f32.mrb[26].mxu0  ;;  %v11058_v53 = vld [vmem:[%s12819_s4] sm:$0xff]  }
 0x40f   : > { %v1861_v56 = vpop.f32.mrb[27].mxu0  ;;  %v11060_v55 = vld [vmem:[%s12819_s4 + $0x8] sm:$0xff]  }
 0x410   : > { %v11061_v56 = vld [vmem:[%s12819_s4 + $0x50] sm:$0xff]  }
 0x411   : > { %v1918_v57 = vpop.f32.mrb[24].mxu1 }
 0x412   : > { %v1925_v58 = vadd.f32 %v1918_v57, %v1863_v52  ;;  %v1920_v59 = vpop.f32.mrb[25].mxu1  ;;  %v11057_v52 = vld [vmem:[%s12819_s4 + $0x40] sm:$0xff]   ;;  %v11062_v57 = vld [vmem:[%s12819_s4 + $0x10] sm:$0xff]  }
 0x413   : > { %v1926_v60 = vadd.f32 %v1920_v59, %v1864_v54  ;;  %v1922_v61 = vpop.f32.mrb[26].mxu1  ;;  %v11059_v54 = vld [vmem:[%s12819_s4 + $0x48] sm:$0xff]   ;;  %9844 = vmatprep.subr.bf16.mxu0 %v11057_v52  ;;  %v11064_v59 = vld [vmem:[%s12819_s4 + $0x18] sm:$0xff]  }
 0x414   : > { %v1923_v62 = vpop.f32.mrb[27].mxu1  ;;  %v1986_v63 = vpop.f32.mrb[28].mxu0  ;;  %9845 = vmatpush3.bf16.msra.mxu0 %v11058_v53  ;;  %v11066_v61 = vld [vmem:[%s12819_s4 + $0x20] sm:$0xff]  }
 0x415   : > { %v1993_v0 = vadd.f32 %v1986_v63, %v1925_v58  ;;  %v1988_v1 = vpop.f32.mrb[29].mxu0  ;;  %9846 = vmatprep.subr.bf16.mxu0 %v11059_v54  ;;  %v11063_v58 = vld [vmem:[%s12819_s4 + $0x58] sm:$0xff]   ;;  %v11067_v62 = vld [vmem:[%s12819_s4 + $0x68] sm:$0xff]   ;;  %v11074_v53 = vld [vmem:[%s11261_s25 + $0x20] sm:$0xff]  }
 0x416   : > { %v1994_v2 = vadd.f32 %v1988_v1, %v1926_v60  ;;  %v1990_v3 = vpop.f32.mrb[30].mxu0  ;;  %v11065_v60 = vld [vmem:[%s12819_s4 + $0x60] sm:$0xff]   ;;  %v11068_v63 = vld [vmem:[%s12819_s4 + $0x28] sm:$0xff]   ;;  %v11070_v1 = vld [vmem:[%s12819_s4 + $0x30] sm:$0xff]  }
 0x417   : > { %v1991_v5 = vpop.f32.mrb[31].mxu0  ;;  %v11072_v3 = vld [vmem:[%s12819_s4 + $0x38] sm:$0xff]  }
 0x418   : > { %9847 = vmatpush3.bf16.msra.mxu0 %v11060_v55 }
 0x419   : > { %9848 = vmatprep.subr.bf16.mxu0 %v11061_v56 }
 0x41a   : > { %v2054_v6 = vpop.f32.mrb[28].mxu1 }
 0x41b   : > { %v2061_v7 = vadd.f32 %v2054_v6, %v1993_v0  ;;  %v2056_v8 = vpop.f32.mrb[29].mxu1  ;;  %v11069_v0 = vld [vmem:[%s12819_s4 + $0x70] sm:$0xff]  }
 0x41c   : > { %v2062_v9 = vadd.f32 %v2056_v8, %v1994_v2  ;;  %v2058_v10 = vpop.f32.mrb[30].mxu1  ;;  %9849 = vmatpush3.bf16.msra.mxu0 %v11062_v57  ;;  %v11071_v2 = vld [vmem:[%s12819_s4 + $0x78] sm:$0xff]   ;;  %s12865_s4 = sld [smem:[#allocation11_spill]] }
 0x41d   : > { %v2059_v13 = vpop.f32.mrb[31].mxu1  ;;  %9850 = vmatprep.subr.bf16.mxu0 %v11063_v58 }
 0x420   : > { %9851 = vmatpush3.bf16.msra.mxu0 %v11064_v59 }
 0x421   : > { %v2116_v14 = vpop.f32.mrb[32].mxu0  ;;  %9852 = vmatprep.subr.bf16.mxu0 %v11065_v60 }
 0x422   : > { %v2123_v15 = vadd.f32 %v2116_v14, %v2061_v7  ;;  %v2118_v16 = vpop.f32.mrb[33].mxu0  ;;  %v2184_v17 = vpop.f32.mrb[32].mxu1 }
 0x423   : > { %v2124_v18 = vadd.f32 %v2118_v16, %v2062_v9  ;;  %v2120_v20 = vpop.f32.mrb[34].mxu0  ;;  %v2186_v21 = vpop.f32.mrb[33].mxu1 }
 0x424   : > { %v2191_v22 = vadd.f32 %v2184_v17, %v2123_v15  ;;  %v2121_v23 = vpop.f32.mrb[35].mxu0  ;;  %v2188_v24 = vpop.f32.mrb[34].mxu1  ;;  %9853 = vmatpush3.bf16.msra.mxu0 %v11066_v61 }
 0x425   : > { %v2192_v26 = vadd.f32 %v2186_v21, %v2124_v18  ;;  %v2189_v27 = vpop.f32.mrb[35].mxu1  ;;  %9854 = vmatprep.subr.bf16.mxu0 %v11067_v62  ;;  %v11075_v62 = vld [vmem:[%s11261_s25] sm:$0xff]  }
 0x426   : > { %v2199_v28 = vadd.f32 %v2197_v25, %v2191_v22 }
 0x427   : > { %v2200_v29 = vadd.f32 %v2197_v25, %v2192_v26 }
 0x428   : > { %v2201_v30 = vmax.f32 %v2199_v28, 0.0  ;;  %9855 = vmatpush3.bf16.msra.mxu0 %v11068_v63 }
 0x429   : > { %v2202_v31 = vmax.f32 %v2200_v29, 0.0  ;;  %9856 = vmatprep.subr.bf16.mxu0 %v11069_v0  ;;  %v11076_v0 = vld [vmem:[%s11261_s25 + $0x30] sm:$0xff]  }
 0x42b   : > { %v10650_v32 = vpack.i.bf16 %v2202_v31, %v2201_v30  ;;  %v11219_v30 = vmov 0.0  }
 0x42c   : > { %9857 = vmatpush3.bf16.msra.mxu0 %v11070_v1  ;;  %10036 = vmatprep.subr.bf16.mxu1 %v11219_v30 }
 0x42d   : > { %10651 = vrot.lane.b32.xlu1 %v10650_v32, %s12780_s15  ;;  %9858 = vmatprep.subr.bf16.mxu0 %v11071_v2  ;;  %s11225_s15 = smov 123  }
 0x42e   : > { %10038 = vmatprep.mubr.msk.bf16.mxu1 %vm11220_vm4, %v11219_v30 }
 0x430   : > { %9859 = vmatpush3.bf16.msra.mxu0 %v11072_v3 }
 0x431   : > { %10060 = vmatprep.subr.bf16.mxu0 %v11219_v30 }
 0x49f   : > { %v10652_v33 = vpop.permute.xlu1 %10651 }
 0x4a0   : > { %v10654_v34 = vunpack.i.h.bf16 %v10652_v33  ;;  %v10653_v35 = vunpack.i.l.bf16 %v10652_v33 }
 0x4a2   : > { %v11650_v37 = vsel %vm12788_vm0, %v10654_v34, 0.0  ;;  %v11653_v39 = vsel %vm12788_vm0, %v10653_v35, %v10654_v34  ;;  %v11656_v40 = vsel %vm12788_vm0, 0.0, %v10653_v35  ;;  %v2989_v35 = vld [vmem:[%s11266_s29] sm:$0xff] }
 0x4a3   : > { %2217 = vrot.lane.b32.xlu1 %v11656_v40, %s12797_s16  ;;  %v10655_v41 = vpack.i.bf16 %v11650_v37, %v11653_v39 }
 0x4a5   : > { %10656 = vrot.lane.b32.xlu0 %v10655_v41, %s12797_s16  ;;  %v2990_v41 = vld [vmem:[%s11266_s29 + $0x8] sm:$0xff] }
 0x515   : > { %v2218_v45 = vpop.permute.xlu1 %2217 }
 0x517   : > { %v10657_v42 = vpop.permute.xlu0 %10656 }
 0x518   : > { %v10659_v43 = vunpack.i.h.bf16 %v10657_v42  ;;  %v10658_v44 = vunpack.i.l.bf16 %v10657_v42  ;;  %v939_v42 = vand.u32 7, %v11398_v4 }
 0x51a   : > { %v2231_v46 = vmax.f32 %v11650_v37, %v10659_v43  ;;  %v2224_v47 = vsel %vm12786_vm5, %v2218_v45, %v10658_v44  ;;  %v2225_v48 = vsel %vm12786_vm5, %v10658_v44, %v10659_v43  ;;  %vm11721_vm12 = vcmp.lt.s32.totalorder %v939_v42, 7  ;;  %v3561_v43 = vld [vmem:[%s11276_s8 + $0x8] sm:$0xff] }
 0x51b   : > { %v2229_v49 = vmax.f32 %v11656_v40, %v2224_v47  ;;  %v2230_v50 = vmax.f32 %v11653_v39, %v2225_v48  ;;  %v11073_v48 = vld [vmem:[%s11261_s25 + $0x8] sm:$0xff]  }
 0x51d   : > { %2235 = vrot.lane.b32.xlu1 %v2229_v49, %s12791_s22  ;;  %v10660_v51 = vpack.i.bf16 %v2231_v46, %v2230_v50 }
 0x51f   : > { %10661 = vrot.lane.b32.xlu0 %v10660_v51, %s12791_s22 }
 0x58f   : > { %v2236_v8 = vpop.permute.xlu1 %2235 }
 0x591   : > { %v10662_v5 = vpop.permute.xlu0 %10661 }
 0x592   : > { %v10664_v6 = vunpack.i.h.bf16 %v10662_v5  ;;  %v10663_v7 = vunpack.i.l.bf16 %v10662_v5 }
 0x594   : > { %v2248_v9 = vmax.f32 %v2231_v46, %v10664_v6  ;;  %v2242_v10 = vsel %vm12779_vm9, %v10663_v7, %v10664_v6  ;;  %v2241_v13 = vsel %vm12779_vm9, %v2236_v8, %v10663_v7  ;;  %vm3700_vm9 = vcmask 171008  }
 0x595   : > { %v2247_v14 = vmax.f32 %v2230_v50, %v2242_v10  ;;  %v2246_v17 = vmax.f32 %v2229_v49, %v2241_v13  ;;  %v11080_v10 = vld [vmem:[%s11261_s25 + $0x40] sm:$0xff]  }
 0x596   : > { %v2251_v15 = vpack.c.bf16 %v2248_v9, %v2248_v9  ;;  %v11077_v9 = vld [vmem:[%s11261_s25 + $0x10] sm:$0xff]  }
 0x597   : > { %v2250_v16 = vpack.c.bf16 %v2247_v14, %v2247_v14  ;;  %v2249_v18 = vpack.c.bf16 %v2246_v17, %v2246_v17 }
 0x598   : > { %2291 = vrot.lane.b32.xlu1 %v2251_v15, %s12784_s23 }
 0x599   : > { %2289 = vrot.lane.b32.xlu0 %v2250_v16, %s12784_s23  ;;  %v11078_v16 = vld [vmem:[%s11261_s25 + $0x18] sm:$0xff]  }
 0x59d   : > { %2287 = vrot.lane.b32.xlu0 %v2249_v18, %s12784_s23  ;;  %v11079_v18 = vld [vmem:[%s11261_s25 + $0x28] sm:$0xff]  }
 0x60a   : > { %v2292_v20 = vpop.permute.xlu1 %2291 }
 0x60b   : > { %v2290_v21 = vpop.permute.xlu0 %2289 }
 0x60c   : > { %v2294_v22 = vsel %vm12772_vm11, %v2290_v21, %v2292_v20 }
 0x60d   : > { %2425 = vmatprep.mubr.bf16.mxu0 %v2294_v22  ;;  %v11081_v22 = vld [vmem:[%s11261_s25 + $0x38] sm:$0xff]  }
 0x60f   : > { %v2288_v23 = vpop.permute.xlu0 %2287 }
 0x610   : > { %v2293_v24 = vsel %vm12772_vm11, %v2288_v23, %v2290_v21  ;;  %vm11713_vm11 = vcmp.gt.s32.totalorder %v939_v42, 0 }
 0x611   : > { %2426 = vmatmul.mubr.bf16.vlgmr.msra.gmra.mrb[36].mxu0 %v2293_v24 }
 0x612   : > { %10062 = vmatprep.mubr.msk.bf16.mxu0 %vm11220_vm4, %v11219_v30 }
 0x6e4   : > { %v9860_v25 = vpop.f32.mrb[36].mxu0 }
 0x6e5   : > { %v9861_v26 = vpop.f32.mrb[37].mxu0 }
 0x6e6   : > { %v9862_v27 = vadd.f32 %v9861_v26, %v9860_v25  ;;  %v9863_v28 = vpop.f32.mrb[38].mxu0 }
 0x6e7   : > { %v9864_v29 = vpop.f32.mrb[39].mxu0 }
 0x6e8   : > { %2434 = vrot.lane.b32.xlu1 %v9862_v27, %s11218_s11 }
 0x75a   : > { %v2435_v31 = vpop.permute.xlu1 %2434 }
 0x75b   : > { %v2438_v32 = vsel %vm2437_vm14, 0.0, %v2435_v31 }
 0x75c   : > { %v2440_v33 = vsel %vm2439_vm13, %v2438_v32, 0.0 }
 0x75d   : > { %2561 = vrot.lane.b32.xlu1 %v2440_v33, %s12795_s18  ;;  %v2450_v34 = vpack.c.bf16 %v2440_v33, %v2440_v33  ;;  %v2443_v45 = vsel %vm11713_vm11, %v2440_v33, 0.0 }
 0x75e   : > { %v2446_v49 = vpack.c.bf16 %v2443_v45, %v2443_v45 }
 0x75f   : > { %2457 = vrot.lane.b32.xlu0 %v2450_v34, %s12797_s16 }
 0x760   : > { %v2515_v55 = vsel %vm12775_vm15, %v2446_v49, 0 }
 0x761   : > { %2693 = vrot.lane.b32.xlu1 %v2450_v34, %s11221_s0 }
 0x763   : > { %2623 = vrot.lane.b32.xlu0 %v2440_v33, %s12793_s1 }
 0x765   : > { %2806 = vrot.lane.b32.xlu1 %v2440_v33, %s12791_s22 }
 0x767   : > { %2744 = vrot.lane.b32.xlu0 %v2440_v33, %s12790_s2 }
 0x769   : > { %2876 = vrot.lane.b32.xlu1 %v2450_v34, %s12784_s23 }
 0x76b   : > { %2927 = vrot.lane.b32.xlu0 %v2440_v33, %s12782_s26 }
 0x76d   : > { %2998 = vperm.xlu1 %10665, %v2990_v41  }
 0x76f   : > { %2993 = vperm.xlu0 %10619, %v2989_v35  }
 0x7cf   : > { %v2562_v44 = vpop.permute.xlu1 %2561 }
 0x7d0   : > { %v2564_v56 = vsel %vm11721_vm12, %v2562_v44, 0.0 }
 0x7d1   : > { %v2458_v46 = vpop.permute.xlu0 %2457  ;;  %v2568_v61 = vpack.c.bf16 %v2564_v56, %v2564_v56 }
 0x7d2   : > { %v2463_v47 = vsel %vm12775_vm15, %v2458_v46, 0 }
 0x7d3   : > { %v2694_v50 = vpop.permute.xlu1 %2693  ;;  %10037 = vmatpush3.bf16.msra.mxu1 %v2463_v47  ;;  %v2578_v3 = vsel %vm12775_vm15, %v2568_v61, 0 }
 0x7d4   : > { %v2699_v52 = vsel %vm12775_vm15, %v2694_v50, 0  ;;  %10042 = vmatprep.subr.bf16.mxu1 %v11219_v30 }
 0x7d5   : > { %10061 = vmatpush3.bf16.msra.mxu0 %v2699_v52  ;;  %v2624_v54 = vpop.permute.xlu0 %2623 }
 0x7d6   : > { %10039 = vmatmul.mubr.msk.bf16.vlgmr.msra.gmra.mrb[36].mxu1 %vm12774_vm3, %v11073_v48  ;;  %10072 = vmatprep.subr.bf16.mxu0 %v11219_v30  ;;  %v2626_v5 = vsel %vm11713_vm11, %v2624_v54, 0.0 }
 0x7d7   : > { %v2807_v57 = vpop.permute.xlu1 %2806  ;;  %10043 = vmatpush3.bf16.msra.mxu1 %v2515_v55  ;;  %10044 = vmatprep.mubr.msk.bf16.mxu1 %vm11220_vm4, %v11219_v30  ;;  %v2630_v8 = vpack.c.bf16 %v2626_v5, %v2626_v5 }
 0x7d8   : > { %v2809_v58 = vsel %vm11713_vm11, %v2807_v57, 0.0  ;;  %10063 = vmatmul.mubr.msk.bf16.vlgmr.msra.gmra.mrb[40].mxu0 %vm12774_vm3, %v11074_v53  ;;  %10048 = vmatprep.subr.bf16.mxu1 %v11219_v30 }
 0x7d9   : > { %v2813_v59 = vpack.c.bf16 %v2809_v58, %v2809_v58  ;;  %v2745_v60 = vpop.permute.xlu0 %2744  ;;  %10074 = vmatprep.mubr.msk.bf16.mxu0 %vm11220_vm4, %v11219_v30  ;;  %v2640_v13 = vsel %vm12775_vm15, %v2630_v8, 0 }
 0x7da   : > { %v2747_v14 = vsel %vm11721_vm12, %v2745_v60, 0.0 }
 0x7db   : > { %v2823_v63 = vsel %vm12775_vm15, %v2813_v59, 0  ;;  %v2751_v15 = vpack.c.bf16 %v2747_v14, %v2747_v14  ;;  %v2877_v20 = vpop.permute.xlu1 %2876 }
 0x7dc   : > { %10073 = vmatpush3.bf16.msra.mxu0 %v2823_v63  ;;  %v2882_v21 = vsel %vm12775_vm15, %v2877_v20, 0 }
 0x7dd   : > { %v2928_v1 = vpop.permute.xlu0 %2927  ;;  %10084 = vmatprep.subr.bf16.mxu0 %v11219_v30  ;;  %v2761_v17 = vsel %vm12775_vm15, %v2751_v15, 0 }
 0x7de   : > { %v2930_v2 = vsel %vm11721_vm12, %v2928_v1, 0.0  ;;  %10045 = vmatmul.mubr.msk.bf16.vlgmr.msra.gmra.mrb[40].mxu1 %vm12774_vm3, %v11075_v62 }
 0x7df   : > { %v2934_v6 = vpack.c.bf16 %v2930_v2, %v2930_v2  ;;  %10049 = vmatpush3.bf16.msra.mxu1 %v2578_v3  ;;  %10050 = vmatprep.mubr.msk.bf16.mxu1 %vm11220_vm4, %v11219_v30 }
 0x7e0   : > { %10075 = vmatmul.mubr.msk.bf16.vlgmr.msra.gmra.mrb[44].mxu0 %vm12774_vm3, %v11076_v0  ;;  %10054 = vmatprep.subr.bf16.mxu1 %v11219_v30 }
 0x7e1   : > { %v2944_v7 = vsel %vm12775_vm15, %v2934_v6, 0  ;;  %10086 = vmatprep.mubr.msk.bf16.mxu0 %vm11220_vm4, %v11219_v30  ;;  %vm3035_vm15 = vcmask 130048  }
 0x7e2   : > { %10085 = vmatpush3.bf16.msra.mxu0 %v2944_v7 }
 0x7e3   : > { %10096 = vmatprep.subr.bf16.mxu0 %v11219_v30 }
 0x7e6   : > { %10051 = vmatmul.mubr.msk.bf16.vlgmr.msra.gmra.mrb[44].mxu1 %vm12774_vm3, %v11077_v9 }
 0x7e7   : > { %10055 = vmatpush3.bf16.msra.mxu1 %v2640_v13  ;;  %10056 = vmatprep.mubr.msk.bf16.mxu1 %vm11220_vm4, %v11219_v30 }
 0x7e8   : > { %10066 = vmatprep.subr.bf16.mxu1 %v11219_v30  ;;  %10087 = vmatmul.mubr.msk.bf16.vlgmr.msra.gmra.mrb[48].mxu0 %vm12774_vm3, %v11080_v10 }
 0x7e9   : > { %10098 = vmatprep.mubr.msk.bf16.mxu0 %vm11220_vm4, %v11219_v30 }
 0x7ee   : > { %10057 = vmatmul.mubr.msk.bf16.vlgmr.msra.gmra.mrb[48].mxu1 %vm12774_vm3, %v11078_v16 }
 0x7ef   : > { %10067 = vmatpush3.bf16.msra.mxu1 %v2761_v17  ;;  %10068 = vmatprep.mubr.msk.bf16.mxu1 %vm11220_vm4, %v11219_v30 }
 0x7f0   : > { %10078 = vmatprep.subr.bf16.mxu1 %v11219_v30 }
 0x7f6   : > { %10069 = vmatmul.mubr.msk.bf16.vlgmr.msra.gmra.mrb[52].mxu1 %vm12774_vm3, %v11079_v18 }
 0x7f7   : > { %10079 = vmatpush3.bf16.msra.mxu1 %v2882_v21  ;;  %10080 = vmatprep.mubr.msk.bf16.mxu1 %vm11220_vm4, %v11219_v30 }
 0x7f8   : > { %10090 = vmatprep.subr.bf16.mxu1 %v11219_v30 }
 0x7fe   : > { %10081 = vmatmul.mubr.msk.bf16.vlgmr.msra.gmra.mrb[56].mxu1 %vm12774_vm3, %v11081_v22  ;;  %v2994_v22 = vpop.permute.xlu0 %2993  ;;  %vm11795_vm3 = vmpackc.low %vm11713_vm11, %vm11713_vm11 }
 0x7ff   : > { %10092 = vmatprep.mubr.msk.bf16.mxu1 %vm11220_vm4, %v11219_v30  ;;  %vm11820_vm11 = vmpackc.low %vm11721_vm12, %vm11721_vm12  ;;  %vm12789_vm12 = vcmask 523264  }
 0x8a9   : > { %v2499_v23 = vpop.f32.mrb[36].mxu1 }
 0x8aa   : > { %v10040_v24 = vpop.f32.mrb[37].mxu1 }
 0x8ab   : > { %v2502_v25 = vpop.f32.mrb[38].mxu1  ;;  %v2735_v26 = vpop.f32.mrb[40].mxu0 }
 0x8ac   : > { %v10041_v27 = vpop.f32.mrb[39].mxu1  ;;  %v10064_v28 = vpop.f32.mrb[41].mxu0 }
 0x8ad   : > { %v2738_v29 = vpop.f32.mrb[42].mxu0 }
 0x8ae   : > { %v10065_v31 = vpop.f32.mrb[43].mxu0 }
 0x8b1   : > { %v2551_v32 = vpop.f32.mrb[40].mxu1 }
 0x8b2   : > { %v2552_v33 = vadd.f32 %v2551_v32, %v2499_v23  ;;  %v10046_v34 = vpop.f32.mrb[41].mxu1  ;;  %v2999_v23 = vpop.permute.xlu1 %2998 }
 0x8b3   : > { %v2554_v35 = vpop.f32.mrb[42].mxu1  ;;  %v2859_v41 = vpop.f32.mrb[44].mxu0 }
 0x8b4   : > { %v2555_v42 = vadd.f32 %v2554_v35, %v2502_v25  ;;  %v10047_v44 = vpop.f32.mrb[43].mxu1  ;;  %v10076_v45 = vpop.f32.mrb[45].mxu0 }
 0x8b5   : > { %v2862_v46 = vpop.f32.mrb[46].mxu0 }
 0x8b6   : > { %v10077_v47 = vpop.f32.mrb[47].mxu0 }
 0x8b7   : > { %v11083_v47 = vld [vmem:[%s12820_s3] sm:$0xff]  }
 0x8b9   : > { %v2614_v48 = vpop.f32.mrb[44].mxu1 }
 0x8ba   : > { %v2621_v49 = vadd.f32 %v2614_v48, %v2552_v33  ;;  %v10052_v50 = vpop.f32.mrb[45].mxu1  ;;  %v3560_v48 = vld [vmem:[%s11276_s8] sm:$0xff] }
 0x8bb   : > { %v2617_v52 = vpop.f32.mrb[46].mxu1  ;;  %v2980_v53 = vpop.f32.mrb[48].mxu0 }
 0x8bc   : > { %v2622_v54 = vadd.f32 %v2617_v52, %v2555_v42  ;;  %v10053_v55 = vpop.f32.mrb[47].mxu1  ;;  %v10088_v56 = vpop.f32.mrb[49].mxu0  ;;  %v11082_v52 = vld [vmem:[%s12820_s3 + $0x8] sm:$0xff]  }
 0x8bd   : > { %v2983_v57 = vpop.f32.mrb[50].mxu0 }
 0x8be   : > { %v10089_v58 = vpop.f32.mrb[51].mxu0 }
 0x8c1   : > { %v2676_v59 = vpop.f32.mrb[48].mxu1 }
 0x8c2   : > { %v2683_v60 = vadd.f32 %v2676_v59, %v2621_v49  ;;  %v10058_v61 = vpop.f32.mrb[49].mxu1 }
 0x8c3   : > { %v2679_v62 = vpop.f32.mrb[50].mxu1 }
 0x8c4   : > { %v2684_v63 = vadd.f32 %v2679_v62, %v2622_v54  ;;  %v10059_v0 = vpop.f32.mrb[51].mxu1  ;;  %v2742_v1 = vadd.f32 %v2735_v26, %v2683_v60  ;;  %v11084_v62 = vld [vmem:[%s12820_s3 + $0x10] sm:$0xff]  }
 0x8c6   : > { %v2743_v2 = vadd.f32 %v2738_v29, %v2684_v63  ;;  %v11085_v63 = vld [vmem:[%s12820_s3 + $0x18] sm:$0xff]  }
 0x8c9   : > { %v2797_v3 = vpop.f32.mrb[52].mxu1 }
 0x8ca   : > { %v2804_v5 = vadd.f32 %v2797_v3, %v2742_v1  ;;  %v10070_v6 = vpop.f32.mrb[53].mxu1 }
 0x8cb   : > { %v2800_v7 = vpop.f32.mrb[54].mxu1 }
 0x8cc   : > { %v2805_v8 = vadd.f32 %v2800_v7, %v2743_v2  ;;  %v10071_v9 = vpop.f32.mrb[55].mxu1  ;;  %v2866_v10 = vadd.f32 %v2859_v41, %v2804_v5  ;;  %v11086_v7 = vld [vmem:[%s12820_s3 + $0x20] sm:$0xff]  }
 0x8ce   : > { %v2867_v13 = vadd.f32 %v2862_v46, %v2805_v8  ;;  %v11087_v8 = vld [vmem:[%s12820_s3 + $0x28] sm:$0xff]  }
 0x8d1   : > { %v2918_v14 = vpop.f32.mrb[56].mxu1 }
 0x8d2   : > { %v2925_v15 = vadd.f32 %v2918_v14, %v2866_v10  ;;  %v10082_v16 = vpop.f32.mrb[57].mxu1 }
 0x8d3   : > { %v2921_v17 = vpop.f32.mrb[58].mxu1  ;;  %v11088_v16 = vld [vmem:[%s12820_s3 + $0x30] sm:$0xff]  }
 0x8d4   : > { %v2987_v18 = vadd.f32 %v2980_v53, %v2925_v15  ;;  %v2926_v20 = vadd.f32 %v2921_v17, %v2867_v13  ;;  %v10083_v21 = vpop.f32.mrb[59].mxu1  ;;  %v11089_v17 = vld [vmem:[%s12820_s3 + $0x38] sm:$0xff]  }
 0x8d6   : > { %v3001_v24 = vadd.f32 %v2994_v22, %v2987_v18  ;;  %v2988_v25 = vadd.f32 %v2983_v57, %v2926_v20  ;;  %v11090_v20 = vld [vmem:[%s12820_s3 + $0x40] sm:$0xff]   ;;  %s12864_s3 = smov 127  }
 0x8d8   : > { %v3002_v26 = vadd.f32 %v2999_v23, %v2988_v25  ;;  %v3003_v27 = vmax.f32 %v3001_v24, 0.0 }
 0x8da   : > { %v3004_v28 = vmax.f32 %v3002_v26, 0.0 }
 0x8dc   : > { %v10666_v29 = vpack.i.bf16 %v3004_v28, %v3003_v27 }
 0x8de   : > { %10667 = vrot.lane.b32.xlu0 %v10666_v29, %s11218_s11 }
 0x950   : > { %v10668_v31 = vpop.permute.xlu0 %10667 }
 0x951   : > { %v10670_v32 = vunpack.i.h.bf16 %v10668_v31  ;;  %v10669_v33 = vunpack.i.l.bf16 %v10668_v31 }
 0x953   : > { %v3014_v34 = vsel %vm2437_vm14, 0.0, %v10670_v32  ;;  %v3013_v35 = vsel %vm2437_vm14, 0.0, %v10669_v33 }
 0x954   : > { %v3016_v41 = vsel %vm2439_vm13, %v3014_v34, 0.0  ;;  %v3015_v42 = vsel %vm2439_vm13, %v3013_v35, 0.0 }
 0x955   : > { %v10671_v45 = vpack.i.bf16 %v3016_v41, %v3015_v42  ;;  %v3025_v46 = vpack.c.bf16 %v3016_v41, %v3015_v42 }
 0x957   : > { %10672 = vrot.lane.b32.xlu0 %v10671_v45, %s12795_s18  ;;  %3032 = vrot.lane.b32.xlu1 %v3025_v46, %s12797_s16 }
 0x958   : > { %10097 = vmatpush3.bf16.msk.msra.mxu0 %vm11795_vm3, %v3025_v46 }
 0x959   : > { %10108 = vmatprep.subr.bf16.mxu0 %v11219_v30 }
 0x95b   : > { %3265 = vrot.lane.b32.xlu0 %v3025_v46, %s11221_s0  ;;  %10677 = vrot.lane.b32.xlu1 %v10671_v45, %s12793_s1 }
 0x95c   : > { %10099 = vmatmul.mubr.msk.bf16.vlgmr.msra.gmra.mrb[52].mxu0 %vm3035_vm15, %v11083_v47 }
 0x95d   : > { %10110 = vmatprep.mubr.msk.bf16.mxu0 %vm11220_vm4, %v11219_v30 }
 0x95f   : > { %10687 = vrot.lane.b32.xlu0 %v10671_v45, %s12791_s22  ;;  %10682 = vrot.lane.b32.xlu1 %v10671_v45, %s12790_s2 }
 0x963   : > { %10692 = vrot.lane.b32.xlu0 %v10671_v45, %s12782_s26  ;;  %3448 = vrot.lane.b32.xlu1 %v3025_v46, %s12784_s23  ;;  %s11226_s26 = smov 124   ;;  %s11227_s23 = smov 122  }
 0x967   : > { %3569 = vperm.xlu0 %10619, %v3561_v43   ;;  %3564 = vperm.xlu1 %10665, %v3560_v48  }
 0x9c9   : > { %v10673_v49 = vpop.permute.xlu0 %10672  ;;  %v3033_v50 = vpop.permute.xlu1 %3032 }
 0x9ca   : > { %v10675_v53 = vunpack.i.h.bf16 %v10673_v49  ;;  %v10674_v54 = vunpack.i.l.bf16 %v10673_v49  ;;  %10091 = vmatpush3.bf16.msra.mxu1 %v3033_v50 }
 0x9cb   : > { %10102 = vmatprep.subr.bf16.mxu1 %v11219_v30 }
 0x9cc   : > { %v9313_v56 = vpack.c.bf16 %v10675_v53, %v10674_v54 }
 0x9cd   : > { %10093 = vmatmul.mubr.msk.bf16.vlgmr.msra.gmra.mrb[60].mxu1 %vm3035_vm15, %v11082_v52  ;;  %v10678_v57 = vpop.permute.xlu1 %10677  ;;  %v3266_v51 = vpop.permute.xlu0 %3265 }
 0x9ce   : > { %v10680_v58 = vunpack.i.h.bf16 %v10678_v57  ;;  %v10679_v59 = vunpack.i.l.bf16 %v10678_v57  ;;  %10103 = vmatpush3.bf16.msk.msra.mxu1 %vm11820_vm11, %v9313_v56  ;;  %10104 = vmatprep.mubr.msk.bf16.mxu1 %vm11220_vm4, %v11219_v30 }
 0x9cf   : > { %10114 = vmatprep.subr.bf16.mxu1 %v11219_v30 }
 0x9d0   : > { %v9320_v60 = vpack.c.bf16 %v10680_v58, %v10679_v59 }
 0x9d1   : > { %v10683_v61 = vpop.permute.xlu1 %10682  ;;  %v10688_v3 = vpop.permute.xlu0 %10687 }
 0x9d2   : > { %v10685_v0 = vunpack.i.h.bf16 %v10683_v61  ;;  %v10684_v1 = vunpack.i.l.bf16 %v10683_v61  ;;  %10109 = vmatpush3.bf16.msk.msra.mxu0 %vm11795_vm3, %v9320_v60  ;;  %v10690_v5 = vunpack.i.h.bf16 %v10688_v3  ;;  %v10689_v6 = vunpack.i.l.bf16 %v10688_v3 }
 0x9d3   : > { %10120 = vmatprep.subr.bf16.mxu0 %v11219_v30 }
 0x9d4   : > { %v9331_v2 = vpack.c.bf16 %v10685_v0, %v10684_v1  ;;  %v9338_v9 = vpack.c.bf16 %v10690_v5, %v10689_v6 }
 0x9d5   : > { %10105 = vmatmul.mubr.msk.bf16.vlgmr.msra.gmra.mrb[64].mxu1 %vm3035_vm15, %v11084_v62  ;;  %10111 = vmatmul.mubr.msk.bf16.vlgmr.msra.gmra.mrb[56].mxu0 %vm3035_vm15, %v11085_v63  ;;  %v10693_v10 = vpop.permute.xlu0 %10692  ;;  %v3449_v13 = vpop.permute.xlu1 %3448 }
 0x9d6   : > { %10115 = vmatpush3.bf16.msra.mxu1 %v3266_v51  ;;  %10121 = vmatpush3.bf16.msk.msra.mxu0 %vm11820_vm11, %v9331_v2  ;;  %v10695_v14 = vunpack.i.h.bf16 %v10693_v10  ;;  %v10694_v15 = vunpack.i.l.bf16 %v10693_v10 }
 0x9d7   : > { %10116 = vmatprep.mubr.msk.bf16.mxu1 %vm11220_vm4, %v11219_v30  ;;  %10122 = vmatprep.mubr.msk.bf16.mxu0 %vm11220_vm4, %v11219_v30 }
 0x9d8   : > { %10126 = vmatprep.subr.bf16.mxu1 %v11219_v30  ;;  %10132 = vmatprep.subr.bf16.mxu0 %v11219_v30  ;;  %v9349_v18 = vpack.c.bf16 %v10695_v14, %v10694_v15 }
 0x9dd   : > { %10117 = vmatmul.mubr.msk.bf16.vlgmr.msra.gmra.mrb[68].mxu1 %vm3035_vm15, %v11086_v7  ;;  %10123 = vmatmul.mubr.msk.bf16.vlgmr.msra.gmra.mrb[60].mxu0 %vm3035_vm15, %v11087_v8 }
 0x9de   : > { %10127 = vmatpush3.bf16.msk.msra.mxu1 %vm11795_vm3, %v9338_v9  ;;  %10133 = vmatpush3.bf16.msra.mxu0 %v3449_v13 }
 0x9df   : > { %10128 = vmatprep.mubr.msk.bf16.mxu1 %vm11220_vm4, %v11219_v30  ;;  %10138 = vmatprep.subr.bf16.mxu1 %v11219_v30 }
 0x9e0   : > { %10134 = vmatprep.mubr.msk.bf16.mxu0 %vm11220_vm4, %v11219_v30  ;;  %10144 = vmatprep.subr.bf16.mxu0 %v11219_v30 }
 0x9e5   : > { %10129 = vmatmul.mubr.msk.bf16.vlgmr.msra.gmra.mrb[72].mxu1 %vm3035_vm15, %v11088_v16  ;;  %10135 = vmatmul.mubr.msk.bf16.vlgmr.msra.gmra.mrb[64].mxu0 %vm3035_vm15, %v11089_v17 }
 0x9e6   : > { %10139 = vmatpush3.bf16.msk.msra.mxu1 %vm11820_vm11, %v9349_v18  ;;  %10140 = vmatprep.mubr.msk.bf16.mxu1 %vm11220_vm4, %v11219_v30  ;;  %v3565_v17 = vpop.permute.xlu1 %3564 }
 0x9e7   : > { %10152 = vmatprep.mubr.msk.bf16.mxu0 %vm11220_vm4, %v11219_v30 }
 0x9ed   : > { %10141 = vmatmul.mubr.msk.bf16.vlgmr.msra.gmra.mrb[76].mxu1 %vm3035_vm15, %v11090_v20 }
 0xa2f   : > { %v3122_v21 = vpop.f32.mrb[52].mxu0 }
 0xa30   : > { %v10100_v22 = vpop.f32.mrb[53].mxu0 }
 0xa31   : > { %v3125_v23 = vpop.f32.mrb[54].mxu0 }
 0xa32   : > { %v10101_v24 = vpop.f32.mrb[55].mxu0 }
 0xaa0   : > { %v3073_v25 = vpop.f32.mrb[60].mxu1 }
 0xaa1   : > { %v3123_v26 = vadd.f32 %v3122_v21, %v3073_v25  ;;  %v10094_v27 = vpop.f32.mrb[61].mxu1 }
 0xaa2   : > { %v3076_v28 = vpop.f32.mrb[62].mxu1 }
 0xaa3   : > { %v3126_v29 = vadd.f32 %v3125_v23, %v3076_v28  ;;  %v10095_v31 = vpop.f32.mrb[63].mxu1  ;;  %v3570_v23 = vpop.permute.xlu0 %3569 }
 0xaa8   : > { %v3185_v32 = vpop.f32.mrb[64].mxu1  ;;  %v3248_v33 = vpop.f32.mrb[56].mxu0 }
 0xaa9   : > { %v3192_v34 = vadd.f32 %v3185_v32, %v3123_v26  ;;  %v10106_v35 = vpop.f32.mrb[65].mxu1  ;;  %v10112_v41 = vpop.f32.mrb[57].mxu0 }
 0xaaa   : > { %v3188_v42 = vpop.f32.mrb[66].mxu1  ;;  %v3251_v45 = vpop.f32.mrb[58].mxu0 }
 0xaab   : > { %v3193_v46 = vadd.f32 %v3188_v42, %v3126_v29  ;;  %v3255_v47 = vadd.f32 %v3248_v33, %v3192_v34  ;;  %v10107_v43 = vpop.f32.mrb[67].mxu1  ;;  %v10113_v48 = vpop.f32.mrb[59].mxu0 }
 0xaac   : > { %v11092_v43 = vld [vmem:[%s11366_s12 + $0x8] sm:$0xff]  }
 0xaad   : > { %v3256_v49 = vadd.f32 %v3251_v45, %v3193_v46  ;;  %v11091_v45 = vld [vmem:[%s11366_s12] sm:$0xff]  }
 0xaae   : > { %10145 = vmatpush3.bf16.msra.mxu0 %v11091_v45 }
 0xaaf   : > { %10146 = vmatprep.subr.bf16.mxu0 %v11219_v30 }
 0xab0   : > { %v3305_v50 = vpop.f32.mrb[68].mxu1  ;;  %v3368_v52 = vpop.f32.mrb[60].mxu0 }
 0xab1   : > { %v3312_v53 = vadd.f32 %v3305_v50, %v3255_v47  ;;  %v10118_v54 = vpop.f32.mrb[69].mxu1  ;;  %v10124_v56 = vpop.f32.mrb[61].mxu0 }
 0xab2   : > { %v3308_v57 = vpop.f32.mrb[70].mxu1  ;;  %v3371_v58 = vpop.f32.mrb[62].mxu0  ;;  %10147 = vmatpush3.bf16.msra.mxu0 %v11092_v43 }
 0xab3   : > { %v3313_v59 = vadd.f32 %v3308_v57, %v3256_v49  ;;  %v3375_v51 = vadd.f32 %v3368_v52, %v3312_v53  ;;  %v10119_v60 = vpop.f32.mrb[71].mxu1  ;;  %v10125_v61 = vpop.f32.mrb[63].mxu0  ;;  %v11093_v52 = vld [vmem:[%s11366_s12 + $0x10] sm:$0xff]   ;;  %10148 = vmatprep.subr.bf16.mxu0 %v11219_v30  ;;  %v11094_v53 = vld [vmem:[%s11366_s12 + $0x18] sm:$0xff]  }
 0xab5   : > { %v3376_v62 = vadd.f32 %v3371_v58, %v3313_v59 }
 0xab6   : > { %10149 = vmatpush3.bf16.msra.mxu0 %v11093_v52  ;;  %v11102_v52 = vld [vmem:[%s11281_s14 + $0x38] sm:$0xff]  }
 0xab7   : > { %10150 = vmatprep.subr.bf16.mxu0 %v11219_v30 }
 0xab8   : > { %v3431_v63 = vpop.f32.mrb[72].mxu1  ;;  %v3488_v0 = vpop.f32.mrb[64].mxu0 }
 0xab9   : > { %v3438_v1 = vadd.f32 %v3431_v63, %v3375_v51  ;;  %v10130_v2 = vpop.f32.mrb[73].mxu1  ;;  %v10136_v3 = vpop.f32.mrb[65].mxu0 }
 0xaba   : > { %v3434_v5 = vpop.f32.mrb[74].mxu1  ;;  %v3491_v6 = vpop.f32.mrb[66].mxu0  ;;  %10151 = vmatpush3.bf16.msra.mxu0 %v11094_v53  ;;  %v11095_v2 = vld [vmem:[%s11281_s14 + $0x10] sm:$0xff]   ;;  %v11103_v53 = vld [vmem:[%s11281_s14 + $0x40] sm:$0xff]  }
 0xabb   : > { %v3439_v7 = vadd.f32 %v3434_v5, %v3376_v62  ;;  %v3495_v8 = vadd.f32 %v3488_v0, %v3438_v1  ;;  %v10131_v9 = vpop.f32.mrb[75].mxu1  ;;  %v10137_v10 = vpop.f32.mrb[67].mxu0  ;;  %10158 = vmatprep.mubr.msk.bf16.mxu1 %vm3035_vm15, %v11095_v2 }
 0xabd   : > { %v3496_v13 = vadd.f32 %v3491_v6, %v3439_v7 }
 0xac0   : > { %v3551_v14 = vpop.f32.mrb[76].mxu1 }
 0xac1   : > { %v3558_v15 = vadd.f32 %v3551_v14, %v3495_v8  ;;  %v10142_v16 = vpop.f32.mrb[77].mxu1 }
 0xac2   : > { %v3554_v18 = vpop.f32.mrb[78].mxu1  ;;  %v4425_v16 = vld [vmem:[%s11286_s19] sm:$0xff] }
 0xac3   : > { %v3572_v20 = vadd.f32 %v3565_v17, %v3558_v15  ;;  %v3559_v21 = vadd.f32 %v3554_v18, %v3496_v13  ;;  %v10143_v22 = vpop.f32.mrb[79].mxu1  ;;  %v4426_v15 = vld [vmem:[%s11286_s19 + $0x8] sm:$0xff]  ;;  %v4428_v17 = vld [vmem:[%s11286_s19 + $0x18] sm:$0xff]  ;;  %v4427_v18 = vld [vmem:[%s11286_s19 + $0x10] sm:$0xff] }
 0xac5   : > { %v3573_v24 = vadd.f32 %v3570_v23, %v3559_v21  ;;  %v3574_v25 = vmax.f32 %v3572_v20, 0.0  ;;  %v953_v20 = vand.u32 3, %v11398_v4 }
 0xac7   : > { %v3575_v26 = vmax.f32 %v3573_v24, 0.0  ;;  %vm961_vm5 = vcmp.gt.s32.totalorder %v953_v20, 0  ;;  %vm962_vm0 = vcmp.lt.s32.totalorder %v953_v20, 3 }
 0xac8   : > { %vm11917_vm6 = vmpackc.low %vm961_vm5, %vm961_vm5  ;;  %vm12852_vm5 = vcmask 523264  }
 0xac9   : > { %v10696_v27 = vpack.i.bf16 %v3575_v26, %v3574_v25  ;;  %v11096_v26 = vld [vmem:[%s11281_s14 + $0x18] sm:$0xff]  }
 0xacb   : > { %10697 = vrot.lane.b32.xlu1 %v10696_v27, %s11218_s11  ;;  %v11097_v27 = vld [vmem:[%s11281_s14] sm:$0xff]  }
 0xb3d   : > { %v10698_v28 = vpop.permute.xlu1 %10697 }
 0xb3e   : > { %v10700_v29 = vunpack.i.h.bf16 %v10698_v28  ;;  %v10699_v31 = vunpack.i.l.bf16 %v10698_v28 }
 0xb40   : > { %v3585_v32 = vsel %vm2437_vm14, 0.0, %v10700_v29  ;;  %v3584_v33 = vsel %vm2437_vm14, 0.0, %v10699_v31 }
 0xb41   : > { %v11874_v34 = vsel %vm2439_vm13, %v3585_v32, 0.0  ;;  %v11877_v35 = vsel %vm2439_vm13, %v3584_v33, 0.0  ;;  %v11098_v33 = vld [vmem:[%s11281_s14 + $0x8] sm:$0xff]  }
 0xb42   : > { %v11881_v41 = vpack.i.bf16 %v11874_v34, %v11877_v35 }
 0xb44   : > { %10702 = vrot.lane.b32.xlu0 %v11881_v41, %s12797_s16 }
 0xbb6   : > { %v10703_v42 = vpop.permute.xlu0 %10702 }
 0xbb7   : > { %v10705_v46 = vunpack.i.h.bf16 %v10703_v42  ;;  %v10704_v47 = vunpack.i.l.bf16 %v10703_v42  ;;  %v11099_v42 = vld [vmem:[%s11281_s14 + $0x20] sm:$0xff]  }
 0xbb9   : > { %v3597_v48 = vmax.f32 %v11874_v34, %v10705_v46  ;;  %v3596_v49 = vmax.f32 %v11877_v35, %v10704_v47  ;;  %v11100_v46 = vld [vmem:[%s11281_s14 + $0x28] sm:$0xff]   ;;  %v11101_v47 = vld [vmem:[%s11281_s14 + $0x30] sm:$0xff]  }
 0xbbb   : > { %v10706_v50 = vpack.i.bf16 %v3597_v48, %v3596_v49 }
 0xbbd   : > { %10707 = vrot.lane.b32.xlu1 %v10706_v50, %s12793_s1 }
 0xc2f   : > { %v10708_v54 = vpop.permute.xlu1 %10707 }
 0xc30   : > { %v10710_v56 = vunpack.i.h.bf16 %v10708_v54  ;;  %v10709_v57 = vunpack.i.l.bf16 %v10708_v54 }
 0xc32   : > { %v3607_v58 = vmax.f32 %v3597_v48, %v10710_v56  ;;  %v3606_v59 = vmax.f32 %v3596_v49, %v10709_v57 }
 0xc34   : > { %v3608_v51 = vpack.c.bf16 %v3607_v58, %v3606_v59  ;;  %v11104_v59 = vld [vmem:[%s11281_s14 + $0x48] sm:$0xff]  }
 0xc36   : > { %3618 = vrot.lane.b32.xlu0 %v3608_v51, %s11221_s0  ;;  %v11105_v51 = vld [vmem:[%s11281_s14 + $0x50] sm:$0xff]  }
 0xca8   : > { %v3619_v60 = vpop.permute.xlu0 %3618 }
 0xca9   : > { %10153 = vmatmul.mubr.msk.bf16.vlgmr.msra.gmra.mrb[68].mxu0 %vm12789_vm12, %v3619_v60  ;;  %vm11925_vm12 = vmpackc.low %vm962_vm0, %vm962_vm0  ;;  %vm4516_vm0 = vcmask 261120  }
 0xd7c   : > { %v3682_v61 = vpop.f32.mrb[68].mxu0 }
 0xd7d   : > { %v10154_v62 = vpop.f32.mrb[69].mxu0 }
 0xd7e   : > { %v3685_v63 = vpop.f32.mrb[70].mxu0  ;;  %v11107_v62 = vld [vmem:[%s11281_s14 + $0x60] sm:$0xff]  }
 0xd7f   : > { %v10711_v0 = vpack.i.bf16 %v3685_v63, %v3682_v61  ;;  %v10155_v1 = vpop.f32.mrb[71].mxu0  ;;  %v11106_v61 = vld [vmem:[%s11281_s14 + $0x58] sm:$0xff]  }
 0xd81   : > { %10712 = vrot.lane.b32.xlu1 %v10711_v0, %s11224_s28 }
 0xdf3   : > { %v10713_v3 = vpop.permute.xlu1 %10712 }
 0xdf4   : > { %v10715_v5 = vunpack.i.h.bf16 %v10713_v3  ;;  %v10714_v6 = vunpack.i.l.bf16 %v10713_v3  ;;  %v11108_v3 = vld [vmem:[%s11281_s14 + $0x68] sm:$0xff]  }
 0xdf6   : > { %v3699_v7 = vsel %vm3697_vm10, 0.0, %v10715_v5  ;;  %v3698_v8 = vsel %vm3697_vm10, 0.0, %v10714_v6  ;;  %v11109_v5 = vld [vmem:[%s11281_s14 + $0x70] sm:$0xff]  }
 0xdf7   : > { %v3702_v9 = vsel %vm3700_vm9, %v3699_v7, 0.0  ;;  %v3701_v10 = vsel %vm3700_vm9, %v3698_v8, 0.0  ;;  %v11110_v7 = vld [vmem:[%s11281_s14 + $0x78] sm:$0xff]   ;;  %v11111_v8 = vld [vmem:[%s11281_s14 + $0x80] sm:$0xff]  }
 0xdf8   : > { %v10716_v13 = vpack.i.bf16 %v3702_v9, %v3701_v10  ;;  %v3717_v14 = vpack.c.bf16 %v3702_v9, %v3701_v10  ;;  %v11112_v9 = vld [vmem:[%s11281_s14 + $0x88] sm:$0xff]  }
 0xdfa   : > { %10717 = vrot.lane.b32.xlu1 %v10716_v13, %s12795_s18  ;;  %3729 = vrot.lane.b32.xlu0 %v3717_v14, %s12797_s16 }
 0xdfe   : > { %4037 = vrot.lane.b32.xlu1 %v3717_v14, %s11225_s15  ;;  %10722 = vrot.lane.b32.xlu0 %v10716_v13, %s11226_s26 }
 0xe02   : > { %10732 = vrot.lane.b32.xlu1 %v10716_v13, %s12793_s1  ;;  %10727 = vrot.lane.b32.xlu0 %v10716_v13, %s11227_s23 }
 0xe06   : > { %10737 = vrot.lane.b32.xlu1 %v10716_v13, %s12790_s2  ;;  %4280 = vrot.lane.b32.xlu0 %v3717_v14, %s11221_s0 }
 0xe0a   : > { %4436 = vperm.xlu1 %10665, %v4426_v15   ;;  %4431 = vperm.xlu0 %10619, %v4425_v16  }
 0xe0e   : > { %4446 = vperm.xlu1 %10665, %v4428_v17   ;;  %4441 = vperm.xlu0 %10619, %v4427_v18  }
 0xe6c   : > { %v10718_v22 = vpop.permute.xlu1 %10717  ;;  %v3730_v23 = vpop.permute.xlu0 %3729 }
 0xe6d   : > { %v10720_v24 = vunpack.i.h.bf16 %v10718_v22  ;;  %v10719_v25 = vunpack.i.l.bf16 %v10718_v22  ;;  %10156 = vmatprep.subr.bf16.mxu1 %v3730_v23 }
 0xe6e   : > { %10157 = vmatpush3.bf16.msra.mxu1 %v3730_v23 }
 0xe6f   : > { %10162 = vmatprep.subr.msk.bf16.mxu1 %vm11917_vm6, %v3717_v14  ;;  %v9379_v28 = vpack.c.bf16 %v10720_v24, %v10719_v25 }
 0xe70   : > { %v10723_v29 = vpop.permute.xlu0 %10722  ;;  %v4038_v43 = vpop.permute.xlu1 %4037 }
 0xe71   : > { %10159 = vmatmul.mubr.msk.bf16.vlgmr.msra.gmra.mrb[80].mxu1 %vm3035_vm15, %v11096_v26  ;;  %v10725_v31 = vunpack.i.h.bf16 %v10723_v29  ;;  %v10724_v32 = vunpack.i.l.bf16 %v10723_v29 }
 0xe72   : > { %10163 = vmatpush3.bf16.msk.msra.mxu1 %vm11917_vm6, %v3717_v14  ;;  %10164 = vmatprep.mubr.msk.bf16.mxu1 %vm3035_vm15, %v11097_v27 }
 0xe73   : > { %10168 = vmatprep.subr.msk.bf16.mxu1 %vm11925_vm12, %v9379_v28  ;;  %v9390_v45 = vpack.c.bf16 %v10725_v31, %v10724_v32 }
 0xe74   : > { %v10728_v48 = vpop.permute.xlu0 %10727  ;;  %v10733_v56 = vpop.permute.xlu1 %10732 }
 0xe75   : > { %v10730_v49 = vunpack.i.h.bf16 %v10728_v48  ;;  %v10729_v50 = vunpack.i.l.bf16 %v10728_v48  ;;  %v10735_v57 = vunpack.i.h.bf16 %v10733_v56  ;;  %v10734_v58 = vunpack.i.l.bf16 %v10733_v56 }
 0xe77   : > { %v9409_v54 = vpack.c.bf16 %v10730_v49, %v10729_v50  ;;  %v9420_v60 = vpack.c.bf16 %v10735_v57, %v10734_v58 }
 0xe78   : > { %v4281_v63 = vpop.permute.xlu0 %4280  ;;  %v10738_v0 = vpop.permute.xlu1 %10737 }
 0xe79   : > { %v10740_v1 = vunpack.i.h.bf16 %v10738_v0  ;;  %v10739_v2 = vunpack.i.l.bf16 %v10738_v0  ;;  %v5264_v0 = vld [vmem:[%s11296_s30 + $0x18] sm:$0xff] }
 0xe7b   : > { %v9439_v6 = vpack.c.bf16 %v10740_v1, %v10739_v2  ;;  %v5263_v1 = vld [vmem:[%s11296_s30 + $0x10] sm:$0xff] }
 0xe7d   : > { %10165 = vmatmul.mubr.msk.bf16.vlgmr.msra.gmra.mrb[80].mxu1 %vm3035_vm15, %v11098_v33 }
 0xe7e   : > { %10169 = vmatpush3.bf16.msk.msra.mxu1 %vm11925_vm12, %v9379_v28  ;;  %10170 = vmatprep.mubr.msk.bf16.mxu1 %vm3035_vm15, %v11099_v42 }
 0xe7f   : > { %10174 = vmatprep.subr.msk.bf16.mxu1 %vm11917_vm6, %v9390_v45 }
 0xe89   : > { %10171 = vmatmul.mubr.msk.bf16.vlgmr.msra.gmra.mrb[80].mxu1 %vm3035_vm15, %v11100_v46  ;;  %v4432_v10 = vpop.permute.xlu0 %4431  ;;  %v4437_v13 = vpop.permute.xlu1 %4436 }
 0xe8a   : > { %10175 = vmatpush3.bf16.msk.msra.mxu1 %vm11917_vm6, %v9390_v45  ;;  %10176 = vmatprep.mubr.msk.bf16.mxu1 %vm3035_vm15, %v11101_v47 }
 0xe8b   : > { %10180 = vmatprep.subr.bf16.mxu1 %v4038_v43 }
 0xe8d   : > { %v4442_v14 = vpop.permute.xlu0 %4441  ;;  %v4447_v18 = vpop.permute.xlu1 %4446 }
 0xe95   : > { %10177 = vmatmul.mubr.msk.bf16.vlgmr.msra.gmra.mrb[80].mxu1 %vm3035_vm15, %v11102_v52 }
 0xe96   : > { %10181 = vmatpush3.bf16.msra.mxu1 %v4038_v43  ;;  %10182 = vmatprep.mubr.msk.bf16.mxu1 %vm3035_vm15, %v11103_v53 }
 0xe97   : > { %10186 = vmatprep.subr.msk.bf16.mxu1 %vm11925_vm12, %v9409_v54 }
 0xea1   : > { %10183 = vmatmul.mubr.msk.bf16.vlgmr.msra.gmra.mrb[80].mxu1 %vm3035_vm15, %v11104_v59  ;;  %v11113_v59 = vld [vmem:[%s11291_s24 + $0x10] sm:$0xff]  }
 0xea2   : > { %10187 = vmatpush3.bf16.msk.msra.mxu1 %vm11925_vm12, %v9409_v54  ;;  %10188 = vmatprep.mubr.msk.bf16.mxu1 %vm3035_vm15, %v11105_v51 }
 0xea3   : > { %10192 = vmatprep.subr.msk.bf16.mxu1 %vm11917_vm6, %v9420_v60  ;;  %10214 = vmatprep.mubr.msk.bf16.mxu0 %vm4516_vm0, %v11113_v59 }
 0xead   : > { %10189 = vmatmul.mubr.msk.bf16.vlgmr.msra.gmra.mrb[80].mxu1 %vm3035_vm15, %v11106_v61 }
 0xeae   : > { %10193 = vmatpush3.bf16.msk.msra.mxu1 %vm11917_vm6, %v9420_v60  ;;  %10194 = vmatprep.mubr.msk.bf16.mxu1 %vm3035_vm15, %v11107_v62  ;;  %v5262_v62 = vld [vmem:[%s11296_s30 + $0x8] sm:$0xff] }
 0xeaf   : > { %10198 = vmatprep.subr.bf16.mxu1 %v4281_v63 }
 0xeb9   : > { %10195 = vmatmul.mubr.msk.bf16.vlgmr.msra.gmra.mrb[80].mxu1 %vm3035_vm15, %v11108_v3 }
 0xeba   : > { %10199 = vmatpush3.bf16.msra.mxu1 %v4281_v63  ;;  %10200 = vmatprep.mubr.msk.bf16.mxu1 %vm3035_vm15, %v11109_v5  ;;  %v5261_v63 = vld [vmem:[%s11296_s30] sm:$0xff]  ;;  %v11114_v5 = vld [vmem:[%s11291_s24 + $0x18] sm:$0xff]  }
 0xebb   : > { %10204 = vmatprep.subr.msk.bf16.mxu1 %vm11925_vm12, %v9439_v6 }
 0xec5   : > { %10201 = vmatmul.mubr.msk.bf16.vlgmr.msra.gmra.mrb[80].mxu1 %vm3035_vm15, %v11110_v7  ;;  %v11115_v7 = vld [vmem:[%s11291_s24] sm:$0xff]  }
 0xec6   : > { %10205 = vmatpush3.bf16.msk.msra.mxu1 %vm11925_vm12, %v9439_v6  ;;  %10206 = vmatprep.mubr.msk.bf16.mxu1 %vm3035_vm15, %v11111_v8 }
 0xed1   : > { %10207 = vmatmul.mubr.msk.bf16.vlgmr.msra.gmra.mrb[80].mxu1 %vm3035_vm15, %v11112_v9 }
 0xfa4   : > { %v10208_v15 = vpop.f32.mrb[80].mxu1 }
 0xfa5   : > { %v4451_v16 = vadd.f32 %v10208_v15, %v4442_v14  ;;  %v4406_v17 = vpop.f32.mrb[81].mxu1 }
 0xfa6   : > { %v4449_v20 = vadd.f32 %v4432_v10, %v4406_v17  ;;  %v10209_v22 = vpop.f32.mrb[82].mxu1 }
 0xfa7   : > { %v4452_v23 = vadd.f32 %v10209_v22, %v4447_v18  ;;  %v4409_v24 = vpop.f32.mrb[83].mxu1  ;;  %v4455_v26 = vmax.f32 %v4451_v16, 0.0  ;;  %v11116_v16 = vld [vmem:[%s11291_s24 + $0x8] sm:$0xff]   ;;  %v11117_v18 = vld [vmem:[%s11291_s24 + $0x20] sm:$0xff]  }
 0xfa8   : > { %v4450_v25 = vadd.f32 %v4437_v13, %v4409_v24  ;;  %v4453_v28 = vmax.f32 %v4449_v20, 0.0 }
 0xfa9   : > { %v4456_v27 = vmax.f32 %v4452_v23, 0.0 }
 0xfaa   : > { %v4454_v29 = vmax.f32 %v4450_v25, 0.0 }
 0xfab   : > { %v10746_v31 = vpack.i.bf16 %v4456_v27, %v4455_v26 }
 0xfac   : > { %v10741_v32 = vpack.i.bf16 %v4454_v29, %v4453_v28  ;;  %v11118_v28 = vld [vmem:[%s11291_s24 + $0x28] sm:$0xff]   ;;  %v11119_v29 = vld [vmem:[%s11291_s24 + $0x30] sm:$0xff]  }
 0xfad   : > { %10747 = vrot.lane.b32.xlu1 %v10746_v31, %s11224_s28 }
 0xfae   : > { %10742 = vrot.lane.b32.xlu0 %v10741_v32, %s11224_s28  ;;  %s12845_s28 = smov 110  }
0x101f   : > { %v10748_v33 = vpop.permute.xlu1 %10747 }
0x1020   : > { %v10750_v42 = vunpack.i.h.bf16 %v10748_v33  ;;  %v10749_v45 = vunpack.i.l.bf16 %v10748_v33  ;;  %v10743_v46 = vpop.permute.xlu0 %10742  ;;  %v11120_v33 = vld [vmem:[%s11291_s24 + $0x38] sm:$0xff]  }
0x1021   : > { %v10745_v47 = vunpack.i.h.bf16 %v10743_v46  ;;  %v10744_v43 = vunpack.i.l.bf16 %v10743_v46 }
0x1022   : > { %v4476_v48 = vsel %vm3697_vm10, 0.0, %v10750_v42  ;;  %v4475_v49 = vsel %vm3697_vm10, 0.0, %v10749_v45  ;;  %v11121_v45 = vld [vmem:[%s11291_s24 + $0x40] sm:$0xff]  }
0x1023   : > { %v4480_v50 = vsel %vm3700_vm9, %v4476_v48, 0.0  ;;  %v4479_v52 = vsel %vm3700_vm9, %v4475_v49, 0.0  ;;  %v4474_v53 = vsel %vm3697_vm10, 0.0, %v10745_v47  ;;  %v4473_v54 = vsel %vm3697_vm10, 0.0, %v10744_v43 }
0x1024   : > { %v4478_v56 = vsel %vm3700_vm9, %v4474_v53, 0.0  ;;  %v4477_v57 = vsel %vm3700_vm9, %v4473_v54, 0.0  ;;  %v4497_v58 = vpack.c.bf16 %v4480_v50, %v4479_v52  ;;  %v10756_v60 = vpack.i.bf16 %v4480_v50, %v4479_v52  ;;  %v11122_v53 = vld [vmem:[%s11291_s24 + $0x48] sm:$0xff]  }
0x1025   : > { %v4496_v51 = vpack.c.bf16 %v4478_v56, %v4477_v57  ;;  %v10751_v61 = vpack.i.bf16 %v4478_v56, %v4477_v57  ;;  %v11123_v56 = vld [vmem:[%s11291_s24 + $0x50] sm:$0xff]  }
0x1026   : > { %4512 = vrot.lane.b32.xlu1 %v4497_v58, %s12797_s16 }
0x1027   : > { %4510 = vrot.lane.b32.xlu0 %v4496_v51, %s12797_s16 }
0x102a   : > { %10757 = vrot.lane.b32.xlu1 %v10756_v60, %s12795_s18 }
0x102b   : > { %10752 = vrot.lane.b32.xlu0 %v10751_v61, %s12795_s18 }
0x102e   : > { %10767 = vrot.lane.b32.xlu1 %v10756_v60, %s11226_s26 }
0x102f   : > { %10762 = vrot.lane.b32.xlu0 %v10751_v61, %s11226_s26  ;;  %s12844_s26 = smov 111  }
0x1032   : > { %4842 = vrot.lane.b32.xlu1 %v4497_v58, %s11225_s15 }
0x1033   : > { %4840 = vrot.lane.b32.xlu0 %v4496_v51, %s11225_s15  ;;  %s12842_s15 = sld [smem:[#allocation4_spill]] }
0x1036   : > { %10777 = vrot.lane.b32.xlu1 %v10756_v60, %s11227_s23 }
0x1037   : > { %10772 = vrot.lane.b32.xlu0 %v10751_v61, %s11227_s23  ;;  %s12843_s23 = sld [smem:[#allocation6_spill]] }
0x103a   : > { %10787 = vrot.lane.b32.xlu1 %v10756_v60, %s12793_s1 }
0x103b   : > { %10782 = vrot.lane.b32.xlu0 %v10751_v61, %s12793_s1 }
0x103e   : > { %5106 = vrot.lane.b32.xlu1 %v4497_v58, %s11221_s0 }
0x103f   : > { %5104 = vrot.lane.b32.xlu0 %v4496_v51, %s11221_s0 }
0x1042   : > { %10797 = vrot.lane.b32.xlu1 %v10756_v60, %s12790_s2 }
0x1043   : > { %10792 = vrot.lane.b32.xlu0 %v10751_v61, %s12790_s2 }
0x1046   : > { %5272 = vperm.xlu1 %10665, %v5262_v62  }
0x1047   : > { %5267 = vperm.xlu0 %10619, %v5261_v63   ;;  %v11124_v63 = vld [vmem:[%s11291_s24 + $0x58] sm:$0xff]  }
0x104a   : > { %5282 = vperm.xlu1 %10665, %v5264_v0   ;;  %v11125_v0 = vld [vmem:[%s11291_s24 + $0x60] sm:$0xff]  }
0x104b   : > { %5277 = vperm.xlu0 %10619, %v5263_v1  }
0x1098   : > { %v4513_v3 = vpop.permute.xlu1 %4512 }
0x1099   : > { %v4511_v2 = vpop.permute.xlu0 %4510 }
0x109a   : > { %10210 = vmatprep.subr.bf16.mxu0 %v4511_v2 }
0x109b   : > { %10211 = vmatpush3.bf16.msra.mxu0 %v4511_v2 }
0x109c   : > { %10212 = vmatprep.subr.bf16.mxu0 %v4513_v3  ;;  %v10758_v13 = vpop.permute.xlu1 %10757 }
0x109d   : > { %v10753_v6 = vpop.permute.xlu0 %10752  ;;  %v10760_v14 = vunpack.i.h.bf16 %v10758_v13  ;;  %v10759_v15 = vunpack.i.l.bf16 %v10758_v13 }
0x109e   : > { %v10755_v8 = vunpack.i.h.bf16 %v10753_v6  ;;  %v10754_v9 = vunpack.i.l.bf16 %v10753_v6  ;;  %v11127_v6 = vld [vmem:[%s11291_s24 + $0x70] sm:$0xff]  }
0x109f   : > { %10213 = vmatpush3.bf16.msra.mxu0 %v4513_v3  ;;  %v9471_v20 = vpack.c.bf16 %v10760_v14, %v10759_v15  ;;  %v11126_v3 = vld [vmem:[%s11291_s24 + $0x68] sm:$0xff]   ;;  %v11128_v15 = vld [vmem:[%s11291_s24 + $0x78] sm:$0xff]  }
0x10a0   : > { %10218 = vmatprep.subr.msk.bf16.mxu0 %vm11917_vm6, %v4496_v51  ;;  %v9468_v10 = vpack.c.bf16 %v10755_v8, %v10754_v9  ;;  %v10768_v25 = vpop.permute.xlu1 %10767 }
0x10a1   : > { %v10763_v17 = vpop.permute.xlu0 %10762  ;;  %v10770_v26 = vunpack.i.h.bf16 %v10768_v25  ;;  %v10769_v27 = vunpack.i.l.bf16 %v10768_v25 }
0x10a2   : > { %10215 = vmatmul.mubr.msk.bf16.vlgmr.msra.gmra.mrb[72].mxu0 %vm4516_vm0, %v11114_v5  ;;  %v10765_v22 = vunpack.i.h.bf16 %v10763_v17  ;;  %v10764_v23 = vunpack.i.l.bf16 %v10763_v17 }
0x10a3   : > { %10219 = vmatpush3.bf16.msk.msra.mxu0 %vm11917_vm6, %v4496_v51  ;;  %10222 = vmatprep.mubr.msk.bf16.mxu0 %vm4516_vm0, %v11115_v7  ;;  %v9485_v31 = vpack.c.bf16 %v10770_v26, %v10769_v27 }
0x10a4   : > { %10220 = vmatprep.subr.msk.bf16.mxu0 %vm11917_vm6, %v4497_v58  ;;  %v9482_v24 = vpack.c.bf16 %v10765_v22, %v10764_v23  ;;  %v4843_v46 = vpop.permute.xlu1 %4842 }
0x10a5   : > { %v4841_v32 = vpop.permute.xlu0 %4840 }
0x10a7   : > { %10221 = vmatpush3.bf16.msk.msra.mxu0 %vm11917_vm6, %v4497_v58 }
0x10a8   : > { %10226 = vmatprep.subr.msk.bf16.mxu0 %vm11925_vm12, %v9468_v10  ;;  %v10778_v49 = vpop.permute.xlu1 %10777 }
0x10a9   : > { %v10773_v42 = vpop.permute.xlu0 %10772  ;;  %v10780_v50 = vunpack.i.h.bf16 %v10778_v49  ;;  %v10779_v52 = vunpack.i.l.bf16 %v10778_v49 }
0x10aa   : > { %v10775_v47 = vunpack.i.h.bf16 %v10773_v42  ;;  %v10774_v43 = vunpack.i.l.bf16 %v10773_v42 }
0x10ab   : > { %v9507_v57 = vpack.c.bf16 %v10780_v50, %v10779_v52 }
0x10ac   : > { %v9504_v48 = vpack.c.bf16 %v10775_v47, %v10774_v43  ;;  %v10788_v60 = vpop.permute.xlu1 %10787 }
0x10ad   : > { %v10783_v54 = vpop.permute.xlu0 %10782  ;;  %v10790_v61 = vunpack.i.h.bf16 %v10788_v60  ;;  %v10789_v62 = vunpack.i.l.bf16 %v10788_v60 }
0x10ae   : > { %10223 = vmatmul.mubr.msk.bf16.vlgmr.msra.gmra.mrb[72].mxu0 %vm4516_vm0, %v11116_v16  ;;  %v10785_v58 = vunpack.i.h.bf16 %v10783_v54  ;;  %v10784_v59 = vunpack.i.l.bf16 %v10783_v54  ;;  %v11129_v16 = vld [vmem:[%s11291_s24 + $0x80] sm:$0xff]  }
0x10af   : > { %10227 = vmatpush3.bf16.msk.msra.mxu0 %vm11925_vm12, %v9468_v10  ;;  %10230 = vmatprep.mubr.msk.bf16.mxu0 %vm4516_vm0, %v11117_v18  ;;  %v9521_v1 = vpack.c.bf16 %v10790_v61, %v10789_v62  ;;  %v11130_v18 = vld [vmem:[%s11291_s24 + $0x88] sm:$0xff]  }
0x10b0   : > { %10228 = vmatprep.subr.msk.bf16.mxu0 %vm11925_vm12, %v9471_v20  ;;  %v9518_v51 = vpack.c.bf16 %v10785_v58, %v10784_v59  ;;  %v5107_v7 = vpop.permute.xlu1 %5106 }
0x10b1   : > { %v5105_v2 = vpop.permute.xlu0 %5104 }
0x10b3   : > { %10229 = vmatpush3.bf16.msk.msra.mxu0 %vm11925_vm12, %v9471_v20  ;;  %v11131_v20 = vld [vmem:[%s11371_s20] sm:$0xff]  }
0x10b4   : > { %10234 = vmatprep.subr.msk.bf16.mxu0 %vm11917_vm6, %v9482_v24  ;;  %v10798_v13 = vpop.permute.xlu1 %10797  ;;  %10282 = vmatprep.subr.bf16.mxu1 %v11131_v20 }
0x10b5   : > { %v10793_v5 = vpop.permute.xlu0 %10792  ;;  %v10800_v21 = vunpack.i.h.bf16 %v10798_v13  ;;  %v10799_v14 = vunpack.i.l.bf16 %v10798_v13  ;;  %10283 = vmatpush3.bf16.msra.mxu1 %v11131_v20 }
0x10b6   : > { %v10795_v8 = vunpack.i.h.bf16 %v10793_v5  ;;  %v10794_v9 = vunpack.i.l.bf16 %v10793_v5  ;;  %10288 = vmatprep.subr.bf16.mxu1 %v11219_v30 }
0x10b7   : > { %v9543_v17 = vpack.c.bf16 %v10800_v21, %v10799_v14  ;;  %v12144_v21 = vpack.c.bf16 %v11874_v34, %v11877_v35  ;;  %v6528_v34 = vld [vmem:[%s12843_s23 + $0x8] sm:$0xff]  ;;  %v6527_v35 = vld [vmem:[%s12843_s23] sm:$0xff] }
0x10b8   : > { %v9540_v10 = vpack.c.bf16 %v10795_v8, %v10794_v9 }
0x10ba   : > { %10231 = vmatmul.mubr.msk.bf16.vlgmr.msra.gmra.mrb[72].mxu0 %vm4516_vm0, %v11118_v28 }
0x10bb   : > { %10235 = vmatpush3.bf16.msk.msra.mxu0 %vm11917_vm6, %v9482_v24  ;;  %10238 = vmatprep.mubr.msk.bf16.mxu0 %vm4516_vm0, %v11119_v29 }
0x10bc   : > { %10236 = vmatprep.subr.msk.bf16.mxu0 %vm11917_vm6, %v9485_v31 }
0x10bf   : > { %10237 = vmatpush3.bf16.msk.msra.mxu0 %vm11917_vm6, %v9485_v31 }
0x10c0   : > { %10242 = vmatprep.subr.bf16.mxu0 %v4841_v32 }
0x10c5   : > { %v5273_v23 = vpop.permute.xlu1 %5272 }
0x10c6   : > { %10239 = vmatmul.mubr.msk.bf16.vlgmr.msra.gmra.mrb[72].mxu0 %vm4516_vm0, %v11120_v33  ;;  %v5268_v22 = vpop.permute.xlu0 %5267 }
0x10c7   : > { %10243 = vmatpush3.bf16.msra.mxu0 %v4841_v32  ;;  %10246 = vmatprep.mubr.msk.bf16.mxu0 %vm4516_vm0, %v11121_v45 }
0x10c8   : > { %10244 = vmatprep.subr.bf16.mxu0 %v4843_v46 }
0x10c9   : > { %v5283_v27 = vpop.permute.xlu1 %5282 }
0x10ca   : > { %v5278_v24 = vpop.permute.xlu0 %5277 }
0x10cb   : > { %10245 = vmatpush3.bf16.msra.mxu0 %v4843_v46 }
0x10cc   : > { %10250 = vmatprep.subr.msk.bf16.mxu0 %vm11925_vm12, %v9504_v48 }
0x10d2   : > { %10247 = vmatmul.mubr.msk.bf16.vlgmr.msra.gmra.mrb[72].mxu0 %vm4516_vm0, %v11122_v53 }
0x10d3   : > { %10251 = vmatpush3.bf16.msk.msra.mxu0 %vm11925_vm12, %v9504_v48  ;;  %10254 = vmatprep.mubr.msk.bf16.mxu0 %vm4516_vm0, %v11123_v56 }
0x10d4   : > { %10252 = vmatprep.subr.msk.bf16.mxu0 %vm11925_vm12, %v9507_v57 }
0x10d7   : > { %10253 = vmatpush3.bf16.msk.msra.mxu0 %vm11925_vm12, %v9507_v57 }
0x10d8   : > { %10258 = vmatprep.subr.msk.bf16.mxu0 %vm11917_vm6, %v9518_v51 }
0x10de   : > { %10255 = vmatmul.mubr.msk.bf16.vlgmr.msra.gmra.mrb[72].mxu0 %vm4516_vm0, %v11124_v63 }
0x10df   : > { %10259 = vmatpush3.bf16.msk.msra.mxu0 %vm11917_vm6, %v9518_v51  ;;  %10262 = vmatprep.mubr.msk.bf16.mxu0 %vm4516_vm0, %v11125_v0 }
0x10e0   : > { %10260 = vmatprep.subr.msk.bf16.mxu0 %vm11917_vm6, %v9521_v1 }
0x10e3   : > { %10261 = vmatpush3.bf16.msk.msra.mxu0 %vm11917_vm6, %v9521_v1  ;;  %vm12854_vm6 = vcmask 138240  }
0x10e4   : > { %10266 = vmatprep.subr.bf16.mxu0 %v5105_v2  ;;  %vm12855_vm9 = vmmov %vm12854_vm6 }
0x10e5   : > { %vm12856_vm10 = vmmov %vm12854_vm6 }
0x10ea   : > { %10263 = vmatmul.mubr.msk.bf16.vlgmr.msra.gmra.mrb[72].mxu0 %vm4516_vm0, %v11126_v3 }
0x10eb   : > { %10267 = vmatpush3.bf16.msra.mxu0 %v5105_v2  ;;  %10270 = vmatprep.mubr.msk.bf16.mxu0 %vm4516_vm0, %v11127_v6 }
0x10ec   : > { %10268 = vmatprep.subr.bf16.mxu0 %v5107_v7 }
0x10ef   : > { %10269 = vmatpush3.bf16.msra.mxu0 %v5107_v7 }
0x10f0   : > { %10274 = vmatprep.subr.msk.bf16.mxu0 %vm11925_vm12, %v9540_v10 }
0x10f6   : > { %10271 = vmatmul.mubr.msk.bf16.vlgmr.msra.gmra.mrb[72].mxu0 %vm4516_vm0, %v11128_v15 }
0x10f7   : > { %10275 = vmatpush3.bf16.msk.msra.mxu0 %vm11925_vm12, %v9540_v10  ;;  %10278 = vmatprep.mubr.msk.bf16.mxu0 %vm4516_vm0, %v11129_v16  ;;  %v11132_v10 = vld [vmem:[%s12842_s15] sm:$0xff]  }
0x10f8   : > { %10276 = vmatprep.subr.msk.bf16.mxu0 %vm11925_vm12, %v9543_v17 }
0x10fb   : > { %10277 = vmatpush3.bf16.msk.msra.mxu0 %vm11925_vm12, %v9543_v17 }
0x10fc   : > { %10296 = vmatprep.subr.bf16.mxu0 %v11219_v30 }
0x1102   : > { %10279 = vmatmul.mubr.msk.bf16.vlgmr.msra.gmra.mrb[72].mxu0 %vm4516_vm0, %v11130_v18 }
0x1103   : > { %10300 = vmatprep.mubr.msk.bf16.mxu0 %vm11220_vm4, %v11219_v30 }
0x11d5   : > { %v10280_v25 = vpop.f32.mrb[72].mxu0 }
0x11d6   : > { %v5287_v26 = vadd.f32 %v10280_v25, %v5278_v24  ;;  %v5242_v4 = vpop.f32.mrb[73].mxu0 }
0x11d7   : > { %v5285_v28 = vadd.f32 %v5268_v22, %v5242_v4  ;;  %v10281_v29 = vpop.f32.mrb[74].mxu0  ;;  %v11133_v22 = vld [vmem:[%s12842_s15 + $0x8] sm:$0xff]  }
0x11d8   : > { %v5288_v31 = vadd.f32 %v10281_v29, %v5283_v27  ;;  %v5245_v32 = vpop.f32.mrb[75].mxu0  ;;  %v5291_v42 = vmax.f32 %v5287_v26, 0.0 }
0x11d9   : > { %v5286_v33 = vadd.f32 %v5273_v23, %v5245_v32  ;;  %v5289_v46 = vmax.f32 %v5285_v28, 0.0 }
0x11da   : > { %v5292_v45 = vmax.f32 %v5288_v31, 0.0 }
0x11db   : > { %v5290_v47 = vmax.f32 %v5286_v33, 0.0 }
0x11dc   : > { %v5294_v43 = vpack.c.bf16 %v5292_v45, %v5291_v42  ;;  %v11134_v45 = vld [vmem:[%s12842_s15 + $0x18] sm:$0xff]  }
0x11dd   : > { %v5293_v48 = vpack.c.bf16 %v5290_v47, %v5289_v46 }
0x11df   : > { %10284 = vmatprep.mubr.msk.bf16.mxu1 %vm3035_vm15, %v5293_v48  ;;  %v11135_v48 = vld [vmem:[%s12842_s15 + $0x10] sm:$0xff]  }
0x11e0   : > { %10285 = vmatmul.mubr.msk.bf16.vlgmr.msra.gmra.mrb[84].mxu1 %vm3035_vm15, %v5294_v43 }
0x11e1   : > { %10292 = vmatprep.mubr.msk.bf16.mxu1 %vm11220_vm4, %v11219_v30 }
0x12b3   : > { %v10286_v49 = vpop.f32.mrb[84].mxu1 }
0x12b4   : > { %v5343_v50 = vpop.f32.mrb[85].mxu1 }
0x12b5   : > { %v10287_v52 = vpop.f32.mrb[86].mxu1 }
0x12b6   : > { %v10806_v53 = vpack.i.bf16 %v10287_v52, %v10286_v49  ;;  %v5346_v54 = vpop.f32.mrb[87].mxu1 }
0x12b7   : > { %v10801_v56 = vpack.i.bf16 %v5346_v54, %v5343_v50 }
0x12b8   : > { %10807 = vrot.lane.b32.xlu1 %v10806_v53, %s11218_s11 }
0x12b9   : > { %10802 = vrot.lane.b32.xlu0 %v10801_v56, %s11218_s11 }
0x132a   : > { %v10808_v57 = vpop.permute.xlu1 %10807 }
0x132b   : > { %v10810_v58 = vunpack.i.h.bf16 %v10808_v57  ;;  %v10809_v59 = vunpack.i.l.bf16 %v10808_v57  ;;  %v10803_v51 = vpop.permute.xlu0 %10802 }
0x132c   : > { %v10805_v60 = vunpack.i.h.bf16 %v10803_v51  ;;  %v10804_v61 = vunpack.i.l.bf16 %v10803_v51  ;;  %v11137_v51 = vld [vmem:[%s12842_s15 + $0x20] sm:$0xff]  }
0x132d   : > { %v5377_v62 = vsel %vm2437_vm14, 0.0, %v10810_v58  ;;  %v5376_v63 = vsel %vm2437_vm14, 0.0, %v10809_v59  ;;  %v11136_v58 = vld [vmem:[%s12842_s15 + $0x28] sm:$0xff]  }
0x132e   : > { %v5381_v0 = vsel %vm2439_vm13, %v5377_v62, 0.0  ;;  %v5380_v1 = vsel %vm2439_vm13, %v5376_v63, 0.0  ;;  %v5375_v2 = vsel %vm2437_vm14, 0.0, %v10805_v60  ;;  %v5374_v3 = vsel %vm2437_vm14, 0.0, %v10804_v61 }
0x132f   : > { %v5379_v5 = vsel %vm2439_vm13, %v5375_v2, 0.0  ;;  %v5378_v6 = vsel %vm2439_vm13, %v5374_v3, 0.0  ;;  %v5394_v7 = vpack.c.bf16 %v5381_v0, %v5380_v1  ;;  %v10826_v13 = vpack.i.bf16 %v5381_v0, %v5380_v1 }
0x1330   : > { %v5393_v8 = vpack.c.bf16 %v5379_v5, %v5378_v6  ;;  %v10816_v9 = vpack.i.bf16 %v5379_v5, %v5378_v6 }
0x1331   : > { %5404 = vrot.lane.b32.xlu1 %v5394_v7, %s12797_s16 }
0x1332   : > { %5402 = vrot.lane.b32.xlu0 %v5393_v8, %s12797_s16  ;;  %10297 = vmatpush3.bf16.msk.msra.mxu0 %vm11795_vm3, %v5393_v8 }
0x1333   : > { %10298 = vmatprep.subr.bf16.mxu0 %v11219_v30 }
0x1335   : > { %10817 = vrot.lane.b32.xlu1 %v10816_v9, %s12793_s1 }
0x1336   : > { %10812 = vrot.lane.b32.xlu0 %v10816_v9, %s12795_s18  ;;  %10299 = vmatpush3.bf16.msk.msra.mxu0 %vm11795_vm3, %v5394_v7 }
0x1337   : > { %10312 = vmatprep.subr.bf16.mxu0 %v11219_v30 }
0x1339   : > { %10827 = vrot.lane.b32.xlu1 %v10826_v13, %s12793_s1  ;;  %10301 = vmatmul.mubr.msk.bf16.vlgmr.msra.gmra.mrb[76].mxu0 %vm4516_vm0, %v11132_v10 }
0x133a   : > { %10822 = vrot.lane.b32.xlu0 %v10826_v13, %s12795_s18  ;;  %10316 = vmatprep.mubr.msk.bf16.mxu0 %vm11220_vm4, %v11219_v30 }
0x133d   : > { %10832 = vrot.lane.b32.xlu1 %v10816_v9, %s12790_s2 }
0x133e   : > { %5657 = vrot.lane.b32.xlu0 %v5393_v8, %s11221_s0 }
0x1341   : > { %10837 = vrot.lane.b32.xlu1 %v10826_v13, %s12790_s2 }
0x1342   : > { %5659 = vrot.lane.b32.xlu0 %v5394_v7, %s11221_s0 }
0x1345   : > { %10847 = vrot.lane.b32.xlu1 %v10826_v13, %s12791_s22 }
0x1346   : > { %10842 = vrot.lane.b32.xlu0 %v10816_v9, %s12791_s22 }
0x1349   : > { %5863 = vrot.lane.b32.xlu1 %v5394_v7, %s12844_s26  ;;  %v11138_v7 = vld [vmem:[%s12842_s15 + $0x30] sm:$0xff]  }
0x134a   : > { %5861 = vrot.lane.b32.xlu0 %v5393_v8, %s12844_s26  ;;  %v11139_v8 = vld [vmem:[%s12842_s15 + $0x38] sm:$0xff]  }
0x134d   : > { %10857 = vrot.lane.b32.xlu1 %v10826_v13, %s12845_s28 }
0x134e   : > { %10852 = vrot.lane.b32.xlu0 %v10816_v9, %s12845_s28 }
0x1351   : > { %10862 = vrot.lane.b32.xlu1 %v11881_v41, %s12795_s18 }
0x1352   : > { %6000 = vrot.lane.b32.xlu0 %v12144_v21, %s12797_s16 }
0x1355   : > { %6230 = vrot.lane.b32.xlu1 %v12144_v21, %s11221_s0 }
0x1356   : > { %10867 = vrot.lane.b32.xlu0 %v11881_v41, %s12793_s1  ;;  %s12848_s1 = sld [smem:[#allocation8_spill]] }
0x1359   : > { %10877 = vrot.lane.b32.xlu1 %v11881_v41, %s12791_s22  ;;  %s12847_s22 = sld [smem:[#allocation7_spill]] }
0x135a   : > { %10872 = vrot.lane.b32.xlu0 %v11881_v41, %s12790_s2  ;;  %s12846_s2 = sld [smem:[#allocation5_spill]] }
0x135d   : > { %10882 = vrot.lane.b32.xlu1 %v11881_v41, %s12845_s28 }
0x135e   : > { %6413 = vrot.lane.b32.xlu0 %v12144_v21, %s12844_s26 }
0x135f   : > { %v11158_v44 = vld [vmem:[%s12847_s22 + $0x40] sm:$0xff]  }
0x1361   : > { %6536 = vperm.xlu1 %10665, %v6528_v34  }
0x1362   : > { %6531 = vperm.xlu0 %10619, %v6527_v35  }
0x13a3   : > { %v5405_v14 = vpop.permute.xlu1 %5404 }
0x13a4   : > { %v5403_v15 = vpop.permute.xlu0 %5402 }
0x13a5   : > { %10289 = vmatpush3.bf16.msra.mxu1 %v5403_v15 }
0x13a6   : > { %10290 = vmatprep.subr.bf16.mxu1 %v11219_v30 }
0x13a7   : > { %v10818_v16 = vpop.permute.xlu1 %10817 }
0x13a8   : > { %v10820_v17 = vunpack.i.h.bf16 %v10818_v16  ;;  %v10819_v18 = vunpack.i.l.bf16 %v10818_v16  ;;  %v10813_v20 = vpop.permute.xlu0 %10812 }
0x13a9   : > { %v10815_v23 = vunpack.i.h.bf16 %v10813_v20  ;;  %v10814_v24 = vunpack.i.l.bf16 %v10813_v20  ;;  %10291 = vmatpush3.bf16.msra.mxu1 %v5405_v14  ;;  %v11140_v20 = vld [vmem:[%s12842_s15 + $0x40] sm:$0xff]  }
0x13aa   : > { %v9576_v41 = vpack.c.bf16 %v10820_v17, %v10819_v18  ;;  %10304 = vmatprep.subr.bf16.mxu1 %v11219_v30 }
0x13ab   : > { %v9566_v25 = vpack.c.bf16 %v10815_v23, %v10814_v24  ;;  %v10828_v26 = vpop.permute.xlu1 %10827 }
0x13ac   : > { %v10830_v4 = vunpack.i.h.bf16 %v10828_v26  ;;  %v10829_v27 = vunpack.i.l.bf16 %v10828_v26  ;;  %10293 = vmatmul.mubr.msk.bf16.vlgmr.msra.gmra.mrb[88].mxu1 %vm4516_vm0, %v11133_v22  ;;  %v10823_v28 = vpop.permute.xlu0 %10822  ;;  %10313 = vmatpush3.bf16.msk.msra.mxu0 %vm11795_vm3, %v9576_v41  ;;  %v11141_v22 = vld [vmem:[%s12846_s2 + $0x8] sm:$0xff]  }
0x13ad   : > { %v10825_v29 = vunpack.i.h.bf16 %v10823_v28  ;;  %v10824_v31 = vunpack.i.l.bf16 %v10823_v28  ;;  %10305 = vmatpush3.bf16.msk.msra.mxu1 %vm11820_vm11, %v9566_v25  ;;  %10314 = vmatprep.subr.bf16.mxu0 %v11219_v30 }
0x13ae   : > { %v9579_v32 = vpack.c.bf16 %v10830_v4, %v10829_v27  ;;  %10306 = vmatprep.subr.bf16.mxu1 %v11219_v30  ;;  %10308 = vmatprep.mubr.msk.bf16.mxu1 %vm11220_vm4, %v11219_v30  ;;  %v11142_v4 = vld [vmem:[%s12846_s2] sm:$0xff]   ;;  %v11143_v27 = vld [vmem:[%s12846_s2 + $0x10] sm:$0xff]  }
0x13af   : > { %v9569_v33 = vpack.c.bf16 %v10825_v29, %v10824_v31  ;;  %v10833_v42 = vpop.permute.xlu1 %10832 }
0x13b0   : > { %v10835_v46 = vunpack.i.h.bf16 %v10833_v42  ;;  %v10834_v47 = vunpack.i.l.bf16 %v10833_v42  ;;  %v5658_v43 = vpop.permute.xlu0 %5657  ;;  %10315 = vmatpush3.bf16.msk.msra.mxu0 %vm11795_vm3, %v9579_v32 }
0x13b1   : > { %10307 = vmatpush3.bf16.msk.msra.mxu1 %vm11820_vm11, %v9569_v33  ;;  %10328 = vmatprep.subr.bf16.mxu0 %v11219_v30 }
0x13b2   : > { %v9590_v49 = vpack.c.bf16 %v10835_v46, %v10834_v47  ;;  %10320 = vmatprep.subr.bf16.mxu1 %v11219_v30  ;;  %v11145_v46 = vld [vmem:[%s12846_s2 + $0x20] sm:$0xff]  }
0x13b3   : > { %v10838_v50 = vpop.permute.xlu1 %10837  ;;  %10317 = vmatmul.mubr.msk.bf16.vlgmr.msra.gmra.mrb[80].mxu0 %vm4516_vm0, %v11134_v45  ;;  %v11144_v45 = vld [vmem:[%s12846_s2 + $0x18] sm:$0xff]  }
0x13b4   : > { %v10840_v52 = vunpack.i.h.bf16 %v10838_v50  ;;  %v10839_v53 = vunpack.i.l.bf16 %v10838_v50  ;;  %v5660_v54 = vpop.permute.xlu0 %5659  ;;  %10309 = vmatmul.mubr.msk.bf16.vlgmr.msra.gmra.mrb[92].mxu1 %vm4516_vm0, %v11135_v48  ;;  %10329 = vmatpush3.bf16.msk.msra.mxu0 %vm11820_vm11, %v9590_v49 }
0x13b5   : > { %10321 = vmatpush3.bf16.msra.mxu1 %v5658_v43  ;;  %10330 = vmatprep.subr.bf16.mxu0 %v11219_v30 }
0x13b6   : > { %v9593_v56 = vpack.c.bf16 %v10840_v52, %v10839_v53  ;;  %10322 = vmatprep.subr.bf16.mxu1 %v11219_v30  ;;  %10332 = vmatprep.mubr.msk.bf16.mxu0 %vm11220_vm4, %v11219_v30  ;;  %v11146_v52 = vld [vmem:[%s12846_s2 + $0x28] sm:$0xff]   ;;  %v11147_v53 = vld [vmem:[%s12846_s2 + $0x30] sm:$0xff]  }
0x13b7   : > { %v10848_v57 = vpop.permute.xlu1 %10847  ;;  %10324 = vmatprep.mubr.msk.bf16.mxu1 %vm11220_vm4, %v11219_v30 }
0x13b8   : > { %v10843_v59 = vpop.permute.xlu0 %10842  ;;  %10331 = vmatpush3.bf16.msk.msra.mxu0 %vm11820_vm11, %v9593_v56  ;;  %v10850_v62 = vunpack.i.h.bf16 %v10848_v57  ;;  %v10849_v63 = vunpack.i.l.bf16 %v10848_v57  ;;  %v11148_v57 = vld [vmem:[%s12846_s2 + $0x38] sm:$0xff]  }
0x13b9   : > { %v10845_v60 = vunpack.i.h.bf16 %v10843_v59  ;;  %v10844_v61 = vunpack.i.l.bf16 %v10843_v59  ;;  %10323 = vmatpush3.bf16.msra.mxu1 %v5660_v54  ;;  %10344 = vmatprep.subr.bf16.mxu0 %v11219_v30 }
0x13ba   : > { %10336 = vmatprep.subr.bf16.mxu1 %v11219_v30  ;;  %v9603_v3 = vpack.c.bf16 %v10850_v62, %v10849_v63 }
0x13bb   : > { %v9600_v0 = vpack.c.bf16 %v10845_v60, %v10844_v61  ;;  %v5864_v1 = vpop.permute.xlu1 %5863  ;;  %10333 = vmatmul.mubr.msk.bf16.vlgmr.msra.gmra.mrb[84].mxu0 %vm4516_vm0, %v11136_v58  ;;  %v11149_v58 = vld [vmem:[%s12846_s2 + $0x40] sm:$0xff]   ;;  %s12850_s2 = smov 112  }
0x13bc   : > { %v5862_v2 = vpop.permute.xlu0 %5861  ;;  %10325 = vmatmul.mubr.msk.bf16.vlgmr.msra.gmra.mrb[96].mxu1 %vm4516_vm0, %v11137_v51  ;;  %10348 = vmatprep.mubr.msk.bf16.mxu0 %vm11220_vm4, %v11219_v30 }
0x13bd   : > { %10337 = vmatpush3.bf16.msk.msra.mxu1 %vm11795_vm3, %v9600_v0  ;;  %10345 = vmatpush3.bf16.msra.mxu0 %v5862_v2 }
0x13be   : > { %10338 = vmatprep.subr.bf16.mxu1 %v11219_v30  ;;  %10346 = vmatprep.subr.bf16.mxu0 %v11219_v30 }
0x13bf   : > { %v10858_v5 = vpop.permute.xlu1 %10857  ;;  %10340 = vmatprep.mubr.msk.bf16.mxu1 %vm11220_vm4, %v11219_v30 }
0x13c0   : > { %v10853_v6 = vpop.permute.xlu0 %10852  ;;  %v10860_v13 = vunpack.i.h.bf16 %v10858_v5  ;;  %v10859_v34 = vunpack.i.l.bf16 %v10858_v5 }
0x13c1   : > { %v10855_v9 = vunpack.i.h.bf16 %v10853_v6  ;;  %v10854_v10 = vunpack.i.l.bf16 %v10853_v6  ;;  %10339 = vmatpush3.bf16.msk.msra.mxu1 %vm11795_vm3, %v9603_v3  ;;  %10347 = vmatpush3.bf16.msra.mxu0 %v5864_v1 }
0x13c2   : > { %10352 = vmatprep.subr.bf16.mxu1 %v11219_v30  ;;  %10360 = vmatprep.subr.bf16.mxu0 %v11219_v30  ;;  %v9617_v16 = vpack.c.bf16 %v10860_v13, %v10859_v34 }
0x13c3   : > { %v9614_v35 = vpack.c.bf16 %v10855_v9, %v10854_v10  ;;  %v10863_v14 = vpop.permute.xlu1 %10862 }
0x13c4   : > { %v6001_v15 = vpop.permute.xlu0 %6000  ;;  %10341 = vmatmul.mubr.msk.bf16.vlgmr.msra.gmra.mrb[100].mxu1 %vm4516_vm0, %v11138_v7  ;;  %10349 = vmatmul.mubr.msk.bf16.vlgmr.msra.gmra.mrb[88].mxu0 %vm4516_vm0, %v11139_v8  ;;  %v10865_v17 = vunpack.i.h.bf16 %v10863_v14  ;;  %v10864_v18 = vunpack.i.l.bf16 %v10863_v14 }
0x13c5   : > { %10353 = vmatpush3.bf16.msk.msra.mxu1 %vm11820_vm11, %v9614_v35  ;;  %10361 = vmatpush3.bf16.msra.mxu0 %v6001_v15 }
0x13c6   : > { %10354 = vmatprep.subr.bf16.mxu1 %v11219_v30  ;;  %10356 = vmatprep.mubr.msk.bf16.mxu1 %vm11220_vm4, %v11219_v30  ;;  %v9633_v23 = vpack.c.bf16 %v10865_v17, %v10864_v18 }
0x13c7   : > { %10362 = vmatprep.mubr.msk.bf16.mxu0 %vm11220_vm4, %v11219_v30  ;;  %10372 = vmatprep.subr.bf16.mxu0 %v11219_v30  ;;  %v6231_v41 = vpop.permute.xlu1 %6230 }
0x13c8   : > { %v10868_v24 = vpop.permute.xlu0 %10867 }
0x13c9   : > { %10355 = vmatpush3.bf16.msk.msra.mxu1 %vm11820_vm11, %v9617_v16  ;;  %v10870_v25 = vunpack.i.h.bf16 %v10868_v24  ;;  %v10869_v26 = vunpack.i.l.bf16 %v10868_v24 }
0x13ca   : > { %10366 = vmatprep.subr.bf16.mxu1 %v11219_v30 }
0x13cb   : > { %v9640_v28 = vpack.c.bf16 %v10870_v25, %v10869_v26  ;;  %v10878_v29 = vpop.permute.xlu1 %10877 }
0x13cc   : > { %10357 = vmatmul.mubr.msk.bf16.vlgmr.msra.gmra.mrb[104].mxu1 %vm4516_vm0, %v11140_v20  ;;  %10363 = vmatmul.mubr.msk.bf16.vlgmr.msra.gmra.mrb[92].mxu0 %vm3035_vm15, %v11141_v22  ;;  %v10880_v31 = vunpack.i.h.bf16 %v10878_v29  ;;  %v10879_v32 = vunpack.i.l.bf16 %v10878_v29 }
0x13cd   : > { %10373 = vmatpush3.bf16.msk.msra.mxu0 %vm11820_vm11, %v9633_v23  ;;  %10367 = vmatpush3.bf16.msk.msra.mxu1 %vm11795_vm3, %v12144_v21  ;;  %v10873_v21 = vpop.permute.xlu0 %10872 }
0x13ce   : > { %10368 = vmatprep.mubr.msk.bf16.mxu1 %vm11220_vm4, %v11219_v30  ;;  %10374 = vmatprep.mubr.msk.bf16.mxu0 %vm11220_vm4, %v11219_v30  ;;  %v10875_v33 = vunpack.i.h.bf16 %v10873_v21  ;;  %v10874_v42 = vunpack.i.l.bf16 %v10873_v21  ;;  %v9658_v47 = vpack.c.bf16 %v10880_v31, %v10879_v32 }
0x13cf   : > { %10378 = vmatprep.subr.bf16.mxu1 %v11219_v30  ;;  %10384 = vmatprep.subr.bf16.mxu0 %v11219_v30  ;;  %v10883_v48 = vpop.permute.xlu1 %10882 }
0x13d0   : > { %v9651_v43 = vpack.c.bf16 %v10875_v33, %v10874_v42  ;;  %v10885_v49 = vunpack.i.h.bf16 %v10883_v48  ;;  %v10884_v50 = vunpack.i.l.bf16 %v10883_v48 }
0x13d1   : > { %v6414_v56 = vpop.permute.xlu0 %6413 }
0x13d2   : > { %v9669_v54 = vpack.c.bf16 %v10885_v49, %v10884_v50 }
0x13d4   : > { %10369 = vmatmul.mubr.msk.bf16.vlgmr.msra.gmra.mrb[108].mxu1 %vm3035_vm15, %v11142_v4  ;;  %10375 = vmatmul.mubr.msk.bf16.vlgmr.msra.gmra.mrb[96].mxu0 %vm3035_vm15, %v11143_v27 }
0x13d5   : > { %10379 = vmatpush3.bf16.msk.msra.mxu1 %vm11795_vm3, %v9640_v28  ;;  %10385 = vmatpush3.bf16.msra.mxu0 %v6231_v41 }
0x13d6   : > { %10380 = vmatprep.mubr.msk.bf16.mxu1 %vm11220_vm4, %v11219_v30  ;;  %10386 = vmatprep.mubr.msk.bf16.mxu0 %vm11220_vm4, %v11219_v30 }
0x13d7   : > { %10390 = vmatprep.subr.bf16.mxu1 %v11219_v30  ;;  %10396 = vmatprep.subr.bf16.mxu0 %v11219_v30 }
0x13dc   : > { %10381 = vmatmul.mubr.msk.bf16.vlgmr.msra.gmra.mrb[112].mxu1 %vm3035_vm15, %v11144_v45  ;;  %10387 = vmatmul.mubr.msk.bf16.vlgmr.msra.gmra.mrb[100].mxu0 %vm3035_vm15, %v11145_v46 }
0x13dd   : > { %10391 = vmatpush3.bf16.msk.msra.mxu1 %vm11820_vm11, %v9651_v43  ;;  %10397 = vmatpush3.bf16.msk.msra.mxu0 %vm11795_vm3, %v9658_v47 }
0x13de   : > { %10392 = vmatprep.mubr.msk.bf16.mxu1 %vm11220_vm4, %v11219_v30  ;;  %10398 = vmatprep.mubr.msk.bf16.mxu0 %vm11220_vm4, %v11219_v30 }
0x13df   : > { %10402 = vmatprep.subr.bf16.mxu1 %v11219_v30  ;;  %10408 = vmatprep.subr.bf16.mxu0 %v11219_v30 }
0x13e4   : > { %10393 = vmatmul.mubr.msk.bf16.vlgmr.msra.gmra.mrb[116].mxu1 %vm3035_vm15, %v11146_v52  ;;  %10399 = vmatmul.mubr.msk.bf16.vlgmr.msra.gmra.mrb[104].mxu0 %vm3035_vm15, %v11147_v53 }
0x13e5   : > { %10403 = vmatpush3.bf16.msra.mxu1 %v6414_v56  ;;  %10409 = vmatpush3.bf16.msk.msra.mxu0 %vm11820_vm11, %v9669_v54 }
0x13e6   : > { %10404 = vmatprep.mubr.msk.bf16.mxu1 %vm11220_vm4, %v11219_v30  ;;  %10410 = vmatprep.mubr.msk.bf16.mxu0 %vm11220_vm4, %v11219_v30 }
0x13e7   : > { %10420 = vmatprep.subr.bf16.mxu0 %v11219_v30  ;;  %10414 = vmatprep.subr.bf16.mxu1 %v11219_v30 }
0x13ec   : > { %10405 = vmatmul.mubr.msk.bf16.vlgmr.msra.gmra.mrb[120].mxu1 %vm3035_vm15, %v11148_v57  ;;  %10411 = vmatmul.mubr.msk.bf16.vlgmr.msra.gmra.mrb[108].mxu0 %vm3035_vm15, %v11149_v58 }
0x13ed   : > { %10416 = vmatprep.mubr.msk.bf16.mxu1 %vm11220_vm4, %v11219_v30  ;;  %10422 = vmatprep.mubr.msk.bf16.mxu0 %vm11220_vm4, %v11219_v30 }
0x140c   : > { %v5494_v59 = vpop.f32.mrb[76].mxu0 }
0x140d   : > { %v10302_v51 = vpop.f32.mrb[77].mxu0 }
0x140e   : > { %v5497_v60 = vpop.f32.mrb[78].mxu0 }
0x140f   : > { %v10303_v61 = vpop.f32.mrb[79].mxu0 }
0x147f   : > { %v5445_v62 = vpop.f32.mrb[88].mxu1 }
0x1480   : > { %v5495_v63 = vadd.f32 %v5494_v59, %v5445_v62  ;;  %v10294_v0 = vpop.f32.mrb[89].mxu1 }
0x1481   : > { %v5448_v1 = vpop.f32.mrb[90].mxu1 }
0x1482   : > { %v5498_v2 = vadd.f32 %v5497_v60, %v5448_v1  ;;  %v10295_v3 = vpop.f32.mrb[91].mxu1 }
0x1486   : > { %v5640_v5 = vpop.f32.mrb[80].mxu0 }
0x1487   : > { %v5568_v6 = vpop.f32.mrb[92].mxu1  ;;  %v10318_v7 = vpop.f32.mrb[81].mxu0 }
0x1488   : > { %v5575_v8 = vadd.f32 %v5568_v6, %v5495_v63  ;;  %v10310_v9 = vpop.f32.mrb[93].mxu1  ;;  %v5643_v10 = vpop.f32.mrb[82].mxu0 }
0x1489   : > { %v5571_v13 = vpop.f32.mrb[94].mxu1  ;;  %v10319_v34 = vpop.f32.mrb[83].mxu0 }
0x148a   : > { %v5576_v35 = vadd.f32 %v5571_v13, %v5498_v2  ;;  %v10311_v14 = vpop.f32.mrb[95].mxu1  ;;  %v5647_v15 = vadd.f32 %v5640_v5, %v5575_v8 }
0x148c   : > { %v5648_v16 = vadd.f32 %v5643_v10, %v5576_v35 }
0x148e   : > { %v5772_v17 = vpop.f32.mrb[84].mxu0 }
0x148f   : > { %v5700_v18 = vpop.f32.mrb[96].mxu1  ;;  %v10334_v20 = vpop.f32.mrb[85].mxu0 }
0x1490   : > { %v5707_v22 = vadd.f32 %v5700_v18, %v5647_v15  ;;  %v10326_v23 = vpop.f32.mrb[97].mxu1  ;;  %v5775_v24 = vpop.f32.mrb[86].mxu0 }
0x1491   : > { %v5703_v41 = vpop.f32.mrb[98].mxu1  ;;  %v10335_v25 = vpop.f32.mrb[87].mxu0 }
0x1492   : > { %v5708_v26 = vadd.f32 %v5703_v41, %v5648_v16  ;;  %v10327_v4 = vpop.f32.mrb[99].mxu1  ;;  %v5779_v27 = vadd.f32 %v5772_v17, %v5707_v22 }
0x1494   : > { %v5780_v28 = vadd.f32 %v5775_v24, %v5708_v26 }
0x1497   : > { %v5844_v29 = vpop.f32.mrb[100].mxu1  ;;  %v5904_v21 = vpop.f32.mrb[88].mxu0 }
0x1498   : > { %v5851_v31 = vadd.f32 %v5844_v29, %v5779_v27  ;;  %v10342_v32 = vpop.f32.mrb[101].mxu1  ;;  %v10350_v33 = vpop.f32.mrb[89].mxu0 }
0x1499   : > { %v5847_v42 = vpop.f32.mrb[102].mxu1  ;;  %v5907_v45 = vpop.f32.mrb[90].mxu0 }
0x149a   : > { %v5911_v46 = vadd.f32 %v5904_v21, %v5851_v31  ;;  %v5852_v47 = vadd.f32 %v5847_v42, %v5780_v28  ;;  %v10343_v43 = vpop.f32.mrb[103].mxu1  ;;  %v10351_v48 = vpop.f32.mrb[91].mxu0 }
0x149c   : > { %v5912_v49 = vadd.f32 %v5907_v45, %v5852_v47 }
0x149f   : > { %v5976_v50 = vpop.f32.mrb[104].mxu1  ;;  %v6040_v52 = vpop.f32.mrb[92].mxu0 }
0x14a0   : > { %v5983_v53 = vadd.f32 %v5976_v50, %v5911_v46  ;;  %v10358_v54 = vpop.f32.mrb[105].mxu1  ;;  %v10364_v56 = vpop.f32.mrb[93].mxu0 }
0x14a1   : > { %v5979_v57 = vpop.f32.mrb[106].mxu1  ;;  %v6043_v58 = vpop.f32.mrb[94].mxu0 }
0x14a2   : > { %v5984_v59 = vadd.f32 %v5979_v57, %v5912_v49  ;;  %v10359_v51 = vpop.f32.mrb[107].mxu1  ;;  %v10365_v60 = vpop.f32.mrb[95].mxu0 }
0x14a3   : > { %v6532_v51 = vpop.permute.xlu0 %6531 }
0x14a7   : > { %v6089_v61 = vpop.f32.mrb[108].mxu1  ;;  %v6150_v62 = vpop.f32.mrb[96].mxu0 }
0x14a8   : > { %v6090_v63 = vadd.f32 %v6089_v61, %v6040_v52  ;;  %v10370_v0 = vpop.f32.mrb[109].mxu1  ;;  %v10376_v1 = vpop.f32.mrb[97].mxu0 }
0x14a9   : > { %v6092_v2 = vpop.f32.mrb[110].mxu1  ;;  %v6153_v3 = vpop.f32.mrb[98].mxu0 }
0x14aa   : > { %v6157_v5 = vadd.f32 %v6150_v62, %v6090_v63  ;;  %v6093_v6 = vadd.f32 %v6092_v2, %v6043_v58  ;;  %v10371_v7 = vpop.f32.mrb[111].mxu1  ;;  %v10377_v8 = vpop.f32.mrb[99].mxu0 }
0x14ab   : > { %v6537_v62 = vpop.permute.xlu1 %6536 }
0x14ac   : > { %v6158_v9 = vadd.f32 %v6153_v3, %v6093_v6 }
0x14af   : > { %v6213_v10 = vpop.f32.mrb[112].mxu1  ;;  %v6270_v13 = vpop.f32.mrb[100].mxu0 }
0x14b0   : > { %v6220_v34 = vadd.f32 %v6213_v10, %v6157_v5  ;;  %v10382_v35 = vpop.f32.mrb[113].mxu1  ;;  %v10388_v14 = vpop.f32.mrb[101].mxu0 }
0x14b1   : > { %v6216_v15 = vpop.f32.mrb[114].mxu1  ;;  %v6273_v16 = vpop.f32.mrb[102].mxu0  ;;  %v7097_v35 = vld [vmem:[%s12848_s1] sm:$0xff] }
0x14b2   : > { %v6277_v17 = vadd.f32 %v6270_v13, %v6220_v34  ;;  %v6221_v18 = vadd.f32 %v6216_v15, %v6158_v9  ;;  %v10383_v20 = vpop.f32.mrb[115].mxu1  ;;  %v10389_v22 = vpop.f32.mrb[103].mxu0  ;;  %v11151_v13 = vld [vmem:[%s12847_s22] sm:$0xff]   ;;  %v7098_v34 = vld [vmem:[%s12848_s1 + $0x8] sm:$0xff]  ;;  %s12863_s1 = smov 94  }
0x14b4   : > { %v6278_v23 = vadd.f32 %v6273_v16, %v6221_v18  ;;  %v11150_v16 = vld [vmem:[%s12847_s22 + $0x8] sm:$0xff]  }
0x14b7   : > { %v6333_v24 = vpop.f32.mrb[116].mxu1  ;;  %v6396_v41 = vpop.f32.mrb[104].mxu0 }
0x14b8   : > { %v6340_v25 = vadd.f32 %v6333_v24, %v6277_v17  ;;  %v10394_v26 = vpop.f32.mrb[117].mxu1  ;;  %v10400_v4 = vpop.f32.mrb[105].mxu0 }
0x14b9   : > { %v6336_v27 = vpop.f32.mrb[118].mxu1  ;;  %v6399_v28 = vpop.f32.mrb[106].mxu0  ;;  %v11152_v4 = vld [vmem:[%s12847_s22 + $0x10] sm:$0xff]  }
0x14ba   : > { %v6403_v29 = vadd.f32 %v6396_v41, %v6340_v25  ;;  %v6341_v21 = vadd.f32 %v6336_v27, %v6278_v23  ;;  %v10395_v31 = vpop.f32.mrb[119].mxu1  ;;  %v10401_v32 = vpop.f32.mrb[107].mxu0  ;;  %v11153_v27 = vld [vmem:[%s12847_s22 + $0x18] sm:$0xff]  }
0x14bc   : > { %v6404_v33 = vadd.f32 %v6399_v28, %v6341_v21 }
0x14bf   : > { %v6453_v42 = vpop.f32.mrb[120].mxu1  ;;  %v6516_v45 = vpop.f32.mrb[108].mxu0 }
0x14c0   : > { %v6460_v46 = vadd.f32 %v6453_v42, %v6403_v29  ;;  %v10406_v47 = vpop.f32.mrb[121].mxu1  ;;  %v10412_v43 = vpop.f32.mrb[109].mxu0  ;;  %v11154_v42 = vld [vmem:[%s12847_s22 + $0x20] sm:$0xff]  }
0x14c1   : > { %v6456_v48 = vpop.f32.mrb[122].mxu1  ;;  %v6519_v49 = vpop.f32.mrb[110].mxu0 }
0x14c2   : > { %v6523_v50 = vadd.f32 %v6516_v45, %v6460_v46  ;;  %v6461_v52 = vadd.f32 %v6456_v48, %v6404_v33  ;;  %v10407_v54 = vpop.f32.mrb[123].mxu1  ;;  %v10413_v56 = vpop.f32.mrb[111].mxu0  ;;  %v11155_v45 = vld [vmem:[%s12847_s22 + $0x28] sm:$0xff]  }
0x14c4   : > { %v6525_v57 = vadd.f32 %v6523_v50, %v5983_v53  ;;  %v6524_v58 = vadd.f32 %v6519_v49, %v6461_v52  ;;  %v11156_v50 = vld [vmem:[%s12847_s22 + $0x30] sm:$0xff]   ;;  %v11157_v52 = vld [vmem:[%s12847_s22 + $0x38] sm:$0xff]  }
0x14c6   : > { %v6539_v60 = vadd.f32 %v6532_v51, %v6525_v57  ;;  %v6526_v61 = vadd.f32 %v6524_v58, %v5984_v59  ;;  %v11159_v51 = vld [vmem:[%s11376_s27] ss:$8 sps:$4 sm:$0xff]  }
0x14c8   : > { %v6540_v63 = vadd.f32 %v6537_v62, %v6526_v61  ;;  %v6541_v0 = vmax.f32 %v6539_v60, 0.0  ;;  %v11161_v60 = vld [vmem:[%s11376_s27 + $0x4] ss:$8 sps:$4 sm:$0xff]   ;;  %v11164_v61 = vld [vmem:[%s11376_s27 + $0x14] ss:$8 sps:$4 sm:$0xff]  }
0x14c9   : > { %v11167_v62 = vld [vmem:[%s11376_s27 + $0x24] ss:$8 sps:$4 sm:$0xff]  }
0x14ca   : > { %v6542_v1 = vmax.f32 %v6540_v63, 0.0  ;;  %v11165_v63 = vld [vmem:[%s11376_s27 + $0x20] ss:$8 sps:$4 sm:$0xff]  }
0x14cc   : > { %v10886_v2 = vpack.i.bf16 %v6542_v1, %v6541_v0  ;;  %v11170_v0 = vld [vmem:[%s11376_s27 + $0x34] ss:$8 sps:$4 sm:$0xff]   ;;  %v11168_v1 = vld [vmem:[%s11376_s27 + $0x30] ss:$8 sps:$4 sm:$0xff]  }
0x14ce   : > { %10887 = vrot.lane.b32.xlu0 %v10886_v2, %s11218_s11  ;;  %s12849_s11 = smov 120  }
0x1540   : > { %v10888_v3 = vpop.permute.xlu0 %10887 }
0x1541   : > { %v10890_v5 = vunpack.i.h.bf16 %v10888_v3  ;;  %v10889_v6 = vunpack.i.l.bf16 %v10888_v3 }
0x1543   : > { %v6552_v7 = vsel %vm2437_vm14, 0.0, %v10890_v5  ;;  %v6551_v8 = vsel %vm2437_vm14, 0.0, %v10889_v6  ;;  %vm12858_vm14 = vmmov %vm12854_vm6 }
0x1544   : > { %v6554_v53 = vsel %vm2439_vm13, %v6552_v7, 0.0  ;;  %v6553_v9 = vsel %vm2439_vm13, %v6551_v8, 0.0  ;;  %vm12857_vm13 = vmmov %vm12854_vm6 }
0x1545   : > { %v10891_v59 = vpack.i.bf16 %v6554_v53, %v6553_v9  ;;  %v6563_v10 = vpack.c.bf16 %v6554_v53, %v6553_v9 }
0x1547   : > { %10892 = vrot.lane.b32.xlu0 %v10891_v59, %s12795_s18  ;;  %6570 = vrot.lane.b32.xlu1 %v6563_v10, %s12797_s16  ;;  %s12851_s18 = smov 118  }
0x1548   : > { %10421 = vmatpush3.bf16.msk.msra.mxu0 %vm11795_vm3, %v6563_v10 }
0x1549   : > { %10432 = vmatprep.subr.bf16.mxu0 %v11219_v30 }
0x154b   : > { %6802 = vrot.lane.b32.xlu0 %v6563_v10, %s11221_s0  ;;  %10897 = vrot.lane.b32.xlu1 %v10891_v59, %s12849_s11  ;;  %s12853_s0 = smov 17   ;;  %s12861_s11 = smov 96  }
0x154c   : > { %10423 = vmatmul.mubr.msk.bf16.vlgmr.msra.gmra.mrb[112].mxu0 %vm3035_vm15, %v11151_v13 }
0x154d   : > { %10434 = vmatprep.mubr.msk.bf16.mxu0 %vm11220_vm4, %v11219_v30 }
0x154f   : > { %10907 = vrot.lane.b32.xlu0 %v10891_v59, %s12850_s2  ;;  %10902 = vrot.lane.b32.xlu1 %v10891_v59, %s12851_s18  ;;  %s12859_s18 = smov 126  }
0x1553   : > { %10912 = vrot.lane.b32.xlu0 %v10891_v59, %s12845_s28  ;;  %6985 = vrot.lane.b32.xlu1 %v6563_v10, %s12844_s26 }
0x1557   : > { %7106 = vperm.xlu0 %10619, %v7098_v34   ;;  %7101 = vperm.xlu1 %10665, %v7097_v35  }
0x15b9   : > { %v10893_v14 = vpop.permute.xlu0 %10892  ;;  %v6571_v15 = vpop.permute.xlu1 %6570 }
0x15ba   : > { %v10895_v17 = vunpack.i.h.bf16 %v10893_v14  ;;  %v10894_v18 = vunpack.i.l.bf16 %v10893_v14  ;;  %10415 = vmatpush3.bf16.msra.mxu1 %v6571_v15 }
0x15bb   : > { %10426 = vmatprep.subr.bf16.mxu1 %v11219_v30 }
0x15bc   : > { %v9685_v20 = vpack.c.bf16 %v10895_v17, %v10894_v18 }
0x15bd   : > { %10417 = vmatmul.mubr.msk.bf16.vlgmr.msra.gmra.mrb[124].mxu1 %vm3035_vm15, %v11150_v16  ;;  %v10898_v22 = vpop.permute.xlu1 %10897  ;;  %v6803_v41 = vpop.permute.xlu0 %6802 }
0x15be   : > { %v10900_v23 = vunpack.i.h.bf16 %v10898_v22  ;;  %v10899_v24 = vunpack.i.l.bf16 %v10898_v22  ;;  %10427 = vmatpush3.bf16.msk.msra.mxu1 %vm11820_vm11, %v9685_v20  ;;  %10428 = vmatprep.mubr.msk.bf16.mxu1 %vm11220_vm4, %v11219_v30 }
0x15bf   : > { %10438 = vmatprep.subr.bf16.mxu1 %v11219_v30 }
0x15c0   : > { %v9692_v25 = vpack.c.bf16 %v10900_v23, %v10899_v24 }
0x15c1   : > { %v10903_v26 = vpop.permute.xlu1 %10902  ;;  %v10908_v31 = vpop.permute.xlu0 %10907 }
0x15c2   : > { %v10905_v28 = vunpack.i.h.bf16 %v10903_v26  ;;  %v10904_v29 = vunpack.i.l.bf16 %v10903_v26  ;;  %10433 = vmatpush3.bf16.msk.msra.mxu0 %vm11795_vm3, %v9692_v25  ;;  %v10910_v32 = vunpack.i.h.bf16 %v10908_v31  ;;  %v10909_v33 = vunpack.i.l.bf16 %v10908_v31 }
0x15c3   : > { %10444 = vmatprep.subr.bf16.mxu0 %v11219_v30 }
0x15c4   : > { %v9703_v21 = vpack.c.bf16 %v10905_v28, %v10904_v29  ;;  %v9710_v46 = vpack.c.bf16 %v10910_v32, %v10909_v33 }
0x15c5   : > { %10429 = vmatmul.mubr.msk.bf16.vlgmr.msra.gmra.mrb[128].mxu1 %vm3035_vm15, %v11152_v4  ;;  %10435 = vmatmul.mubr.msk.bf16.vlgmr.msra.gmra.mrb[116].mxu0 %vm3035_vm15, %v11153_v27  ;;  %v10913_v47 = vpop.permute.xlu0 %10912  ;;  %v6986_v43 = vpop.permute.xlu1 %6985 }
0x15c6   : > { %10439 = vmatpush3.bf16.msra.mxu1 %v6803_v41  ;;  %10445 = vmatpush3.bf16.msk.msra.mxu0 %vm11820_vm11, %v9703_v21  ;;  %v10915_v48 = vunpack.i.h.bf16 %v10913_v47  ;;  %v10914_v49 = vunpack.i.l.bf16 %v10913_v47 }
0x15c7   : > { %10440 = vmatprep.mubr.msk.bf16.mxu1 %vm11220_vm4, %v11219_v30  ;;  %10446 = vmatprep.mubr.msk.bf16.mxu0 %vm11220_vm4, %v11219_v30 }
0x15c8   : > { %10450 = vmatprep.subr.bf16.mxu1 %v11219_v30  ;;  %10456 = vmatprep.subr.bf16.mxu0 %v11219_v30  ;;  %v9721_v54 = vpack.c.bf16 %v10915_v48, %v10914_v49 }
0x15cd   : > { %10441 = vmatmul.mubr.msk.bf16.vlgmr.msra.gmra.mrb[132].mxu1 %vm3035_vm15, %v11154_v42  ;;  %10447 = vmatmul.mubr.msk.bf16.vlgmr.msra.gmra.mrb[120].mxu0 %vm3035_vm15, %v11155_v45 }
0x15ce   : > { %10451 = vmatpush3.bf16.msk.msra.mxu1 %vm11795_vm3, %v9710_v46  ;;  %10457 = vmatpush3.bf16.msra.mxu0 %v6986_v43  ;;  %vm12860_vm3 = vmmov %vm12854_vm6 }
0x15cf   : > { %10452 = vmatprep.mubr.msk.bf16.mxu1 %vm11220_vm4, %v11219_v30  ;;  %10462 = vmatprep.subr.bf16.mxu1 %v11219_v30 }
0x15d0   : > { %10458 = vmatprep.mubr.msk.bf16.mxu0 %vm11220_vm4, %v11219_v30  ;;  %7165 = vmatprep.subr.bf16.mxu0 %v11161_v60 }
0x15d5   : > { %10453 = vmatmul.mubr.msk.bf16.vlgmr.msra.gmra.mrb[136].mxu1 %vm3035_vm15, %v11156_v50  ;;  %10459 = vmatmul.mubr.msk.bf16.vlgmr.msra.gmra.mrb[124].mxu0 %vm3035_vm15, %v11157_v52 }
0x15d6   : > { %10463 = vmatpush3.bf16.msk.msra.mxu1 %vm11820_vm11, %v9721_v54  ;;  %10464 = vmatprep.mubr.msk.bf16.mxu1 %vm11220_vm4, %v11219_v30  ;;  %v11162_v30 = vld [vmem:[%s11376_s27 + $0x10] ss:$8 sps:$4 sm:$0xff]   ;;  %vm12867_vm4 = vcmask 1031168  }
0x15d7   : > { %7197 = vmatprep.mubr.bf16.mxu0 %v11209_v19  ;;  %7166 = vmatpush1.bf16.msra.mxu0 %v11159_v51  ;;  %vm12868_vm11 = vmmov %vm12867_vm4 }
0x15d8   : > { %7167 = vmatprep.subr.bf16.mxu0 %v11164_v61  ;;  %v7107_v61 = vpop.permute.xlu0 %7106  ;;  %vm12869_vm12 = vmmov %vm12867_vm4 }
0x15d9   : > { %vm12870_vm0 = vmmov %vm12867_vm4 }
0x15db   : > { %7168 = vmatpush1.bf16.msra.mxu0 %v11162_v30 }
0x15dc   : > { %7169 = vmatprep.subr.bf16.mxu0 %v11167_v62 }
0x15dd   : > { %10465 = vmatmul.mubr.msk.bf16.vlgmr.msra.gmra.mrb[140].mxu1 %vm3035_vm15, %v11158_v44 }
0x15de   : > { %7292 = vmatprep.mubr.bf16.mxu1 %v11209_v19 }
0x15df   : > { %7170 = vmatpush1.bf16.msra.mxu0 %v11165_v63 }
0x15e0   : > { %7171 = vmatprep.subr.bf16.mxu0 %v11170_v0 }
0x15e3   : > { %7172 = vmatpush1.bf16.msra.mxu0 %v11168_v1 }
0x161f   : > { %v6659_v56 = vpop.f32.mrb[112].mxu0 }
0x1620   : > { %v10424_v57 = vpop.f32.mrb[113].mxu0 }
0x1621   : > { %v6662_v58 = vpop.f32.mrb[114].mxu0  ;;  %v7102_v57 = vpop.permute.xlu1 %7101 }
0x1622   : > { %v10425_v55 = vpop.f32.mrb[115].mxu0 }
0x1690   : > { %v6610_v2 = vpop.f32.mrb[124].mxu1 }
0x1691   : > { %v6660_v3 = vadd.f32 %v6659_v56, %v6610_v2  ;;  %v10418_v5 = vpop.f32.mrb[125].mxu1 }
0x1692   : > { %v6613_v6 = vpop.f32.mrb[126].mxu1 }
0x1693   : > { %v6663_v7 = vadd.f32 %v6662_v58, %v6613_v6  ;;  %v10419_v8 = vpop.f32.mrb[127].mxu1 }
0x1698   : > { %v6722_v53 = vpop.f32.mrb[128].mxu1  ;;  %v6785_v9 = vpop.f32.mrb[116].mxu0 }
0x1699   : > { %v6729_v59 = vadd.f32 %v6722_v53, %v6660_v3  ;;  %v10430_v10 = vpop.f32.mrb[129].mxu1  ;;  %v10436_v13 = vpop.f32.mrb[117].mxu0 }
0x169a   : > { %v6725_v34 = vpop.f32.mrb[130].mxu1  ;;  %v6788_v35 = vpop.f32.mrb[118].mxu0 }
0x169b   : > { %v6730_v14 = vadd.f32 %v6725_v34, %v6663_v7  ;;  %v6792_v15 = vadd.f32 %v6785_v9, %v6729_v59  ;;  %v10431_v16 = vpop.f32.mrb[131].mxu1  ;;  %v10437_v17 = vpop.f32.mrb[119].mxu0 }
0x169d   : > { %v6793_v18 = vadd.f32 %v6788_v35, %v6730_v14 }
0x16a0   : > { %v6842_v20 = vpop.f32.mrb[132].mxu1  ;;  %v6905_v22 = vpop.f32.mrb[120].mxu0 }
0x16a1   : > { %v6849_v23 = vadd.f32 %v6842_v20, %v6792_v15  ;;  %v10442_v24 = vpop.f32.mrb[133].mxu1  ;;  %v10448_v41 = vpop.f32.mrb[121].mxu0 }
0x16a2   : > { %v6845_v25 = vpop.f32.mrb[134].mxu1  ;;  %v6908_v26 = vpop.f32.mrb[122].mxu0 }
0x16a3   : > { %v6850_v4 = vadd.f32 %v6845_v25, %v6793_v18  ;;  %v6912_v27 = vadd.f32 %v6905_v22, %v6849_v23  ;;  %v10443_v28 = vpop.f32.mrb[135].mxu1  ;;  %v10449_v29 = vpop.f32.mrb[123].mxu0  ;;  %v7842_v25 = vpack.c.bf16 %v11656_v40, %v11656_v40 }
0x16a4   : > { %v8422_v28 = vld [vmem:[%s12865_s4] sm:$0xff]  ;;  %s12902_s4 = sld [smem:[#allocation10_spill]] }
0x16a5   : > { %v6913_v21 = vadd.f32 %v6908_v26, %v6850_v4  ;;  %v7843_v26 = vpack.c.bf16 %v11653_v39, %v11653_v39  ;;  %v7844_v4 = vpack.c.bf16 %v11650_v37, %v11650_v37 }
0x16a8   : > { %v6968_v31 = vpop.f32.mrb[136].mxu1  ;;  %v7025_v32 = vpop.f32.mrb[124].mxu0 }
0x16a9   : > { %v6975_v33 = vadd.f32 %v6968_v31, %v6912_v27  ;;  %v10454_v42 = vpop.f32.mrb[137].mxu1  ;;  %v10460_v45 = vpop.f32.mrb[125].mxu0  ;;  %v11001_v27 = vpack.i.bf16 %v11653_v39, %v11656_v40 }
0x16aa   : > { %v6971_v46 = vpop.f32.mrb[138].mxu1  ;;  %v7028_v47 = vpop.f32.mrb[126].mxu0 }
0x16ab   : > { %v6976_v43 = vadd.f32 %v6971_v46, %v6913_v21  ;;  %v7032_v48 = vadd.f32 %v7025_v32, %v6975_v33  ;;  %v10455_v49 = vpop.f32.mrb[139].mxu1  ;;  %v10461_v50 = vpop.f32.mrb[127].mxu0 }
0x16ad   : > { %v7033_v52 = vadd.f32 %v7028_v47, %v6976_v43 }
0x16b0   : > { %v7088_v54 = vpop.f32.mrb[140].mxu1 }
0x16b1   : > { %v7095_v44 = vadd.f32 %v7088_v54, %v7032_v48  ;;  %v10466_v56 = vpop.f32.mrb[141].mxu1 }
0x16b2   : > { %v7091_v58 = vpop.f32.mrb[142].mxu1 }
0x16b3   : > { %v7109_v55 = vadd.f32 %v7102_v57, %v7095_v44  ;;  %v7096_v51 = vadd.f32 %v7091_v58, %v7033_v52  ;;  %v10467_v60 = vpop.f32.mrb[143].mxu1 }
0x16b5   : > { %v7110_v30 = vadd.f32 %v7107_v61, %v7096_v51  ;;  %v7111_v62 = vmax.f32 %v7109_v55, 0.0  ;;  %v9742_v55 = vld [vmem:[%s12866_s5 + $0x8] sm:$0xf] }
0x16b7   : > { %v7112_v63 = vmax.f32 %v7110_v30, 0.0 }
0x16b9   : > { %v7113_v0 = vpack.c.bf16 %v7112_v63, %v7111_v62 }
0x16bb   : > { %9732 = vmatmul.mubr.msk.bf16.vlgmr.msra.gmra.mrb[128].mxu0 %vm12852_vm5, %v7113_v0  ;;  %vm12450_vm5 = vmpackc.low %vm11465_vm8, %vm11465_vm8 }
0x16bc   : > { %7412 = vmatprep.mubr.bf16.mxu0 %v11209_v19 }
0x178e   : > { %v7199_v1 = vpop.f32.mrb[128].mxu0 }
0x178f   : > { %v7201_v2 = vpop.f32.mrb[129].mxu0 }
0x1790   : > { %v10916_v3 = vpack.i.bf16 %v7201_v2, %v7199_v1  ;;  %v7203_v5 = vpop.f32.mrb[130].mxu0 }
0x1791   : > { %v7205_v6 = vpop.f32.mrb[131].mxu0 }
0x1792   : > { %v10921_v7 = vpack.i.bf16 %v7205_v6, %v7203_v5  ;;  %10917 = vrot.lane.b32.xlu1 %v10916_v3, %s12853_s0  ;;  %v9733_v5 = vld [vmem:[%s12866_s5 + $0x4] sm:$0xf] }
0x1794   : > { %10922 = vrot.lane.b32.xlu0 %v10921_v7, %s12853_s0 }
0x1804   : > { %v10918_v8 = vpop.permute.xlu1 %10917 }
0x1805   : > { %v10920_v53 = vunpack.i.h.bf16 %v10918_v8  ;;  %v10919_v9 = vunpack.i.l.bf16 %v10918_v8 }
0x1806   : > { %v10923_v59 = vpop.permute.xlu0 %10922 }
0x1807   : > { %v7230_v10 = vsel %vm12854_vm6, %v10920_v53, 0.0  ;;  %v7220_v13 = vsel %vm12855_vm9, %v10919_v9, %v10920_v53  ;;  %v10925_v34 = vunpack.i.h.bf16 %v10923_v59  ;;  %v10924_v35 = vunpack.i.l.bf16 %v10923_v59  ;;  %vm12457_vm6 = vmpackc.low %vm11457_vm7, %vm11457_vm7 }
0x1808   : > { %v10931_v14 = vpack.i.bf16 %v7230_v10, %v7220_v13  ;;  %v7228_v18 = vsel %vm12860_vm3, 0.0, %v10919_v9  ;;  %vm12875_vm9 = vcmask 1039360   ;;  %vm12485_vm3 = vmpackc.low %vm11413_vm2, %vm11413_vm2 }
0x1809   : > { %v7231_v15 = vsel %vm12856_vm10, %v10925_v34, 0.0  ;;  %v7221_v16 = vsel %vm12857_vm13, %v10924_v35, %v10925_v34  ;;  %v7229_v17 = vsel %vm12858_vm14, 0.0, %v10924_v35  ;;  %vm12876_vm10 = vmmov %vm12875_vm9  ;;  %vm12879_vm14 = vcmask 916480  }
0x180a   : > { %10932 = vrot.lane.b32.xlu1 %v10931_v14, %s12850_s2  ;;  %10927 = vrot.lane.b32.xlu0 %v10931_v14, %s12859_s18  ;;  %v10936_v20 = vpack.i.bf16 %v7229_v17, %v7228_v18  ;;  %v10941_v22 = vpack.i.bf16 %v7231_v15, %v7221_v16  ;;  %v7243_v23 = vpack.c.bf16 %v7231_v15, %v7230_v10  ;;  %vm12471_vm13 = vmpackc.low %vm11407_vm1, %vm11407_vm1 }
0x180b   : > { %v12380_v24 = vpack.c.bf16 %v7229_v17, %v7228_v18  ;;  %v12385_v41 = vpack.c.bf16 %v7221_v16, %v7220_v13 }
0x180e   : > { %10937 = vrot.lane.b32.xlu0 %v10936_v20, %s12859_s18  ;;  %10942 = vrot.lane.b32.xlu1 %v10941_v22, %s12859_s18 }
0x1812   : > { %7251 = vrot.lane.b32.xlu0 %v7243_v23, %s12797_s16  ;;  %7247 = vrot.lane.b32.xlu1 %v12380_v24, %s12797_s16 }
0x1816   : > { %10947 = vrot.lane.b32.xlu0 %v10941_v22, %s12850_s2  ;;  %7249 = vrot.lane.b32.xlu1 %v12385_v41, %s12797_s16  ;;  %s12862_s16 = smov 95  }
0x181a   : > { %10957 = vrot.lane.b32.xlu0 %v10931_v14, %s12845_s28  ;;  %10952 = vrot.lane.b32.xlu1 %v10936_v20, %s12850_s2 }
0x181e   : > { %7499 = vrot.lane.b32.xlu0 %v12380_v24, %s12844_s26  ;;  %10962 = vrot.lane.b32.xlu1 %v10941_v22, %s12845_s28 }
0x1822   : > { %10972 = vrot.lane.b32.xlu0 %v10931_v14, %s12861_s11  ;;  %10967 = vrot.lane.b32.xlu1 %v10936_v20, %s12845_s28 }
0x1826   : > { %10982 = vrot.lane.b32.xlu0 %v10936_v20, %s12861_s11  ;;  %10977 = vrot.lane.b32.xlu1 %v10941_v22, %s12861_s11 }
0x182a   : > { %7501 = vrot.lane.b32.xlu0 %v12385_v41, %s12844_s26  ;;  %7705 = vrot.lane.b32.xlu1 %v12380_v24, %s12862_s16 }
0x182e   : > { %10987 = vrot.lane.b32.xlu0 %v10931_v14, %s12863_s1  ;;  %7503 = vrot.lane.b32.xlu1 %v7243_v23, %s12844_s26 }
0x1832   : > { %7709 = vrot.lane.b32.xlu0 %v7243_v23, %s12862_s16  ;;  %10992 = vrot.lane.b32.xlu1 %v10941_v22, %s12863_s1  ;;  %v7236_v23 = vld [vmem:[%s12866_s5] sm:$0xf] }
0x1836   : > { %10997 = vrot.lane.b32.xlu0 %v10936_v20, %s12863_s1  ;;  %7707 = vrot.lane.b32.xlu1 %v12385_v41, %s12862_s16 }
0x183a   : > { %7848 = vrot.lane.b32.xlu1 %v7842_v25, %s12864_s3  ;;  %7850 = vrot.lane.b32.xlu0 %v7843_v26, %s12864_s3 }
0x183e   : > { %7852 = vrot.lane.b32.xlu1 %v7844_v4, %s12864_s3  ;;  %11002 = vrot.lane.b32.xlu0 %v11001_v27, %s12859_s18 }
0x1842   : > { %7960 = vrot.lane.b32.xlu1 %v11650_v37, %s12859_s18  ;;  %11007 = vrot.lane.b32.xlu0 %v11001_v27, %s12850_s2 }
0x1846   : > { %8028 = vrot.lane.b32.xlu1 %v11650_v37, %s12850_s2  ;;  %8094 = vrot.lane.b32.xlu0 %v7842_v25, %s12844_s26 }
0x184a   : > { %8096 = vrot.lane.b32.xlu1 %v7843_v26, %s12844_s26  ;;  %8098 = vrot.lane.b32.xlu0 %v7844_v4, %s12844_s26 }
0x184e   : > { %11012 = vrot.lane.b32.xlu1 %v11001_v27, %s12845_s28  ;;  %8158 = vrot.lane.b32.xlu0 %v11650_v37, %s12845_s28 }
0x1852   : > { %11017 = vrot.lane.b32.xlu1 %v11001_v27, %s12861_s11  ;;  %8226 = vrot.lane.b32.xlu0 %v11650_v37, %s12861_s11 }
0x1856   : > { %11022 = vrot.lane.b32.xlu1 %v11001_v27, %s12863_s1  ;;  %8356 = vrot.lane.b32.xlu0 %v11650_v37, %s12863_s1 }
0x185a   : > { %8292 = vrot.lane.b32.xlu1 %v7842_v25, %s12862_s16  ;;  %8294 = vrot.lane.b32.xlu0 %v7843_v26, %s12862_s16 }
0x185e   : > { %8296 = vrot.lane.b32.xlu1 %v7844_v4, %s12862_s16  ;;  %8425 = vperm.xlu0 %10619, %v8422_v28  }
0x187c   : > { %v10933_v29 = vpop.permute.xlu1 %10932  ;;  %v10928_v21 = vpop.permute.xlu0 %10927 }
0x187d   : > { %v10930_v31 = vunpack.i.h.bf16 %v10928_v21  ;;  %v10929_v32 = vunpack.i.l.bf16 %v10928_v21  ;;  %v10935_v51 = vunpack.i.h.bf16 %v10933_v29  ;;  %v10934_v60 = vunpack.i.l.bf16 %v10933_v29 }
0x187f   : > { %v7362_v37 = vsel %vm12867_vm4, %v10929_v32, %v10930_v31  ;;  %vm12882_vm4 = vmmov %vm12879_vm14 }
0x1880   : > { %v10938_v33 = vpop.permute.xlu0 %10937  ;;  %v10943_v42 = vpop.permute.xlu1 %10942  ;;  %v7436_v53 = vsel %vm12882_vm4, %v10934_v60, %v10935_v51 }
0x1881   : > { %v10940_v45 = vunpack.i.h.bf16 %v10938_v33  ;;  %v10939_v46 = vunpack.i.l.bf16 %v10938_v33  ;;  %v10945_v47 = vunpack.i.h.bf16 %v10943_v42  ;;  %v10944_v43 = vunpack.i.l.bf16 %v10943_v42  ;;  %v9750_v42 = vld [vmem:[%s12866_s5 + $0xc] sm:$0xf] }
0x1883   : > { %v7361_v48 = vsel %vm12868_vm11, %v10939_v46, %v10929_v32  ;;  %v7363_v49 = vsel %vm12869_vm12, %v10940_v45, %v10944_v43  ;;  %v7364_v50 = vsel %vm12870_vm0, %v10944_v43, %v10945_v47  ;;  %vm12883_vm11 = vmmov %vm12882_vm4  ;;  %vm12885_vm0 = vcmask 900096  }
0x1884   : > { %v9744_v54 = vpack.c.bf16 %v7364_v50, %v7362_v37  ;;  %v9747_v44 = vpack.c.bf16 %v7363_v49, %v7361_v48  ;;  %v7252_v56 = vpop.permute.xlu0 %7251  ;;  %v7248_v57 = vpop.permute.xlu1 %7247  ;;  %vm12884_vm12 = vmmov %vm12882_vm4  ;;  %vm12889_vm4 = vcmask 785408  }
0x1886   : > { %9745 = vmatprep.subr.msk.bf16.mxu0 %vm12450_vm5, %v9744_v54 }
0x1887   : > { %9748 = vmatpush1.bf16.msk.msra.mxu0 %vm12457_vm6, %v9747_v44 }
0x1888   : > { %v10948_v61 = vpop.permute.xlu0 %10947  ;;  %v7250_v30 = vpop.permute.xlu1 %7249 }
0x1889   : > { %v10950_v62 = vunpack.i.h.bf16 %v10948_v61  ;;  %v10949_v63 = vunpack.i.l.bf16 %v10948_v61  ;;  %v7253_v0 = vsel %vm12875_vm9, %v7248_v57, %v7250_v30  ;;  %v7254_v1 = vsel %vm12876_vm10, %v7250_v30, %v7252_v56  ;;  %vm12886_vm9 = vmmov %vm12885_vm0 }
0x188a   : > { %7260 = vmatprep.subr.bf16.mxu1 %v7254_v1  ;;  %9749 = vmatmul.mubr.msk.bf16.vlgmr.msra.gmra.mrb[132].mxu0 %vm3035_vm15, %v9742_v55  ;;  %vm12887_vm10 = vmmov %vm12885_vm0 }
0x188b   : > { %v7438_v3 = vsel %vm12879_vm14, %v10949_v63, %v10950_v62  ;;  %7261 = vmatpush1.bf16.msra.mxu1 %v7253_v0  ;;  %7544 = vmatprep.mubr.bf16.mxu0 %v11209_v19  ;;  %vm12888_vm14 = vmmov %vm12885_vm0  ;;  %v9760_v0 = vld [vmem:[%s12866_s5 + $0x14] sm:$0xf] }
0x188c   : > { %v10958_v6 = vpop.permute.xlu0 %10957  ;;  %9737 = vmatprep.subr.msk.bf16.mxu1 %vm12471_vm13, %v12385_v41  ;;  %v10953_v7 = vpop.permute.xlu1 %10952  ;;  %v9752_v9 = vpack.c.bf16 %v7438_v3, %v7436_v53 }
0x188d   : > { %v10955_v59 = vunpack.i.h.bf16 %v10953_v7  ;;  %v10954_v10 = vunpack.i.l.bf16 %v10953_v7  ;;  %v10960_v13 = vunpack.i.h.bf16 %v10958_v6  ;;  %v10959_v34 = vunpack.i.l.bf16 %v10958_v6 }
0x188e   : > { %9734 = vmatmul.mubr.msk.bf16.vlgmr.msra.gmra.mrb[144].mxu1 %vm3035_vm15, %v9733_v5 }
0x188f   : > { %9740 = vmatpush1.bf16.msk.msra.mxu1 %vm12485_vm3, %v12380_v24  ;;  %7336 = vmatprep.mubr.bf16.mxu1 %v11209_v19  ;;  %v7437_v17 = vsel %vm12883_vm11, %v10955_v59, %v10949_v63  ;;  %v7435_v18 = vsel %vm12884_vm12, %v10954_v10, %v10934_v60  ;;  %v7568_v20 = vsel %vm12885_vm0, %v10959_v34, %v10960_v13  ;;  %vm12890_vm11 = vmmov %vm12889_vm4  ;;  %vm12891_vm12 = vcmask 908288   ;;  %v9758_v63 = vld [vmem:[%s12866_s5 + $0x10] sm:$0xf] }
0x1890   : > { %v7500_v35 = vpop.permute.xlu0 %7499  ;;  %9753 = vmatprep.subr.msk.bf16.mxu1 %vm12471_vm13, %v9752_v9  ;;  %v10963_v14 = vpop.permute.xlu1 %10962  ;;  %v9755_v26 = vpack.c.bf16 %v7437_v17, %v7435_v18  ;;  %vm12892_vm0 = vmmov %vm12889_vm4  ;;  %v9776_v17 = vld [vmem:[%s12866_s5 + $0x1c] sm:$0xf]  ;;  %v7836_v18 = vsel %vm11407_vm1, %v11653_v39, 0.0  ;;  %v7835_v39 = vsel %vm11413_vm2, %v11656_v40, 0.0  ;;  %v9786_v40 = vld [vmem:[%s12902_s4 + $0x4] sm:$0xf] }
0x1891   : > { %v10965_v15 = vunpack.i.h.bf16 %v10963_v14  ;;  %v10964_v16 = vunpack.i.l.bf16 %v10963_v14  ;;  %v7839_v52 = vpack.c.bf16 %v7836_v18, %v7836_v18 }
0x1893   : > { %v7570_v22 = vsel %vm12886_vm9, %v10964_v16, %v10965_v15  ;;  %vm12893_vm9 = vmmov %vm12892_vm0 }
0x1894   : > { %v9762_v41 = vpack.c.bf16 %v7570_v22, %v7568_v20  ;;  %v10973_v24 = vpop.permute.xlu0 %10972  ;;  %v10968_v25 = vpop.permute.xlu1 %10967 }
0x1895   : > { %v10970_v4 = vunpack.i.h.bf16 %v10968_v25  ;;  %v10969_v27 = vunpack.i.l.bf16 %v10968_v25  ;;  %v10975_v47 = vunpack.i.h.bf16 %v10973_v24  ;;  %v10974_v43 = vunpack.i.l.bf16 %v10973_v24 }
0x1896   : > { %9741 = vmatmul.mubr.msk.bf16.vlgmr.msra.gmra.mrb[148].mxu1 %vm3035_vm15, %v7236_v23 }
0x1897   : > { %9756 = vmatpush1.bf16.msk.msra.mxu1 %vm12485_vm3, %v9755_v26  ;;  %7486 = vmatprep.mubr.bf16.mxu1 %v11209_v19  ;;  %v7567_v21 = vsel %vm12887_vm10, %v10969_v27, %v10959_v34  ;;  %v7569_v31 = vsel %vm12888_vm14, %v10970_v4, %v10964_v16  ;;  %v7642_v56 = vsel %vm12890_vm11, %v10974_v43, %v10975_v47  ;;  %vm12894_vm10 = vmmov %vm12891_vm12  ;;  %vm12895_vm14 = vcmask 769024   ;;  %v9768_v16 = vld [vmem:[%s12866_s5 + $0x18] sm:$0xf] }
0x1898   : > { %9763 = vmatprep.subr.msk.bf16.mxu1 %vm12450_vm5, %v9762_v41  ;;  %v10983_v28 = vpop.permute.xlu0 %10982  ;;  %v10978_v29 = vpop.permute.xlu1 %10977  ;;  %v9765_v37 = vpack.c.bf16 %v7569_v31, %v7567_v21  ;;  %v9778_v21 = vld [vmem:[%s12866_s5 + $0x20] sm:$0xf]  ;;  %s12951_s5 = sld [smem:[#allocation15_spill]] }
0x1899   : > { %v10980_v32 = vunpack.i.h.bf16 %v10978_v29  ;;  %v10979_v33 = vunpack.i.l.bf16 %v10978_v29  ;;  %v10985_v48 = vunpack.i.h.bf16 %v10983_v28  ;;  %v10984_v49 = vunpack.i.l.bf16 %v10983_v28 }
0x189a   : > { %v7838_v28 = vpack.c.bf16 %v7835_v39, %v7835_v39 }
0x189b   : > { %v7644_v50 = vsel %vm12889_vm4, %v10979_v33, %v10980_v32  ;;  %v7641_v55 = vsel %vm12892_vm0, %v10984_v49, %v10974_v43  ;;  %v7643_v51 = vsel %vm12893_vm9, %v10985_v48, %v10979_v33  ;;  %vm12896_vm4 = vmmov %vm12895_vm14  ;;  %vm12903_vm0 = vcmask 1043456  }
0x189c   : > { %v7502_v45 = vpop.permute.xlu0 %7501  ;;  %v7706_v46 = vpop.permute.xlu1 %7705  ;;  %v9770_v60 = vpack.c.bf16 %v7644_v50, %v7642_v56  ;;  %v9773_v5 = vpack.c.bf16 %v7643_v51, %v7641_v55 }
0x189d   : > { %v7505_v61 = vsel %vm12894_vm10, %v7500_v35, %v7502_v45  ;;  %vm12905_vm10 = vmmov %vm12903_vm0 }
0x189e   : > { %9757 = vmatmul.mubr.msk.bf16.vlgmr.msra.gmra.mrb[152].mxu1 %vm3035_vm15, %v9750_v42 }
0x189f   : > { %9766 = vmatpush1.bf16.msk.msra.mxu1 %vm12457_vm6, %v9765_v37  ;;  %7618 = vmatprep.mubr.bf16.mxu1 %v11209_v19 }
0x18a0   : > { %v10988_v54 = vpop.permute.xlu0 %10987  ;;  %v7504_v44 = vpop.permute.xlu1 %7503 }
0x18a1   : > { %v7506_v57 = vsel %vm12891_vm12, %v7502_v45, %v7504_v44  ;;  %v10990_v30 = vunpack.i.h.bf16 %v10988_v54  ;;  %v10989_v62 = vunpack.i.l.bf16 %v10988_v54  ;;  %vm12899_vm12 = vmmov %vm12896_vm4 }
0x18a2   : > { %7512 = vmatprep.subr.bf16.mxu0 %v7506_v57 }
0x18a3   : > { %7513 = vmatpush1.bf16.msra.mxu0 %v7505_v61  ;;  %v7774_v53 = vsel %vm12895_vm14, %v10989_v62, %v10990_v30  ;;  %vm12907_vm14 = vcmask 1031168   ;;  %v7837_v61 = vld [vmem:[%s12902_s4] sm:$0xf]  ;;  %v9791_v30 = vld [vmem:[%s12902_s4 + $0x8] sm:$0xf] }
0x18a4   : > { %v7710_v1 = vpop.permute.xlu0 %7709  ;;  %v10993_v3 = vpop.permute.xlu1 %10992  ;;  %9771 = vmatprep.subr.msk.bf16.mxu0 %vm12471_vm13, %v9770_v60  ;;  %vm12897_vm13 = vcmask 777216  }
0x18a5   : > { %v10995_v6 = vunpack.i.h.bf16 %v10993_v3  ;;  %v10994_v7 = vunpack.i.l.bf16 %v10993_v3  ;;  %vm12898_vm11 = vmmov %vm12897_vm13 }
0x18a6   : > { %9759 = vmatmul.mubr.msk.bf16.vlgmr.msra.gmra.mrb[136].mxu0 %vm3035_vm15, %v9758_v63  ;;  %9767 = vmatmul.mubr.msk.bf16.vlgmr.msra.gmra.mrb[156].mxu1 %vm3035_vm15, %v9760_v0 }
0x18a7   : > { %v7776_v9 = vsel %vm12896_vm4, %v10994_v7, %v10995_v6  ;;  %9774 = vmatpush1.bf16.msk.msra.mxu0 %vm12485_vm3, %v9773_v5  ;;  %7692 = vmatprep.mubr.bf16.mxu0 %v11209_v19  ;;  %vm12900_vm3 = vmmov %vm12896_vm4 }
0x18a8   : > { %v9780_v2 = vpack.c.bf16 %v7776_v9, %v7774_v53  ;;  %v10998_v59 = vpop.permute.xlu0 %10997  ;;  %v7708_v10 = vpop.permute.xlu1 %7707  ;;  %7750 = vmatprep.mubr.bf16.mxu1 %v11209_v19  ;;  %vm12908_vm4 = vmmov %vm12907_vm14 }
0x18a9   : > { %v11000_v13 = vunpack.i.h.bf16 %v10998_v59  ;;  %v10999_v34 = vunpack.i.l.bf16 %v10998_v59  ;;  %v7711_v35 = vsel %vm12897_vm13, %v7706_v46, %v7708_v10  ;;  %v7712_v14 = vsel %vm12898_vm11, %v7708_v10, %v7710_v1  ;;  %vm12910_vm11 = vmmov %vm12903_vm0  ;;  %v9794_v10 = vld [vmem:[%s12902_s4 + $0xc] sm:$0xf] }
0x18aa   : > { %7718 = vmatprep.subr.bf16.mxu1 %v7712_v14  ;;  %9781 = vmatprep.subr.msk.bf16.mxu0 %vm12450_vm5, %v9780_v2  ;;  %vm12901_vm5 = vcmask 1039360   ;;  %vm12909_vm13 = vcmask 64512   ;;  %v7910_v37 = vsel %vm12910_vm11, %v7838_v28, 0 }
0x18ab   : > { %v7773_v8 = vsel %vm12899_vm12, %v10999_v34, %v10989_v62  ;;  %v7775_v15 = vsel %vm12900_vm3, %v11000_v13, %v10994_v7  ;;  %7719 = vmatpush1.bf16.msra.mxu1 %v7711_v35  ;;  %vm12904_vm9 = vmmov %vm12901_vm5  ;;  %vm12911_vm12 = vcmask 916480   ;;  %v9797_v13 = vld [vmem:[%s12902_s4 + $0x10] sm:$0xf] }
0x18ac   : > { %v9783_v20 = vpack.c.bf16 %v7775_v15, %v7773_v8  ;;  %v7849_v22 = vpop.permute.xlu1 %7848  ;;  %v7851_v23 = vpop.permute.xlu0 %7850  ;;  %vm12913_vm3 = vmmov %vm12903_vm0 }
0x18ad   : > { %v7854_v41 = vsel %vm12901_vm5, %v7849_v22, %v7851_v23  ;;  %vm12914_vm5 = vmmov %vm12903_vm0 }
0x18ae   : > { %9775 = vmatmul.mubr.msk.bf16.vlgmr.msra.gmra.mrb[140].mxu0 %vm3035_vm15, %v9768_v16  ;;  %9777 = vmatmul.mubr.msk.bf16.vlgmr.msra.gmra.mrb[160].mxu1 %vm3035_vm15, %v9776_v17  ;;  %v7860_v58 = vsel %vm12905_vm10, %v7854_v41, 0  ;;  %vm12917_vm10 = vmmov %vm12913_vm3 }
0x18af   : > { %9784 = vmatpush1.bf16.msk.msra.mxu0 %vm12457_vm6, %v9783_v20  ;;  %7824 = vmatprep.mubr.bf16.mxu0 %v11209_v19  ;;  %vm12906_vm6 = vmmov %vm12903_vm0 }
0x18b0   : > { %9789 = vmatprep.subr.msk.bf16.mxu0 %vm12903_vm0, %v7839_v52  ;;  %v7853_v24 = vpop.permute.xlu1 %7852  ;;  %v11003_v25 = vpop.permute.xlu0 %11002  ;;  %7897 = vmatprep.mubr.bf16.mxu1 %v11209_v19  ;;  %vm12915_vm0 = vcmask 908288   ;;  %vm12922_vm11 = vmmov %vm12913_vm3 }
0x18b1   : > { %v7855_v26 = vsel %vm12904_vm9, %v7851_v23, %v7853_v24  ;;  %v11005_v4 = vunpack.i.h.bf16 %v11003_v25  ;;  %v11004_v27 = vunpack.i.l.bf16 %v11003_v25  ;;  %vm12916_vm9 = vmmov %vm12915_vm0 }
0x18b2   : > { %9787 = vmatprep.subr.msk.bf16.mxu1 %vm12906_vm6, %v7855_v26  ;;  %vm12918_vm6 = vmmov %vm12913_vm3 }
0x18b3   : > { %v7962_v29 = vsel %vm12907_vm14, %v11004_v27, %v11005_v4  ;;  %7866 = vmatpush1.bf16.msra.mxu1 %v7860_v58  ;;  %vm12919_vm14 = vmmov %vm12909_vm13 }
0x18b4   : > { %v7961_v31 = vpop.permute.xlu1 %7960  ;;  %v11008_v32 = vpop.permute.xlu0 %11007  ;;  %v7966_v33 = vsel %vm11457_vm7, %v7962_v29, 0.0 }
0x18b5   : > { %v7963_v42 = vsel %vm12908_vm4, %v11005_v4, %v7961_v31  ;;  %v11010_v45 = vunpack.i.h.bf16 %v11008_v32  ;;  %v11009_v46 = vunpack.i.l.bf16 %v11008_v32  ;;  %v7970_v47 = vpack.c.bf16 %v7966_v33, %v7966_v33  ;;  %vm12920_vm4 = vmmov %vm12909_vm13  ;;  %v9803_v33 = vld [vmem:[%s12902_s4 + $0x18] sm:$0xf] }
0x18b6   : > { %v7967_v43 = vsel %vm11465_vm8, %v7963_v42, 0.0  ;;  %9785 = vmatmul.mubr.msk.bf16.vlgmr.msra.gmra.mrb[144].mxu0 %vm3035_vm15, %v9778_v21  ;;  %9788 = vmatmul.mubr.msk.bf16.vlgmr.msra.gmra.mrb[164].mxu1 %vm12909_vm13, %v9786_v40  ;;  %vm12912_vm15 = vmmov %vm12911_vm12  ;;  %v9800_v21 = vld [vmem:[%s12902_s4 + $0x14] sm:$0xf] }
0x18b7   : > { %v7971_v48 = vpack.c.bf16 %v7967_v43, %v7967_v43  ;;  %v8030_v49 = vsel %vm12911_vm12, %v11009_v46, %v11010_v45  ;;  %7916 = vmatpush1.bf16.msra.mxu0 %v7910_v37  ;;  %7947 = vmatprep.mubr.bf16.mxu0 %v11209_v19  ;;  %v7976_v57 = vsel %vm12914_vm5, %v7970_v47, 0  ;;  %vm12921_vm13 = vmmov %vm12913_vm3  ;;  %vm12923_vm12 = vcmask 900096  }
0x18b8   : > { %v8029_v50 = vpop.permute.xlu1 %8028  ;;  %v8095_v54 = vpop.permute.xlu0 %8094  ;;  %8013 = vmatprep.mubr.bf16.mxu1 %v11209_v19  ;;  %v8034_v44 = vsel %vm11413_vm2, %v8030_v49, 0.0 }
0x18b9   : > { %v8031_v56 = vsel %vm12912_vm15, %v11010_v45, %v8029_v50  ;;  %9792 = vmatprep.subr.msk.bf16.mxu1 %vm12913_vm3, %v7971_v48  ;;  %v8038_v51 = vpack.c.bf16 %v8034_v44, %v8034_v44  ;;  %vm12924_vm15 = vmmov %vm12923_vm12  ;;  %v9806_v50 = vld [vmem:[%s12902_s4 + $0x1c] sm:$0xf] }
0x18ba   : > { %v8035_v55 = vsel %vm11407_vm1, %v8031_v56, 0.0  ;;  %7982 = vmatpush1.bf16.msra.mxu1 %v7976_v57  ;;  %vm12925_vm3 = vmmov %vm12920_vm4 }
0x18bb   : > { %v8039_v60 = vpack.c.bf16 %v8035_v55, %v8035_v55  ;;  %v8044_v5 = vsel %vm12921_vm13, %v8038_v51, 0  ;;  %vm12926_vm5 = vmmov %vm12925_vm3 }
0x18bc   : > { %v8097_v62 = vpop.permute.xlu1 %8096  ;;  %v8099_v63 = vpop.permute.xlu0 %8098  ;;  %vm12932_vm13 = vmmov %vm12918_vm6 }
0x18bd   : > { %v8100_v0 = vsel %vm12915_vm0, %v8095_v54, %v8097_v62  ;;  %v8101_v1 = vsel %vm12916_vm9, %v8097_v62, %v8099_v63  ;;  %9795 = vmatprep.subr.msk.bf16.mxu0 %vm12917_vm10, %v8039_v60  ;;  %vm12927_vm0 = vcmask 785408   ;;  %vm12929_vm10 = vmmov %vm12918_vm6  ;;  %v9809_v54 = vld [vmem:[%s12902_s4 + $0x20] sm:$0xf]  ;;  %s12945_s4 = sld [smem:[#allocation12_spill]] }
0x18be   : > { %v8106_v3 = vsel %vm12918_vm6, %v8100_v0, 0  ;;  %9790 = vmatmul.mubr.msk.bf16.vlgmr.msra.gmra.mrb[148].mxu0 %vm12919_vm14, %v7837_v61  ;;  %9793 = vmatmul.mubr.msk.bf16.vlgmr.msra.gmra.mrb[168].mxu1 %vm12920_vm4, %v9791_v30  ;;  %vm12928_vm9 = vmmov %vm12927_vm0  ;;  %vm12930_vm14 = vcmask 769024  }
0x18bf   : > { %8050 = vmatpush1.bf16.msra.mxu0 %v8044_v5  ;;  %9798 = vmatprep.subr.msk.bf16.mxu1 %vm12922_vm11, %v8101_v1  ;;  %vm12931_vm4 = vmmov %vm12930_vm14 }
0x18c0   : > { %8112 = vmatpush1.bf16.msra.mxu1 %v8106_v3  ;;  %v11013_v6 = vpop.permute.xlu1 %11012  ;;  %v8159_v7 = vpop.permute.xlu0 %8158  ;;  %8081 = vmatprep.mubr.bf16.mxu0 %v11209_v19  ;;  %vm12933_vm11 = vmmov %vm12918_vm6 }
0x18c1   : > { %v11015_v53 = vunpack.i.h.bf16 %v11013_v6  ;;  %v11014_v9 = vunpack.i.l.bf16 %v11013_v6  ;;  %8143 = vmatprep.mubr.bf16.mxu1 %v11209_v19 }
0x18c3   : > { %v8160_v2 = vsel %vm12923_vm12, %v11014_v9, %v11015_v53  ;;  %v8161_v59 = vsel %vm12924_vm15, %v11015_v53, %v8159_v7  ;;  %vm12934_vm12 = vmmov %vm12925_vm3  ;;  %vm12935_vm15 = vcmask 777216  }
0x18c4   : > { %v8165_v34 = vsel %vm11465_vm8, %v8161_v59, 0.0  ;;  %v11018_v35 = vpop.permute.xlu1 %11017  ;;  %v8227_v14 = vpop.permute.xlu0 %8226  ;;  %v8164_v8 = vsel %vm11457_vm7, %v8160_v2, 0.0 }
0x18c5   : > { %v8169_v15 = vpack.c.bf16 %v8165_v34, %v8165_v34  ;;  %v11020_v16 = vunpack.i.h.bf16 %v11018_v35  ;;  %v11019_v17 = vunpack.i.l.bf16 %v11018_v35  ;;  %v8168_v18 = vpack.c.bf16 %v8164_v8, %v8164_v8 }
0x18c6   : > { %9796 = vmatmul.mubr.msk.bf16.vlgmr.msra.gmra.mrb[152].mxu0 %vm12925_vm3, %v9794_v10  ;;  %9799 = vmatmul.mubr.msk.bf16.vlgmr.msra.gmra.mrb[172].mxu1 %vm12926_vm5, %v9797_v13  ;;  %vm12936_vm5 = vmmov %vm12918_vm6 }
0x18c7   : > { %v8228_v20 = vsel %vm12927_vm0, %v11019_v17, %v11020_v16  ;;  %v8229_v22 = vsel %vm12928_vm9, %v11020_v16, %v8227_v14  ;;  %9801 = vmatprep.subr.msk.bf16.mxu0 %vm12929_vm10, %v8169_v15  ;;  %v8174_v23 = vsel %vm12918_vm6, %v8168_v18, 0  ;;  %8211 = vmatprep.mubr.bf16.mxu0 %v11209_v19  ;;  %vm12937_vm0 = vmmov %vm12936_vm5 }
0x18c8   : > { %v8233_v52 = vsel %vm11407_vm1, %v8229_v22, 0.0  ;;  %v11023_v41 = vpop.permute.xlu1 %11022  ;;  %v8357_v39 = vpop.permute.xlu0 %8356  ;;  %8180 = vmatpush1.bf16.msra.mxu0 %v8174_v23  ;;  %v8232_v24 = vsel %vm11413_vm2, %v8228_v20, 0.0  ;;  %8279 = vmatprep.mubr.bf16.mxu1 %v11209_v19  ;;  %vm12938_vm9 = vmmov %vm12935_vm15 }
0x18c9   : > { %v8237_v25 = vpack.c.bf16 %v8233_v52, %v8233_v52  ;;  %v11025_v26 = vunpack.i.h.bf16 %v11023_v41  ;;  %v11024_v4 = vunpack.i.l.bf16 %v11023_v41  ;;  %v8236_v27 = vpack.c.bf16 %v8232_v24, %v8232_v24  ;;  %vm12939_vm10 = vmmov %vm12937_vm0 }
0x18ca   : > { %vm12940_vm6 = vmmov %vm12937_vm0 }
0x18cb   : > { %v8358_v58 = vsel %vm12930_vm14, %v11024_v4, %v11025_v26  ;;  %v8359_v28 = vsel %vm12931_vm4, %v11025_v26, %v8357_v39  ;;  %9804 = vmatprep.subr.msk.bf16.mxu1 %vm12932_vm13, %v8237_v25  ;;  %v8242_v29 = vsel %vm12933_vm11, %v8236_v27, 0  ;;  %vm12941_vm14 = vmmov %vm12925_vm3  ;;  %vm12943_vm13 = vcmask 138240  }
0x18cc   : > { %v8363_v40 = vsel %vm11465_vm8, %v8359_v28, 0.0  ;;  %v8293_v31 = vpop.permute.xlu1 %8292  ;;  %v8295_v32 = vpop.permute.xlu0 %8294  ;;  %8248 = vmatpush1.bf16.msra.mxu1 %v8242_v29  ;;  %v8362_v42 = vsel %vm11457_vm7, %v8358_v58, 0.0  ;;  %vm12942_vm4 = vmmov %vm12925_vm3 }
0x18cd   : > { %v8367_v45 = vpack.c.bf16 %v8363_v40, %v8363_v40  ;;  %v8366_v46 = vpack.c.bf16 %v8362_v42, %v8362_v42  ;;  %v8298_v47 = vsel %vm12935_vm15, %v8293_v31, %v8295_v32  ;;  %vm12944_vm11 = vmmov %vm12943_vm13 }
0x18ce   : > { %9802 = vmatmul.mubr.msk.bf16.vlgmr.msra.gmra.mrb[156].mxu0 %vm12934_vm12, %v9800_v21  ;;  %v8304_v49 = vsel %vm12939_vm10, %v8298_v47, 0  ;;  %vm12946_vm12 = vmmov %vm12944_vm11 }
0x18cf   : > { %9805 = vmatmul.mubr.msk.bf16.vlgmr.msra.gmra.mrb[176].mxu1 %vm12925_vm3, %v9803_v33  ;;  %9810 = vmatprep.subr.msk.bf16.mxu1 %vm12936_vm5, %v8367_v45  ;;  %v8372_v43 = vsel %vm12937_vm0, %v8366_v46, 0  ;;  %vm12947_vm15 = vmmov %vm12937_vm0 }
0x18d0   : > { %v8297_v37 = vpop.permute.xlu1 %8296  ;;  %8378 = vmatpush1.bf16.msra.mxu1 %v8372_v43  ;;  %8341 = vmatprep.mubr.bf16.mxu0 %v11209_v19  ;;  %vm12948_vm3 = vmmov %vm12937_vm0  ;;  %vm12952_vm0 = vcmask 1039360  }
0x18d1   : > { %v8299_v48 = vsel %vm12938_vm9, %v8295_v32, %v8297_v37  ;;  %8409 = vmatprep.mubr.bf16.mxu1 %v11209_v19  ;;  %vm12949_vm5 = vmmov %vm12942_vm4 }
0x18d2   : > { %9807 = vmatprep.subr.msk.bf16.mxu0 %vm12940_vm6, %v8299_v48  ;;  %vm12953_vm9 = vmmov %vm12952_vm0 }
0x18d3   : > { %8310 = vmatpush1.bf16.msra.mxu0 %v8304_v49  ;;  %vm12954_vm10 = vmmov %vm12948_vm3 }
0x18d4   : > { %vm12955_vm6 = vmmov %vm12948_vm3 }
0x18d6   : > { %9808 = vmatmul.mubr.msk.bf16.vlgmr.msra.gmra.mrb[160].mxu0 %vm12941_vm14, %v9806_v50  ;;  %vm12956_vm14 = vcmask 1031168  }
0x18d7   : > { %9811 = vmatmul.mubr.msk.bf16.vlgmr.msra.gmra.mrb[180].mxu1 %vm12942_vm4, %v9809_v54  ;;  %8506 = vmatprep.mubr.bf16.mxu0 %v11209_v19  ;;  %vm12957_vm4 = vmmov %vm12956_vm14 }
0x18d8   : > { %8556 = vmatprep.mubr.bf16.mxu1 %v11209_v19 }
0x195d   : > { %v7414_v44 = vpop.f32.mrb[132].mxu0 }
0x195e   : > { %v7416_v56 = vpop.f32.mrb[133].mxu0 }
0x195f   : > { %v7418_v57 = vpop.f32.mrb[134].mxu0 }
0x1960   : > { %v7419_v55 = vpop.f32.mrb[135].mxu0 }
0x1961   : > { %v7294_v51 = vpop.f32.mrb[144].mxu1 }
0x1962   : > { %v7296_v60 = vpop.f32.mrb[145].mxu1 }
0x1963   : > { %v7298_v61 = vpop.f32.mrb[146].mxu1 }
0x1964   : > { %v7299_v30 = vpop.f32.mrb[147].mxu1 }
0x1969   : > { %v7338_v62 = vpop.f32.mrb[148].mxu1 }
0x196a   : > { %v7339_v63 = vadd.f32 %v7338_v62, %v7294_v51  ;;  %v7340_v0 = vpop.f32.mrb[149].mxu1 }
0x196b   : > { %v7341_v1 = vadd.f32 %v7340_v0, %v7296_v60  ;;  %v7342_v3 = vpop.f32.mrb[150].mxu1 }
0x196c   : > { %v7421_v5 = vadd.f32 %v7414_v44, %v7339_v63  ;;  %v7343_v6 = vpop.f32.mrb[151].mxu1 }
0x196d   : > { %v7422_v7 = vadd.f32 %v7416_v56, %v7341_v1 }
0x1971   : > { %v7488_v53 = vpop.f32.mrb[152].mxu1 }
0x1972   : > { %v7495_v9 = vadd.f32 %v7488_v53, %v7421_v5  ;;  %v7490_v2 = vpop.f32.mrb[153].mxu1 }
0x1973   : > { %v7496_v59 = vadd.f32 %v7490_v2, %v7422_v7  ;;  %v7492_v10 = vpop.f32.mrb[154].mxu1 }
0x1974   : > { %v7493_v13 = vpop.f32.mrb[155].mxu1 }
0x1979   : > { %v7546_v34 = vpop.f32.mrb[136].mxu0  ;;  %v7620_v35 = vpop.f32.mrb[156].mxu1 }
0x197a   : > { %v7553_v14 = vadd.f32 %v7546_v34, %v7495_v9  ;;  %v7548_v8 = vpop.f32.mrb[137].mxu0  ;;  %v7622_v15 = vpop.f32.mrb[157].mxu1 }
0x197b   : > { %v7554_v16 = vadd.f32 %v7548_v8, %v7496_v59  ;;  %v7550_v17 = vpop.f32.mrb[138].mxu0  ;;  %v7624_v18 = vpop.f32.mrb[158].mxu1 }
0x197c   : > { %v7627_v20 = vadd.f32 %v7620_v35, %v7553_v14  ;;  %v7551_v22 = vpop.f32.mrb[139].mxu0  ;;  %v7625_v23 = vpop.f32.mrb[159].mxu1 }
0x197d   : > { %v7628_v52 = vadd.f32 %v7622_v15, %v7554_v16 }
0x1981   : > { %v7694_v41 = vpop.f32.mrb[140].mxu0  ;;  %v7752_v39 = vpop.f32.mrb[160].mxu1 }
0x1982   : > { %v7701_v24 = vadd.f32 %v7694_v41, %v7627_v20  ;;  %v7696_v25 = vpop.f32.mrb[141].mxu0  ;;  %v7754_v26 = vpop.f32.mrb[161].mxu1 }
0x1983   : > { %v7702_v4 = vadd.f32 %v7696_v25, %v7628_v52  ;;  %v7698_v27 = vpop.f32.mrb[142].mxu0  ;;  %v7756_v58 = vpop.f32.mrb[162].mxu1 }
0x1984   : > { %v7759_v28 = vadd.f32 %v7752_v39, %v7701_v24  ;;  %v7699_v29 = vpop.f32.mrb[143].mxu0  ;;  %v7757_v21 = vpop.f32.mrb[163].mxu1 }
0x1985   : > { %v7760_v40 = vadd.f32 %v7754_v26, %v7702_v4 }
0x1989   : > { %v7826_v31 = vpop.f32.mrb[144].mxu0  ;;  %v7899_v32 = vpop.f32.mrb[164].mxu1 }
0x198a   : > { %v7833_v33 = vadd.f32 %v7826_v31, %v7759_v28  ;;  %v7828_v42 = vpop.f32.mrb[145].mxu0  ;;  %v7901_v45 = vpop.f32.mrb[165].mxu1 }
0x198b   : > { %v7834_v46 = vadd.f32 %v7828_v42, %v7760_v40  ;;  %v7830_v47 = vpop.f32.mrb[146].mxu0  ;;  %v7903_v43 = vpop.f32.mrb[166].mxu1 }
0x198c   : > { %v7831_v37 = vpop.f32.mrb[147].mxu0  ;;  %v7904_v48 = vpop.f32.mrb[167].mxu1 }
0x198d   : > { %v8426_v31 = vpop.permute.xlu0 %8425 }
0x1991   : > { %v7949_v49 = vpop.f32.mrb[148].mxu0  ;;  %v8015_v50 = vpop.f32.mrb[168].mxu1 }
0x1992   : > { %v7950_v54 = vadd.f32 %v7949_v49, %v7899_v32  ;;  %v7951_v44 = vpop.f32.mrb[149].mxu0  ;;  %v8017_v56 = vpop.f32.mrb[169].mxu1 }
0x1993   : > { %v7952_v57 = vadd.f32 %v7951_v44, %v7901_v45  ;;  %v7953_v55 = vpop.f32.mrb[150].mxu0  ;;  %v8019_v51 = vpop.f32.mrb[170].mxu1 }
0x1994   : > { %v8022_v60 = vadd.f32 %v8015_v50, %v7950_v54  ;;  %v7954_v61 = vpop.f32.mrb[151].mxu0  ;;  %v8020_v30 = vpop.f32.mrb[171].mxu1 }
0x1995   : > { %v8023_v62 = vadd.f32 %v8017_v56, %v7952_v57 }
0x1999   : > { %v8083_v63 = vpop.f32.mrb[152].mxu0  ;;  %v8145_v0 = vpop.f32.mrb[172].mxu1 }
0x199a   : > { %v8090_v1 = vadd.f32 %v8083_v63, %v8022_v60  ;;  %v8085_v3 = vpop.f32.mrb[153].mxu0  ;;  %v8147_v5 = vpop.f32.mrb[173].mxu1  ;;  %v8446_v63 = vld [vmem:[%s12945_s4] sm:$0xf] }
0x199b   : > { %v8091_v6 = vadd.f32 %v8085_v3, %v8023_v62  ;;  %v8087_v7 = vpop.f32.mrb[154].mxu0  ;;  %v8149_v53 = vpop.f32.mrb[174].mxu1 }
0x199c   : > { %v8152_v9 = vadd.f32 %v8145_v0, %v8090_v1  ;;  %v8088_v2 = vpop.f32.mrb[155].mxu0  ;;  %v8150_v59 = vpop.f32.mrb[175].mxu1  ;;  %v9044_v1 = vld [vmem:[%s12951_s5] sm:$0x7]  ;;  %s12990_s5 = sld [smem:[#allocation14_spill]] }
0x199d   : > { %v8153_v10 = vadd.f32 %v8147_v5, %v8091_v6 }
0x19a1   : > { %v8213_v13 = vpop.f32.mrb[156].mxu0 }
0x19a2   : > { %v8220_v34 = vadd.f32 %v8213_v13, %v8152_v9  ;;  %v8215_v35 = vpop.f32.mrb[157].mxu0  ;;  %v8281_v14 = vpop.f32.mrb[176].mxu1 }
0x19a3   : > { %v8221_v8 = vadd.f32 %v8215_v35, %v8153_v10  ;;  %v8217_v15 = vpop.f32.mrb[158].mxu0  ;;  %v8283_v16 = vpop.f32.mrb[177].mxu1 }
0x19a4   : > { %v8288_v17 = vadd.f32 %v8281_v14, %v8220_v34  ;;  %v8218_v18 = vpop.f32.mrb[159].mxu0  ;;  %v8285_v20 = vpop.f32.mrb[178].mxu1  ;;  %v9812_v34 = vld [vmem:[%s12945_s4 + $0x4] sm:$0xf] }
0x19a5   : > { %v8289_v22 = vadd.f32 %v8283_v16, %v8221_v8  ;;  %v8286_v23 = vpop.f32.mrb[179].mxu1 }
0x19a9   : > { %v8343_v52 = vpop.f32.mrb[160].mxu0 }
0x19aa   : > { %v8350_v41 = vadd.f32 %v8343_v52, %v8288_v17  ;;  %v8345_v39 = vpop.f32.mrb[161].mxu0  ;;  %v8411_v24 = vpop.f32.mrb[180].mxu1 }
0x19ab   : > { %v8351_v25 = vadd.f32 %v8345_v39, %v8289_v22  ;;  %v8347_v26 = vpop.f32.mrb[162].mxu0  ;;  %v8413_v4 = vpop.f32.mrb[181].mxu1 }
0x19ac   : > { %v8418_v27 = vadd.f32 %v8411_v24, %v8350_v41  ;;  %v8348_v58 = vpop.f32.mrb[163].mxu0  ;;  %v8415_v28 = vpop.f32.mrb[182].mxu1 }
0x19ad   : > { %v8419_v29 = vadd.f32 %v8413_v4, %v8351_v25  ;;  %v8416_v21 = vpop.f32.mrb[183].mxu1  ;;  %v9817_v58 = vld [vmem:[%s12945_s4 + $0x8] sm:$0xf] }
0x19ae   : > { %v8420_v40 = vadd.f32 %v8418_v27, %v7833_v33 }
0x19af   : > { %v8421_v32 = vadd.f32 %v8419_v29, %v7834_v46 }
0x19b0   : > { %v8428_v42 = vadd.f32 %v8426_v31, %v8420_v40 }
0x19b1   : > { %v8429_v45 = vadd.f32 %v8426_v31, %v8421_v32  ;;  %v9820_v32 = vld [vmem:[%s12945_s4 + $0xc] sm:$0xf] }
0x19b2   : > { %v8430_v47 = vmax.f32 %v8428_v42, 0.0 }
0x19b3   : > { %v8431_v43 = vmax.f32 %v8429_v45, 0.0 }
0x19b5   : > { %v11026_v37 = vpack.i.bf16 %v8431_v43, %v8430_v47 }
0x19b7   : > { %11027 = vrot.lane.b32.xlu1 %v11026_v37, %s12853_s0  ;;  %s12950_s0 = sld [smem:[#allocation13_spill]] }
0x19bd   : > { %v9031_v0 = vld [vmem:[%s12950_s0] sm:$0xff] }
0x1a29   : > { %v11028_v48 = vpop.permute.xlu1 %11027 }
0x1a2a   : > { %v11030_v49 = vunpack.i.h.bf16 %v11028_v48  ;;  %v11029_v50 = vunpack.i.l.bf16 %v11028_v48 }
0x1a2c   : > { %v8438_v54 = vsel %vm12943_vm13, %v11029_v50, %v11030_v49  ;;  %v8442_v44 = vsel %vm12944_vm11, 0.0, %v11029_v50  ;;  %v8443_v55 = vsel %vm12946_vm12, %v11030_v49, 0.0  ;;  %vm12958_vm13 = vmmov %vm12949_vm5  ;;  %vm12959_vm11 = vcmask 916480  }
0x1a2d   : > { %v8451_v56 = vpack.c.bf16 %v8442_v44, %v8442_v44  ;;  %v8452_v57 = vpack.c.bf16 %v8438_v54, %v8438_v54  ;;  %v8445_v33 = vsel %vm11407_vm1, %v8438_v54, 0.0  ;;  %v8444_v46 = vsel %vm11413_vm2, %v8442_v44, 0.0  ;;  %vm12960_vm12 = vmmov %vm12959_vm11 }
0x1a2e   : > { %v8448_v51 = vpack.c.bf16 %v8445_v33, %v8445_v33  ;;  %v8447_v60 = vpack.c.bf16 %v8444_v46, %v8444_v46  ;;  %v8453_v30 = vpack.c.bf16 %v8443_v55, %v8443_v55  ;;  %v11031_v62 = vpack.i.bf16 %v8438_v54, %v8442_v44 }
0x1a2f   : > { %8457 = vrot.lane.b32.xlu0 %v8451_v56, %s12864_s3  ;;  %8459 = vrot.lane.b32.xlu1 %v8452_v57, %s12864_s3 }
0x1a30   : > { %9815 = vmatprep.subr.msk.bf16.mxu1 %vm12947_vm15, %v8448_v51  ;;  %v8519_v61 = vsel %vm12948_vm3, %v8447_v60, 0  ;;  %vm12961_vm15 = vmmov %vm12948_vm3 }
0x1a31   : > { %8525 = vmatpush1.bf16.msra.mxu1 %v8519_v61  ;;  %v9826_v61 = vld [vmem:[%s12945_s4 + $0x14] sm:$0xf] }
0x1a33   : > { %8461 = vrot.lane.b32.xlu0 %v8453_v30, %s12864_s3  ;;  %11032 = vrot.lane.b32.xlu1 %v11031_v62, %s12859_s18  ;;  %s12994_s3 = sshll.u32 %s12996_s10, 3 }
0x1a34   : > { %9816 = vmatmul.mubr.msk.bf16.vlgmr.msra.gmra.mrb[184].mxu1 %vm12949_vm5, %v8446_v63  ;;  %vm12962_vm5 = vmmov %vm12948_vm3 }
0x1a35   : > { %8692 = vmatprep.mubr.bf16.mxu1 %v11209_v19 }
0x1a37   : > { %8571 = vrot.lane.b32.xlu0 %v8443_v55, %s12859_s18  ;;  %11037 = vrot.lane.b32.xlu1 %v11031_v62, %s12850_s2 }
0x1a3b   : > { %8639 = vrot.lane.b32.xlu0 %v8443_v55, %s12850_s2  ;;  %8705 = vrot.lane.b32.xlu1 %v8451_v56, %s12844_s26 }
0x1a3f   : > { %11042 = vrot.lane.b32.xlu0 %v11031_v62, %s12845_s28  ;;  %8709 = vrot.lane.b32.xlu1 %v8453_v30, %s12844_s26 }
0x1a43   : > { %8707 = vrot.lane.b32.xlu0 %v8452_v57, %s12844_s26  ;;  %8769 = vrot.lane.b32.xlu1 %v8443_v55, %s12845_s28 }
0x1a47   : > { %11047 = vrot.lane.b32.xlu0 %v11031_v62, %s12861_s11  ;;  %8837 = vrot.lane.b32.xlu1 %v8443_v55, %s12861_s11 }
0x1a4b   : > { %11052 = vrot.lane.b32.xlu0 %v11031_v62, %s12863_s1  ;;  %8967 = vrot.lane.b32.xlu1 %v8443_v55, %s12863_s1 }
0x1a4f   : > { %8903 = vrot.lane.b32.xlu0 %v8451_v56, %s12862_s16  ;;  %8905 = vrot.lane.b32.xlu1 %v8452_v57, %s12862_s16  ;;  %v9823_v57 = vld [vmem:[%s12945_s4 + $0x10] sm:$0xf] }
0x1a53   : > { %8907 = vrot.lane.b32.xlu0 %v8453_v30, %s12862_s16  ;;  %9034 = vperm.xlu1 %10665, %v9031_v0   ;;  %s902_s16 = scalar_lea.vmem %s11381_s6, %s12994_s3 }
0x1a57   : > { %9047 = vperm.xlu0 %10619, %v9044_v1  }
0x1aa1   : > { %v8458_v3 = vpop.permute.xlu0 %8457  ;;  %v8460_v5 = vpop.permute.xlu1 %8459 }
0x1aa2   : > { %v8463_v6 = vsel %vm12952_vm0, %v8458_v3, %v8460_v5  ;;  %vm12963_vm0 = vmmov %vm12948_vm3 }
0x1aa3   : > { %v8469_v10 = vsel %vm12954_vm10, %v8463_v6, 0  ;;  %vm12965_vm10 = vcmask 900096  }
0x1aa5   : > { %v8462_v7 = vpop.permute.xlu0 %8461  ;;  %v11033_v53 = vpop.permute.xlu1 %11032 }
0x1aa6   : > { %v8464_v9 = vsel %vm12953_vm9, %v8460_v5, %v8462_v7  ;;  %v11035_v2 = vunpack.i.h.bf16 %v11033_v53  ;;  %v11034_v59 = vunpack.i.l.bf16 %v11033_v53  ;;  %vm12964_vm9 = vmmov %vm12958_vm13 }
0x1aa7   : > { %9813 = vmatprep.subr.msk.bf16.mxu0 %vm12955_vm6, %v8464_v9  ;;  %vm12966_vm6 = vcmask 908288  }
0x1aa8   : > { %v8573_v13 = vsel %vm12956_vm14, %v11034_v59, %v11035_v2  ;;  %8475 = vmatpush1.bf16.msra.mxu0 %v8469_v10  ;;  %vm12967_vm14 = vmmov %vm12966_vm6 }
0x1aa9   : > { %v8572_v35 = vpop.permute.xlu0 %8571  ;;  %v11038_v14 = vpop.permute.xlu1 %11037  ;;  %v8577_v8 = vsel %vm11457_vm7, %v8573_v13, 0.0  ;;  %v9829_v13 = vld [vmem:[%s12945_s4 + $0x18] sm:$0xf] }
0x1aaa   : > { %v8574_v15 = vsel %vm12957_vm4, %v11035_v2, %v8572_v35  ;;  %v11040_v16 = vunpack.i.h.bf16 %v11038_v14  ;;  %v11039_v17 = vunpack.i.l.bf16 %v11038_v14  ;;  %v8581_v18 = vpack.c.bf16 %v8577_v8, %v8577_v8  ;;  %vm12968_vm4 = vmmov %vm12965_vm10 }
0x1aab   : > { %v8578_v20 = vsel %vm11465_vm8, %v8574_v15, 0.0  ;;  %9814 = vmatmul.mubr.msk.bf16.vlgmr.msra.gmra.mrb[164].mxu0 %vm12958_vm13, %v9812_v34  ;;  %vm12969_vm13 = vmmov %vm12964_vm9 }
0x1aac   : > { %v8582_v22 = vpack.c.bf16 %v8578_v20, %v8578_v20  ;;  %v8641_v23 = vsel %vm12959_vm11, %v11039_v17, %v11040_v16  ;;  %8624 = vmatprep.mubr.bf16.mxu0 %v11209_v19  ;;  %v8587_v25 = vsel %vm12948_vm3, %v8581_v18, 0  ;;  %vm12970_vm11 = vmmov %vm12963_vm0  ;;  %v9832_v17 = vld [vmem:[%s12945_s4 + $0x1c] sm:$0xf]  ;;  %v9835_v18 = vld [vmem:[%s12945_s4 + $0x20] sm:$0xf] }
0x1aad   : > { %v8640_v52 = vpop.permute.xlu0 %8639  ;;  %v8706_v41 = vpop.permute.xlu1 %8705  ;;  %v8645_v39 = vsel %vm11413_vm2, %v8641_v23, 0.0  ;;  %vm12973_vm3 = vmmov %vm12963_vm0 }
0x1aae   : > { %v8642_v24 = vsel %vm12960_vm12, %v11040_v16, %v8640_v52  ;;  %9818 = vmatprep.subr.msk.bf16.mxu0 %vm12961_vm15, %v8582_v22  ;;  %v8649_v26 = vpack.c.bf16 %v8645_v39, %v8645_v39  ;;  %vm12971_vm12 = vmmov %vm12963_vm0 }
0x1aaf   : > { %v8646_v4 = vsel %vm11407_vm1, %v8642_v24, 0.0  ;;  %8593 = vmatpush1.bf16.msra.mxu0 %v8587_v25  ;;  %vm12972_vm15 = vmmov %vm12963_vm0 }
0x1ab0   : > { %v8650_v27 = vpack.c.bf16 %v8646_v4, %v8646_v4  ;;  %v8655_v31 = vsel %vm12963_vm0, %v8649_v26, 0  ;;  %vm12975_vm0 = vcmask 785408  }
0x1ab1   : > { %v11043_v28 = vpop.permute.xlu0 %11042  ;;  %v8710_v29 = vpop.permute.xlu1 %8709 }
0x1ab2   : > { %v11045_v21 = vunpack.i.h.bf16 %v11043_v28  ;;  %v11044_v40 = vunpack.i.l.bf16 %v11043_v28  ;;  %9821 = vmatprep.subr.msk.bf16.mxu1 %vm12962_vm5, %v8650_v27  ;;  %vm12974_vm5 = vmmov %vm12964_vm9 }
0x1ab3   : > { %9819 = vmatmul.mubr.msk.bf16.vlgmr.msra.gmra.mrb[168].mxu0 %vm12964_vm9, %v9817_v58  ;;  %8661 = vmatpush1.bf16.msra.mxu1 %v8655_v31  ;;  %vm12976_vm9 = vmmov %vm12975_vm0 }
0x1ab4   : > { %v8771_v42 = vsel %vm12965_vm10, %v11044_v40, %v11045_v21  ;;  %8754 = vmatprep.mubr.bf16.mxu0 %v11209_v19  ;;  %vm12977_vm10 = vmmov %vm12974_vm5 }
0x1ab5   : > { %v8708_v45 = vpop.permute.xlu0 %8707  ;;  %v8770_v47 = vpop.permute.xlu1 %8769  ;;  %v8775_v43 = vsel %vm11457_vm7, %v8771_v42, 0.0 }
0x1ab6   : > { %v8711_v37 = vsel %vm12966_vm6, %v8706_v41, %v8708_v45  ;;  %v8712_v48 = vsel %vm12967_vm14, %v8708_v45, %v8710_v29  ;;  %v8772_v49 = vsel %vm12968_vm4, %v11045_v21, %v8770_v47  ;;  %9822 = vmatmul.mubr.msk.bf16.vlgmr.msra.gmra.mrb[188].mxu1 %vm12969_vm13, %v9820_v32  ;;  %v8779_v50 = vpack.c.bf16 %v8775_v43, %v8775_v43  ;;  %vm12980_vm4 = vmmov %vm12973_vm3 }
0x1ab7   : > { %v8717_v54 = vsel %vm12970_vm11, %v8711_v37, 0  ;;  %v8776_v44 = vsel %vm11465_vm8, %v8772_v49, 0.0  ;;  %9824 = vmatprep.subr.msk.bf16.mxu0 %vm12971_vm12, %v8712_v48  ;;  %8822 = vmatprep.mubr.bf16.mxu1 %v11209_v19  ;;  %vm12978_vm6 = vcmask 769024   ;;  %vm12983_vm13 = vmmov %vm12974_vm5 }
0x1ab8   : > { %v8780_v56 = vpack.c.bf16 %v8776_v44, %v8776_v44  ;;  %8723 = vmatpush1.bf16.msra.mxu0 %v8717_v54  ;;  %v8785_v60 = vsel %vm12973_vm3, %v8779_v50, 0  ;;  %vm12979_vm14 = vmmov %vm12978_vm6 }
0x1ab9   : > { %v11048_v33 = vpop.permute.xlu0 %11047  ;;  %v8838_v46 = vpop.permute.xlu1 %8837 }
0x1aba   : > { %v11050_v55 = vunpack.i.h.bf16 %v11048_v33  ;;  %v11049_v51 = vunpack.i.l.bf16 %v11048_v33  ;;  %9827 = vmatprep.subr.msk.bf16.mxu1 %vm12972_vm15, %v8780_v56 }
0x1abb   : > { %9825 = vmatmul.mubr.msk.bf16.vlgmr.msra.gmra.mrb[172].mxu0 %vm12974_vm5, %v9823_v57  ;;  %8791 = vmatpush1.bf16.msra.mxu1 %v8785_v60 }
0x1abc   : > { %v8839_v30 = vsel %vm12975_vm0, %v11049_v51, %v11050_v55  ;;  %v8840_v62 = vsel %vm12976_vm9, %v11050_v55, %v8838_v46  ;;  %8890 = vmatprep.mubr.bf16.mxu0 %v11209_v19 }
0x1abd   : > { %v8844_v63 = vsel %vm11407_vm1, %v8840_v62, 0.0  ;;  %v11053_v0 = vpop.permute.xlu0 %11052  ;;  %v8968_v1 = vpop.permute.xlu1 %8967  ;;  %v8843_v3 = vsel %vm11413_vm2, %v8839_v30, 0.0  ;;  %vm12981_vm1 = vmmov %vm12973_vm3  ;;  %vm12982_vm2 = vcmask 777216  }
0x1abe   : > { %v8848_v5 = vpack.c.bf16 %v8844_v63, %v8844_v63  ;;  %v11055_v6 = vunpack.i.h.bf16 %v11053_v0  ;;  %v11054_v7 = vunpack.i.l.bf16 %v11053_v0  ;;  %9828 = vmatmul.mubr.msk.bf16.vlgmr.msra.gmra.mrb[192].mxu1 %vm12977_vm10, %v9826_v61  ;;  %v8847_v53 = vpack.c.bf16 %v8843_v3, %v8843_v3  ;;  %vm12984_vm11 = vmmov %vm12981_vm1 }
0x1abf   : > { %8952 = vmatprep.mubr.bf16.mxu1 %v11209_v19  ;;  %vm12985_vm12 = vmmov %vm12981_vm1 }
0x1ac0   : > { %v8969_v9 = vsel %vm12978_vm6, %v11054_v7, %v11055_v6  ;;  %v8970_v2 = vsel %vm12979_vm14, %v11055_v6, %v8968_v1  ;;  %9830 = vmatprep.subr.msk.bf16.mxu0 %vm12980_vm4, %v8848_v5  ;;  %v8853_v11 = vsel %vm12981_vm1, %v8847_v53, 0  ;;  %vm12987_vm15 = vmmov %vm12981_vm1 }
0x1ac1   : > { %v8974_v12 = vsel %vm11465_vm8, %v8970_v2, 0.0  ;;  %v8904_v59 = vpop.permute.xlu0 %8903  ;;  %v8906_v10 = vpop.permute.xlu1 %8905  ;;  %8859 = vmatpush1.bf16.msra.mxu0 %v8853_v11  ;;  %v8973_v34 = vsel %vm11457_vm7, %v8969_v9, 0.0  ;;  %vm12986_vm8 = vmmov %vm12982_vm2 }
0x1ac2   : > { %v8978_v35 = vpack.c.bf16 %v8974_v12, %v8974_v12  ;;  %v8977_v14 = vpack.c.bf16 %v8973_v34, %v8973_v34  ;;  %v8909_v8 = vsel %vm12982_vm2, %v8904_v59, %v8906_v10  ;;  %vm12988_vm3 = vmmov %vm12981_vm1 }
0x1ac3   : > { %v8915_v36 = vsel %vm12987_vm15, %v8909_v8, 0  ;;  %vm12989_vm7 = vmmov %vm12974_vm5 }
0x1ac4   : > { %9831 = vmatmul.mubr.msk.bf16.vlgmr.msra.gmra.mrb[176].mxu0 %vm12983_vm13, %v9829_v13  ;;  %9836 = vmatprep.subr.msk.bf16.mxu0 %vm12984_vm11, %v8978_v35  ;;  %v8983_v38 = vsel %vm12985_vm12, %v8977_v14, 0  ;;  %vm12991_vm0 = vmmov %vm12981_vm1 }
0x1ac5   : > { %v8908_v15 = vpop.permute.xlu0 %8907  ;;  %8989 = vmatpush1.bf16.msra.mxu0 %v8983_v38  ;;  %9020 = vmatprep.mubr.bf16.mxu0 %v11209_v19  ;;  %vm12992_vm9 = vmmov %vm12991_vm0 }
0x1ac6   : > { %v8910_v16 = vsel %vm12986_vm8, %v8906_v10, %v8908_v15  ;;  %vm12993_vm10 = vmmov %vm12974_vm5 }
0x1ac7   : > { %9833 = vmatprep.subr.msk.bf16.mxu1 %vm12988_vm3, %v8910_v16  ;;  %v9041_v16 = vld [vmem:[%s12990_s5] sm:$0x3] }
0x1ac8   : > { %8921 = vmatpush1.bf16.msra.mxu1 %v8915_v36 }
0x1acb   : > { %9834 = vmatmul.mubr.msk.bf16.vlgmr.msra.gmra.mrb[196].mxu1 %vm12989_vm7, %v9832_v17 }
0x1acc   : > { %9837 = vmatmul.mubr.msk.bf16.vlgmr.msra.gmra.mrb[180].mxu0 %vm12974_vm5, %v9835_v18  ;;  %9091 = vmatprep.mubr.bf16.mxu1 %v11209_v19 }
0x1ad2   : > { %v9035_v12 = vpop.permute.xlu1 %9034 }
0x1ad6   : > { %v9048_v36 = vpop.permute.xlu0 %9047 }
0x1b07   : > { %v8558_v20 = vpop.f32.mrb[184].mxu1 }
0x1b08   : > { %v8560_v22 = vpop.f32.mrb[185].mxu1 }
0x1b09   : > { %v8562_v23 = vpop.f32.mrb[186].mxu1 }
0x1b0a   : > { %v8563_v52 = vpop.f32.mrb[187].mxu1 }
0x1b7e   : > { %v8508_v41 = vpop.f32.mrb[164].mxu0 }
0x1b7f   : > { %v8510_v39 = vpop.f32.mrb[165].mxu0  ;;  %v8559_v24 = vadd.f32 %v8558_v20, %v8508_v41 }
0x1b80   : > { %v8512_v25 = vpop.f32.mrb[166].mxu0  ;;  %v8561_v26 = vadd.f32 %v8560_v22, %v8510_v39 }
0x1b81   : > { %v8513_v4 = vpop.f32.mrb[167].mxu0 }
0x1b86   : > { %v8626_v27 = vpop.f32.mrb[168].mxu0 }
0x1b87   : > { %v8633_v58 = vadd.f32 %v8626_v27, %v8559_v24  ;;  %v8628_v28 = vpop.f32.mrb[169].mxu0 }
0x1b88   : > { %v8634_v29 = vadd.f32 %v8628_v28, %v8561_v26  ;;  %v8630_v21 = vpop.f32.mrb[170].mxu0 }
0x1b89   : > { %v8631_v40 = vpop.f32.mrb[171].mxu0  ;;  %v8694_v31 = vpop.f32.mrb[188].mxu1 }
0x1b8a   : > { %v8701_v32 = vadd.f32 %v8694_v31, %v8633_v58  ;;  %v8696_v42 = vpop.f32.mrb[189].mxu1 }
0x1b8b   : > { %v8702_v19 = vadd.f32 %v8696_v42, %v8634_v29  ;;  %v8698_v45 = vpop.f32.mrb[190].mxu1 }
0x1b8c   : > { %v8699_v47 = vpop.f32.mrb[191].mxu1 }
0x1b8e   : > { %v8756_v43 = vpop.f32.mrb[172].mxu0 }
0x1b8f   : > { %v8763_v37 = vadd.f32 %v8756_v43, %v8701_v32  ;;  %v8758_v48 = vpop.f32.mrb[173].mxu0 }
0x1b90   : > { %v8764_v49 = vadd.f32 %v8758_v48, %v8702_v19  ;;  %v8760_v50 = vpop.f32.mrb[174].mxu0 }
0x1b91   : > { %v8761_v54 = vpop.f32.mrb[175].mxu0  ;;  %v8824_v44 = vpop.f32.mrb[192].mxu1 }
0x1b92   : > { %v8831_v56 = vadd.f32 %v8824_v44, %v8763_v37  ;;  %v8826_v57 = vpop.f32.mrb[193].mxu1 }
0x1b93   : > { %v8832_v33 = vadd.f32 %v8826_v57, %v8764_v49  ;;  %v8828_v46 = vpop.f32.mrb[194].mxu1 }
0x1b94   : > { %v8829_v55 = vpop.f32.mrb[195].mxu1 }
0x1b97   : > { %v8892_v51 = vpop.f32.mrb[176].mxu0 }
0x1b98   : > { %v8899_v60 = vadd.f32 %v8892_v51, %v8831_v56  ;;  %v8894_v61 = vpop.f32.mrb[177].mxu0 }
0x1b99   : > { %v8900_v30 = vadd.f32 %v8894_v61, %v8832_v33  ;;  %v8896_v62 = vpop.f32.mrb[178].mxu0 }
0x1b9a   : > { %v8897_v63 = vpop.f32.mrb[179].mxu0 }
0x1b9e   : > { %v8954_v0 = vpop.f32.mrb[196].mxu1 }
0x1b9f   : > { %v8961_v1 = vadd.f32 %v8954_v0, %v8899_v60  ;;  %v8956_v3 = vpop.f32.mrb[197].mxu1  ;;  %v9022_v5 = vpop.f32.mrb[180].mxu0 }
0x1ba0   : > { %v8962_v6 = vadd.f32 %v8956_v3, %v8900_v30  ;;  %v8958_v7 = vpop.f32.mrb[198].mxu1  ;;  %v9024_v53 = vpop.f32.mrb[181].mxu0 }
0x1ba1   : > { %v9029_v9 = vadd.f32 %v9022_v5, %v8961_v1  ;;  %v8959_v2 = vpop.f32.mrb[199].mxu1  ;;  %v9026_v11 = vpop.f32.mrb[182].mxu0 }
0x1ba2   : > { %v9030_v59 = vadd.f32 %v9024_v53, %v8962_v6  ;;  %v9027_v10 = vpop.f32.mrb[183].mxu0 }
0x1ba3   : > { %v9037_v13 = vadd.f32 %v9035_v12, %v9029_v9 }
0x1ba4   : > { %v9038_v34 = vadd.f32 %v9035_v12, %v9030_v59 }
0x1ba5   : > { %v9039_v35 = vmax.f32 %v9037_v13, 0.0 }
0x1ba6   : > { %v9040_v14 = vmax.f32 %v9038_v34, 0.0 }
0x1ba7   : > { %v9042_v8 = vpack.c.bf16 %v9039_v35, %v9039_v35 }
0x1ba8   : > { %v9043_v38 = vpack.c.bf16 %v9040_v14, %v9040_v14 }
0x1ba9   : > { %v9054_v15 = vsel %vm12991_vm0, %v9042_v8, 0 }
0x1baa   : > { %9838 = vmatprep.subr.msk.bf16.mxu1 %vm12992_vm9, %v9043_v38 }
0x1bab   : > { %9060 = vmatpush1.bf16.msra.mxu1 %v9054_v15 }
0x1bae   : > { %9839 = vmatmul.mubr.msk.bf16.vlgmr.msra.gmra.mrb[200].mxu1 %vm12993_vm10, %v9041_v16 }
0x1c81   : > { %v9093_v17 = vpop.f32.mrb[200].mxu1 }
0x1c82   : > { %v9094_v18 = vadd.f32 %v9093_v17, %v9048_v36  ;;  %v9095_v20 = vpop.f32.mrb[201].mxu1 }
0x1c83   : > { %v9096_v22 = vadd.f32 %v9095_v20, %v9048_v36  ;;  %v9097_v23 = vpop.f32.mrb[202].mxu1 }
0x1c84   : > { %v9098_v52 = vpop.f32.mrb[203].mxu1 }
0x1c85   : > { %v9102_v41 = vcombine.low %v9094_v18, %v9096_v22 }
0x1c87   : > { %9104 = vst [vmem:[%s902_s16] sm:$0x77] %v9102_v41 }
0x1c88 PF: > { %s69_s7 = sadd.s32 1, %s11177_s7  }
0x1c89   : > { %p66_p4 = scmp.ge.s32.totalorder %s69_s7, 4  }
0x1c8b   :  { %68 = sbr.rel (!%p66_p4) target bundleno = 50 (0x32), region = 291 }

</bundles_post_ra>
